<compile_context>
chip_gen: v6e
topology: v6e:2x2x1
jax: 0.10.0
libtpu: 0.0.40
codegen_flags: <defaults>
</compile_context>

<pallas_src>
import numpy as np
import jax
import jax.numpy as jnp
from jax import lax
from jax.experimental import pallas as pl
from jax.experimental.pallas import tpu as pltpu

EPS = 1e-5

# ---- conv-stack geometry (fixed by the module: 3 x [Conv1d(k=5,s=1)+BN+ReLU+MaxPool1d(3)])
L_IN = 6370                 # implied by Linear(6318,1024): 27 * 234 = 6318
L_OUT = 234                 # final per-channel length
N_OFF = 81                  # input offsets per output column (receptive field 79)
N_OFF_PAD = 96              # padded to a multiple of 16 (bf16 sublane packing)
N_POS = {1: 25, 2: 7, 3: 1}
C_OUT = {1: 3, 2: 9, 3: 27}
C3 = 27
RP = {1: 80, 2: 64, 3: 32}  # per-phase row count (N_POS*C_OUT) padded to a multiple of 16
JT = 256                    # conv lane tile (parallel grid axis)

# ---- FC geometry ----
K_FC = C3 * L_OUT           # 6318
KP = 6400                   # fc1 K padded to a multiple of 128
TK = 3200                   # 128-aligned K tile -> 2 K-steps (bf16 tile 6.55 MB, dbl-buffered)
N1, N2 = 1024, 256
N3P, N4P = 128, 128         # fc3/fc4 widths lane-padded to 128

VMEM_LIMIT = 32 * 1024 * 1024   # explicit scoped-VMEM limit (safe on v5e/v6e/v7x)


# ----------------------------------------------------------------------------
# Pallas kernels
# ----------------------------------------------------------------------------
def conv_stack_kernel(a0_ref, w1_ref, s1_ref, w2_ref, s2_ref, w3_ref, s3_ref, o_ref):
    """Fused 3x (Conv1d(k=5) + BN(eval) + ReLU + MaxPool1d(3)) on one lane tile.

    a0_ref : (96, JT) bf16     input window slab tile
    wL_ref : (3*RP[L], K_L)    bf16 stacked per-phase banded weights (BN scale folded in)
    sL_ref : (RP[L], 1) f32    per-row shift (conv bias + BN shift), zero in padded rows
    o_ref  : (32, JT) bf16
    """
    def stage(w_ref, s_ref, h, rp):
        z = jnp.dot(w_ref[...], h, preferred_element_type=jnp.float32)    # (3*rp, JT)
        z = jnp.maximum(jnp.maximum(z[:rp], z[rp:2 * rp]), z[2 * rp:])    # MaxPool1d(3)
        return jnp.maximum(z + s_ref[...], 0.0).astype(jnp.bfloat16)      # +shift, ReLU

    h = stage(w1_ref, s1_ref, a0_ref[...], RP[1])
    h = stage(w2_ref, s2_ref, h, RP[2])
    o_ref[...] = stage(w3_ref, s3_ref, h, RP[3])


def fc_fused_kernel(x_ref, w1_ref, b1_ref, w2_ref, b2_ref, w3_ref, b3_ref,
                    w4_ref, b4_ref, o_ref, acc_ref):
    """Single-call FC head (1-TensorCore chips).  Grid axis = fc1 K tiles; fc2-4 tail
    runs inside the last step."""
    k = pl.program_id(0)

    @pl.when(k == 0)
    def _():
        acc_ref[...] = jnp.broadcast_to(b1_ref[...], acc_ref.shape)

    acc_ref[...] += jnp.dot(x_ref[...], w1_ref[...], preferred_element_type=jnp.float32)

    @pl.when(k == pl.num_programs(0) - 1)
    def _():
        h = jnp.maximum(acc_ref[...], 0.0).astype(jnp.bfloat16)                   # fc1+ReLU
        h = jnp.maximum(jnp.dot(h, w2_ref[...], preferred_element_type=jnp.float32)
                        + b2_ref[...], 0.0)                                        # fc2+ReLU
        h = jnp.maximum(jnp.dot(h, w3_ref[...], preferred_element_type=jnp.float32)
                        + b3_ref[...], 0.0)                                        # fc3+ReLU
        o_ref[...] = (jnp.dot(h, w4_ref[...], preferred_element_type=jnp.float32)
                      + b4_ref[...])                                               # fc4


def fc1_split_kernel(x_ref, w1_ref, b1_ref, h_ref, acc_ref):
    """fc1 with the N axis split over a 'parallel' grid axis (v7x dual-TensorCore)."""
    k = pl.program_id(1)

    @pl.when(k == 0)
    def _():
        acc_ref[...] = jnp.broadcast_to(b1_ref[...], acc_ref.shape)

    acc_ref[...] += jnp.dot(x_ref[...], w1_ref[...], preferred_element_type=jnp.float32)

    @pl.when(k == pl.num_programs(1) - 1)
    def _():
        h_ref[...] = jnp.maximum(acc_ref[...], 0.0).astype(h_ref.dtype)


def fc_tail_kernel(h_ref, w2_ref, b2_ref, w3_ref, b3_ref, w4_ref, b4_ref, o_ref):
    """Tiny fc2-4 tail (only used with the dual-TensorCore fc1 split)."""
    h = jnp.maximum(jnp.dot(h_ref[...], w2_ref[...], preferred_element_type=jnp.float32)
                    + b2_ref[...], 0.0)
    h = jnp.maximum(jnp.dot(h, w3_ref[...], preferred_element_type=jnp.float32)
                    + b3_ref[...], 0.0)
    o_ref[...] = (jnp.dot(h, w4_ref[...], preferred_element_type=jnp.float32)
                  + b4_ref[...])


# ----------------------------------------------------------------------------
# Wrappers
# ----------------------------------------------------------------------------
def conv_stack(prep, x):
    """x: (B, 1, 6370) -> (B, 6400) bf16 (flattened conv output, zero-padded K)."""
    B = x.shape[0]
    assert x.shape[1] == 1 and x.shape[2] == L_IN, x.shape
    nj = B * L_OUT
    jp = -(-nj // JT) * JT                               # lane-dense, multiple of JT

    # A0[o, b*234 + j] = x[b, 27*j + o],  o in [0, 81)  (built from a few tiny XLA ops)
    xp = jnp.pad(x[:, 0, :], ((0, 0), (0, 27 * (L_OUT + 2) - L_IN)))      # (B, 6372)
    xr = xp.reshape(B, L_OUT + 2, 27)
    a0 = jnp.concatenate([xr[:, s:s + L_OUT, :] for s in range(3)], axis=2)  # (B,234,81)
    a0 = a0.transpose(2, 0, 1).reshape(N_OFF, nj)
    a0 = jnp.pad(a0, ((0, N_OFF_PAD - N_OFF), (0, jp - nj))).astype(jnp.bfloat16)

    out = pl.pallas_call(
        conv_stack_kernel,
        out_shape=jax.ShapeDtypeStruct((RP[3], jp), jnp.bfloat16),
        grid_spec=pltpu.PrefetchScalarGridSpec(
            num_scalar_prefetch=0,
            grid=(jp // JT,),
            in_specs=[
                pl.BlockSpec((N_OFF_PAD, JT), lambda j: (0, j)),        # a0 lane tile
                pl.BlockSpec((3 * RP[1], N_OFF_PAD), lambda j: (0, 0)),  # band 1 (resident)
                pl.BlockSpec((RP[1], 1), lambda j: (0, 0)),
                pl.BlockSpec((3 * RP[2], RP[1]), lambda j: (0, 0)),      # band 2
                pl.BlockSpec((RP[2], 1), lambda j: (0, 0)),
                pl.BlockSpec((3 * RP[3], RP[2]), lambda j: (0, 0)),      # band 3
                pl.BlockSpec((RP[3], 1), lambda j: (0, 0)),
            ],
            out_specs=pl.BlockSpec((RP[3], JT), lambda j: (0, j)),
        ),
        compiler_params=pltpu.CompilerParams(dimension_semantics=("parallel",)),
    )(a0, prep["cw1"], prep["cs1"], prep["cw2"], prep["cs2"], prep["cw3"], prep["cs3"])

    # small bf16 glue: (27, B*234) -> (B, 6318) -> pad to (B, 6400)
    h = out[:C3, :nj].reshape(C3, B, L_OUT).transpose(1, 0, 2).reshape(B, K_FC)
    return jnp.pad(h, ((0, 0), (0, KP - K_FC)))


def fc_stack(prep, hp, nsplit):
    """hp: (B, 6400) bf16 -> (B, 12)."""
    B = hp.shape[0]

    if nsplit <= 1:
        # Single fused call: fc1 K-pipelined, fc2-4 tail in the last grid step.
        out = pl.pallas_call(
            fc_fused_kernel,
            out_shape=jax.ShapeDtypeStruct((B, N4P), jnp.float32),
            grid_spec=pltpu.PrefetchScalarGridSpec(
                num_scalar_prefetch=0,
                grid=(KP // TK,),
                in_specs=[
                    pl.BlockSpec((B, TK), lambda k: (0, k)),        # x tile (bf16)
                    pl.BlockSpec((TK, N1), lambda k: (k, 0)),       # fc1 weight tile (bf16)
                    pl.BlockSpec((1, N1), lambda k: (0, 0)),        # fc1 bias
                    pl.BlockSpec((N1, N2), lambda k: (0, 0)),       # fc2 weight (bf16, resident)
                    pl.BlockSpec((1, N2), lambda k: (0, 0)),
                    pl.BlockSpec((N2, N3P), lambda k: (0, 0)),      # fc3 weight (padded)
                    pl.BlockSpec((1, N3P), lambda k: (0, 0)),
                    pl.BlockSpec((N3P, N4P), lambda k: (0, 0)),     # fc4 weight (padded)
                    pl.BlockSpec((1, N4P), lambda k: (0, 0)),
                ],
                out_specs=pl.BlockSpec((B, N4P), lambda k: (0, 0)),
                scratch_shapes=[pltpu.VMEM((B, N1), jnp.float32)],
            ),
            compiler_params=pltpu.CompilerParams(
                dimension_semantics=("arbitrary",),
                vmem_limit_bytes=VMEM_LIMIT),
        )(hp, prep["fc1_w"], prep["fc1_b"], prep["fc2_w"], prep["fc2_b"],
          prep["fc3_w"], prep["fc3_b"], prep["fc4_w"], prep["fc4_b"])
        return out[:, :12]

    # Dual-TensorCore path (v7x): fc1 N-split across a "parallel" grid axis, then a
    # tiny fc2-4 tail call.  Each core streams half of the fc1 bf16 weight.
    nh = N1 // nsplit
    h1 = pl.pallas_call(
        fc1_split_kernel,
        out_shape=jax.ShapeDtypeStruct((B, N1), jnp.bfloat16),
        grid_spec=pltpu.PrefetchScalarGridSpec(
            num_scalar_prefetch=0,
            grid=(nsplit, KP // TK),
            in_specs=[
                pl.BlockSpec((B, TK), lambda i, k: (0, k)),
                pl.BlockSpec((TK, nh), lambda i, k: (k, i)),
                pl.BlockSpec((1, nh), lambda i, k: (0, i)),
            ],
            out_specs=pl.BlockSpec((B, nh), lambda i, k: (0, i)),
            scratch_shapes=[pltpu.VMEM((B, nh), jnp.float32)],
        ),
        compiler_params=pltpu.CompilerParams(
            dimension_semantics=("parallel", "arbitrary"),
            vmem_limit_bytes=VMEM_LIMIT),
    )(hp, prep["fc1_w"], prep["fc1_b"])

    vmem = pl.BlockSpec(memory_space=pltpu.MemorySpace.VMEM)
    out = pl.pallas_call(
        fc_tail_kernel,
        out_shape=jax.ShapeDtypeStruct((B, N4P), jnp.float32),
        in_specs=[vmem] * 7,
        out_specs=vmem,
    )(h1, prep["fc2_w"], prep["fc2_b"], prep["fc3_w"], prep["fc3_b"],
      prep["fc4_w"], prep["fc4_b"])
    return out[:, :12]


def _auto_nsplit():
    """fc1 N-split only on chips with two TensorCores per chip (v7x-class)."""
    try:
        kind = jax.devices()[0].device_kind.lower()
    except Exception:
        return 1
    return 2 if ("v7" in kind or "7x" in kind) else 1


def forward(prep, x, nsplit=None):
    if nsplit is None:
        nsplit = _auto_nsplit()
    return fc_stack(prep, conv_stack(prep, x), nsplit)


# ----------------------------------------------------------------------------
# Parameters (deterministic synthetic init), BN folding, kernel-side packing
# ----------------------------------------------------------------------------
def init_params(key):
    ks = iter(jax.random.split(key, 40))
    nrm = lambda shape, s: s * jax.random.normal(next(ks), shape, dtype=jnp.float32)
    raw = {}
    for i, (cin, cout) in enumerate([(1, 3), (3, 9), (9, 27)], start=1):
        fan = cin * 5
        raw[f"conv{i}_w"] = nrm((cout, cin, 5), 1.0 / (fan ** 0.5))
        raw[f"conv{i}_b"] = nrm((cout,), 0.05)
        raw[f"bn{i}_g"] = 1.0 + nrm((cout,), 0.1)
        raw[f"bn{i}_b"] = nrm((cout,), 0.1)
        raw[f"bn{i}_m"] = nrm((cout,), 0.1)
        raw[f"bn{i}_v"] = 1.0 + 0.1 * jnp.abs(jax.random.normal(next(ks), (cout,), jnp.float32))
    for i, (fin, fout) in enumerate([(K_FC, 1024), (1024, 256), (256, 64), (64, 12)], start=1):
        raw[f"fc{i}_w"] = nrm((fin, fout), 1.0 / (fin ** 0.5))
        raw[f"fc{i}_b"] = nrm((fout,), 0.05)
    return raw


def _fold_bn(raw, i):
    g = np.asarray(raw[f"bn{i}_g"]); b = np.asarray(raw[f"bn{i}_b"])
    m = np.asarray(raw[f"bn{i}_m"]); v = np.asarray(raw[f"bn{i}_v"])
    cb = np.asarray(raw[f"conv{i}_b"])
    inv = g / np.sqrt(v + EPS)
    return inv, b + inv * (cb - m)          # scale (into weights), shift (per channel)


def _make_band(w_scaled, n_pos, rp, n_cols_pad):
    """Stacked per-phase banded weight (3*rp, n_cols_pad):
       row r*rp + p*cout + co  <-  input column (3p + r + k)*cin + ci."""
    cout, cin, kw = w_scaled.shape
    W = np.zeros((3 * rp, n_cols_pad), np.float32)
    for r in range(3):
        for p in range(n_pos):
            for k in range(kw):
                c0 = (3 * p + r + k) * cin
                W[r * rp + p * cout: r * rp + (p + 1) * cout, c0:c0 + cin] = w_scaled[:, :, k]
    return W


def prepare_params(raw):
    """Eager one-time packing: BN folding, merged banded conv matrices (bf16),
    padded / cast FC weights."""
    prep = {}
    n_cols = {1: N_OFF_PAD, 2: RP[1], 3: RP[2]}
    for i in (1, 2, 3):
        scale, shift = _fold_bn(raw, i)
        w = np.asarray(raw[f"conv{i}_w"]) * scale[:, None, None]
        prep[f"cw{i}"] = jnp.asarray(_make_band(w, N_POS[i], RP[i], n_cols[i])).astype(jnp.bfloat16)
        s = np.zeros((RP[i], 1), np.float32)
        s[: N_POS[i] * C_OUT[i], 0] = np.tile(shift.astype(np.float32), N_POS[i])
        prep[f"cs{i}"] = jnp.asarray(s)

    w1 = np.zeros((KP, N1), np.float32); w1[:K_FC] = np.asarray(raw["fc1_w"])
    prep["fc1_w"] = jnp.asarray(w1).astype(jnp.bfloat16)
    prep["fc1_b"] = jnp.asarray(np.asarray(raw["fc1_b"])[None, :])
    prep["fc2_w"] = jnp.asarray(raw["fc2_w"]).astype(jnp.bfloat16)
    prep["fc2_b"] = jnp.asarray(np.asarray(raw["fc2_b"])[None, :])
    w3 = np.zeros((N2, N3P), np.float32); w3[:, :64] = np.asarray(raw["fc3_w"])
    b3 = np.zeros((1, N3P), np.float32);  b3[0, :64] = np.asarray(raw["fc3_b"])
    w4 = np.zeros((N3P, N4P), np.float32); w4[:64, :12] = np.asarray(raw["fc4_w"])
    b4 = np.zeros((1, N4P), np.float32);   b4[0, :12] = np.asarray(raw["fc4_b"])
    prep["fc3_w"] = jnp.asarray(w3); prep["fc3_b"] = jnp.asarray(b3)
    prep["fc4_w"] = jnp.asarray(w4); prep["fc4_b"] = jnp.asarray(b4)
    return prep


# ----------------------------------------------------------------------------
# Pure-JAX reference (BatchNorm in eval mode with running stats)
# ----------------------------------------------------------------------------
def ref_forward(params, x):
    def layer(x, i):
        w, b = params[f"conv{i}_w"], params[f"conv{i}_b"]
        g, bt = params[f"bn{i}_g"], params[f"bn{i}_b"]
        m, v = params[f"bn{i}_m"], params[f"bn{i}_v"]
        z = lax.conv_general_dilated(x, w, (1,), "VALID",
                                     dimension_numbers=("NCH", "OIH", "NCH"))
        z = z + b[None, :, None]
        z = (z - m[None, :, None]) / jnp.sqrt(v[None, :, None] + EPS) * g[None, :, None] \
            + bt[None, :, None]
        z = jnp.maximum(z, 0.0)
        B, C, L = z.shape
        Lp = L // 3
        return z[:, :, : 3 * Lp].reshape(B, C, Lp, 3).max(axis=-1)

    for i in (1, 2, 3):
        x = layer(x, i)
    x = x.reshape(x.shape[0], -1)
    x = jnp.maximum(x @ params["fc1_w"] + params["fc1_b"], 0.0)
    x = jnp.maximum(x @ params["fc2_w"] + params["fc2_b"], 0.0)
    x = jnp.maximum(x @ params["fc3_w"] + params["fc3_b"], 0.0)
    return x @ params["fc4_w"] + params["fc4_b"]


# ----------------------------------------------------------------------------
if __name__ == "__main__":
    key = jax.random.PRNGKey(0)
    pkey, xkey = jax.random.split(key)
    raw = init_params(pkey)
    prep = prepare_params(raw)

    # Input length 6370 is implied by the module: after three (conv k=5 -> pool/3)
    # stages the flattened size must be 27*234 = 6318 to match Linear(6318, 1024).
    x = jax.random.normal(xkey, (2, 1, L_IN), dtype=jnp.float32)

    fwd_auto = jax.jit(lambda p, xx: forward(p, xx))              # chip-selected path
    fwd_split = jax.jit(lambda p, xx: forward(p, xx, nsplit=2))   # dual-TC path (valid on 1 TC too)

    out = jax.block_until_ready(fwd_auto(prep, x))
    out_split = jax.block_until_ready(fwd_split(prep, x))

    assert out.shape == (2, 12), out.shape
    ref = ref_forward(raw, x)
    assert jnp.all(jnp.isfinite(out))
    for o in (out, out_split):
        assert jnp.allclose(o, ref, atol=5e-2, rtol=5e-2), \
            float(jnp.max(jnp.abs(o - ref)))

    print("KERNEL_OK")
</pallas_src>

<mosaic_0001>
module attributes {stable_mosaic.version = 11 : i64} {
  func.func @fc_fused_kernel(%arg0: i32, %arg1: memref<2x3200xbf16, #tpu.memory_space<vmem>>, %arg2: memref<3200x1024xbf16, #tpu.memory_space<vmem>>, %arg3: memref<1x1024xf32, #tpu.memory_space<vmem>>, %arg4: memref<1024x256xbf16, #tpu.memory_space<vmem>>, %arg5: memref<1x256xf32, #tpu.memory_space<vmem>>, %arg6: memref<256x128xf32, #tpu.memory_space<vmem>>, %arg7: memref<1x128xf32, #tpu.memory_space<vmem>>, %arg8: memref<128x128xf32, #tpu.memory_space<vmem>>, %arg9: memref<1x128xf32, #tpu.memory_space<vmem>>, %arg10: memref<2x128xf32, #tpu.memory_space<vmem>>, %arg11: memref<2x1024xf32, #tpu.memory_space<vmem>>) attributes {dimension_semantics = [#tpu.dimension_semantics<arbitrary>], iteration_bounds = array<i64: 2>, scalar_prefetch = 0 : i64, scratch_operands = 1 : i64, tpu.core_type = #tpu.core_type<tc>, window_params = [{transform_indices = @transform_0, window_bounds = array<i64: 2, 3200>}, {transform_indices = @transform_1, window_bounds = array<i64: 3200, 1024>}, {pipeline_mode = #tpu.pipeline_mode<synchronous>, transform_indices = @transform_2, window_bounds = array<i64: 1, 1024>}, {pipeline_mode = #tpu.pipeline_mode<synchronous>, transform_indices = @transform_3, window_bounds = array<i64: 1024, 256>}, {pipeline_mode = #tpu.pipeline_mode<synchronous>, transform_indices = @transform_4, window_bounds = array<i64: 1, 256>}, {pipeline_mode = #tpu.pipeline_mode<synchronous>, transform_indices = @transform_5, window_bounds = array<i64: 256, 128>}, {pipeline_mode = #tpu.pipeline_mode<synchronous>, transform_indices = @transform_6, window_bounds = array<i64: 1, 128>}, {pipeline_mode = #tpu.pipeline_mode<synchronous>, transform_indices = @transform_7, window_bounds = array<i64: 128, 128>}, {pipeline_mode = #tpu.pipeline_mode<synchronous>, transform_indices = @transform_8, window_bounds = array<i64: 1, 128>}, {pipeline_mode = #tpu.pipeline_mode<synchronous>, transform_indices = @transform_9, window_bounds = array<i64: 2, 128>}]} {
    %c0_i32 = arith.constant 0 : i32
    %0 = arith.cmpi eq, %arg0, %c0_i32 : i32
    %1 = arith.extui %0 : i1 to i32
    %c0_i32_0 = arith.constant 0 : i32
    %2 = arith.cmpi ne, %1, %c0_i32_0 : i32
    scf.if %2 {
      %c0_9 = arith.constant 0 : index
      %c0_10 = arith.constant 0 : index
      %12 = vector.load %arg3[%c0_9, %c0_10] : memref<1x1024xf32, #tpu.memory_space<vmem>>, vector<1x1024xf32>
      %13 = vector.shape_cast %12 : vector<1x1024xf32> to vector<1x1024xf32>
      %14 = vector.broadcast %13 : vector<1x1024xf32> to vector<2x1024xf32>
      %c0_11 = arith.constant 0 : index
      %c0_12 = arith.constant 0 : index
      %15 = vector.load %arg11[%c0_11, %c0_12] : memref<2x1024xf32, #tpu.memory_space<vmem>>, vector<2x1024xf32>
      tpu.vector_store %arg11[%c0_11, %c0_12], %14 {strides = array<i32>} : memref<2x1024xf32, #tpu.memory_space<vmem>>, vector<2x1024xf32>,
    } else {
    }
    %c0 = arith.constant 0 : index
    %c0_1 = arith.constant 0 : index
    %3 = vector.load %arg11[%c0, %c0_1] : memref<2x1024xf32, #tpu.memory_space<vmem>>, vector<2x1024xf32>
    %c0_2 = arith.constant 0 : index
    %c0_3 = arith.constant 0 : index
    %4 = vector.load %arg1[%c0_2, %c0_3] : memref<2x3200xbf16, #tpu.memory_space<vmem>>, vector<2x3200xbf16>
    %c0_4 = arith.constant 0 : index
    %c0_5 = arith.constant 0 : index
    %5 = vector.load %arg2[%c0_4, %c0_5] : memref<3200x1024xbf16, #tpu.memory_space<vmem>>, vector<3200x1024xbf16>
    %cst = arith.constant dense<0.000000e+00> : vector<2x1024xf32>
    %6 = tpu.matmul %4, %5, %cst {dimension_numbers = #tpu.dot_dimension_numbers<[1], [0], [0], [1], [0, 0, 1, 1], [], []>} : vector<2x3200xbf16>, vector<3200x1024xbf16>, vector<2x1024xf32> -> vector<2x1024xf32>
    %7 = arith.addf %3, %6 : vector<2x1024xf32>
    %c0_6 = arith.constant 0 : index
    %c0_7 = arith.constant 0 : index
    %8 = vector.load %arg11[%c0_6, %c0_7] : memref<2x1024xf32, #tpu.memory_space<vmem>>, vector<2x1024xf32>
    tpu.vector_store %arg11[%c0_6, %c0_7], %7 {strides = array<i32>} : memref<2x1024xf32, #tpu.memory_space<vmem>>, vector<2x1024xf32>,
    %c1_i32 = arith.constant 1 : i32
    %9 = arith.cmpi eq, %arg0, %c1_i32 : i32
    %10 = arith.extui %9 : i1 to i32
    %c0_i32_8 = arith.constant 0 : i32
    %11 = arith.cmpi ne, %10, %c0_i32_8 : i32
    scf.if %11 {
      %c0_9 = arith.constant 0 : index
      %c0_10 = arith.constant 0 : index
      %12 = vector.load %arg11[%c0_9, %c0_10] : memref<2x1024xf32, #tpu.memory_space<vmem>>, vector<2x1024xf32>
      %cst_11 = arith.constant 0.000000e+00 : f32
      %13 = vector.broadcast %cst_11 : f32 to vector<2x1024xf32>
      %14 = arith.maximumf %12, %13 : vector<2x1024xf32>
      %15 = arith.truncf %14 : vector<2x1024xf32> to vector<2x1024xbf16>
      %c0_12 = arith.constant 0 : index
      %c0_13 = arith.constant 0 : index
      %16 = vector.load %arg4[%c0_12, %c0_13] : memref<1024x256xbf16, #tpu.memory_space<vmem>>, vector<1024x256xbf16>
      %cst_14 = arith.constant dense<0.000000e+00> : vector<2x256xf32>
      %17 = tpu.matmul %15, %16, %cst_14 {dimension_numbers = #tpu.dot_dimension_numbers<[1], [0], [0], [1], [0, 0, 1, 1], [], []>} : vector<2x1024xbf16>, vector<1024x256xbf16>, vector<2x256xf32> -> vector<2x256xf32>
      %c0_15 = arith.constant 0 : index
      %c0_16 = arith.constant 0 : index
      %18 = vector.load %arg5[%c0_15, %c0_16] : memref<1x256xf32, #tpu.memory_space<vmem>>, vector<1x256xf32>
      %19 = vector.broadcast %18 : vector<1x256xf32> to vector<2x256xf32>
      %20 = arith.addf %17, %19 : vector<2x256xf32>
      %cst_17 = arith.constant 0.000000e+00 : f32
      %21 = vector.broadcast %cst_17 : f32 to vector<2x256xf32>
      %22 = arith.maximumf %20, %21 : vector<2x256xf32>
      %c0_18 = arith.constant 0 : index
      %c0_19 = arith.constant 0 : index
      %23 = vector.load %arg6[%c0_18, %c0_19] : memref<256x128xf32, #tpu.memory_space<vmem>>, vector<256x128xf32>
      %cst_20 = arith.constant dense<0.000000e+00> : vector<2x128xf32>
      %24 = tpu.matmul %22, %23, %cst_20 {dimension_numbers = #tpu.dot_dimension_numbers<[1], [0], [0], [1], [0, 0, 1, 1], [], []>} : vector<2x256xf32>, vector<256x128xf32>, vector<2x128xf32> -> vector<2x128xf32>
      %c0_21 = arith.constant 0 : index
      %c0_22 = arith.constant 0 : index
      %25 = vector.load %arg7[%c0_21, %c0_22] : memref<1x128xf32, #tpu.memory_space<vmem>>, vector<1x128xf32>
      %26 = vector.broadcast %25 : vector<1x128xf32> to vector<2x128xf32>
      %27 = arith.addf %24, %26 : vector<2x128xf32>
      %cst_23 = arith.constant 0.000000e+00 : f32
      %28 = vector.broadcast %cst_23 : f32 to vector<2x128xf32>
      %29 = arith.maximumf %27, %28 : vector<2x128xf32>
      %c0_24 = arith.constant 0 : index
      %c0_25 = arith.constant 0 : index
      %30 = vector.load %arg8[%c0_24, %c0_25] : memref<128x128xf32, #tpu.memory_space<vmem>>, vector<128x128xf32>
      %cst_26 = arith.constant dense<0.000000e+00> : vector<2x128xf32>
      %31 = tpu.matmul %29, %30, %cst_26 {dimension_numbers = #tpu.dot_dimension_numbers<[1], [0], [0], [1], [0, 0, 1, 1], [], []>} : vector<2x128xf32>, vector<128x128xf32>, vector<2x128xf32> -> vector<2x128xf32>
      %c0_27 = arith.constant 0 : index
      %c0_28 = arith.constant 0 : index
      %32 = vector.load %arg9[%c0_27, %c0_28] : memref<1x128xf32, #tpu.memory_space<vmem>>, vector<1x128xf32>
      %33 = vector.broadcast %32 : vector<1x128xf32> to vector<2x128xf32>
      %34 = arith.addf %31, %33 : vector<2x128xf32>
      %c0_29 = arith.constant 0 : index
      %c0_30 = arith.constant 0 : index
      %35 = vector.load %arg10[%c0_29, %c0_30] : memref<2x128xf32, #tpu.memory_space<vmem>>, vector<2x128xf32>
      tpu.vector_store %arg10[%c0_29, %c0_30], %34 {strides = array<i32>} : memref<2x128xf32, #tpu.memory_space<vmem>>, vector<2x128xf32>,
    } else {
    }
    return
  }
  func.func @transform_0(%arg0: i32) -> (i32, i32) {
    %c0_i32 = arith.constant 0 : i32
    %c0_i32_0 = arith.constant 0 : i32
    return %c0_i32, %arg0 : i32, i32
  }
  func.func @transform_1(%arg0: i32) -> (i32, i32) {
    %c0_i32 = arith.constant 0 : i32
    %c0_i32_0 = arith.constant 0 : i32
    return %arg0, %c0_i32 : i32, i32
  }
  func.func @transform_2(%arg0: i32) -> (i32, i32) {
    %c0_i32 = arith.constant 0 : i32
    %c0_i32_0 = arith.constant 0 : i32
    %c0_i32_1 = arith.constant 0 : i32
    return %c0_i32, %c0_i32_0 : i32, i32
  }
  func.func @transform_3(%arg0: i32) -> (i32, i32) {
    %c0_i32 = arith.constant 0 : i32
    %c0_i32_0 = arith.constant 0 : i32
    %c0_i32_1 = arith.constant 0 : i32
    return %c0_i32, %c0_i32_0 : i32, i32
  }
  func.func @transform_4(%arg0: i32) -> (i32, i32) {
    %c0_i32 = arith.constant 0 : i32
    %c0_i32_0 = arith.constant 0 : i32
    %c0_i32_1 = arith.constant 0 : i32
    return %c0_i32, %c0_i32_0 : i32, i32
  }
  func.func @transform_5(%arg0: i32) -> (i32, i32) {
    %c0_i32 = arith.constant 0 : i32
    %c0_i32_0 = arith.constant 0 : i32
    %c0_i32_1 = arith.constant 0 : i32
    return %c0_i32, %c0_i32_0 : i32, i32
  }
  func.func @transform_6(%arg0: i32) -> (i32, i32) {
    %c0_i32 = arith.constant 0 : i32
    %c0_i32_0 = arith.constant 0 : i32
    %c0_i32_1 = arith.constant 0 : i32
    return %c0_i32, %c0_i32_0 : i32, i32
  }
  func.func @transform_7(%arg0: i32) -> (i32, i32) {
    %c0_i32 = arith.constant 0 : i32
    %c0_i32_0 = arith.constant 0 : i32
    %c0_i32_1 = arith.constant 0 : i32
    return %c0_i32, %c0_i32_0 : i32, i32
  }
  func.func @transform_8(%arg0: i32) -> (i32, i32) {
    %c0_i32 = arith.constant 0 : i32
    %c0_i32_0 = arith.constant 0 : i32
    %c0_i32_1 = arith.constant 0 : i32
    return %c0_i32, %c0_i32_0 : i32, i32
  }
  func.func @transform_9(%arg0: i32) -> (i32, i32) {
    %c0_i32 = arith.constant 0 : i32
    %c0_i32_0 = arith.constant 0 : i32
    %c0_i32_1 = arith.constant 0 : i32
    return %c0_i32, %c0_i32_0 : i32, i32
  }
}

module attributes {stable_mosaic.version = 11 : i64} {
  func.func @conv_stack_kernel(%arg0: i32, %arg1: memref<96x256xbf16, #tpu.memory_space<vmem>>, %arg2: memref<240x96xbf16, #tpu.memory_space<vmem>>, %arg3: memref<80x1xf32, #tpu.memory_space<vmem>>, %arg4: memref<192x80xbf16, #tpu.memory_space<vmem>>, %arg5: memref<64x1xf32, #tpu.memory_space<vmem>>, %arg6: memref<96x64xbf16, #tpu.memory_space<vmem>>, %arg7: memref<32x1xf32, #tpu.memory_space<vmem>>, %arg8: memref<32x256xbf16, #tpu.memory_space<vmem>>) attributes {dimension_semantics = [#tpu.dimension_semantics<parallel>], iteration_bounds = array<i64: 2>, scalar_prefetch = 0 : i64, scratch_operands = 0 : i64, tpu.core_type = #tpu.core_type<tc>, window_params = [{transform_indices = @transform_0, window_bounds = array<i64: 96, 256>}, {pipeline_mode = #tpu.pipeline_mode<synchronous>, transform_indices = @transform_1, window_bounds = array<i64: 240, 96>}, {pipeline_mode = #tpu.pipeline_mode<synchronous>, transform_indices = @transform_2, window_bounds = array<i64: 80, 1>}, {pipeline_mode = #tpu.pipeline_mode<synchronous>, transform_indices = @transform_3, window_bounds = array<i64: 192, 80>}, {pipeline_mode = #tpu.pipeline_mode<synchronous>, transform_indices = @transform_4, window_bounds = array<i64: 64, 1>}, {pipeline_mode = #tpu.pipeline_mode<synchronous>, transform_indices = @transform_5, window_bounds = array<i64: 96, 64>}, {pipeline_mode = #tpu.pipeline_mode<synchronous>, transform_indices = @transform_6, window_bounds = array<i64: 32, 1>}, {transform_indices = @transform_7, window_bounds = array<i64: 32, 256>}]} {
    %c0 = arith.constant 0 : index
    %c0_0 = arith.constant 0 : index
    %0 = vector.load %arg1[%c0, %c0_0] : memref<96x256xbf16, #tpu.memory_space<vmem>>, vector<96x256xbf16>
    %c0_1 = arith.constant 0 : index
    %c0_2 = arith.constant 0 : index
    %1 = vector.load %arg2[%c0_1, %c0_2] : memref<240x96xbf16, #tpu.memory_space<vmem>>, vector<240x96xbf16>
    %cst = arith.constant dense<0.000000e+00> : vector<240x256xf32>
    %2 = tpu.matmul %1, %0, %cst {dimension_numbers = #tpu.dot_dimension_numbers<[1], [0], [0], [1], [0, 0, 1, 1], [], []>} : vector<240x96xbf16>, vector<96x256xbf16>, vector<240x256xf32> -> vector<240x256xf32>
    %3 = vector.extract_strided_slice %2 {offsets = [0, 0], sizes = [80, 256], strides = [1, 1]} : vector<240x256xf32> to vector<80x256xf32>
    %4 = vector.extract_strided_slice %2 {offsets = [80, 0], sizes = [80, 256], strides = [1, 1]} : vector<240x256xf32> to vector<80x256xf32>
    %5 = arith.maximumf %3, %4 : vector<80x256xf32>
    %6 = vector.extract_strided_slice %2 {offsets = [160, 0], sizes = [80, 256], strides = [1, 1]} : vector<240x256xf32> to vector<80x256xf32>
    %7 = arith.maximumf %5, %6 : vector<80x256xf32>
    %c0_3 = arith.constant 0 : index
    %c0_4 = arith.constant 0 : index
    %8 = vector.load %arg3[%c0_3, %c0_4] : memref<80x1xf32, #tpu.memory_space<vmem>>, vector<80x1xf32>
    %9 = vector.broadcast %8 : vector<80x1xf32> to vector<80x256xf32>
    %10 = arith.addf %7, %9 : vector<80x256xf32>
    %cst_5 = arith.constant 0.000000e+00 : f32
    %11 = vector.broadcast %cst_5 : f32 to vector<80x256xf32>
    %12 = arith.maximumf %10, %11 : vector<80x256xf32>
    %13 = arith.truncf %12 : vector<80x256xf32> to vector<80x256xbf16>
    %c0_6 = arith.constant 0 : index
    %c0_7 = arith.constant 0 : index
    %14 = vector.load %arg4[%c0_6, %c0_7] : memref<192x80xbf16, #tpu.memory_space<vmem>>, vector<192x80xbf16>
    %cst_8 = arith.constant dense<0.000000e+00> : vector<192x256xf32>
    %15 = tpu.matmul %14, %13, %cst_8 {dimension_numbers = #tpu.dot_dimension_numbers<[1], [0], [0], [1], [0, 0, 1, 1], [], []>} : vector<192x80xbf16>, vector<80x256xbf16>, vector<192x256xf32> -> vector<192x256xf32>
    %16 = vector.extract_strided_slice %15 {offsets = [0, 0], sizes = [64, 256], strides = [1, 1]} : vector<192x256xf32> to vector<64x256xf32>
    %17 = vector.extract_strided_slice %15 {offsets = [64, 0], sizes = [64, 256], strides = [1, 1]} : vector<192x256xf32> to vector<64x256xf32>
    %18 = arith.maximumf %16, %17 : vector<64x256xf32>
    %19 = vector.extract_strided_slice %15 {offsets = [128, 0], sizes = [64, 256], strides = [1, 1]} : vector<192x256xf32> to vector<64x256xf32>
    %20 = arith.maximumf %18, %19 : vector<64x256xf32>
    %c0_9 = arith.constant 0 : index
    %c0_10 = arith.constant 0 : index
    %21 = vector.load %arg5[%c0_9, %c0_10] : memref<64x1xf32, #tpu.memory_space<vmem>>, vector<64x1xf32>
    %22 = vector.broadcast %21 : vector<64x1xf32> to vector<64x256xf32>
    %23 = arith.addf %20, %22 : vector<64x256xf32>
    %cst_11 = arith.constant 0.000000e+00 : f32
    %24 = vector.broadcast %cst_11 : f32 to vector<64x256xf32>
    %25 = arith.maximumf %23, %24 : vector<64x256xf32>
    %26 = arith.truncf %25 : vector<64x256xf32> to vector<64x256xbf16>
    %c0_12 = arith.constant 0 : index
    %c0_13 = arith.constant 0 : index
    %27 = vector.load %arg6[%c0_12, %c0_13] : memref<96x64xbf16, #tpu.memory_space<vmem>>, vector<96x64xbf16>
    %cst_14 = arith.constant dense<0.000000e+00> : vector<96x256xf32>
    %28 = tpu.matmul %27, %26, %cst_14 {dimension_numbers = #tpu.dot_dimension_numbers<[1], [0], [0], [1], [0, 0, 1, 1], [], []>} : vector<96x64xbf16>, vector<64x256xbf16>, vector<96x256xf32> -> vector<96x256xf32>
    %29 = vector.extract_strided_slice %28 {offsets = [0, 0], sizes = [32, 256], strides = [1, 1]} : vector<96x256xf32> to vector<32x256xf32>
    %30 = vector.extract_strided_slice %28 {offsets = [32, 0], sizes = [32, 256], strides = [1, 1]} : vector<96x256xf32> to vector<32x256xf32>
    %31 = arith.maximumf %29, %30 : vector<32x256xf32>
    %32 = vector.extract_strided_slice %28 {offsets = [64, 0], sizes = [32, 256], strides = [1, 1]} : vector<96x256xf32> to vector<32x256xf32>
    %33 = arith.maximumf %31, %32 : vector<32x256xf32>
    %c0_15 = arith.constant 0 : index
    %c0_16 = arith.constant 0 : index
    %34 = vector.load %arg7[%c0_15, %c0_16] : memref<32x1xf32, #tpu.memory_space<vmem>>, vector<32x1xf32>
    %35 = vector.broadcast %34 : vector<32x1xf32> to vector<32x256xf32>
    %36 = arith.addf %33, %35 : vector<32x256xf32>
    %cst_17 = arith.constant 0.000000e+00 : f32
    %37 = vector.broadcast %cst_17 : f32 to vector<32x256xf32>
    %38 = arith.maximumf %36, %37 : vector<32x256xf32>
    %39 = arith.truncf %38 : vector<32x256xf32> to vector<32x256xbf16>
    %c0_18 = arith.constant 0 : index
    %c0_19 = arith.constant 0 : index
    %40 = vector.load %arg8[%c0_18, %c0_19] : memref<32x256xbf16, #tpu.memory_space<vmem>>, vector<32x256xbf16>
    tpu.vector_store %arg8[%c0_18, %c0_19], %39 {strides = array<i32>} : memref<32x256xbf16, #tpu.memory_space<vmem>>, vector<32x256xbf16>,
    return
  }
  func.func @transform_0(%arg0: i32) -> (i32, i32) {
    %c0_i32 = arith.constant 0 : i32
    %c0_i32_0 = arith.constant 0 : i32
    return %c0_i32, %arg0 : i32, i32
  }
  func.func @transform_1(%arg0: i32) -> (i32, i32) {
    %c0_i32 = arith.constant 0 : i32
    %c0_i32_0 = arith.constant 0 : i32
    %c0_i32_1 = arith.constant 0 : i32
    return %c0_i32, %c0_i32_0 : i32, i32
  }
  func.func @transform_2(%arg0: i32) -> (i32, i32) {
    %c0_i32 = arith.constant 0 : i32
    %c0_i32_0 = arith.constant 0 : i32
    %c0_i32_1 = arith.constant 0 : i32
    return %c0_i32, %c0_i32_0 : i32, i32
  }
  func.func @transform_3(%arg0: i32) -> (i32, i32) {
    %c0_i32 = arith.constant 0 : i32
    %c0_i32_0 = arith.constant 0 : i32
    %c0_i32_1 = arith.constant 0 : i32
    return %c0_i32, %c0_i32_0 : i32, i32
  }
  func.func @transform_4(%arg0: i32) -> (i32, i32) {
    %c0_i32 = arith.constant 0 : i32
    %c0_i32_0 = arith.constant 0 : i32
    %c0_i32_1 = arith.constant 0 : i32
    return %c0_i32, %c0_i32_0 : i32, i32
  }
  func.func @transform_5(%arg0: i32) -> (i32, i32) {
    %c0_i32 = arith.constant 0 : i32
    %c0_i32_0 = arith.constant 0 : i32
    %c0_i32_1 = arith.constant 0 : i32
    return %c0_i32, %c0_i32_0 : i32, i32
  }
  func.func @transform_6(%arg0: i32) -> (i32, i32) {
    %c0_i32 = arith.constant 0 : i32
    %c0_i32_0 = arith.constant 0 : i32
    %c0_i32_1 = arith.constant 0 : i32
    return %c0_i32, %c0_i32_0 : i32, i32
  }
  func.func @transform_7(%arg0: i32) -> (i32, i32) {
    %c0_i32 = arith.constant 0 : i32
    %c0_i32_0 = arith.constant 0 : i32
    return %c0_i32, %arg0 : i32, i32
  }
}

</mosaic_0001>

<bundles_post_ra>
// kernel: _lambda_.2
= control target key start
LH: loop header
LB: loop body
LE: loop exit
PB: predicated region body
PF: predicated region fallthrough
CT: control target
= control target key end

     0   :  { %s1911_s24 = smov 0   ;;  %s1913_s25 = smov 0   ;;  %s2413_s0 = inlined_call_operand.vmem [shape: bf16[96,512], index: 0, kind: input, shape index: {}]   ;;  %s2414_s1 = inlined_call_operand.vmem [shape: bf16[240,96], index: 1, kind: input, shape index: {}]   ;;  %s2415_s2 = inlined_call_operand.vmem [shape: f32[80,1], index: 2, kind: input, shape index: {}]   ;;  %s2416_s3 = inlined_call_operand.vmem [shape: bf16[192,80], index: 3, kind: input, shape index: {}]   ;;  %s2417_s4 = inlined_call_operand.vmem [shape: f32[64,1], index: 4, kind: input, shape index: {}]   ;;  %s2418_s5 = inlined_call_operand.vmem [shape: bf16[96,64], index: 5, kind: input, shape index: {}]   ;;  %s2419_s6 = inlined_call_operand.vmem [shape: f32[32,1], index: 6, kind: input, shape index: {}]   ;;  %s2420_s7 = inlined_call_operand.vmem [shape: bf16[32,512], index: 7, kind: output, shape index: {}]  }
   0x1   :  { %s1915_s26 = smov 0  }
   0x2 LB: > { %s1655_s27 = sadd.s32 4294967295, %s1868_s26   ;;  %s1928_s28 = sadd.s32 1, %s1868_s26   ;;  %s1868_s26 = sphi %s1915_s26, %s2424_s26   ;;  %s1864_s25 = sphi %s1913_s25, %s2423_s25   ;;  %s1860_s24 = sphi %s1911_s24, %s2422_s24  }
   0x3   : > { %s21_s29 = ssub.s32 %s1868_s26, %s1928_s28  ;;  %s24_s30 = sadd.s32 1, %s1864_s25 }
   0x4   : > { %p22_p0 = scmp.eq.s32.totalorder %s21_s29, 0  ;;  %p31_p1 = scmp.ne.s32.totalorder %s1864_s25, %s1860_s24 }
   0x5   : > { %p32_p2 = scmp.eq.s32.totalorder %s1868_s26, 0  ;;  %p187_p3 = scmp.eq.s32.totalorder %s1655_s27, 1 }
   0x6   : > { %s1939_s8 = scalar_select %p22_p0, %s1864_s25, %s24_s30  }
   0x7   : > { %p33_p4 = por %p32_p2, %p31_p1  ;;  %p1941_p5 = por %p187_p3, %p31_p1 }
   0x8   : > { %p1658_p6 = scmp.ge.s32.totalorder %s1868_s26, 2 }
   0xa   : > { %227 = sbr.rel (%p1658_p6) target bundleno = 25 (0x19), region = 40 }
   0xf   : > { %230 = sbr.rel (!%p33_p4) target bundleno = 25 (0x19), region = 44  ;;  %s232_s10 = sand.u32 (%p33_p4), 1, %s1864_s25  }
  0x10   : > { %s1750_s11 = sshll.u32 (%p33_p4), %s1868_s26, 3  ;;  %s1766_s12 = smul.u32 (%p33_p4), 96, %s232_s10 }
  0x11   : > { %s237_s15 = scalar_lea.vmem (%p33_p4), %s2413_s0, %s1750_s11 }
  0x12   : > { %v288_v0 = vld [vmem:[%s237_s15] sm:$0xff] (%p33_p4)  ;;  %v290_v1 = vld [vmem:[%s237_s15 + $0x10] sm:$0xff] (%p33_p4)  ;;  %s234_s16 = scalar_lea.vmem (%p33_p4), [#allocation2], %s1766_s12 }
  0x13   : > { %v292_v2 = vld [vmem:[%s237_s15 + $0x20] sm:$0xff] (%p33_p4)  ;;  %v294_v3 = vld [vmem:[%s237_s15 + $0x30] sm:$0xff] (%p33_p4)  ;;  %289 = vst [vmem:[%s234_s16] sm:$0xff] (%p33_p4), %v288_v0  ;;  %291 = vst [vmem:[%s234_s16 + $0x8] sm:$0xff] (%p33_p4), %v290_v1 }
  0x14   : > { %v296_v4 = vld [vmem:[%s237_s15 + $0x40] sm:$0xff]  ;;  %v298_v5 = vld [vmem:[%s237_s15 + $0x50] sm:$0xff]  ;;  %293 = vst [vmem:[%s234_s16 + $0x10] sm:$0xff] %v292_v2  ;;  %295 = vst [vmem:[%s234_s16 + $0x18] sm:$0xff] %v294_v3 }
  0x15   : > { %297 = vst [vmem:[%s234_s16 + $0x20] sm:$0xff] %v296_v4  ;;  %299 = vst [vmem:[%s234_s16 + $0x28] sm:$0xff] %v298_v5  ;;  %v300_v6 = vld [vmem:[%s237_s15 + $0x60] sm:$0xff]  ;;  %v302_v7 = vld [vmem:[%s237_s15 + $0x70] sm:$0xff] }
  0x16   : > { %v304_v8 = vld [vmem:[%s237_s15 + $0x80] sm:$0xff]  ;;  %301 = vst [vmem:[%s234_s16 + $0x30] sm:$0xff] %v300_v6  ;;  %303 = vst [vmem:[%s234_s16 + $0x38] sm:$0xff] %v302_v7  ;;  %v306_v9 = vld [vmem:[%s237_s15 + $0x90] sm:$0xff] }
  0x17   : > { %305 = vst [vmem:[%s234_s16 + $0x40] sm:$0xff] %v304_v8  ;;  %v308_v10 = vld [vmem:[%s237_s15 + $0xa0] sm:$0xff]  ;;  %v310_v11 = vld [vmem:[%s237_s15 + $0xb0] sm:$0xff]  ;;  %307 = vst [vmem:[%s234_s16 + $0x48] sm:$0xff] %v306_v9 }
  0x18   : > { %309 = vst [vmem:[%s234_s16 + $0x50] sm:$0xff] %v308_v10  ;;  %311 = vst [vmem:[%s234_s16 + $0x58] sm:$0xff] %v310_v11 }
  0x19 PF: > { %p1661_p7 = scmp.ge.s32.totalorder %s1868_s26, 1  ;;  %p316_p8 = scmp.lt.s32.totalorder %s1868_s26, 3 }
  0x1b   : > { %p317_p9 = pnand %p1661_p7, %p316_p8 }
  0x1c   : > { %s323_s17 = sand.u32 (!%p317_p9), 1, %s1860_s24  }
  0x1d   : > { %320 = sbr.rel (%p317_p9) target bundleno = 959 (0x3bf), region = 82  ;;  %s1662_s30 = sshll.u32 (!%p317_p9), %s323_s17, 5 }
  0x1e   : > { %s1767_s18 = smul.u32 (!%p317_p9), 96, %s323_s17  ;;  %s2386_s10 = scalar_lea.vmem (!%p317_p9), [#allocation3], %s1662_s30 }
  0x20   : > { %s325_s19 = scalar_lea.vmem (!%p317_p9), [#allocation2], %s1767_s18 }
  0x22   : > { %v1870_v12 = vmov 0   ;;  %v1795_v13 = vld [vmem:[%s325_s19 + $0x54] ss:$8 sps:$4 sm:$0xff]   ;;  %v1797_v14 = vld [vmem:[%s325_s19 + $0x50] ss:$8 sps:$4 sm:$0xff]   ;;  %v810_v25 = vld [vmem:[%s2415_s2 + $0x40] sm:$0xff] }
  0x23   : > { %611 = vmatprep.mubr.bf16.mxu0 %v1870_v12  ;;  %1793 = vset.pattern.permute.xlu0 %v1870_v12  ;;  %v1798_v15 = vld [vmem:[%s325_s19 + $0x44] ss:$8 sps:$4 sm:$0xff]   ;;  %v1800_v16 = vld [vmem:[%s325_s19 + $0x40] ss:$8 sps:$4 sm:$0xff]   ;;  %v1801_v17 = vld [vmem:[%s325_s19 + $0x34] ss:$8 sps:$4 sm:$0xff]  }
  0x24   : > { %1794 = vset.pattern.permute.xlu1 %v1870_v12  ;;  %1075 = vmatprep.mubr.bf16.mxu1 %v1870_v12  ;;  %v1803_v18 = vld [vmem:[%s325_s19 + $0x30] ss:$8 sps:$4 sm:$0xff]   ;;  %v1804_v19 = vld [vmem:[%s325_s19 + $0x24] ss:$8 sps:$4 sm:$0xff]   ;;  %v1806_v20 = vld [vmem:[%s325_s19 + $0x20] ss:$8 sps:$4 sm:$0xff]  }
  0x25   : > { %583 = vmatprep.subr.bf16.mxu0 %v1795_v13  ;;  %v1807_v21 = vld [vmem:[%s325_s19 + $0x14] ss:$8 sps:$4 sm:$0xff]   ;;  %v1809_v22 = vld [vmem:[%s325_s19 + $0x10] ss:$8 sps:$4 sm:$0xff]   ;;  %v1810_v23 = vld [vmem:[%s325_s19 + $0x4] ss:$8 sps:$4 sm:$0xff]   ;;  %854 = vperm.xlu0 %1793, %v810_v25  }
  0x26   : > { %584 = vmatpush1.bf16.msra.mxu0 %v1797_v14  ;;  %v1812_v24 = vld [vmem:[%s325_s19] ss:$8 sps:$4 sm:$0xff]   ;;  %v808_v26 = vld [vmem:[%s2415_s2 + $0x30] sm:$0xff]  ;;  %v809_v29 = vld [vmem:[%s2415_s2 + $0x38] sm:$0xff]  ;;  %vm533_vm0 = vcmask 785408   ;;  %vm996_vm1 = vcmask 654336  }
  0x27   : > { %585 = vmatprep.subr.bf16.mxu0 %v1798_v15  ;;  %844 = vperm.xlu1 %1794, %v808_v26   ;;  %v811_v27 = vld [vmem:[%s2415_s2 + $0x48] sm:$0xff]  ;;  %v1813_v28 = vld [vmem:[%s2414_s1] sm:$0xff]   ;;  %v804_v32 = vld [vmem:[%s2415_s2 + $0x10] sm:$0xff]  ;;  %vm1348_vm2 = vcmask 523264   ;;  %s1755_s24 = sshll.u32 (%p1941_p5), %s1655_s27, 3 }
  0x28   : > { %v806_v30 = vld [vmem:[%s2415_s2 + $0x20] sm:$0xff]  ;;  %v807_v31 = vld [vmem:[%s2415_s2 + $0x28] sm:$0xff]  ;;  %v805_v34 = vld [vmem:[%s2415_s2 + $0x18] sm:$0xff]  ;;  %s1553_s12 = scalar_lea.vmem (%p1941_p5), %s2420_s7, %s1755_s24 }
  0x29   : > { %859 = vperm.xlu0 %1793, %v811_v27   ;;  %v1814_v33 = vld [vmem:[%s2414_s1 + $0x8] sm:$0xff]   ;;  %v802_v35 = vld [vmem:[%s2415_s2] sm:$0xff]  ;;  %v1224_v37 = vld [vmem:[%s2417_s4 + $0x30] sm:$0xff] }
  0x2a   : > { %586 = vmatpush1.bf16.msra.mxu0 %v1800_v16  ;;  %v803_v36 = vld [vmem:[%s2415_s2 + $0x8] sm:$0xff]  ;;  %v1815_v38 = vld [vmem:[%s2414_s1 + $0x10] sm:$0xff]   ;;  %v1225_v39 = vld [vmem:[%s2417_s4 + $0x38] sm:$0xff] }
  0x2b   : > { %587 = vmatprep.subr.bf16.mxu0 %v1801_v17  ;;  %849 = vperm.xlu1 %1794, %v809_v29   ;;  %v1222_v40 = vld [vmem:[%s2417_s4 + $0x20] sm:$0xff]  ;;  %v1223_v41 = vld [vmem:[%s2417_s4 + $0x28] sm:$0xff]  ;;  %v1220_v42 = vld [vmem:[%s2417_s4 + $0x10] sm:$0xff] }
  0x2c   : > { %v1816_v43 = vld [vmem:[%s2414_s1 + $0x18] sm:$0xff]   ;;  %v1218_v45 = vld [vmem:[%s2417_s4] sm:$0xff]  ;;  %v1219_v46 = vld [vmem:[%s2417_s4 + $0x8] sm:$0xff] }
  0x2d   : > { %834 = vperm.xlu0 %1793, %v806_v30   ;;  %v1221_v44 = vld [vmem:[%s2417_s4 + $0x18] sm:$0xff]  ;;  %v1476_v47 = vld [vmem:[%s2419_s6] sm:$0xff]  ;;  %v1477_v49 = vld [vmem:[%s2419_s6 + $0x8] sm:$0xff] }
  0x2e   : > { %588 = vmatpush1.bf16.msra.mxu0 %v1803_v18  ;;  %v1817_v48 = vld [vmem:[%s2414_s1 + $0x20] sm:$0xff]   ;;  %v1478_v50 = vld [vmem:[%s2419_s6 + $0x10] sm:$0xff]  ;;  %v1479_v51 = vld [vmem:[%s2419_s6 + $0x18] sm:$0xff] }
  0x2f   : > { %589 = vmatprep.subr.bf16.mxu0 %v1804_v19  ;;  %839 = vperm.xlu1 %1794, %v807_v31   ;;  %v1818_v52 = vld [vmem:[%s2414_s1 + $0x28] sm:$0xff]   ;;  %v1819_v53 = vld [vmem:[%s2414_s1 + $0x30] sm:$0xff]   ;;  %v1820_v54 = vld [vmem:[%s2414_s1 + $0x38] sm:$0xff]  }
  0x30   : > { %v1821_v55 = vld [vmem:[%s2414_s1 + $0x40] sm:$0xff]   ;;  %v1822_v56 = vld [vmem:[%s2414_s1 + $0x48] sm:$0xff]   ;;  %v1823_v57 = vld [vmem:[%s2414_s1 + $0x50] sm:$0xff]  }
  0x31   : > { %824 = vperm.xlu0 %1793, %v804_v32   ;;  %v1824_v58 = vld [vmem:[%s2414_s1 + $0x58] sm:$0xff]   ;;  %v1825_v59 = vld [vmem:[%s2414_s1 + $0x60] sm:$0xff]   ;;  %v1826_v60 = vld [vmem:[%s2414_s1 + $0x68] sm:$0xff]  }
  0x32   : > { %590 = vmatpush1.bf16.msra.mxu0 %v1806_v20  ;;  %v1827_v61 = vld [vmem:[%s2414_s1 + $0x70] sm:$0xff]  }
  0x33   : > { %591 = vmatprep.subr.bf16.mxu0 %v1807_v21  ;;  %829 = vperm.xlu1 %1794, %v805_v34  }
  0x35   : > { %814 = vperm.xlu0 %1793, %v802_v35  }
  0x36   : > { %592 = vmatpush1.bf16.msra.mxu0 %v1809_v22 }
  0x37   : > { %593 = vmatprep.subr.bf16.mxu0 %v1810_v23  ;;  %819 = vperm.xlu1 %1794, %v803_v36  }
  0x39   : > { %1258 = vperm.xlu0 %1793, %v1224_v37  }
  0x3a   : > { %594 = vmatpush1.bf16.msra.mxu0 %v1812_v24 }
  0x3b   : > { %1263 = vperm.xlu1 %1794, %v1225_v39  }
  0x3d   : > { %1690 = vmatmul.mubr.msk.bf16.vlgmr.msra.gmra.mxu0 %vm533_vm0, %v1813_v28  ;;  %1248 = vperm.xlu0 %1793, %v1222_v40  }
  0x3e   : > { %621 = vmatprep.mubr.bf16.mxu0 %v1870_v12 }
  0x3f   : > { %1253 = vperm.xlu1 %1794, %v1223_v41  }
  0x41   : > { %1238 = vperm.xlu0 %1793, %v1220_v42  }
  0x43   : > { %1243 = vperm.xlu1 %1794, %v1221_v44  }
  0x45   : > { %1691 = vmatmul.mubr.msk.bf16.gmra.mxu0 %vm533_vm0, %v1814_v33  ;;  %1228 = vperm.xlu0 %1793, %v1218_v45  }
  0x46   : > { %631 = vmatprep.mubr.bf16.mxu0 %v1870_v12 }
  0x47   : > { %1233 = vperm.xlu1 %1794, %v1219_v46  }
  0x49   : > { %1482 = vperm.xlu0 %1793, %v1476_v47  }
  0x4b   : > { %1487 = vperm.xlu1 %1794, %v1477_v49  }
  0x4d   : > { %1692 = vmatmul.mubr.msk.bf16.gmra.mxu0 %vm533_vm0, %v1815_v38  ;;  %1492 = vperm.xlu0 %1793, %v1478_v50  }
  0x4e   : > { %641 = vmatprep.mubr.bf16.mxu0 %v1870_v12 }
  0x4f   : > { %1497 = vperm.xlu1 %1794, %v1479_v51  }
  0x55   : > { %1693 = vmatmul.mubr.msk.bf16.gmra.mxu0 %vm533_vm0, %v1816_v43 }
  0x56   : > { %651 = vmatprep.mubr.bf16.mxu0 %v1870_v12 }
  0x5d   : > { %1694 = vmatmul.mubr.msk.bf16.gmra.mxu0 %vm533_vm0, %v1817_v48 }
  0x5e   : > { %661 = vmatprep.mubr.bf16.mxu0 %v1870_v12 }
  0x65   : > { %1695 = vmatmul.mubr.msk.bf16.gmra.mxu0 %vm533_vm0, %v1818_v52 }
  0x66   : > { %671 = vmatprep.mubr.bf16.mxu0 %v1870_v12 }
  0x6d   : > { %1696 = vmatmul.mubr.msk.bf16.gmra.mxu0 %vm533_vm0, %v1819_v53 }
  0x6e   : > { %681 = vmatprep.mubr.bf16.mxu0 %v1870_v12 }
  0x75   : > { %1697 = vmatmul.mubr.msk.bf16.gmra.mxu0 %vm533_vm0, %v1820_v54 }
  0x76   : > { %691 = vmatprep.mubr.bf16.mxu0 %v1870_v12 }
  0x7d   : > { %1698 = vmatmul.mubr.msk.bf16.gmra.mxu0 %vm533_vm0, %v1821_v55 }
  0x7e   : > { %701 = vmatprep.mubr.bf16.mxu0 %v1870_v12 }
  0x85   : > { %1699 = vmatmul.mubr.msk.bf16.gmra.mxu0 %vm533_vm0, %v1822_v56 }
  0x86   : > { %711 = vmatprep.mubr.bf16.mxu0 %v1870_v12 }
  0x8d   : > { %1700 = vmatmul.mubr.msk.bf16.gmra.mxu0 %vm533_vm0, %v1823_v57 }
  0x8e   : > { %721 = vmatprep.mubr.bf16.mxu0 %v1870_v12 }
  0x95   : > { %1701 = vmatmul.mubr.msk.bf16.gmra.mxu0 %vm533_vm0, %v1824_v58 }
  0x96   : > { %731 = vmatprep.mubr.bf16.mxu0 %v1870_v12 }
  0x9d   : > { %1702 = vmatmul.mubr.msk.bf16.gmra.mxu0 %vm533_vm0, %v1825_v59 }
  0x9e   : > { %741 = vmatprep.mubr.bf16.mxu0 %v1870_v12 }
  0xa0   : > { %v2147_v38 = vpop.permute.xlu0 %854 }
  0xa2   : > { %v2152_v41 = vpop.permute.xlu1 %844 }
  0xa4   : > { %v2160_v45 = vpop.permute.xlu0 %859 }
  0xa5   : > { %1703 = vmatmul.mubr.msk.bf16.gmra.mxu0 %vm533_vm0, %v1826_v60 }
  0xa6   : > { %751 = vmatprep.mubr.bf16.mxu0 %v1870_v12  ;;  %v2164_v47 = vpop.permute.xlu1 %849 }
  0xa8   : > { %v835_v50 = vpop.permute.xlu0 %834 }
  0xaa   : > { %v840_v52 = vpop.permute.xlu1 %839 }
  0xac   : > { %v825_v55 = vpop.permute.xlu0 %824 }
  0xad   : > { %1704 = vmatmul.mubr.msk.bf16.gmra.mxu0 %vm533_vm0, %v1827_v61 }
  0xae   : > { %1065 = vmatprep.mubr.bf16.mxu0 %v1870_v12  ;;  %v830_v57 = vpop.permute.xlu1 %829 }
  0xb0   : > { %v815_v60 = vpop.permute.xlu0 %814 }
  0xfd   : > { %v613_v62 = vpop.f32.mrf.mxu0 }
  0xff   : > { %v2101_v63 = vpop.f32.mrf.mxu0 }
 0x101   : > { %v2103_v0 = vpop.f32.mrf.mxu0 }
 0x103   : > { %v2105_v1 = vpop.f32.mrf.mxu0 }
 0x105   : > { %v2107_v2 = vpop.f32.mrf.mxu0 }
 0x107   : > { %v2109_v3 = vpop.f32.mrf.mxu0 }
 0x109   : > { %v2111_v4 = vpop.f32.mrf.mxu0 }
 0x10b   : > { %v2113_v5 = vpop.f32.mrf.mxu0 }
 0x10d   : > { %v2115_v6 = vpop.f32.mrf.mxu0 }
 0x10f   : > { %v2117_v7 = vpop.f32.mrf.mxu0 }
 0x111   : > { %v2119_v8 = vpop.f32.mrf.mxu0 }
 0x113   : > { %v2121_v9 = vpop.f32.mrf.mxu0 }
 0x115   : > { %v2123_v10 = vpop.f32.mrf.mxu0 }
 0x117   : > { %v2125_v11 = vpop.f32.mrf.mxu0 }
 0x119   : > { %v2127_v13 = vpop.f32.mrf.mxu0 }
 0x11b   : > { %v2129_v14 = vpop.f32.mrf.mxu0 }
 0x11d   : > { %v2131_v15 = vpop.f32.mrf.mxu0 }
 0x11f   : > { %v2133_v16 = vpop.f32.mrf.mxu0 }
 0x121   : > { %v2135_v17 = vpop.f32.mrf.mxu0 }
 0x123   : > { %v2137_v18 = vpop.f32.mrf.mxu0 }
 0x125   : > { %v663_v19 = vpop.f32.mrf.mxu0 }
 0x126   : > { %v762_v20 = vmax.f32 %v613_v62, %v663_v19 }
 0x127   : > { %v665_v21 = vpop.f32.mrf.mxu0 }
 0x128   : > { %v763_v22 = vmax.f32 %v2101_v63, %v665_v21 }
 0x129   : > { %v667_v23 = vpop.f32.mrf.mxu0 }
 0x12a   : > { %v764_v24 = vmax.f32 %v2103_v0, %v667_v23  ;;  %v820_v0 = vpop.permute.xlu1 %819 }
 0x12b   : > { %v669_v25 = vpop.f32.mrf.mxu0 }
 0x12c   : > { %v765_v26 = vmax.f32 %v2105_v1, %v669_v25 }
 0x12d   : > { %v673_v27 = vpop.f32.mrf.mxu0 }
 0x12e   : > { %v766_v28 = vmax.f32 %v2107_v2, %v673_v27 }
 0x12f   : > { %v675_v29 = vpop.f32.mrf.mxu0 }
 0x130   : > { %v767_v30 = vmax.f32 %v2109_v3, %v675_v29 }
 0x131   : > { %v677_v31 = vpop.f32.mrf.mxu0 }
 0x132   : > { %v768_v32 = vmax.f32 %v2111_v4, %v677_v31 }
 0x133   : > { %v679_v33 = vpop.f32.mrf.mxu0 }
 0x134   : > { %v769_v34 = vmax.f32 %v2113_v5, %v679_v33 }
 0x135   : > { %v683_v35 = vpop.f32.mrf.mxu0 }
 0x136   : > { %v770_v36 = vmax.f32 %v2115_v6, %v683_v35 }
 0x137   : > { %v685_v37 = vpop.f32.mrf.mxu0 }
 0x138   : > { %v771_v39 = vmax.f32 %v2117_v7, %v685_v37 }
 0x139   : > { %v2150_v40 = vpop.f32.mrf.mxu0 }
 0x13a   : > { %v772_v42 = vmax.f32 %v2119_v8, %v2150_v40 }
 0x13b   : > { %v2156_v43 = vpop.f32.mrf.mxu0 }
 0x13d   : > { %v2158_v44 = vpop.f32.mrf.mxu0 }
 0x13f   : > { %v2162_v46 = vpop.f32.mrf.mxu0 }
 0x141   : > { %v2166_v48 = vpop.f32.mrf.mxu0 }
 0x143   : > { %v2168_v49 = vpop.f32.mrf.mxu0 }
 0x145   : > { %v2170_v51 = vpop.f32.mrf.mxu0 }
 0x147   : > { %v2172_v53 = vpop.f32.mrf.mxu0 }
 0x149   : > { %v2174_v54 = vpop.f32.mrf.mxu0 }
 0x14b   : > { %v2176_v56 = vpop.f32.mrf.mxu0 }
 0x14d   : > { %v713_v58 = vpop.f32.mrf.mxu0 }
 0x14e   : > { %v782_v59 = vmax.f32 %v762_v20, %v713_v58 }
 0x14f   : > { %v715_v61 = vpop.f32.mrf.mxu0 }
 0x150   : > { %v783_v62 = vmax.f32 %v763_v22, %v715_v61  ;;  %v862_v1 = vadd.f32 %v815_v60, %v782_v59 }
 0x151   : > { %v717_v63 = vpop.f32.mrf.mxu0 }
 0x152   : > { %v784_v2 = vmax.f32 %v764_v24, %v717_v63  ;;  %v863_v4 = vadd.f32 %v815_v60, %v783_v62  ;;  %v882_v8 = vmax.f32 %v862_v1, 0.0 }
 0x153   : > { %v719_v3 = vpop.f32.mrf.mxu0 }
 0x154   : > { %v864_v5 = vadd.f32 %v820_v0, %v784_v2  ;;  %v785_v6 = vmax.f32 %v765_v26, %v719_v3  ;;  %v883_v27 = vmax.f32 %v863_v4, 0.0 }
 0x155   : > { %v723_v7 = vpop.f32.mrf.mxu0 }
 0x156   : > { %v884_v19 = vmax.f32 %v864_v5, 0.0  ;;  %v865_v21 = vadd.f32 %v820_v0, %v785_v6  ;;  %v786_v23 = vmax.f32 %v766_v28, %v723_v7  ;;  %v774_v6 = vmax.f32 %v2123_v10, %v2158_v44 }
 0x157   : > { %v725_v25 = vpop.f32.mrf.mxu0  ;;  %v777_v44 = vmax.f32 %v2129_v14, %v2168_v49 }
 0x158   : > { %v2178_v29 = vpack.c.bf16 %v884_v19, %v882_v8  ;;  %v885_v20 = vmax.f32 %v865_v21, 0.0  ;;  %v787_v31 = vmax.f32 %v767_v30, %v725_v25  ;;  %v866_v33 = vadd.f32 %v825_v55, %v786_v23 }
 0x159   : > { %v727_v22 = vpop.f32.mrf.mxu0  ;;  %v775_v8 = vmax.f32 %v2125_v11, %v2162_v46 }
 0x15a   : > { %v788_v35 = vmax.f32 %v768_v32, %v727_v22  ;;  %v2180_v37 = vpack.c.bf16 %v885_v20, %v883_v27  ;;  %v867_v40 = vadd.f32 %v825_v55, %v787_v31  ;;  %v886_v60 = vmax.f32 %v866_v33, 0.0 }
 0x15b   : > { %v729_v24 = vpop.f32.mrf.mxu0  ;;  %v773_v32 = vmax.f32 %v2121_v9, %v2156_v43  ;;  %v776_v9 = vmax.f32 %v2127_v13, %v2166_v48 }
 0x15c   : > { %v868_v58 = vadd.f32 %v830_v57, %v788_v35  ;;  %v789_v26 = vmax.f32 %v769_v34, %v729_v24  ;;  %v887_v0 = vmax.f32 %v867_v40, 0.0  ;;  %v779_v35 = vmax.f32 %v2133_v16, %v2172_v53 }
 0x15d   : > { %v733_v59 = vpop.f32.mrf.mxu0 }
 0x15e   : > { %v888_v61 = vmax.f32 %v868_v58, 0.0  ;;  %v869_v62 = vadd.f32 %v830_v57, %v789_v26  ;;  %v790_v28 = vmax.f32 %v770_v36, %v733_v59  ;;  %v780_v26 = vmax.f32 %v2135_v17, %v2174_v54 }
 0x15f   : > { %v735_v63 = vpop.f32.mrf.mxu0 }
 0x160   : > { %v2182_v1 = vpack.c.bf16 %v888_v61, %v886_v60  ;;  %v889_v2 = vmax.f32 %v869_v62, 0.0  ;;  %v791_v30 = vmax.f32 %v771_v39, %v735_v63  ;;  %v870_v4 = vadd.f32 %v835_v50, %v790_v28 }
 0x161   : > { %v737_v3 = vpop.f32.mrf.mxu0  ;;  %v781_v62 = vmax.f32 %v2137_v18, %v2176_v56  ;;  %v1828_v18 = vld [vmem:[%s2416_s3 + $0x8] sm:$0xff]   ;;  %v1830_v56 = vld [vmem:[%s2416_s3 + $0x18] sm:$0xff]  }
 0x162   : > { %v792_v5 = vmax.f32 %v772_v42, %v737_v3  ;;  %v2186_v55 = vpack.c.bf16 %v889_v2, %v887_v0  ;;  %v871_v57 = vadd.f32 %v835_v50, %v791_v30  ;;  %v890_v39 = vmax.f32 %v870_v4, 0.0 }
 0x163   : > { %v739_v34 = vpop.f32.mrf.mxu0 }
 0x164   : > { %v872_v36 = vadd.f32 %v840_v52, %v792_v5  ;;  %v793_v7 = vmax.f32 %v773_v32, %v739_v34  ;;  %v891_v43 = vmax.f32 %v871_v57, 0.0  ;;  %v1836_v34 = vld [vmem:[%s2416_s3 + $0x40] sm:$0xff]   ;;  %v1838_v57 = vld [vmem:[%s2416_s3 + $0x50] sm:$0xff]  }
 0x165   : > { %v743_v19 = vpop.f32.mrf.mxu0 }
 0x166   : > { %v892_v21 = vmax.f32 %v872_v36, 0.0  ;;  %v873_v23 = vadd.f32 %v840_v52, %v793_v7  ;;  %v794_v25 = vmax.f32 %v774_v6, %v743_v19  ;;  %v778_v52 = vmax.f32 %v2131_v15, %v2170_v51  ;;  %v1837_v6 = vld [vmem:[%s2416_s3 + $0x48] sm:$0xff]   ;;  %v1839_v36 = vld [vmem:[%s2416_s3 + $0x58] sm:$0xff]  }
 0x167   : > { %v745_v42 = vpop.f32.mrf.mxu0 }
 0x168   : > { %v906_v27 = vpack.c.bf16 %v892_v21, %v890_v39  ;;  %v893_v20 = vmax.f32 %v873_v23, 0.0  ;;  %v795_v31 = vmax.f32 %v775_v8, %v745_v42  ;;  %v874_v50 = vadd.f32 %v2152_v41, %v794_v25 }
 0x169   : > { %v747_v10 = vpop.f32.mrf.mxu0 }
 0x16a   : > { %v796_v11 = vmax.f32 %v776_v9, %v747_v10  ;;  %v907_v46 = vpack.c.bf16 %v893_v20, %v891_v43  ;;  %v875_v33 = vadd.f32 %v2152_v41, %v795_v31  ;;  %v894_v40 = vmax.f32 %v874_v50, 0.0 }
 0x16b   : > { %v749_v22 = vpop.f32.mrf.mxu0 }
 0x16c   : > { %v876_v13 = vadd.f32 %v2164_v47, %v796_v11  ;;  %v797_v48 = vmax.f32 %v777_v44, %v749_v22  ;;  %v895_v60 = vmax.f32 %v875_v33, 0.0 }
 0x16d   : > { %v753_v24 = vpop.f32.mrf.mxu0 }
 0x16e   : > { %v896_v58 = vmax.f32 %v876_v13, 0.0  ;;  %v877_v14 = vadd.f32 %v2164_v47, %v797_v48  ;;  %v798_v49 = vmax.f32 %v778_v52, %v753_v24  ;;  %v2303_v13 = vpop.permute.xlu0 %1258 }
 0x16f   : > { %v755_v59 = vpop.f32.mrf.mxu0 }
 0x170   : > { %v908_v15 = vpack.c.bf16 %v896_v58, %v894_v40  ;;  %v897_v51 = vmax.f32 %v877_v14, 0.0  ;;  %v799_v41 = vmax.f32 %v779_v35, %v755_v59  ;;  %v878_v16 = vadd.f32 %v2147_v38, %v798_v49  ;;  %v2307_v35 = vpop.permute.xlu1 %1263 }
 0x171   : > { %v757_v61 = vpop.f32.mrf.mxu0 }
 0x172   : > { %v800_v53 = vmax.f32 %v780_v26, %v757_v61  ;;  %v909_v28 = vpack.c.bf16 %v897_v51, %v895_v60  ;;  %v879_v47 = vadd.f32 %v2147_v38, %v799_v41  ;;  %v898_v17 = vmax.f32 %v878_v16, 0.0  ;;  %v1831_v38 = vld [vmem:[%s2416_s3] sm:$0xff]   ;;  %v2313_v14 = vpop.permute.xlu0 %1248 }
 0x173   : > { %v759_v63 = vpop.f32.mrf.mxu0 }
 0x174   : > { %v880_v0 = vadd.f32 %v2160_v45, %v800_v53  ;;  %v801_v2 = vmax.f32 %v781_v62, %v759_v63  ;;  %v899_v3 = vmax.f32 %v879_v47, 0.0  ;;  %v2317_v26 = vpop.permute.xlu1 %1253 }
 0x176   : > { %v900_v54 = vmax.f32 %v880_v0, 0.0  ;;  %v881_v30 = vadd.f32 %v2160_v45, %v801_v2  ;;  %v1829_v45 = vld [vmem:[%s2416_s3 + $0x10] sm:$0xff]   ;;  %v1239_v51 = vpop.permute.xlu0 %1238 }
 0x178   : > { %v910_v32 = vpack.c.bf16 %v900_v54, %v898_v17  ;;  %v901_v4 = vmax.f32 %v881_v30, 0.0  ;;  %v1244_v16 = vpop.permute.xlu1 %1243 }
 0x17a   : > { %v911_v5 = vpack.c.bf16 %v901_v4, %v899_v3  ;;  %v1229_v54 = vpop.permute.xlu0 %1228 }
 0x17c   : > { %1039 = vmatprep.subr.bf16.mxu0 %v911_v5  ;;  %1756 = vmatprep.subr.bf16.mxu1 %v911_v5  ;;  %v1234_v5 = vpop.permute.xlu1 %1233 }
 0x17d   : > { %1040 = vmatpush1.bf16.msra.mxu0 %v910_v32  ;;  %1761 = vmatpush1.bf16.msra.mxu1 %v910_v32 }
 0x17e   : > { %1041 = vmatprep.subr.bf16.mxu0 %v909_v28  ;;  %1757 = vmatprep.subr.bf16.mxu1 %v909_v28 }
 0x181   : > { %1042 = vmatpush1.bf16.msra.mxu0 %v908_v15  ;;  %1762 = vmatpush1.bf16.msra.mxu1 %v908_v15 }
 0x182   : > { %1043 = vmatprep.subr.bf16.mxu0 %v907_v46  ;;  %1758 = vmatprep.subr.bf16.mxu1 %v907_v46 }
 0x185   : > { %1044 = vmatpush1.bf16.msra.mxu0 %v906_v27  ;;  %1763 = vmatpush1.bf16.msra.mxu1 %v906_v27 }
 0x186   : > { %1045 = vmatprep.subr.bf16.mxu0 %v2186_v55  ;;  %1759 = vmatprep.subr.bf16.mxu1 %v2186_v55  ;;  %v1835_v55 = vld [vmem:[%s2416_s3 + $0x38] sm:$0xff]  }
 0x189   : > { %1046 = vmatpush1.bf16.msra.mxu0 %v2182_v1  ;;  %1764 = vmatpush1.bf16.msra.mxu1 %v2182_v1  ;;  %v1834_v1 = vld [vmem:[%s2416_s3 + $0x30] sm:$0xff]  }
 0x18a   : > { %1047 = vmatprep.subr.bf16.mxu0 %v2180_v37  ;;  %1760 = vmatprep.subr.bf16.mxu1 %v2180_v37  ;;  %v1833_v37 = vld [vmem:[%s2416_s3 + $0x28] sm:$0xff]  }
 0x18d   : > { %1048 = vmatpush1.bf16.msra.mxu0 %v2178_v29  ;;  %1765 = vmatpush1.bf16.msra.mxu1 %v2178_v29  ;;  %v1832_v29 = vld [vmem:[%s2416_s3 + $0x20] sm:$0xff]  }
 0x190   : > { %1718 = vmatmul.mubr.msk.bf16.vlgmr.msra.gmra.mxu1 %vm996_vm1, %v1828_v18  ;;  %1717 = vmatmul.mubr.msk.bf16.vlgmr.msra.gmra.mxu0 %vm996_vm1, %v1831_v38 }
 0x191   : > { %1085 = vmatprep.mubr.bf16.mxu1 %v1870_v12 }
 0x198   : > { %1719 = vmatmul.mubr.msk.bf16.gmra.mxu1 %vm996_vm1, %v1829_v45 }
 0x199   : > { %1095 = vmatprep.mubr.bf16.mxu1 %v1870_v12 }
 0x1a0   : > { %1720 = vmatmul.mubr.msk.bf16.gmra.mxu1 %vm996_vm1, %v1830_v56 }
 0x1a1   : > { %1105 = vmatprep.mubr.bf16.mxu1 %v1870_v12 }
 0x1a8   : > { %1721 = vmatmul.mubr.msk.bf16.gmra.mxu1 %vm996_vm1, %v1832_v29 }
 0x1a9   : > { %1115 = vmatprep.mubr.bf16.mxu1 %v1870_v12 }
 0x1b0   : > { %1722 = vmatmul.mubr.msk.bf16.gmra.mxu1 %vm996_vm1, %v1833_v37 }
 0x1b1   : > { %1125 = vmatprep.mubr.bf16.mxu1 %v1870_v12 }
 0x1b8   : > { %1723 = vmatmul.mubr.msk.bf16.gmra.mxu1 %vm996_vm1, %v1834_v1 }
 0x1b9   : > { %1135 = vmatprep.mubr.bf16.mxu1 %v1870_v12 }
 0x1c0   : > { %1724 = vmatmul.mubr.msk.bf16.gmra.mxu1 %vm996_vm1, %v1835_v55 }
 0x1c1   : > { %1145 = vmatprep.mubr.bf16.mxu1 %v1870_v12 }
 0x1c8   : > { %1725 = vmatmul.mubr.msk.bf16.gmra.mxu1 %vm996_vm1, %v1836_v34 }
 0x1c9   : > { %1155 = vmatprep.mubr.bf16.mxu1 %v1870_v12 }
 0x1d0   : > { %1726 = vmatmul.mubr.msk.bf16.gmra.mxu1 %vm996_vm1, %v1837_v6 }
 0x1d1   : > { %1165 = vmatprep.mubr.bf16.mxu1 %v1870_v12 }
 0x1d8   : > { %1727 = vmatmul.mubr.msk.bf16.gmra.mxu1 %vm996_vm1, %v1838_v57 }
 0x1d9   : > { %1175 = vmatprep.mubr.bf16.mxu1 %v1870_v12 }
 0x1e0   : > { %1728 = vmatmul.mubr.msk.bf16.gmra.mxu1 %vm996_vm1, %v1839_v36 }
 0x1e1   : > { %1399 = vmatprep.mubr.bf16.mxu1 %v1870_v12 }
 0x250   : > { %v1077_v7 = vpop.f32.mrf.mxu1  ;;  %v1067_v40 = vpop.f32.mrf.mxu0 }
 0x252   : > { %v2279_v8 = vpop.f32.mrf.mxu1  ;;  %v1069_v59 = vpop.f32.mrf.mxu0 }
 0x254   : > { %v2281_v19 = vpop.f32.mrf.mxu1  ;;  %v1071_v41 = vpop.f32.mrf.mxu0 }
 0x256   : > { %v2283_v39 = vpop.f32.mrf.mxu1  ;;  %v1073_v47 = vpop.f32.mrf.mxu0 }
 0x258   : > { %v2285_v21 = vpop.f32.mrf.mxu1 }
 0x25a   : > { %v2287_v23 = vpop.f32.mrf.mxu1 }
 0x25c   : > { %v2289_v25 = vpop.f32.mrf.mxu1 }
 0x25e   : > { %v2291_v9 = vpop.f32.mrf.mxu1 }
 0x260   : > { %v2293_v42 = vpop.f32.mrf.mxu1 }
 0x262   : > { %v2295_v43 = vpop.f32.mrf.mxu1 }
 0x264   : > { %v2297_v27 = vpop.f32.mrf.mxu1 }
 0x266   : > { %v2299_v20 = vpop.f32.mrf.mxu1 }
 0x268   : > { %v1107_v31 = vpop.f32.mrf.mxu1 }
 0x269   : > { %v1186_v62 = vmax.f32 %v1067_v40, %v1107_v31 }
 0x26a   : > { %v1109_v10 = vpop.f32.mrf.mxu1 }
 0x26b   : > { %v1187_v28 = vmax.f32 %v1069_v59, %v1109_v10 }
 0x26c   : > { %v1111_v44 = vpop.f32.mrf.mxu1 }
 0x26d   : > { %v1188_v2 = vmax.f32 %v1071_v41, %v1111_v44 }
 0x26e   : > { %v1113_v50 = vpop.f32.mrf.mxu1 }
 0x26f   : > { %v1189_v3 = vmax.f32 %v1073_v47, %v1113_v50 }
 0x270   : > { %v1117_v11 = vpop.f32.mrf.mxu1 }
 0x271   : > { %v1190_v38 = vmax.f32 %v1077_v7, %v1117_v11 }
 0x272   : > { %v1119_v46 = vpop.f32.mrf.mxu1 }
 0x273   : > { %v1191_v37 = vmax.f32 %v2279_v8, %v1119_v46 }
 0x274   : > { %v1121_v22 = vpop.f32.mrf.mxu1 }
 0x275   : > { %v1192_v36 = vmax.f32 %v2281_v19, %v1121_v22 }
 0x276   : > { %v1123_v52 = vpop.f32.mrf.mxu1 }
 0x277   : > { %v1193_v7 = vmax.f32 %v2283_v39, %v1123_v52 }
 0x278   : > { %v2301_v33 = vpop.f32.mrf.mxu1 }
 0x279   : > { %v1194_v46 = vmax.f32 %v2285_v21, %v2301_v33 }
 0x27a   : > { %v2305_v48 = vpop.f32.mrf.mxu1 }
 0x27b   : > { %v1195_v19 = vmax.f32 %v2287_v23, %v2305_v48 }
 0x27c   : > { %v2309_v24 = vpop.f32.mrf.mxu1 }
 0x27d   : > { %v1196_v39 = vmax.f32 %v2289_v25, %v2309_v24 }
 0x27e   : > { %v2311_v58 = vpop.f32.mrf.mxu1 }
 0x27f   : > { %v1197_v33 = vmax.f32 %v2291_v9, %v2311_v58 }
 0x280   : > { %v2315_v49 = vpop.f32.mrf.mxu1 }
 0x282   : > { %v2319_v60 = vpop.f32.mrf.mxu1 }
 0x284   : > { %v2321_v15 = vpop.f32.mrf.mxu1 }
 0x286   : > { %v2323_v61 = vpop.f32.mrf.mxu1 }
 0x288   : > { %v1147_v53 = vpop.f32.mrf.mxu1 }
 0x289   : > { %v1202_v63 = vmax.f32 %v1186_v62, %v1147_v53 }
 0x28a   : > { %v1149_v0 = vpop.f32.mrf.mxu1 }
 0x28b   : > { %v1203_v17 = vmax.f32 %v1187_v28, %v1149_v0  ;;  %v1266_v32 = vadd.f32 %v1229_v54, %v1202_v63 }
 0x28c   : > { %v1151_v30 = vpop.f32.mrf.mxu1 }
 0x28d   : > { %v1204_v4 = vmax.f32 %v1188_v2, %v1151_v30  ;;  %v1267_v45 = vadd.f32 %v1229_v54, %v1203_v17  ;;  %v1282_v55 = vmax.f32 %v1266_v32, 0.0 }
 0x28e   : > { %v1153_v18 = vpop.f32.mrf.mxu1 }
 0x28f   : > { %v1268_v56 = vadd.f32 %v1234_v5, %v1204_v4  ;;  %v1205_v29 = vmax.f32 %v1189_v3, %v1153_v18  ;;  %v1283_v10 = vmax.f32 %v1267_v45, 0.0  ;;  %v1199_v18 = vmax.f32 %v2295_v43, %v2319_v60 }
 0x290   : > { %v1157_v1 = vpop.f32.mrf.mxu1 }
 0x291   : > { %v1284_v34 = vmax.f32 %v1268_v56, 0.0  ;;  %v1269_v6 = vadd.f32 %v1234_v5, %v1205_v29  ;;  %v1206_v57 = vmax.f32 %v1190_v38, %v1157_v1  ;;  %v1200_v29 = vmax.f32 %v2297_v27, %v2321_v15 }
 0x292   : > { %v1159_v31 = vpop.f32.mrf.mxu1 }
 0x293   : > { %v2327_v44 = vpack.c.bf16 %v1284_v34, %v1282_v55  ;;  %v1285_v50 = vmax.f32 %v1269_v6, 0.0  ;;  %v1207_v40 = vmax.f32 %v1191_v37, %v1159_v31  ;;  %v1270_v11 = vadd.f32 %v1239_v51, %v1206_v57 }
 0x294   : > { %v1161_v59 = vpop.f32.mrf.mxu1  ;;  %v1201_v34 = vmax.f32 %v2299_v20, %v2323_v61  ;;  %v1840_v20 = vld [vmem:[%s2418_s5] sm:$0xff]   ;;  %v1843_v61 = vld [vmem:[%s2418_s5 + $0x18] sm:$0xff]  }
 0x295   : > { %v1208_v41 = vmax.f32 %v1192_v36, %v1161_v59  ;;  %v1299_v62 = vpack.c.bf16 %v1285_v50, %v1283_v10  ;;  %v1271_v53 = vadd.f32 %v1239_v51, %v1207_v40  ;;  %v1286_v47 = vmax.f32 %v1270_v11, 0.0  ;;  %v1845_v11 = vld [vmem:[%s2418_s5 + $0x28] sm:$0xff]  }
 0x296   : > { %v1163_v8 = vpop.f32.mrf.mxu1 }
 0x297   : > { %v1272_v28 = vadd.f32 %v1244_v16, %v1208_v41  ;;  %v1209_v63 = vmax.f32 %v1193_v7, %v1163_v8  ;;  %v1287_v54 = vmax.f32 %v1271_v53, 0.0 }
 0x298   : > { %v1167_v22 = vpop.f32.mrf.mxu1 }
 0x299   : > { %v1288_v0 = vmax.f32 %v1272_v28, 0.0  ;;  %v1273_v2 = vadd.f32 %v1244_v16, %v1209_v63  ;;  %v1210_v17 = vmax.f32 %v1194_v46, %v1167_v22  ;;  %v1198_v16 = vmax.f32 %v2293_v42, %v2315_v49 }
 0x29a   : > { %v1169_v52 = vpop.f32.mrf.mxu1 }
 0x29b   : > { %v1300_v30 = vpack.c.bf16 %v1288_v0, %v1286_v47  ;;  %v1289_v3 = vmax.f32 %v1273_v2, 0.0  ;;  %v1211_v32 = vmax.f32 %v1195_v19, %v1169_v52  ;;  %v1274_v51 = vadd.f32 %v2313_v14, %v1210_v17 }
 0x29c   : > { %v1171_v21 = vpop.f32.mrf.mxu1 }
 0x29d   : > { %v1212_v23 = vmax.f32 %v1196_v39, %v1171_v21  ;;  %v1301_v48 = vpack.c.bf16 %v1289_v3, %v1287_v54  ;;  %v1275_v5 = vadd.f32 %v2313_v14, %v1211_v32  ;;  %v1290_v45 = vmax.f32 %v1274_v51, 0.0  ;;  %v1483_v21 = vpop.permute.xlu0 %1482 }
 0x29e   : > { %v1173_v4 = vpop.f32.mrf.mxu1 }
 0x29f   : > { %v1276_v25 = vadd.f32 %v2317_v26, %v1212_v23  ;;  %v1213_v24 = vmax.f32 %v1197_v33, %v1173_v4  ;;  %v1291_v1 = vmax.f32 %v1275_v5, 0.0 }
 0x2a0   : > { %v1177_v38 = vpop.f32.mrf.mxu1 }
 0x2a1   : > { %v1292_v56 = vmax.f32 %v1276_v25, 0.0  ;;  %v1277_v9 = vadd.f32 %v2317_v26, %v1213_v24  ;;  %v1214_v58 = vmax.f32 %v1198_v16, %v1177_v38  ;;  %v1488_v24 = vpop.permute.xlu1 %1487 }
 0x2a2   : > { %v1179_v37 = vpop.f32.mrf.mxu1 }
 0x2a3   : > { %v1302_v42 = vpack.c.bf16 %v1292_v56, %v1290_v45  ;;  %v1293_v49 = vmax.f32 %v1277_v9, 0.0  ;;  %v1215_v14 = vmax.f32 %v1199_v18, %v1179_v37  ;;  %v1278_v43 = vadd.f32 %v2303_v13, %v1214_v58 }
 0x2a4   : > { %v1181_v55 = vpop.f32.mrf.mxu1 }
 0x2a5   : > { %v1216_v60 = vmax.f32 %v1200_v29, %v1181_v55  ;;  %v1303_v6 = vpack.c.bf16 %v1293_v49, %v1291_v1  ;;  %v1279_v26 = vadd.f32 %v2303_v13, %v1215_v14  ;;  %v1294_v27 = vmax.f32 %v1278_v43, 0.0  ;;  %v1841_v13 = vld [vmem:[%s2418_s5 + $0x8] sm:$0xff]   ;;  %v1493_v14 = vpop.permute.xlu0 %1492 }
 0x2a6   : > { %v1183_v57 = vpop.f32.mrf.mxu1 }
 0x2a7   : > { %v1280_v36 = vadd.f32 %v2307_v35, %v1216_v60  ;;  %v1217_v31 = vmax.f32 %v1201_v34, %v1183_v57  ;;  %v1295_v50 = vmax.f32 %v1279_v26, 0.0 }
 0x2a9   : > { %v1296_v15 = vmax.f32 %v1280_v36, 0.0  ;;  %v1281_v10 = vadd.f32 %v2307_v35, %v1217_v31  ;;  %v1842_v35 = vld [vmem:[%s2418_s5 + $0x10] sm:$0xff]  }
 0x2ab   : > { %v1304_v40 = vpack.c.bf16 %v1296_v15, %v1294_v27  ;;  %v1297_v59 = vmax.f32 %v1281_v10, 0.0  ;;  %v1498_v10 = vpop.permute.xlu1 %1497 }
 0x2ad   : > { %v1305_v7 = vpack.c.bf16 %v1297_v59, %v1295_v50 }
 0x2af   : > { %1375 = vmatprep.subr.bf16.mxu1 %v1305_v7 }
 0x2b0   : > { %1376 = vmatpush1.bf16.msra.mxu1 %v1304_v40 }
 0x2b1   : > { %1377 = vmatprep.subr.bf16.mxu1 %v1303_v6 }
 0x2b4   : > { %1378 = vmatpush1.bf16.msra.mxu1 %v1302_v42 }
 0x2b5   : > { %1379 = vmatprep.subr.bf16.mxu1 %v1301_v48 }
 0x2b8   : > { %1380 = vmatpush1.bf16.msra.mxu1 %v1300_v30 }
 0x2b9   : > { %1381 = vmatprep.subr.bf16.mxu1 %v1299_v62 }
 0x2bc   : > { %1382 = vmatpush1.bf16.msra.mxu1 %v2327_v44  ;;  %v1844_v44 = vld [vmem:[%s2418_s5 + $0x20] sm:$0xff]  }
 0x2bf   : > { %1735 = vmatmul.mubr.msk.bf16.vlgmr.msra.gmra.mxu1 %vm1348_vm2, %v1840_v20 }
 0x2c0   : > { %1409 = vmatprep.mubr.bf16.mxu1 %v1870_v12 }
 0x2c7   : > { %1736 = vmatmul.mubr.msk.bf16.gmra.mxu1 %vm1348_vm2, %v1841_v13 }
 0x2c8   : > { %1419 = vmatprep.mubr.bf16.mxu1 %v1870_v12 }
 0x2cf   : > { %1737 = vmatmul.mubr.msk.bf16.gmra.mxu1 %vm1348_vm2, %v1842_v35 }
 0x2d0   : > { %1429 = vmatprep.mubr.bf16.mxu1 %v1870_v12 }
 0x2d7   : > { %1738 = vmatmul.mubr.msk.bf16.gmra.mxu1 %vm1348_vm2, %v1843_v61 }
 0x2d8   : > { %1439 = vmatprep.mubr.bf16.mxu1 %v1870_v12 }
 0x2df   : > { %1739 = vmatmul.mubr.msk.bf16.gmra.mxu1 %vm1348_vm2, %v1844_v44 }
 0x2e0   : > { %1449 = vmatprep.mubr.bf16.mxu1 %v1870_v12 }
 0x2e7   : > { %1740 = vmatmul.mubr.msk.bf16.gmra.mxu1 %vm1348_vm2, %v1845_v11 }
 0x37f   : > { %v1401_v41 = vpop.f32.mrf.mxu1 }
 0x381   : > { %v1403_v62 = vpop.f32.mrf.mxu1 }
 0x383   : > { %v1405_v8 = vpop.f32.mrf.mxu1 }
 0x385   : > { %v1407_v46 = vpop.f32.mrf.mxu1 }
 0x387   : > { %v1411_v53 = vpop.f32.mrf.mxu1 }
 0x389   : > { %v1413_v28 = vpop.f32.mrf.mxu1 }
 0x38b   : > { %v1415_v63 = vpop.f32.mrf.mxu1 }
 0x38d   : > { %v1417_v19 = vpop.f32.mrf.mxu1 }
 0x38f   : > { %v1421_v22 = vpop.f32.mrf.mxu1 }
 0x390   : > { %v1460_v54 = vmax.f32 %v1401_v41, %v1421_v22 }
 0x391   : > { %v1423_v47 = vpop.f32.mrf.mxu1 }
 0x392   : > { %v1461_v3 = vmax.f32 %v1403_v62, %v1423_v47 }
 0x393   : > { %v1425_v0 = vpop.f32.mrf.mxu1 }
 0x394   : > { %v1462_v51 = vmax.f32 %v1405_v8, %v1425_v0 }
 0x395   : > { %v1427_v2 = vpop.f32.mrf.mxu1 }
 0x396   : > { %v1463_v16 = vmax.f32 %v1407_v46, %v1427_v2 }
 0x397   : > { %v1431_v12 = vpop.f32.mrf.mxu1 }
 0x398   : > { %v1464_v18 = vmax.f32 %v1411_v53, %v1431_v12 }
 0x399   : > { %v1433_v17 = vpop.f32.mrf.mxu1 }
 0x39a   : > { %v1465_v37 = vmax.f32 %v1413_v28, %v1433_v17 }
 0x39b   : > { %v1435_v39 = vpop.f32.mrf.mxu1 }
 0x39c   : > { %v1466_v55 = vmax.f32 %v1415_v63, %v1435_v39 }
 0x39d   : > { %v1437_v52 = vpop.f32.mrf.mxu1 }
 0x39e   : > { %v1467_v36 = vmax.f32 %v1417_v19, %v1437_v52 }
 0x39f   : > { %v1441_v30 = vpop.f32.mrf.mxu1 }
 0x3a0   : > { %v1468_v32 = vmax.f32 %v1460_v54, %v1441_v30 }
 0x3a1   : > { %v1443_v33 = vpop.f32.mrf.mxu1 }
 0x3a2   : > { %v1500_v23 = vadd.f32 %v1483_v21, %v1468_v32  ;;  %v1469_v48 = vmax.f32 %v1461_v3, %v1443_v33 }
 0x3a3   : > { %v1445_v4 = vpop.f32.mrf.mxu1 }
 0x3a4   : > { %v1501_v5 = vadd.f32 %v1483_v21, %v1469_v48  ;;  %v1470_v25 = vmax.f32 %v1462_v51, %v1445_v4  ;;  %v1508_v45 = vmax.f32 %v1500_v23, 0.0 }
 0x3a5   : > { %v1447_v38 = vpop.f32.mrf.mxu1 }
 0x3a6   : > { %v1509_v56 = vmax.f32 %v1501_v5, 0.0  ;;  %v1502_v9 = vadd.f32 %v1488_v24, %v1470_v25  ;;  %v1471_v58 = vmax.f32 %v1463_v16, %v1447_v38 }
 0x3a7   : > { %v1451_v29 = vpop.f32.mrf.mxu1 }
 0x3a8   : > { %v1751_v1 = vpack.c.bf16 %v1509_v56, %v1508_v45  ;;  %v1503_v42 = vadd.f32 %v1488_v24, %v1471_v58  ;;  %v1472_v49 = vmax.f32 %v1464_v18, %v1451_v29  ;;  %v1510_v43 = vmax.f32 %v1502_v9, 0.0 }
 0x3a9   : > { %v1453_v34 = vpop.f32.mrf.mxu1 }
 0x3aa   : > { %1540 = vst [vmem:[%s2386_s10] sm:$0xff] %v1751_v1  ;;  %v1511_v60 = vmax.f32 %v1503_v42, 0.0  ;;  %v1504_v6 = vadd.f32 %v1493_v14, %v1472_v49  ;;  %v1473_v57 = vmax.f32 %v1465_v37, %v1453_v34 }
 0x3ab   : > { %v1455_v26 = vpop.f32.mrf.mxu1 }
 0x3ac   : > { %v1752_v31 = vpack.c.bf16 %v1511_v60, %v1510_v43  ;;  %v1505_v27 = vadd.f32 %v1493_v14, %v1473_v57  ;;  %v1474_v15 = vmax.f32 %v1466_v55, %v1455_v26  ;;  %v1512_v40 = vmax.f32 %v1504_v6, 0.0 }
 0x3ad   : > { %v1457_v50 = vpop.f32.mrf.mxu1 }
 0x3ae   : > { %1541 = vst [vmem:[%s2386_s10 + $0x8] sm:$0xff] %v1752_v31  ;;  %v1513_v59 = vmax.f32 %v1505_v27, 0.0  ;;  %v1506_v7 = vadd.f32 %v1498_v10, %v1474_v15  ;;  %v1475_v20 = vmax.f32 %v1467_v36, %v1457_v50 }
 0x3b0   : > { %v1753_v13 = vpack.c.bf16 %v1513_v59, %v1512_v40  ;;  %v1507_v35 = vadd.f32 %v1498_v10, %v1475_v20  ;;  %v1514_v61 = vmax.f32 %v1506_v7, 0.0 }
 0x3b1   : > { %v1588_v41 = vld [vmem:[%s2386_s10] sm:$0xff] (%p1941_p5) }
 0x3b2   : > { %1542 = vst [vmem:[%s2386_s10 + $0x10] sm:$0xff] %v1753_v13  ;;  %v1515_v44 = vmax.f32 %v1507_v35, 0.0  ;;  %1550 = sbr.rel (!%p1941_p5) target bundleno = 959 (0x3bf), region = 90  ;;  %1589 = vst [vmem:[%s1553_s12] sm:$0xff] (%p1941_p5), %v1588_v41 }
 0x3b4   : > { %v1754_v11 = vpack.c.bf16 %v1515_v44, %v1514_v61 }
 0x3b5   : > { %v1590_v62 = vld [vmem:[%s2386_s10 + $0x8] sm:$0xff] (%p1941_p5) }
 0x3b6   : > { %1543 = vst [vmem:[%s2386_s10 + $0x18] sm:$0xff] %v1754_v11  ;;  %1591 = vst [vmem:[%s1553_s12 + $0x10] sm:$0xff] (%p1941_p5), %v1590_v62 }
 0x3b9   : > { %v1592_v8 = vld [vmem:[%s2386_s10 + $0x10] sm:$0xff] }
 0x3ba   : > { %1593 = vst [vmem:[%s1553_s12 + $0x20] sm:$0xff] %v1592_v8 }
 0x3bd   : > { %v1594_v46 = vld [vmem:[%s2386_s10 + $0x18] sm:$0xff] }
 0x3be   : > { %1595 = vst [vmem:[%s1553_s12 + $0x30] sm:$0xff] %v1594_v46 }
 0x3bf PF: > { %p14_p10 = scmp.ge.s32.totalorder %s1928_s28, 4   ;;  %s2422_s24 = smov %s1864_s25 }
 0x3c0   : > { %s2423_s25 = smov %s1939_s8  ;;  %s2424_s26 = smov %s1928_s28 }
 0x3c1   :  { %16 = sbr.rel (!%p14_p10) target bundleno = 2 (0x2), region = 159 }

// kernel: _lambda_.3
= control target key start
LH: loop header
LB: loop body
LE: loop exit
PB: predicated region body
PF: predicated region fallthrough
CT: control target
= control target key end

     0   :  { %14 = vsyncpa [#allocation4], 0  ;;  %s18687_s0 = inlined_call_operand.vmem [shape: bf16[2,6400], index: 0, kind: input, shape index: {}]   ;;  %s18688_s1 = inlined_call_operand.hbm [shape: bf16[6400,1024], index: 1, kind: input, shape index: {}]   ;;  %s18689_s2 = inlined_call_operand.hbm [shape: f32[1,1024], index: 2, kind: input, shape index: {}]   ;;  %s18690_s3 = inlined_call_operand.hbm [shape: bf16[1024,256], index: 3, kind: input, shape index: {}]   ;;  %s18691_s4 = inlined_call_operand.hbm [shape: f32[1,256], index: 4, kind: input, shape index: {}]   ;;  %s18692_s5 = inlined_call_operand.hbm [shape: f32[256,128], index: 5, kind: input, shape index: {}]   ;;  %s18693_s6 = inlined_call_operand.hbm [shape: f32[1,128], index: 6, kind: input, shape index: {}]   ;;  %s18694_s7 = inlined_call_operand.hbm [shape: f32[128,128], index: 7, kind: input, shape index: {}]   ;;  %s18695_s8 = inlined_call_operand.hbm [shape: f32[1,128], index: 8, kind: input, shape index: {}]   ;;  %s18696_s9 = inlined_call_operand.hbm [shape: f32[2,128], index: 9, kind: output, shape index: {}]  }
   0x1   :  { %16 = vsyncpa [#allocation4 + $0x1], 0 }
   0x2   :  { %17 = vsyncpa [#allocation7], 0 }
   0x3   :  { %18 = vsyncpa [#allocation10], 0 }
   0x4   :  { %19 = vsyncpa [#allocation13], 0 }
   0x5   :  { %20 = vsyncpa [#allocation16], 0 }
   0x6   :  { %21 = vsyncpa [#allocation5], 0  ;;  %s16380_s30 = smov 0   ;;  %s16382_s10 = smov 0  }
   0x7   :  { %s16384_s11 = smov 0   ;;  %s16386_s12 = smov 0  }
   0x8 LB: > { %s16311_s13 = smov [#allocation6]   ;;  %s16401_s15 = sadd.s32 4294967295, %s16309_s12   ;;  %s16309_s12 = sphi %s16386_s12, %s18720_s12   ;;  %s16305_s11 = sphi %s16384_s11, %s18719_s11   ;;  %s16301_s10 = sphi %s16382_s10, %s18718_s10   ;;  %s16297_s30 = sphi %s16380_s30, %s18717_s30  }
   0x9   : > { %s265_s14 = sshll.u32 %s16311_s13, 4  ;;  %p13851_p0 = scmp.ge.s32.totalorder %s16309_s12, 1  ;;  %s266_s14 = int_to_ptr.vmem [resolvable:$true] %s265_s14 }
   0xa   : > { %p18697_p1 = scmp.eq.s32.totalorder %s16401_s15, 0  ;;  %p252_p2 = scmp.lt.s32.totalorder %s16309_s12, 3 }
   0xb   : > { %s16312_s17 = smov [#allocation9]   ;;  %s16313_s19 = smov [#allocation12]  }
   0xc   : > { %p16407_p4 = pnand %p13851_p0, %p252_p2  ;;  %s289_s18 = sshll.u32 %s16312_s17, 4  ;;  %s290_s18 = int_to_ptr.vmem [resolvable:$true] %s289_s18 }
   0xd   : > { %s313_s20 = sshll.u32 %s16313_s19, 4  ;;  %s16314_s22 = smov [#allocation8]   ;;  %s16419_s20 = int_to_ptr.vmem [resolvable:$true] %s313_s20 }
   0xe   : > { %s18700_s16 = scalar_select %p16407_p4, 1, 0 }
   0xf   : > { %p15733_p5 = pneg %p16407_p4  ;;  %s16421_s23 = sshll.u32 %s16314_s22, 4  ;;  %s276_s23 = int_to_ptr.vmem [resolvable:$true] %s16421_s23 }
  0x10   : > { %s16032_s25 = scalar_lea.vmem %s266_s14, 128  ;;  %p16040_p11 = scmp.lt.s32.totalorder %s266_s14, %s266_s14 }
  0x11   : > { %p16415_p6 = pnand %p15733_p5, %p18697_p1  ;;  %p16033_p8 = scmp.ne.s32.totalorder %s266_s14, %s16032_s25 }
  0x12   : > { %p16041_p12 = scmp.lt.s32.totalorder %s16032_s25, %s16032_s25 }
  0x13   : > { %p16425_p7 = pneg %p16415_p6 }
  0x14   : > { %p16042_p13 = por %p16041_p12, %p16040_p11 }
  0x15   : > { %p16035_p9 = pnand %p16033_p8, %p16425_p7 }
  0x17   : > { %p16036_p10 = pneg %p16035_p9 }
  0x19   : > { %p16043_p0 = pnand %p16042_p13, %p16036_p10 }
  0x1b   : > { %16046 = shalt.err (!%p16043_p0)
}
  0x1c   : > { %15736 = dma.hbm_to_vmem [thread:$0]  (!%p16415_p6), %s18689_s2, 128, %s266_s14, [#allocation7]  }
  0x1d   : > { %s16058_s28 = scalar_lea.vmem %s290_s18, 32  ;;  %p16066_p1 = scmp.lt.s32.totalorder %s290_s18, %s290_s18 }
  0x1e   : > { %p16059_p2 = scmp.ne.s32.totalorder %s290_s18, %s16058_s28  ;;  %p16067_p8 = scmp.lt.s32.totalorder %s16058_s28, %s16058_s28 }
  0x20   : > { %p16061_p5 = pnand %p16059_p2, %p16425_p7  ;;  %p16068_p9 = por %p16067_p8, %p16066_p1 }
  0x22   : > { %p16062_p3 = pneg %p16061_p5 }
  0x24   : > { %p16069_p4 = pnand %p16068_p9, %p16062_p3 }
  0x26   : > { %16072 = shalt.err (!%p16069_p4)
}
  0x27   : > { %15742 = dma.hbm_to_vmem [thread:$0]  (!%p16415_p6), %s18691_s4, 32, %s290_s18, [#allocation10]  }
  0x28   : > { %s16084_s14 = scalar_lea.vmem %s16419_s20, 16  ;;  %s16091_s17 = scalar_lea.vmem %s16419_s20, 32 }
  0x29   : > { %p16085_p10 = scmp.ne.s32.totalorder %s16419_s20, %s16084_s14  ;;  %p16092_p1 = scmp.lt.s32.totalorder %s16419_s20, %s16419_s20 }
  0x2a   : > { %p16093_p3 = scmp.lt.s32.totalorder %s16091_s17, %s16084_s14 }
  0x2b   : > { %p16087_p11 = pnand %p16085_p10, %p16425_p7 }
  0x2c   : > { %p16094_p4 = por %p16093_p3, %p16092_p1 }
  0x2d   : > { %p16088_p12 = pneg %p16087_p11 }
  0x2f   : > { %p16095_p13 = pnand %p16094_p4, %p16088_p12 }
  0x31   : > { %16098 = shalt.err (!%p16095_p13)
}
  0x32   : > { %15748 = dma.hbm_to_vmem [thread:$0]  (!%p16415_p6), %s18693_s6, 16, %s16419_s20, [#allocation13]  }
  0x33   : > { %s16110_s18 = scalar_lea.vmem %s276_s23, 16384  ;;  %p16118_p8 = scmp.lt.s32.totalorder %s276_s23, %s276_s23 }
  0x34   : > { %p16111_p0 = scmp.ne.s32.totalorder %s276_s23, %s16110_s18  ;;  %p16119_p9 = scmp.lt.s32.totalorder %s16110_s18, %s16110_s18 }
  0x36   : > { %p16113_p2 = pnand %p16111_p0, %p16425_p7  ;;  %p16120_p10 = por %p16119_p9, %p16118_p8 }
  0x38   : > { %p16114_p5 = pneg %p16113_p2 }
  0x3a   : > { %p16121_p11 = pnand %p16120_p10, %p16114_p5 }
  0x3c   : > { %16124 = shalt.err (!%p16121_p11)
}
  0x3d   : > { %s16315_s25 = smov 128   ;;  %s16316_s26 = smov 8  }
  0x3e   : > { %15739 = dma.hbm_to_vmem [thread:$0]  (!%p16415_p6), %s18690_s3, 16384, %s276_s23, [#allocation7], %s16315_s25, %s16315_s25, %s16316_s26  }
  0x3f   : > { %s16317_s28 = smov [#allocation11]   ;;  %s16318_s13 = smov [#allocation14]  }
  0x40   : > { %s299_s29 = sshll.u32 %s16317_s28, 4  ;;  %s323_s14 = sshll.u32 %s16318_s13, 4  ;;  %s300_s29 = int_to_ptr.vmem [resolvable:$true] %s299_s29  ;;  %s324_s14 = int_to_ptr.vmem [resolvable:$true] %s323_s14 }
  0x41   : > { %s16136_s17 = scalar_lea.vmem %s300_s29, 4096  ;;  %p16144_p4 = scmp.lt.s32.totalorder %s300_s29, %s300_s29 }
  0x42   : > { %p16137_p12 = scmp.ne.s32.totalorder %s300_s29, %s16136_s17  ;;  %p16145_p13 = scmp.lt.s32.totalorder %s16136_s17, %s16136_s17 }
  0x44   : > { %p16139_p1 = pnand %p16137_p12, %p16425_p7  ;;  %p16146_p0 = por %p16145_p13, %p16144_p4 }
  0x46   : > { %p16140_p3 = pneg %p16139_p1 }
  0x48   : > { %p16147_p2 = pnand %p16146_p0, %p16140_p3 }
  0x4a   : > { %16150 = shalt.err (!%p16147_p2)
}
  0x4b   : > { %15745 = dma.hbm_to_vmem [thread:$0]  (!%p16415_p6), %s18692_s5, 4096, %s300_s29, [#allocation10], %s16315_s25, %s16315_s25, %s16316_s26  }
  0x4c   : > { %s16162_s22 = scalar_lea.vmem %s324_s14, 2048  ;;  %p16170_p10 = scmp.lt.s32.totalorder %s324_s14, %s324_s14 }
  0x4d   : > { %p16163_p5 = scmp.ne.s32.totalorder %s324_s14, %s16162_s22  ;;  %p16171_p11 = scmp.lt.s32.totalorder %s16162_s22, %s16162_s22 }
  0x4f   : > { %p16165_p8 = pnand %p16163_p5, %p16425_p7  ;;  %p16172_p12 = por %p16171_p11, %p16170_p10 }
  0x51   : > { %p16166_p9 = pneg %p16165_p8 }
  0x53   : > { %p16173_p1 = pnand %p16172_p12, %p16166_p9 }
  0x55   : > { %16176 = shalt.err (!%p16173_p1)
}
  0x56   : > { %15751 = dma.hbm_to_vmem [thread:$0]  (!%p16415_p6), %s18694_s7, 2048, %s324_s14, [#allocation13], %s16315_s25, %s16315_s25, %s16316_s26  }
  0x57   : > { %s16319_s27 = smov [#allocation15]  }
  0x58   : > { %s337_s28 = sshll.u32 %s16319_s27, 4  ;;  %s338_s28 = int_to_ptr.vmem [resolvable:$true] %s337_s28 }
  0x59   : > { %s16188_s29 = scalar_lea.vmem %s338_s28, 16  ;;  %s16195_s13 = scalar_lea.vmem %s338_s28, 32 }
  0x5a   : > { %p16189_p3 = scmp.ne.s32.totalorder %s338_s28, %s16188_s29  ;;  %p16196_p0 = scmp.lt.s32.totalorder %s338_s28, %s338_s28 }
  0x5b   : > { %p16197_p2 = scmp.lt.s32.totalorder %s16195_s13, %s16188_s29 }
  0x5c   : > { %p16191_p4 = pnand %p16189_p3, %p16425_p7 }
  0x5d   : > { %p16198_p5 = por %p16197_p2, %p16196_p0 }
  0x5e   : > { %p16192_p13 = pneg %p16191_p4 }
  0x60   : > { %p16199_p8 = pnand %p16198_p5, %p16192_p13 }
  0x62   : > { %16202 = shalt.err (!%p16199_p8)
}
  0x63   : > { %15754 = dma.hbm_to_vmem [thread:$0]  (!%p16415_p6), %s18695_s8, 16, %s338_s28, [#allocation16]  }
  0x64   : > { %s16495_s24 = sadd.s32 1, %s16309_s12   ;;  %s60_s25 = sadd.s32 1, %s16305_s11 }
  0x65   : > { %s57_s21 = ssub.s32 %s16309_s12, %s16495_s24  ;;  %p67_p9 = scmp.ne.s32.totalorder %s16305_s11, %s16301_s10 }
  0x66   : > { %p58_p7 = scmp.eq.s32.totalorder %s57_s21, 0  ;;  %p68_p10 = scmp.eq.s32.totalorder %s16309_s12, 0 }
  0x67   : > { %p73_p11 = scmp.ne.s32.totalorder %s16301_s10, %s16297_s30  ;;  %p18703_p1 = scmp.eq.s32.totalorder %s16401_s15, 0 }
  0x68   : > { %s16506_s26 = scalar_select %p58_p7, %s16305_s11, %s60_s25  }
  0x69   : > { %p69_p12 = por %p68_p10, %p67_p9  ;;  %p16510_p3 = por %p18703_p1, %p73_p11 }
  0x6a   : > { %p15766_p4 = scmp.lt.s32.totalorder %s16309_s12, 2  ;;  %s356_s19 = sand.u32 1, %s16305_s11  }
  0x6b   : > { %s18704_s14 = scalar_select %p16510_p3, 1, 0 }
  0x6c   : > { %s15697_s22 = smul.u32 12800, %s356_s19  ;;  %p16517_p6 = pnand %p15766_p4, %p69_p12 }
  0x6d   : > { %s15609_s18 = smul.u32 204800, %s16309_s12  ;;  %s16528_s17 = scalar_lea.sflag [#allocation4], %s356_s19 }
  0x6e   : > { %s360_s29 = scalar_lea.vmem [#allocation3], %s15697_s22  ;;  %p16205_p0 = pneg %p16517_p6 }
  0x6f   : > { %s16524_s30 = scalar_lea.hbm %s18688_s1, %s15609_s18  ;;  %s368_s13 = sshll.u32 %s360_s29, 4  ;;  %s16526_s13 = int_to_ptr.vmem [resolvable:$true] %s368_s13 }
  0x70   : > { %s16203_s12 = scalar_lea.hbm %s16524_s30, 204800  ;;  %s16208_s25 = scalar_lea.hbm %s18688_s1, 409600 }
  0x71   : > { %p16204_p13 = scmp.ne.s32.totalorder %s16524_s30, %s16203_s12  ;;  %p16209_p8 = scmp.lt.s32.totalorder %s16524_s30, %s18688_s1 }
  0x72   : > { %p16210_p7 = scmp.lt.s32.totalorder %s16208_s25, %s16203_s12 }
  0x73   : > { %p16206_p2 = pnand %p16205_p0, %p16204_p13 }
  0x74   : > { %p16211_p9 = por %p16210_p7, %p16209_p8 }
  0x75   : > { %p16207_p5 = pneg %p16206_p2 }
  0x77   : > { %p16212_p10 = pnand %p16211_p9, %p16207_p5 }
  0x79   : > { %16215 = shalt.err (!%p16212_p10)
}
  0x7a   : > { %s16216_s19 = scalar_lea.vmem %s16526_s13, 204800  ;;  %s16320_s22 = smov [#allocation3]  }
  0x7b   : > { %p16217_p11 = scmp.ne.s32.totalorder %s16526_s13, %s16216_s19  ;;  %s16221_s28 = sshll.u32 %s16320_s22, 4  ;;  %s16222_s28 = int_to_ptr.vmem [resolvable:$false] %s16221_s28 }
  0x7c   : > { %s16223_s29 = scalar_lea.vmem %s16222_s28, 409600  ;;  %p16224_p4 = scmp.lt.s32.totalorder %s16526_s13, %s16222_s28 }
  0x7d   : > { %p16219_p12 = pnand %p16217_p11, %p16205_p0  ;;  %p16225_p13 = scmp.lt.s32.totalorder %s16223_s29, %s16216_s19 }
  0x7f   : > { %p16220_p1 = pneg %p16219_p12  ;;  %p16226_p2 = por %p16225_p13, %p16224_p4 }
  0x81   : > { %p16227_p3 = pnand %p16226_p2, %p16220_p1 }
  0x83   : > { %16230 = shalt.err (!%p16227_p3)
}
  0x84   : > { %s16321_s12 = smov 512   ;;  %s16322_s23 = smov 32  }
  0x85   : > { %15758 = dma.hbm_to_vmem [thread:$0]  (!%p16517_p6), %s16524_s30, 204800, %s16526_s13, %s16528_s17, %s16321_s12, %s16321_s12, %s16322_s23  }
  0x86   : > { %p18706_p0 = scmp.ne.s32.totalorder %s18700_s16, 0 }
  0x87   : > { %s382_s21 = sand.u32 (!%p18706_p0), 1, %s16301_s10   ;;  %p18707_p5 = scmp.ne.s32.totalorder (!%p18706_p0), %s18704_s14, 0 }
  0x88   : > { %380 = sbr.rel (%p18706_p0) target bundleno = 2736 (0xab0), region = 56  ;;  %s383_s18 = scalar_lea.sflag (!%p18706_p0), [#allocation4], %s382_s21 }
  0x89   : > { %s15698_s25 = smul.u32 (!%p18706_p0), 12800, %s382_s21 }
  0x8b   : > { %s16552_s27 = scalar_lea.vmem (!%p18706_p0), [#allocation3], %s15698_s25 }
  0x8d   : > { %16272 = dma.done.wait (%p18707_p5), %s383_s18, 204800  }
  0x8e   : > { %16274 = vsyncadd (%p18707_p5), %s383_s18, 4294762496  ;;  %p18708_p3 = scmp.eq.s32.totalorder %s16401_s15, 0 }
  0x90   : > { %16276 = dma.done.wait (%p18708_p3), [#allocation7], 16512   ;;  %p18709_p6 = pmov %p18708_p3 }
  0x91   : > { %p18710_p8 = pmov %p18708_p3 }
  0x92   : > { %16278 = vsyncadd (%p18709_p6), [#allocation7], 4294950784 }
  0x93   : > { %16280 = dma.done.wait (%p18710_p8), [#allocation10], 4128   ;;  %p18711_p7 = pmov %p18708_p3 }
  0x94   : > { %p18712_p9 = pmov %p18708_p3 }
  0x95   : > { %16282 = vsyncadd (%p18711_p7), [#allocation10], 4294963168 }
  0x96   : > { %16284 = dma.done.wait (%p18712_p9), [#allocation13], 2064   ;;  %p18713_p10 = pmov %p18708_p3 }
  0x97   : > { %p18714_p11 = pmov %p18708_p3 }
  0x98   : > { %16286 = vsyncadd (%p18713_p10), [#allocation13], 4294965232 }
  0x99   : > { %16288 = dma.done.wait (%p18714_p11), [#allocation16], 16   ;;  %p18715_p12 = pmov %p18708_p3 }
  0x9a   : > { %s448_s16 = smul.u32 25, %s16401_s15  ;;  %p18716_p4 = scmp.ne.s32.totalorder %s16401_s15, 0 }
  0x9b   : > { %16290 = vsyncadd (%p18715_p12), [#allocation16], 4294967280 }
  0x9c   : > { %p449_p1 = scmp.lt.s32.totalorder %s448_s16, 49  ;;  %458 = sbr.rel (%p18716_p4) target bundleno = 179 (0xb3), region = 92 }
  0x9e   : > { %s18722_s16 = smov (!%p449_p1, %s448_s16), 49 }
  0x9f   : > { %s16578_s30 = scalar_lea.vmem %s18687_s0, %s18722_s16 }
  0xa1   : > { %v461_v0 = vlaneseq  ;;  %v16323_v1 = vmov 1983009808   ;;  %v459_v4 = vld [vmem:[#allocation6] sm:$0xff] }
  0xa2   : > { %v496_v2 = vunpack.c.l.s4 %v16323_v1 }
  0xa3   : > { %v462_v3 = vshrl.u32 %v461_v0, 7 }
  0xa4   : > { %v497_v5 = vunpack.c.0.s8 %v496_v2 }
  0xa5   : > { %v463_v6 = vsub.s32 0, %v462_v3  ;;  %v467_v7 = vsub.s32 1, %v462_v3  ;;  %v471_v8 = vsub.s32 2, %v462_v3  ;;  %v475_v9 = vsub.s32 3, %v462_v3 }
  0xa6   : > { %v500_v10 = vsub.s32 %v497_v5, %v462_v3  ;;  %v479_v11 = vsub.s32 4, %v462_v3  ;;  %v483_v12 = vsub.s32 5, %v462_v3  ;;  %v487_v13 = vsub.s32 6, %v462_v3 }
  0xa7   : > { %v464_v14 = vrot.slane %v459_v4, %v463_v6  ;;  %v468_v15 = vrot.slane %v459_v4, %v467_v7  ;;  %v472_v16 = vrot.slane %v459_v4, %v471_v8  ;;  %v476_v17 = vrot.slane %v459_v4, %v475_v9 }
  0xa8   : > { %v480_v18 = vrot.slane %v459_v4, %v479_v11  ;;  %v484_v19 = vrot.slane %v459_v4, %v483_v12  ;;  %v488_v20 = vrot.slane %v459_v4, %v487_v13  ;;  %v491_v21 = vsub.s32 7, %v462_v3 }
  0xa9   : > { %v493_v22 = vcombine.low %v464_v14, %v468_v15  ;;  %v494_v23 = vcombine.low %v472_v16, %v476_v17 }
  0xaa   : > { %v492_v24 = vrot.slane %v459_v4, %v491_v21  ;;  %v510_v25 = vcombine.low %v480_v18, %v484_v19 }
  0xab   : > { %v501_v26 = vrot.slane %v493_v22, %v500_v10  ;;  %v508_v27 = vrot.slane %v494_v23, %v500_v10 }
  0xac   : > { %v511_v28 = vcombine.low %v488_v20, %v492_v24  ;;  %v518_v29 = vrot.slane %v510_v25, %v500_v10 }
  0xad   : > { %v509_v30 = vcombine.low %v501_v26, %v508_v27 }
  0xae   : > { %v525_v31 = vrot.slane %v511_v28, %v500_v10 }
  0xaf   : > { %529 = vst [vmem:[#allocation2] sm:$0xff] %v509_v30 }
  0xb0   : > { %v526_v32 = vcombine.low %v518_v29, %v525_v31 }
  0xb2   : > { %530 = vst [vmem:[#allocation2 + $0x8] sm:$0xff] %v526_v32 }
  0xb3 PF: > { %v593_v33 = vld [vmem:[%s16552_s27 + $0x1c0] sm:$0xff]  ;;  %v16324_v1 = vmov 1966171168   ;;  %v2145_v3 = vlaneseq  ;;  %v16616_v28 = vld [vmem:[%s16578_s30] sm:$0xff]  ;;  %p15472_p13 = scmp.ne.s32.totalorder %s16401_s15, 1 }
  0xb4   : > { %v597_v34 = vld [vmem:[%s16552_s27 + $0x1e0] sm:$0xff]  ;;  %v2143_v2 = vunpack.c.l.s4 %v16324_v1 }
  0xb5   : > { %v721_v35 = vld [vmem:[%s16552_s27 + $0x5c0] sm:$0xff]  ;;  %v13929_v36 = vcombine.high %v593_v33, %v597_v34  ;;  %v13928_v38 = vcombine.low %v593_v33, %v597_v34  ;;  %v16604_v13 = vshrl.u32 %v2145_v3, 7 }
  0xb6   : > { %v725_v37 = vld [vmem:[%s16552_s27 + $0x5e0] sm:$0xff]  ;;  %v2144_v12 = vunpack.c.0.s8 %v2143_v2 }
  0xb7   : > { %v585_v39 = vld [vmem:[%s16552_s27 + $0x180] sm:$0xff]  ;;  %v14057_v41 = vcombine.high %v721_v35, %v725_v37  ;;  %v14056_v42 = vcombine.low %v721_v35, %v725_v37  ;;  %10327 = vmatprep.subr.bf16.mxu0 %v13929_v36 }
  0xb8   : > { %v589_v40 = vld [vmem:[%s16552_s27 + $0x1a0] sm:$0xff]  ;;  %10328 = vmatpush1.bf16.msra.mxu0 %v13928_v38  ;;  %v16611_v22 = vsub.s32 %v2144_v12, %v16604_v13 }
  0xb9   : > { %v13921_v43 = vcombine.high %v585_v39, %v589_v40  ;;  %v713_v44 = vld [vmem:[%s16552_s27 + $0x580] sm:$0xff]  ;;  %10368 = vmatprep.subr.bf16.mxu1 %v14057_v41  ;;  %v13920_v51 = vcombine.low %v585_v39, %v589_v40 }
  0xba   : > { %v717_v45 = vld [vmem:[%s16552_s27 + $0x5a0] sm:$0xff]  ;;  %10369 = vmatpush1.bf16.msra.mxu1 %v14056_v42  ;;  %v16622_v32 = vrot.slane %v16616_v28, %v16611_v22 }
  0xbb   : > { %v577_v46 = vld [vmem:[%s16552_s27 + $0x140] sm:$0xff]  ;;  %v14049_v47 = vcombine.high %v713_v44, %v717_v45  ;;  %10329 = vmatprep.subr.bf16.mxu0 %v13921_v43  ;;  %v14048_v52 = vcombine.low %v713_v44, %v717_v45 }
  0xbc   : > { %v581_v48 = vld [vmem:[%s16552_s27 + $0x160] sm:$0xff]  ;;  %10330 = vmatpush1.bf16.msra.mxu0 %v13920_v51  ;;  %v2156_v36 = vcombine.high %v16622_v32, %v16622_v32 }
  0xbd   : > { %v705_v49 = vld [vmem:[%s16552_s27 + $0x540] sm:$0xff]  ;;  %v13913_v53 = vcombine.high %v577_v46, %v581_v48  ;;  %10370 = vmatprep.subr.bf16.mxu1 %v14049_v47  ;;  %v13912_v59 = vcombine.low %v577_v46, %v581_v48 }
  0xbe   : > { %v709_v50 = vld [vmem:[%s16552_s27 + $0x560] sm:$0xff]  ;;  %10371 = vmatpush1.bf16.msra.mxu1 %v14048_v52  ;;  %v16631_v42 = vrot.slane %v2156_v36, %v16611_v22 }
  0xbf   : > { %v14041_v54 = vcombine.high %v705_v49, %v709_v50  ;;  %v569_v55 = vld [vmem:[%s16552_s27 + $0x100] sm:$0xff]  ;;  %10331 = vmatprep.subr.bf16.mxu0 %v13913_v53  ;;  %v14040_v60 = vcombine.low %v705_v49, %v709_v50 }
  0xc0   : > { %v573_v56 = vld [vmem:[%s16552_s27 + $0x120] sm:$0xff]  ;;  %10332 = vmatpush1.bf16.msra.mxu0 %v13912_v59  ;;  %10359 = vmatprep.mubr.bf16.mxu0 %v16631_v42  ;;  %v16638_v46 = vcombine.high %v16631_v42, %v16631_v42 }
  0xc1   : > { %v697_v57 = vld [vmem:[%s16552_s27 + $0x500] sm:$0xff]  ;;  %v13905_v61 = vcombine.high %v569_v55, %v573_v56  ;;  %10372 = vmatprep.subr.bf16.mxu1 %v14041_v54  ;;  %v13904_v6 = vcombine.low %v569_v55, %v573_v56 }
  0xc2   : > { %v701_v58 = vld [vmem:[%s16552_s27 + $0x520] sm:$0xff]  ;;  %10373 = vmatpush1.bf16.msra.mxu1 %v14040_v60  ;;  %10400 = vmatprep.mubr.bf16.mxu1 %v16638_v46 }
  0xc3   : > { %v14033_v62 = vcombine.high %v697_v57, %v701_v58  ;;  %v561_v63 = vld [vmem:[%s16552_s27 + $0xc0] sm:$0xff]  ;;  %10333 = vmatprep.subr.bf16.mxu0 %v13905_v61  ;;  %v14032_v7 = vcombine.low %v697_v57, %v701_v58 }
  0xc4   : > { %v565_v0 = vld [vmem:[%s16552_s27 + $0xe0] sm:$0xff]  ;;  %10334 = vmatpush1.bf16.msra.mxu0 %v13904_v6 }
  0xc5   : > { %v689_v4 = vld [vmem:[%s16552_s27 + $0x4c0] sm:$0xff]  ;;  %v13897_v8 = vcombine.high %v561_v63, %v565_v0  ;;  %10374 = vmatprep.subr.bf16.mxu1 %v14033_v62  ;;  %v13896_v16 = vcombine.low %v561_v63, %v565_v0 }
  0xc6   : > { %v693_v5 = vld [vmem:[%s16552_s27 + $0x4e0] sm:$0xff]  ;;  %10375 = vmatpush1.bf16.msra.mxu1 %v14032_v7 }
  0xc7   : > { %v14025_v9 = vcombine.high %v689_v4, %v693_v5  ;;  %v553_v10 = vld [vmem:[%s16552_s27 + $0x80] sm:$0xff]  ;;  %10335 = vmatprep.subr.bf16.mxu0 %v13897_v8  ;;  %v14024_v17 = vcombine.low %v689_v4, %v693_v5 }
  0xc8   : > { %v557_v11 = vld [vmem:[%s16552_s27 + $0xa0] sm:$0xff]  ;;  %10336 = vmatpush1.bf16.msra.mxu0 %v13896_v16 }
  0xc9   : > { %v681_v14 = vld [vmem:[%s16552_s27 + $0x480] sm:$0xff]  ;;  %v13889_v18 = vcombine.high %v553_v10, %v557_v11  ;;  %10376 = vmatprep.subr.bf16.mxu1 %v14025_v9  ;;  %v13888_v25 = vcombine.low %v553_v10, %v557_v11 }
  0xca   : > { %v685_v15 = vld [vmem:[%s16552_s27 + $0x4a0] sm:$0xff]  ;;  %10377 = vmatpush1.bf16.msra.mxu1 %v14024_v17 }
  0xcb   : > { %v14017_v19 = vcombine.high %v681_v14, %v685_v15  ;;  %v545_v20 = vld [vmem:[%s16552_s27 + $0x40] sm:$0xff]  ;;  %10337 = vmatprep.subr.bf16.mxu0 %v13889_v18  ;;  %v14016_v26 = vcombine.low %v681_v14, %v685_v15 }
  0xcc   : > { %v549_v21 = vld [vmem:[%s16552_s27 + $0x60] sm:$0xff]  ;;  %10338 = vmatpush1.bf16.msra.mxu0 %v13888_v25 }
  0xcd   : > { %v673_v23 = vld [vmem:[%s16552_s27 + $0x440] sm:$0xff]  ;;  %v13881_v27 = vcombine.high %v545_v20, %v549_v21  ;;  %10378 = vmatprep.subr.bf16.mxu1 %v14017_v19  ;;  %v13880_v35 = vcombine.low %v545_v20, %v549_v21 }
  0xce   : > { %v677_v24 = vld [vmem:[%s16552_s27 + $0x460] sm:$0xff]  ;;  %10379 = vmatpush1.bf16.msra.mxu1 %v14016_v26 }
  0xcf   : > { %v14009_v29 = vcombine.high %v673_v23, %v677_v24  ;;  %v537_v30 = vld [vmem:[%s16552_s27] sm:$0xff]  ;;  %10339 = vmatprep.subr.bf16.mxu0 %v13881_v27  ;;  %v14008_v37 = vcombine.low %v673_v23, %v677_v24 }
  0xd0   : > { %v541_v31 = vld [vmem:[%s16552_s27 + $0x20] sm:$0xff]  ;;  %10340 = vmatpush1.bf16.msra.mxu0 %v13880_v35 }
  0xd1   : > { %v665_v33 = vld [vmem:[%s16552_s27 + $0x400] sm:$0xff]  ;;  %v13873_v38 = vcombine.high %v537_v30, %v541_v31  ;;  %10380 = vmatprep.subr.bf16.mxu1 %v14009_v29  ;;  %v13872_v45 = vcombine.low %v537_v30, %v541_v31 }
  0xd2   : > { %v669_v34 = vld [vmem:[%s16552_s27 + $0x420] sm:$0xff]  ;;  %10381 = vmatpush1.bf16.msra.mxu1 %v14008_v37 }
  0xd3   : > { %v14001_v39 = vcombine.high %v665_v33, %v669_v34  ;;  %v657_v40 = vld [vmem:[%s16552_s27 + $0x3c0] sm:$0xff]  ;;  %10341 = vmatprep.subr.bf16.mxu0 %v13873_v38  ;;  %v14000_v47 = vcombine.low %v665_v33, %v669_v34  ;;  %v2141_v34 = vcombine.high %v16616_v28, %v16616_v28 }
  0xd4   : > { %v661_v41 = vld [vmem:[%s16552_s27 + $0x3e0] sm:$0xff]  ;;  %10342 = vmatpush1.bf16.msra.mxu0 %v13872_v45 }
  0xd5   : > { %v785_v43 = vld [vmem:[%s16552_s27 + $0x7c0] sm:$0xff]  ;;  %v13993_v48 = vcombine.high %v657_v40, %v661_v41  ;;  %10382 = vmatprep.subr.bf16.mxu1 %v14001_v39  ;;  %v13992_v54 = vcombine.low %v657_v40, %v661_v41 }
  0xd6   : > { %v789_v44 = vld [vmem:[%s16552_s27 + $0x7e0] sm:$0xff]  ;;  %10383 = vmatpush1.bf16.msra.mxu1 %v14000_v47 }
  0xd7   : > { %v14121_v49 = vcombine.high %v785_v43, %v789_v44  ;;  %v649_v50 = vld [vmem:[%s16552_s27 + $0x380] sm:$0xff]  ;;  %10343 = vmatprep.subr.bf16.mxu0 %v13993_v48  ;;  %v14120_v55 = vcombine.low %v785_v43, %v789_v44  ;;  %v16672_v44 = vrot.slane %v2141_v34, %v16611_v22 }
  0xd8   : > { %v653_v51 = vld [vmem:[%s16552_s27 + $0x3a0] sm:$0xff]  ;;  %10344 = vmatpush2.bf16.msra.mxu0 %v13992_v54 }
  0xd9   : > { %v777_v52 = vld [vmem:[%s16552_s27 + $0x780] sm:$0xff]  ;;  %v13985_v56 = vcombine.high %v649_v50, %v653_v51  ;;  %10384 = vmatprep.subr.bf16.mxu1 %v14121_v49  ;;  %v13984_v62 = vcombine.low %v649_v50, %v653_v51 }
  0xda   : > { %v781_v53 = vld [vmem:[%s16552_s27 + $0x7a0] sm:$0xff]  ;;  %10385 = vmatpush2.bf16.msra.mxu1 %v14120_v55  ;;  %v16682_v55 = vrot.slane %v16622_v32, %v16611_v22 }
  0xdb   : > { %v14113_v57 = vcombine.high %v777_v52, %v781_v53  ;;  %v641_v58 = vld [vmem:[%s16552_s27 + $0x340] sm:$0xff]  ;;  %10345 = vmatprep.subr.bf16.mxu0 %v13985_v56  ;;  %v14112_v63 = vcombine.low %v777_v52, %v781_v53  ;;  %v2157_v53 = vcombine.high %v16672_v44, %v16672_v44 }
  0xdc   : > { %v645_v59 = vld [vmem:[%s16552_s27 + $0x360] sm:$0xff]  ;;  %10346 = vmatpush2.bf16.msra.mxu0 %v13984_v62  ;;  %v16693_v32 = vcombine.high %v16682_v55, %v16682_v55 }
  0xdd   : > { %v769_v60 = vld [vmem:[%s16552_s27 + $0x740] sm:$0xff]  ;;  %v13977_v0 = vcombine.high %v641_v58, %v645_v59  ;;  %10386 = vmatprep.subr.bf16.mxu1 %v14113_v57  ;;  %v13976_v6 = vcombine.low %v641_v58, %v645_v59 }
  0xde   : > { %v773_v61 = vld [vmem:[%s16552_s27 + $0x760] sm:$0xff]  ;;  %10387 = vmatpush2.bf16.msra.mxu1 %v14112_v63  ;;  %v16689_v63 = vrot.slane %v2157_v53, %v16611_v22 }
  0xdf   : > { %v14105_v1 = vcombine.high %v769_v60, %v773_v61  ;;  %v633_v2 = vld [vmem:[%s16552_s27 + $0x300] sm:$0xff]  ;;  %10347 = vmatprep.subr.bf16.mxu0 %v13977_v0  ;;  %v14104_v7 = vcombine.low %v769_v60, %v773_v61 }
  0xe0   : > { %v637_v3 = vld [vmem:[%s16552_s27 + $0x320] sm:$0xff]  ;;  %10348 = vmatpush2.bf16.msra.mxu0 %v13976_v6 }
  0xe1   : > { %v761_v4 = vld [vmem:[%s16552_s27 + $0x700] sm:$0xff]  ;;  %v13969_v8 = vcombine.high %v633_v2, %v637_v3  ;;  %10388 = vmatprep.subr.bf16.mxu1 %v14105_v1  ;;  %v13968_v15 = vcombine.low %v633_v2, %v637_v3 }
  0xe2   : > { %v765_v5 = vld [vmem:[%s16552_s27 + $0x720] sm:$0xff]  ;;  %10389 = vmatpush2.bf16.msra.mxu1 %v14104_v7 }
  0xe3   : > { %v14097_v9 = vcombine.high %v761_v4, %v765_v5  ;;  %v625_v10 = vld [vmem:[%s16552_s27 + $0x2c0] sm:$0xff]  ;;  %10349 = vmatprep.subr.bf16.mxu0 %v13969_v8  ;;  %v14096_v16 = vcombine.low %v761_v4, %v765_v5  ;;  %v16702_v8 = vcombine.high %v16689_v63, %v16689_v63 }
  0xe4   : > { %v629_v11 = vld [vmem:[%s16552_s27 + $0x2e0] sm:$0xff]  ;;  %10350 = vmatpush2.bf16.msra.mxu0 %v13968_v15 }
  0xe5   : > { %v753_v12 = vld [vmem:[%s16552_s27 + $0x6c0] sm:$0xff]  ;;  %v13961_v17 = vcombine.high %v625_v10, %v629_v11  ;;  %10390 = vmatprep.subr.bf16.mxu1 %v14097_v9  ;;  %v13960_v24 = vcombine.low %v625_v10, %v629_v11 }
  0xe6   : > { %v757_v14 = vld [vmem:[%s16552_s27 + $0x6e0] sm:$0xff]  ;;  %10391 = vmatpush2.bf16.msra.mxu1 %v14096_v16 }
  0xe7   : > { %v14089_v18 = vcombine.high %v753_v12, %v757_v14  ;;  %v617_v19 = vld [vmem:[%s16552_s27 + $0x280] sm:$0xff]  ;;  %10351 = vmatprep.subr.bf16.mxu0 %v13961_v17  ;;  %v14088_v25 = vcombine.low %v753_v12, %v757_v14 }
  0xe8   : > { %v621_v20 = vld [vmem:[%s16552_s27 + $0x2a0] sm:$0xff]  ;;  %10352 = vmatpush2.bf16.msra.mxu0 %v13960_v24 }
  0xe9   : > { %v745_v21 = vld [vmem:[%s16552_s27 + $0x680] sm:$0xff]  ;;  %v13953_v26 = vcombine.high %v617_v19, %v621_v20  ;;  %10392 = vmatprep.subr.bf16.mxu1 %v14089_v18  ;;  %v13952_v35 = vcombine.low %v617_v19, %v621_v20 }
  0xea   : > { %v749_v23 = vld [vmem:[%s16552_s27 + $0x6a0] sm:$0xff]  ;;  %10393 = vmatpush2.bf16.msra.mxu1 %v14088_v25 }
  0xeb   : > { %v14081_v27 = vcombine.high %v745_v21, %v749_v23  ;;  %v609_v29 = vld [vmem:[%s16552_s27 + $0x240] sm:$0xff]  ;;  %10353 = vmatprep.subr.bf16.mxu0 %v13953_v26  ;;  %v14080_v36 = vcombine.low %v745_v21, %v749_v23 }
  0xec   : > { %v613_v30 = vld [vmem:[%s16552_s27 + $0x260] sm:$0xff]  ;;  %10354 = vmatpush2.bf16.msra.mxu0 %v13952_v35 }
  0xed   : > { %v737_v31 = vld [vmem:[%s16552_s27 + $0x640] sm:$0xff]  ;;  %v13945_v37 = vcombine.high %v609_v29, %v613_v30  ;;  %10394 = vmatprep.subr.bf16.mxu1 %v14081_v27  ;;  %v13944_v28 = vcombine.low %v609_v29, %v613_v30 }
  0xee   : > { %v741_v33 = vld [vmem:[%s16552_s27 + $0x660] sm:$0xff]  ;;  %10395 = vmatpush2.bf16.msra.mxu1 %v14080_v36 }
  0xef   : > { %v14073_v38 = vcombine.high %v737_v31, %v741_v33  ;;  %v601_v39 = vld [vmem:[%s16552_s27 + $0x200] sm:$0xff]  ;;  %10355 = vmatprep.subr.bf16.mxu0 %v13945_v37  ;;  %v14072_v45 = vcombine.low %v737_v31, %v741_v33 }
  0xf0   : > { %v605_v40 = vld [vmem:[%s16552_s27 + $0x220] sm:$0xff]  ;;  %10356 = vmatpush2.bf16.msra.mxu0 %v13944_v28 }
  0xf1   : > { %v729_v41 = vld [vmem:[%s16552_s27 + $0x600] sm:$0xff]  ;;  %v13937_v47 = vcombine.high %v601_v39, %v605_v40  ;;  %10396 = vmatprep.subr.bf16.mxu1 %v14073_v38  ;;  %v13936_v54 = vcombine.low %v601_v39, %v605_v40 }
  0xf2   : > { %v733_v43 = vld [vmem:[%s16552_s27 + $0x620] sm:$0xff]  ;;  %10397 = vmatpush2.bf16.msra.mxu1 %v14072_v45 }
  0xf3   : > { %v14065_v48 = vcombine.high %v729_v41, %v733_v43  ;;  %v849_v49 = vld [vmem:[%s16552_s27 + $0x9c0] sm:$0xff]  ;;  %10357 = vmatprep.subr.bf16.mxu0 %v13937_v47  ;;  %v14064_v56 = vcombine.low %v729_v41, %v733_v43 }
  0xf4   : > { %v853_v50 = vld [vmem:[%s16552_s27 + $0x9e0] sm:$0xff]  ;;  %10358 = vmatpush2.bf16.msra.mxu0 %v13936_v54 }
  0xf5   : > { %v977_v51 = vld [vmem:[%s16552_s27 + $0xdc0] sm:$0xff]  ;;  %v14185_v57 = vcombine.high %v849_v49, %v853_v50  ;;  %10398 = vmatprep.subr.bf16.mxu1 %v14065_v48  ;;  %v14184_v0 = vcombine.low %v849_v49, %v853_v50 }
  0xf6   : > { %v981_v52 = vld [vmem:[%s16552_s27 + $0xde0] sm:$0xff]  ;;  %10399 = vmatpush2.bf16.msra.mxu1 %v14064_v56 }
  0xf7   : > { %v14313_v58 = vcombine.high %v977_v51, %v981_v52  ;;  %v841_v59 = vld [vmem:[%s16552_s27 + $0x980] sm:$0xff]  ;;  %10409 = vmatprep.subr.bf16.mxu0 %v14185_v57  ;;  %v14312_v1 = vcombine.low %v977_v51, %v981_v52  ;;  %10360 = vmatmul.mubr.bf16.vlgmr.msra.gmra.mxu0 %v16682_v55 }
  0xf8   : > { %v845_v60 = vld [vmem:[%s16552_s27 + $0x9a0] sm:$0xff]  ;;  %10410 = vmatpush1.bf16.msra.mxu0 %v14184_v0  ;;  %10441 = vmatprep.mubr.bf16.mxu0 %v16689_v63 }
  0xf9   : > { %v969_v61 = vld [vmem:[%s16552_s27 + $0xd80] sm:$0xff]  ;;  %v14177_v2 = vcombine.high %v841_v59, %v845_v60  ;;  %10450 = vmatprep.subr.bf16.mxu1 %v14313_v58  ;;  %10401 = vmatmul.mubr.bf16.vlgmr.msra.gmra.mxu1 %v16693_v32  ;;  %v14176_v9 = vcombine.low %v841_v59, %v845_v60 }
  0xfa   : > { %v973_v62 = vld [vmem:[%s16552_s27 + $0xda0] sm:$0xff]  ;;  %10451 = vmatpush1.bf16.msra.mxu1 %v14312_v1  ;;  %10482 = vmatprep.mubr.bf16.mxu1 %v16702_v8 }
  0xfb   : > { %v14305_v3 = vcombine.high %v969_v61, %v973_v62  ;;  %v833_v4 = vld [vmem:[%s16552_s27 + $0x940] sm:$0xff]  ;;  %10411 = vmatprep.subr.bf16.mxu0 %v14177_v2  ;;  %v14304_v10 = vcombine.low %v969_v61, %v973_v62 }
  0xfc   : > { %v837_v5 = vld [vmem:[%s16552_s27 + $0x960] sm:$0xff]  ;;  %10412 = vmatpush1.bf16.msra.mxu0 %v14176_v9 }
  0xfd   : > { %v961_v6 = vld [vmem:[%s16552_s27 + $0xd40] sm:$0xff]  ;;  %v14169_v11 = vcombine.high %v833_v4, %v837_v5  ;;  %10452 = vmatprep.subr.bf16.mxu1 %v14305_v3  ;;  %v14168_v18 = vcombine.low %v833_v4, %v837_v5 }
  0xfe   : > { %v965_v7 = vld [vmem:[%s16552_s27 + $0xd60] sm:$0xff]  ;;  %10453 = vmatpush1.bf16.msra.mxu1 %v14304_v10 }
  0xff   : > { %v14297_v12 = vcombine.high %v961_v6, %v965_v7  ;;  %v825_v14 = vld [vmem:[%s16552_s27 + $0x900] sm:$0xff]  ;;  %10413 = vmatprep.subr.bf16.mxu0 %v14169_v11  ;;  %v14296_v19 = vcombine.low %v961_v6, %v965_v7 }
 0x100   : > { %v829_v15 = vld [vmem:[%s16552_s27 + $0x920] sm:$0xff]  ;;  %10414 = vmatpush1.bf16.msra.mxu0 %v14168_v18 }
 0x101   : > { %v953_v16 = vld [vmem:[%s16552_s27 + $0xd00] sm:$0xff]  ;;  %v14161_v20 = vcombine.high %v825_v14, %v829_v15  ;;  %10454 = vmatprep.subr.bf16.mxu1 %v14297_v12  ;;  %v14160_v27 = vcombine.low %v825_v14, %v829_v15 }
 0x102   : > { %v957_v17 = vld [vmem:[%s16552_s27 + $0xd20] sm:$0xff]  ;;  %10455 = vmatpush1.bf16.msra.mxu1 %v14296_v19 }
 0x103   : > { %v14289_v21 = vcombine.high %v953_v16, %v957_v17  ;;  %v817_v23 = vld [vmem:[%s16552_s27 + $0x8c0] sm:$0xff]  ;;  %10415 = vmatprep.subr.bf16.mxu0 %v14161_v20  ;;  %v14288_v29 = vcombine.low %v953_v16, %v957_v17 }
 0x104   : > { %v821_v24 = vld [vmem:[%s16552_s27 + $0x8e0] sm:$0xff]  ;;  %10416 = vmatpush1.bf16.msra.mxu0 %v14160_v27 }
 0x105   : > { %v945_v25 = vld [vmem:[%s16552_s27 + $0xcc0] sm:$0xff]  ;;  %v14153_v30 = vcombine.high %v817_v23, %v821_v24  ;;  %10456 = vmatprep.subr.bf16.mxu1 %v14289_v21  ;;  %v14152_v37 = vcombine.low %v817_v23, %v821_v24 }
 0x106   : > { %v949_v26 = vld [vmem:[%s16552_s27 + $0xce0] sm:$0xff]  ;;  %10457 = vmatpush1.bf16.msra.mxu1 %v14288_v29 }
 0x107   : > { %v14281_v31 = vcombine.high %v945_v25, %v949_v26  ;;  %v809_v33 = vld [vmem:[%s16552_s27 + $0x880] sm:$0xff]  ;;  %10417 = vmatprep.subr.bf16.mxu0 %v14153_v30  ;;  %v14280_v38 = vcombine.low %v945_v25, %v949_v26 }
 0x108   : > { %v813_v34 = vld [vmem:[%s16552_s27 + $0x8a0] sm:$0xff]  ;;  %10418 = vmatpush1.bf16.msra.mxu0 %v14152_v37 }
 0x109   : > { %v937_v35 = vld [vmem:[%s16552_s27 + $0xc80] sm:$0xff]  ;;  %v14145_v39 = vcombine.high %v809_v33, %v813_v34  ;;  %10458 = vmatprep.subr.bf16.mxu1 %v14281_v31  ;;  %v14144_v47 = vcombine.low %v809_v33, %v813_v34 }
 0x10a   : > { %v941_v36 = vld [vmem:[%s16552_s27 + $0xca0] sm:$0xff]  ;;  %10459 = vmatpush1.bf16.msra.mxu1 %v14280_v38 }
 0x10b   : > { %v14273_v40 = vcombine.high %v937_v35, %v941_v36  ;;  %v801_v41 = vld [vmem:[%s16552_s27 + $0x840] sm:$0xff]  ;;  %10419 = vmatprep.subr.bf16.mxu0 %v14145_v39  ;;  %v14272_v48 = vcombine.low %v937_v35, %v941_v36 }
 0x10c   : > { %v805_v43 = vld [vmem:[%s16552_s27 + $0x860] sm:$0xff]  ;;  %10420 = vmatpush1.bf16.msra.mxu0 %v14144_v47 }
 0x10d   : > { %v929_v28 = vld [vmem:[%s16552_s27 + $0xc40] sm:$0xff]  ;;  %v14137_v49 = vcombine.high %v801_v41, %v805_v43  ;;  %10460 = vmatprep.subr.bf16.mxu1 %v14273_v40  ;;  %v14136_v56 = vcombine.low %v801_v41, %v805_v43 }
 0x10e   : > { %v933_v45 = vld [vmem:[%s16552_s27 + $0xc60] sm:$0xff]  ;;  %10461 = vmatpush1.bf16.msra.mxu1 %v14272_v48 }
 0x10f   : > { %v14265_v50 = vcombine.high %v929_v28, %v933_v45  ;;  %v793_v51 = vld [vmem:[%s16552_s27 + $0x800] sm:$0xff]  ;;  %10421 = vmatprep.subr.bf16.mxu0 %v14137_v49  ;;  %v14264_v57 = vcombine.low %v929_v28, %v933_v45 }
 0x110   : > { %v797_v52 = vld [vmem:[%s16552_s27 + $0x820] sm:$0xff]  ;;  %10422 = vmatpush1.bf16.msra.mxu0 %v14136_v56 }
 0x111   : > { %v921_v53 = vld [vmem:[%s16552_s27 + $0xc00] sm:$0xff]  ;;  %v14129_v58 = vcombine.high %v793_v51, %v797_v52  ;;  %10462 = vmatprep.subr.bf16.mxu1 %v14265_v50  ;;  %v14128_v1 = vcombine.low %v793_v51, %v797_v52 }
 0x112   : > { %v925_v54 = vld [vmem:[%s16552_s27 + $0xc20] sm:$0xff]  ;;  %10463 = vmatpush1.bf16.msra.mxu1 %v14264_v57 }
 0x113   : > { %v14257_v59 = vcombine.high %v921_v53, %v925_v54  ;;  %v913_v60 = vld [vmem:[%s16552_s27 + $0xbc0] sm:$0xff]  ;;  %10423 = vmatprep.subr.bf16.mxu0 %v14129_v58  ;;  %v14256_v2 = vcombine.low %v921_v53, %v925_v54  ;;  %v16756_v58 = vld [vmem:[%s16578_s30 + $0x8] sm:$0xff] }
 0x114   : > { %v917_v61 = vld [vmem:[%s16552_s27 + $0xbe0] sm:$0xff]  ;;  %10424 = vmatpush1.bf16.msra.mxu0 %v14128_v1 }
 0x115   : > { %v1041_v62 = vld [vmem:[%s16552_s27 + $0xfc0] sm:$0xff]  ;;  %v14249_v3 = vcombine.high %v913_v60, %v917_v61  ;;  %10464 = vmatprep.subr.bf16.mxu1 %v14257_v59  ;;  %v14248_v10 = vcombine.low %v913_v60, %v917_v61 }
 0x116   : > { %v1045_v0 = vld [vmem:[%s16552_s27 + $0xfe0] sm:$0xff]  ;;  %10465 = vmatpush1.bf16.msra.mxu1 %v14256_v2 }
 0x117   : > { %v14377_v4 = vcombine.high %v1041_v62, %v1045_v0  ;;  %v905_v5 = vld [vmem:[%s16552_s27 + $0xb80] sm:$0xff]  ;;  %10425 = vmatprep.subr.bf16.mxu0 %v14249_v3  ;;  %v14376_v11 = vcombine.low %v1041_v62, %v1045_v0  ;;  %v16764_v3 = vrot.slane %v16756_v58, %v16611_v22 }
 0x118   : > { %v909_v6 = vld [vmem:[%s16552_s27 + $0xba0] sm:$0xff]  ;;  %10426 = vmatpush2.bf16.msra.mxu0 %v14248_v10 }
 0x119   : > { %v1033_v7 = vld [vmem:[%s16552_s27 + $0xf80] sm:$0xff]  ;;  %v14241_v12 = vcombine.high %v905_v5, %v909_v6  ;;  %10466 = vmatprep.subr.bf16.mxu1 %v14377_v4  ;;  %v14240_v19 = vcombine.low %v905_v5, %v909_v6 }
 0x11a   : > { %v1037_v9 = vld [vmem:[%s16552_s27 + $0xfa0] sm:$0xff]  ;;  %10467 = vmatpush2.bf16.msra.mxu1 %v14376_v11 }
 0x11b   : > { %v14369_v14 = vcombine.high %v1033_v7, %v1037_v9  ;;  %v897_v15 = vld [vmem:[%s16552_s27 + $0xb40] sm:$0xff]  ;;  %10427 = vmatprep.subr.bf16.mxu0 %v14241_v12  ;;  %v14368_v20 = vcombine.low %v1033_v7, %v1037_v9 }
 0x11c   : > { %v901_v16 = vld [vmem:[%s16552_s27 + $0xb60] sm:$0xff]  ;;  %10428 = vmatpush2.bf16.msra.mxu0 %v14240_v19 }
 0x11d   : > { %v1025_v17 = vld [vmem:[%s16552_s27 + $0xf40] sm:$0xff]  ;;  %v14233_v21 = vcombine.high %v897_v15, %v901_v16  ;;  %10468 = vmatprep.subr.bf16.mxu1 %v14369_v14  ;;  %v14232_v29 = vcombine.low %v897_v15, %v901_v16  ;;  %v2205_v14 = vcombine.high %v16764_v3, %v16764_v3  ;;  %v16774_v16 = vrot.slane %v16672_v44, %v16611_v22 }
 0x11e   : > { %v1029_v18 = vld [vmem:[%s16552_s27 + $0xf60] sm:$0xff]  ;;  %10469 = vmatpush2.bf16.msra.mxu1 %v14368_v20 }
 0x11f   : > { %v14361_v23 = vcombine.high %v1025_v17, %v1029_v18  ;;  %v889_v24 = vld [vmem:[%s16552_s27 + $0xb00] sm:$0xff]  ;;  %10429 = vmatprep.subr.bf16.mxu0 %v14233_v21  ;;  %v14360_v30 = vcombine.low %v1025_v17, %v1029_v18  ;;  %v16785_v44 = vcombine.high %v16774_v16, %v16774_v16 }
 0x120   : > { %v893_v25 = vld [vmem:[%s16552_s27 + $0xb20] sm:$0xff]  ;;  %10430 = vmatpush2.bf16.msra.mxu0 %v14232_v29 }
 0x121   : > { %v1017_v26 = vld [vmem:[%s16552_s27 + $0xf00] sm:$0xff]  ;;  %v14225_v31 = vcombine.high %v889_v24, %v893_v25  ;;  %10470 = vmatprep.subr.bf16.mxu1 %v14361_v23  ;;  %v14224_v38 = vcombine.low %v889_v24, %v893_v25  ;;  %v16781_v25 = vrot.slane %v2205_v14, %v16611_v22 }
 0x122   : > { %v1021_v27 = vld [vmem:[%s16552_s27 + $0xf20] sm:$0xff]  ;;  %10471 = vmatpush2.bf16.msra.mxu1 %v14360_v30 }
 0x123   : > { %v14353_v33 = vcombine.high %v1017_v26, %v1021_v27  ;;  %v881_v34 = vld [vmem:[%s16552_s27 + $0xac0] sm:$0xff]  ;;  %10431 = vmatprep.subr.bf16.mxu0 %v14225_v31  ;;  %v14352_v39 = vcombine.low %v1017_v26, %v1021_v27 }
 0x124   : > { %v885_v35 = vld [vmem:[%s16552_s27 + $0xae0] sm:$0xff]  ;;  %10432 = vmatpush2.bf16.msra.mxu0 %v14224_v38 }
 0x125   : > { %v1009_v36 = vld [vmem:[%s16552_s27 + $0xec0] sm:$0xff]  ;;  %v14217_v40 = vcombine.high %v881_v34, %v885_v35  ;;  %10472 = vmatprep.subr.bf16.mxu1 %v14353_v33  ;;  %v14216_v48 = vcombine.low %v881_v34, %v885_v35 }
 0x126   : > { %v1013_v37 = vld [vmem:[%s16552_s27 + $0xee0] sm:$0xff]  ;;  %10473 = vmatpush2.bf16.msra.mxu1 %v14352_v39 }
 0x127   : > { %v14345_v41 = vcombine.high %v1009_v36, %v1013_v37  ;;  %v873_v43 = vld [vmem:[%s16552_s27 + $0xa80] sm:$0xff]  ;;  %10433 = vmatprep.subr.bf16.mxu0 %v14217_v40  ;;  %v14344_v49 = vcombine.low %v1009_v36, %v1013_v37  ;;  %v16794_v36 = vcombine.high %v16781_v25, %v16781_v25 }
 0x128   : > { %v877_v28 = vld [vmem:[%s16552_s27 + $0xaa0] sm:$0xff]  ;;  %10434 = vmatpush2.bf16.msra.mxu0 %v14216_v48 }
 0x129   : > { %v1001_v45 = vld [vmem:[%s16552_s27 + $0xe80] sm:$0xff]  ;;  %v14209_v50 = vcombine.high %v873_v43, %v877_v28  ;;  %10474 = vmatprep.subr.bf16.mxu1 %v14345_v41  ;;  %v14208_v57 = vcombine.low %v873_v43, %v877_v28 }
 0x12a   : > { %v1005_v47 = vld [vmem:[%s16552_s27 + $0xea0] sm:$0xff]  ;;  %10475 = vmatpush2.bf16.msra.mxu1 %v14344_v49 }
 0x12b   : > { %v14337_v51 = vcombine.high %v1001_v45, %v1005_v47  ;;  %v865_v52 = vld [vmem:[%s16552_s27 + $0xa40] sm:$0xff]  ;;  %10435 = vmatprep.subr.bf16.mxu0 %v14209_v50  ;;  %v14336_v59 = vcombine.low %v1001_v45, %v1005_v47 }
 0x12c   : > { %v869_v53 = vld [vmem:[%s16552_s27 + $0xa60] sm:$0xff]  ;;  %10436 = vmatpush2.bf16.msra.mxu0 %v14208_v57 }
 0x12d   : > { %v993_v54 = vld [vmem:[%s16552_s27 + $0xe40] sm:$0xff]  ;;  %v14201_v60 = vcombine.high %v865_v52, %v869_v53  ;;  %10476 = vmatprep.subr.bf16.mxu1 %v14337_v51  ;;  %v14200_v4 = vcombine.low %v865_v52, %v869_v53 }
 0x12e   : > { %v997_v56 = vld [vmem:[%s16552_s27 + $0xe60] sm:$0xff]  ;;  %10477 = vmatpush2.bf16.msra.mxu1 %v14336_v59 }
 0x12f   : > { %v14329_v61 = vcombine.high %v993_v54, %v997_v56  ;;  %v857_v62 = vld [vmem:[%s16552_s27 + $0xa00] sm:$0xff]  ;;  %10437 = vmatprep.subr.bf16.mxu0 %v14201_v60  ;;  %v14328_v5 = vcombine.low %v993_v54, %v997_v56 }
 0x130   : > { %v861_v0 = vld [vmem:[%s16552_s27 + $0xa20] sm:$0xff]  ;;  %10438 = vmatpush2.bf16.msra.mxu0 %v14200_v4 }
 0x131   : > { %v985_v1 = vld [vmem:[%s16552_s27 + $0xe00] sm:$0xff]  ;;  %v14193_v6 = vcombine.high %v857_v62, %v861_v0  ;;  %10478 = vmatprep.subr.bf16.mxu1 %v14329_v61  ;;  %v14192_v15 = vcombine.low %v857_v62, %v861_v0 }
 0x132   : > { %v989_v2 = vld [vmem:[%s16552_s27 + $0xe20] sm:$0xff]  ;;  %10479 = vmatpush2.bf16.msra.mxu1 %v14328_v5 }
 0x133   : > { %v14321_v7 = vcombine.high %v985_v1, %v989_v2  ;;  %v1105_v9 = vld [vmem:[%s16552_s27 + $0x11c0] sm:$0xff]  ;;  %10439 = vmatprep.subr.bf16.mxu0 %v14193_v6  ;;  %v14320_v17 = vcombine.low %v985_v1, %v989_v2 }
 0x134   : > { %v1109_v10 = vld [vmem:[%s16552_s27 + $0x11e0] sm:$0xff]  ;;  %10440 = vmatpush2.bf16.msra.mxu0 %v14192_v15 }
 0x135   : > { %v1233_v11 = vld [vmem:[%s16552_s27 + $0x15c0] sm:$0xff]  ;;  %v14441_v18 = vcombine.high %v1105_v9, %v1109_v10  ;;  %10480 = vmatprep.subr.bf16.mxu1 %v14321_v7  ;;  %v14440_v26 = vcombine.low %v1105_v9, %v1109_v10 }
 0x136   : > { %v1237_v12 = vld [vmem:[%s16552_s27 + $0x15e0] sm:$0xff]  ;;  %10481 = vmatpush2.bf16.msra.mxu1 %v14320_v17 }
 0x137   : > { %v14569_v19 = vcombine.high %v1233_v11, %v1237_v12  ;;  %v1097_v20 = vld [vmem:[%s16552_s27 + $0x1180] sm:$0xff]  ;;  %10491 = vmatprep.subr.bf16.mxu0 %v14441_v18  ;;  %v14568_v27 = vcombine.low %v1233_v11, %v1237_v12  ;;  %10442 = vmatmul.mubr.bf16.vlgmr.msra.gmra.mxu0 %v16774_v16 }
 0x138   : > { %v1101_v21 = vld [vmem:[%s16552_s27 + $0x11a0] sm:$0xff]  ;;  %10492 = vmatpush1.bf16.msra.mxu0 %v14440_v26  ;;  %10523 = vmatprep.mubr.bf16.mxu0 %v16781_v25 }
 0x139   : > { %v1225_v23 = vld [vmem:[%s16552_s27 + $0x1580] sm:$0xff]  ;;  %v14433_v29 = vcombine.high %v1097_v20, %v1101_v21  ;;  %10532 = vmatprep.subr.bf16.mxu1 %v14569_v19  ;;  %10483 = vmatmul.mubr.bf16.vlgmr.msra.gmra.mxu1 %v16785_v44  ;;  %v14432_v37 = vcombine.low %v1097_v20, %v1101_v21 }
 0x13a   : > { %v1229_v24 = vld [vmem:[%s16552_s27 + $0x15a0] sm:$0xff]  ;;  %10533 = vmatpush1.bf16.msra.mxu1 %v14568_v27  ;;  %10564 = vmatprep.mubr.bf16.mxu1 %v16794_v36 }
 0x13b   : > { %v14561_v30 = vcombine.high %v1225_v23, %v1229_v24  ;;  %v1089_v31 = vld [vmem:[%s16552_s27 + $0x1140] sm:$0xff]  ;;  %10493 = vmatprep.subr.bf16.mxu0 %v14433_v29  ;;  %v14560_v38 = vcombine.low %v1225_v23, %v1229_v24 }
 0x13c   : > { %v1093_v33 = vld [vmem:[%s16552_s27 + $0x1160] sm:$0xff]  ;;  %10494 = vmatpush1.bf16.msra.mxu0 %v14432_v37 }
 0x13d   : > { %v1217_v34 = vld [vmem:[%s16552_s27 + $0x1540] sm:$0xff]  ;;  %v14425_v39 = vcombine.high %v1089_v31, %v1093_v33  ;;  %10534 = vmatprep.subr.bf16.mxu1 %v14561_v30  ;;  %v14424_v47 = vcombine.low %v1089_v31, %v1093_v33 }
 0x13e   : > { %v1221_v35 = vld [vmem:[%s16552_s27 + $0x1560] sm:$0xff]  ;;  %10535 = vmatpush1.bf16.msra.mxu1 %v14560_v38 }
 0x13f   : > { %v14553_v40 = vcombine.high %v1217_v34, %v1221_v35  ;;  %v1081_v41 = vld [vmem:[%s16552_s27 + $0x1100] sm:$0xff]  ;;  %10495 = vmatprep.subr.bf16.mxu0 %v14425_v39  ;;  %v14552_v48 = vcombine.low %v1217_v34, %v1221_v35 }
 0x140   : > { %v1085_v43 = vld [vmem:[%s16552_s27 + $0x1120] sm:$0xff]  ;;  %10496 = vmatpush1.bf16.msra.mxu0 %v14424_v47 }
 0x141   : > { %v1209_v28 = vld [vmem:[%s16552_s27 + $0x1500] sm:$0xff]  ;;  %v14417_v49 = vcombine.high %v1081_v41, %v1085_v43  ;;  %10536 = vmatprep.subr.bf16.mxu1 %v14553_v40  ;;  %v14416_v56 = vcombine.low %v1081_v41, %v1085_v43 }
 0x142   : > { %v1213_v45 = vld [vmem:[%s16552_s27 + $0x1520] sm:$0xff]  ;;  %10537 = vmatpush1.bf16.msra.mxu1 %v14552_v48 }
 0x143   : > { %v14545_v50 = vcombine.high %v1209_v28, %v1213_v45  ;;  %v1073_v51 = vld [vmem:[%s16552_s27 + $0x10c0] sm:$0xff]  ;;  %10497 = vmatprep.subr.bf16.mxu0 %v14417_v49  ;;  %v14544_v57 = vcombine.low %v1209_v28, %v1213_v45 }
 0x144   : > { %v1077_v52 = vld [vmem:[%s16552_s27 + $0x10e0] sm:$0xff]  ;;  %10498 = vmatpush1.bf16.msra.mxu0 %v14416_v56 }
 0x145   : > { %v1201_v53 = vld [vmem:[%s16552_s27 + $0x14c0] sm:$0xff]  ;;  %v14409_v59 = vcombine.high %v1073_v51, %v1077_v52  ;;  %10538 = vmatprep.subr.bf16.mxu1 %v14545_v50  ;;  %v14408_v2 = vcombine.low %v1073_v51, %v1077_v52 }
 0x146   : > { %v1205_v54 = vld [vmem:[%s16552_s27 + $0x14e0] sm:$0xff]  ;;  %10539 = vmatpush1.bf16.msra.mxu1 %v14544_v57 }
 0x147   : > { %v14537_v60 = vcombine.high %v1201_v53, %v1205_v54  ;;  %v1065_v61 = vld [vmem:[%s16552_s27 + $0x1080] sm:$0xff]  ;;  %10499 = vmatprep.subr.bf16.mxu0 %v14409_v59  ;;  %v14536_v4 = vcombine.low %v1201_v53, %v1205_v54 }
 0x148   : > { %v1069_v62 = vld [vmem:[%s16552_s27 + $0x10a0] sm:$0xff]  ;;  %10500 = vmatpush1.bf16.msra.mxu0 %v14408_v2 }
 0x149   : > { %v1193_v0 = vld [vmem:[%s16552_s27 + $0x1480] sm:$0xff]  ;;  %v14401_v5 = vcombine.high %v1065_v61, %v1069_v62  ;;  %10540 = vmatprep.subr.bf16.mxu1 %v14537_v60  ;;  %v14400_v12 = vcombine.low %v1065_v61, %v1069_v62 }
 0x14a   : > { %v1197_v1 = vld [vmem:[%s16552_s27 + $0x14a0] sm:$0xff]  ;;  %10541 = vmatpush1.bf16.msra.mxu1 %v14536_v4 }
 0x14b   : > { %v14529_v6 = vcombine.high %v1193_v0, %v1197_v1  ;;  %v1057_v7 = vld [vmem:[%s16552_s27 + $0x1040] sm:$0xff]  ;;  %10501 = vmatprep.subr.bf16.mxu0 %v14401_v5  ;;  %v14528_v14 = vcombine.low %v1193_v0, %v1197_v1 }
 0x14c   : > { %v1061_v9 = vld [vmem:[%s16552_s27 + $0x1060] sm:$0xff]  ;;  %10502 = vmatpush1.bf16.msra.mxu0 %v14400_v12 }
 0x14d   : > { %v1185_v10 = vld [vmem:[%s16552_s27 + $0x1440] sm:$0xff]  ;;  %v14393_v15 = vcombine.high %v1057_v7, %v1061_v9  ;;  %10542 = vmatprep.subr.bf16.mxu1 %v14529_v6  ;;  %v14392_v23 = vcombine.low %v1057_v7, %v1061_v9 }
 0x14e   : > { %v1189_v11 = vld [vmem:[%s16552_s27 + $0x1460] sm:$0xff]  ;;  %10543 = vmatpush1.bf16.msra.mxu1 %v14528_v14 }
 0x14f   : > { %v14521_v17 = vcombine.high %v1185_v10, %v1189_v11  ;;  %v1049_v18 = vld [vmem:[%s16552_s27 + $0x1000] sm:$0xff]  ;;  %10503 = vmatprep.subr.bf16.mxu0 %v14393_v15  ;;  %v14520_v24 = vcombine.low %v1185_v10, %v1189_v11 }
 0x150   : > { %v1053_v19 = vld [vmem:[%s16552_s27 + $0x1020] sm:$0xff]  ;;  %10504 = vmatpush1.bf16.msra.mxu0 %v14392_v23 }
 0x151   : > { %v1177_v20 = vld [vmem:[%s16552_s27 + $0x1400] sm:$0xff]  ;;  %v14385_v26 = vcombine.high %v1049_v18, %v1053_v19  ;;  %10544 = vmatprep.subr.bf16.mxu1 %v14521_v17  ;;  %v14384_v34 = vcombine.low %v1049_v18, %v1053_v19 }
 0x152   : > { %v1181_v21 = vld [vmem:[%s16552_s27 + $0x1420] sm:$0xff]  ;;  %10545 = vmatpush1.bf16.msra.mxu1 %v14520_v24 }
 0x153   : > { %v14513_v27 = vcombine.high %v1177_v20, %v1181_v21  ;;  %v1169_v29 = vld [vmem:[%s16552_s27 + $0x13c0] sm:$0xff]  ;;  %10505 = vmatprep.subr.bf16.mxu0 %v14385_v26  ;;  %v14512_v35 = vcombine.low %v1177_v20, %v1181_v21 }
 0x154   : > { %v1173_v30 = vld [vmem:[%s16552_s27 + $0x13e0] sm:$0xff]  ;;  %10506 = vmatpush1.bf16.msra.mxu0 %v14384_v34 }
 0x155   : > { %v1297_v31 = vld [vmem:[%s16552_s27 + $0x17c0] sm:$0xff]  ;;  %v14505_v37 = vcombine.high %v1169_v29, %v1173_v30  ;;  %10546 = vmatprep.subr.bf16.mxu1 %v14513_v27  ;;  %v14504_v28 = vcombine.low %v1169_v29, %v1173_v30 }
 0x156   : > { %v1301_v33 = vld [vmem:[%s16552_s27 + $0x17e0] sm:$0xff]  ;;  %10547 = vmatpush1.bf16.msra.mxu1 %v14512_v35 }
 0x157   : > { %v14633_v38 = vcombine.high %v1297_v31, %v1301_v33  ;;  %v1161_v39 = vld [vmem:[%s16552_s27 + $0x1380] sm:$0xff]  ;;  %10507 = vmatprep.subr.bf16.mxu0 %v14505_v37  ;;  %v14632_v45 = vcombine.low %v1297_v31, %v1301_v33  ;;  %v2190_v31 = vcombine.high %v16756_v58, %v16756_v58 }
 0x158   : > { %v1165_v40 = vld [vmem:[%s16552_s27 + $0x13a0] sm:$0xff]  ;;  %10508 = vmatpush2.bf16.msra.mxu0 %v14504_v28 }
 0x159   : > { %v1289_v41 = vld [vmem:[%s16552_s27 + $0x1780] sm:$0xff]  ;;  %v14497_v47 = vcombine.high %v1161_v39, %v1165_v40  ;;  %10548 = vmatprep.subr.bf16.mxu1 %v14633_v38  ;;  %v14496_v53 = vcombine.low %v1161_v39, %v1165_v40 }
 0x15a   : > { %v1293_v43 = vld [vmem:[%s16552_s27 + $0x17a0] sm:$0xff]  ;;  %10549 = vmatpush2.bf16.msra.mxu1 %v14632_v45 }
 0x15b   : > { %v14625_v48 = vcombine.high %v1289_v41, %v1293_v43  ;;  %v1153_v49 = vld [vmem:[%s16552_s27 + $0x1340] sm:$0xff]  ;;  %10509 = vmatprep.subr.bf16.mxu0 %v14497_v47  ;;  %v14624_v54 = vcombine.low %v1289_v41, %v1293_v43  ;;  %v16854_v43 = vrot.slane %v2190_v31, %v16611_v22 }
 0x15c   : > { %v1157_v50 = vld [vmem:[%s16552_s27 + $0x1360] sm:$0xff]  ;;  %10510 = vmatpush2.bf16.msra.mxu0 %v14496_v53 }
 0x15d   : > { %v1281_v51 = vld [vmem:[%s16552_s27 + $0x1740] sm:$0xff]  ;;  %v14489_v56 = vcombine.high %v1153_v49, %v1157_v50  ;;  %10550 = vmatprep.subr.bf16.mxu1 %v14625_v48  ;;  %v14488_v0 = vcombine.low %v1153_v49, %v1157_v50 }
 0x15e   : > { %v1285_v52 = vld [vmem:[%s16552_s27 + $0x1760] sm:$0xff]  ;;  %10551 = vmatpush2.bf16.msra.mxu1 %v14624_v54  ;;  %v16864_v54 = vrot.slane %v16764_v3, %v16611_v22 }
 0x15f   : > { %v14617_v57 = vcombine.high %v1281_v51, %v1285_v52  ;;  %v1145_v59 = vld [vmem:[%s16552_s27 + $0x1300] sm:$0xff]  ;;  %10511 = vmatprep.subr.bf16.mxu0 %v14489_v56  ;;  %v14616_v1 = vcombine.low %v1281_v51, %v1285_v52  ;;  %v2206_v52 = vcombine.high %v16854_v43, %v16854_v43 }
 0x160   : > { %v1149_v60 = vld [vmem:[%s16552_s27 + $0x1320] sm:$0xff]  ;;  %10512 = vmatpush2.bf16.msra.mxu0 %v14488_v0  ;;  %v16875_v3 = vcombine.high %v16864_v54, %v16864_v54 }
 0x161   : > { %v1273_v61 = vld [vmem:[%s16552_s27 + $0x1700] sm:$0xff]  ;;  %v14481_v2 = vcombine.high %v1145_v59, %v1149_v60  ;;  %10552 = vmatprep.subr.bf16.mxu1 %v14617_v57  ;;  %v14480_v10 = vcombine.low %v1145_v59, %v1149_v60 }
 0x162   : > { %v1277_v62 = vld [vmem:[%s16552_s27 + $0x1720] sm:$0xff]  ;;  %10553 = vmatpush2.bf16.msra.mxu1 %v14616_v1  ;;  %v16871_v1 = vrot.slane %v2206_v52, %v16611_v22 }
 0x163   : > { %v14609_v4 = vcombine.high %v1273_v61, %v1277_v62  ;;  %v1137_v5 = vld [vmem:[%s16552_s27 + $0x12c0] sm:$0xff]  ;;  %10513 = vmatprep.subr.bf16.mxu0 %v14481_v2  ;;  %v14608_v11 = vcombine.low %v1273_v61, %v1277_v62 }
 0x164   : > { %v1141_v6 = vld [vmem:[%s16552_s27 + $0x12e0] sm:$0xff]  ;;  %10514 = vmatpush2.bf16.msra.mxu0 %v14480_v10 }
 0x165   : > { %v1265_v7 = vld [vmem:[%s16552_s27 + $0x16c0] sm:$0xff]  ;;  %v14473_v12 = vcombine.high %v1137_v5, %v1141_v6  ;;  %10554 = vmatprep.subr.bf16.mxu1 %v14609_v4  ;;  %v14472_v20 = vcombine.low %v1137_v5, %v1141_v6 }
 0x166   : > { %v1269_v9 = vld [vmem:[%s16552_s27 + $0x16e0] sm:$0xff]  ;;  %10555 = vmatpush2.bf16.msra.mxu1 %v14608_v11 }
 0x167   : > { %v14601_v14 = vcombine.high %v1265_v7, %v1269_v9  ;;  %v1129_v15 = vld [vmem:[%s16552_s27 + $0x1280] sm:$0xff]  ;;  %10515 = vmatprep.subr.bf16.mxu0 %v14473_v12  ;;  %v14600_v21 = vcombine.low %v1265_v7, %v1269_v9  ;;  %v16884_v12 = vcombine.high %v16871_v1, %v16871_v1 }
 0x168   : > { %v1133_v17 = vld [vmem:[%s16552_s27 + $0x12a0] sm:$0xff]  ;;  %10516 = vmatpush2.bf16.msra.mxu0 %v14472_v20 }
 0x169   : > { %v1257_v18 = vld [vmem:[%s16552_s27 + $0x1680] sm:$0xff]  ;;  %v14465_v23 = vcombine.high %v1129_v15, %v1133_v17  ;;  %10556 = vmatprep.subr.bf16.mxu1 %v14601_v14  ;;  %v14464_v33 = vcombine.low %v1129_v15, %v1133_v17 }
 0x16a   : > { %v1261_v19 = vld [vmem:[%s16552_s27 + $0x16a0] sm:$0xff]  ;;  %10557 = vmatpush2.bf16.msra.mxu1 %v14600_v21 }
 0x16b   : > { %v14593_v24 = vcombine.high %v1257_v18, %v1261_v19  ;;  %v1121_v26 = vld [vmem:[%s16552_s27 + $0x1240] sm:$0xff]  ;;  %10517 = vmatprep.subr.bf16.mxu0 %v14465_v23  ;;  %v14592_v34 = vcombine.low %v1257_v18, %v1261_v19 }
 0x16c   : > { %v1125_v27 = vld [vmem:[%s16552_s27 + $0x1260] sm:$0xff]  ;;  %10518 = vmatpush2.bf16.msra.mxu0 %v14464_v33 }
 0x16d   : > { %v1249_v29 = vld [vmem:[%s16552_s27 + $0x1640] sm:$0xff]  ;;  %v14457_v35 = vcombine.high %v1121_v26, %v1125_v27  ;;  %10558 = vmatprep.subr.bf16.mxu1 %v14593_v24  ;;  %v14456_v58 = vcombine.low %v1121_v26, %v1125_v27 }
 0x16e   : > { %v1253_v30 = vld [vmem:[%s16552_s27 + $0x1660] sm:$0xff]  ;;  %10559 = vmatpush2.bf16.msra.mxu1 %v14592_v34 }
 0x16f   : > { %v14585_v37 = vcombine.high %v1249_v29, %v1253_v30  ;;  %v1113_v38 = vld [vmem:[%s16552_s27 + $0x1200] sm:$0xff]  ;;  %10519 = vmatprep.subr.bf16.mxu0 %v14457_v35  ;;  %v14584_v28 = vcombine.low %v1249_v29, %v1253_v30 }
 0x170   : > { %v1117_v39 = vld [vmem:[%s16552_s27 + $0x1220] sm:$0xff]  ;;  %10520 = vmatpush2.bf16.msra.mxu0 %v14456_v58 }
 0x171   : > { %v1241_v40 = vld [vmem:[%s16552_s27 + $0x1600] sm:$0xff]  ;;  %v14449_v45 = vcombine.high %v1113_v38, %v1117_v39  ;;  %10560 = vmatprep.subr.bf16.mxu1 %v14585_v37  ;;  %v14448_v53 = vcombine.low %v1113_v38, %v1117_v39 }
 0x172   : > { %v1245_v41 = vld [vmem:[%s16552_s27 + $0x1620] sm:$0xff]  ;;  %10561 = vmatpush2.bf16.msra.mxu1 %v14584_v28 }
 0x173   : > { %v14577_v47 = vcombine.high %v1241_v40, %v1245_v41  ;;  %v1361_v48 = vld [vmem:[%s16552_s27 + $0x19c0] sm:$0xff]  ;;  %10521 = vmatprep.subr.bf16.mxu0 %v14449_v45  ;;  %v14576_v56 = vcombine.low %v1241_v40, %v1245_v41 }
 0x174   : > { %v1365_v49 = vld [vmem:[%s16552_s27 + $0x19e0] sm:$0xff]  ;;  %10522 = vmatpush2.bf16.msra.mxu0 %v14448_v53 }
 0x175   : > { %v1489_v50 = vld [vmem:[%s16552_s27 + $0x1dc0] sm:$0xff]  ;;  %v14697_v57 = vcombine.high %v1361_v48, %v1365_v49  ;;  %10562 = vmatprep.subr.bf16.mxu1 %v14577_v47  ;;  %v14696_v2 = vcombine.low %v1361_v48, %v1365_v49 }
 0x176   : > { %v1493_v51 = vld [vmem:[%s16552_s27 + $0x1de0] sm:$0xff]  ;;  %10563 = vmatpush2.bf16.msra.mxu1 %v14576_v56 }
 0x177   : > { %v14825_v59 = vcombine.high %v1489_v50, %v1493_v51  ;;  %v1353_v60 = vld [vmem:[%s16552_s27 + $0x1980] sm:$0xff]  ;;  %10573 = vmatprep.subr.bf16.mxu0 %v14697_v57  ;;  %v14824_v4 = vcombine.low %v1489_v50, %v1493_v51  ;;  %10524 = vmatmul.mubr.bf16.vlgmr.msra.gmra.mxu0 %v16864_v54 }
 0x178   : > { %v1357_v61 = vld [vmem:[%s16552_s27 + $0x19a0] sm:$0xff]  ;;  %10574 = vmatpush1.bf16.msra.mxu0 %v14696_v2  ;;  %10605 = vmatprep.mubr.bf16.mxu0 %v16871_v1 }
 0x179   : > { %v1481_v62 = vld [vmem:[%s16552_s27 + $0x1d80] sm:$0xff]  ;;  %v14689_v5 = vcombine.high %v1353_v60, %v1357_v61  ;;  %10614 = vmatprep.subr.bf16.mxu1 %v14825_v59  ;;  %10565 = vmatmul.mubr.bf16.vlgmr.msra.gmra.mxu1 %v16875_v3  ;;  %v14688_v14 = vcombine.low %v1353_v60, %v1357_v61 }
 0x17a   : > { %v1485_v0 = vld [vmem:[%s16552_s27 + $0x1da0] sm:$0xff]  ;;  %10615 = vmatpush1.bf16.msra.mxu1 %v14824_v4  ;;  %10646 = vmatprep.mubr.bf16.mxu1 %v16884_v12 }
 0x17b   : > { %v14817_v6 = vcombine.high %v1481_v62, %v1485_v0  ;;  %v1345_v7 = vld [vmem:[%s16552_s27 + $0x1940] sm:$0xff]  ;;  %10575 = vmatprep.subr.bf16.mxu0 %v14689_v5  ;;  %v14816_v15 = vcombine.low %v1481_v62, %v1485_v0 }
 0x17c   : > { %v1349_v9 = vld [vmem:[%s16552_s27 + $0x1960] sm:$0xff]  ;;  %10576 = vmatpush1.bf16.msra.mxu0 %v14688_v14 }
 0x17d   : > { %v1473_v10 = vld [vmem:[%s16552_s27 + $0x1d40] sm:$0xff]  ;;  %v14681_v17 = vcombine.high %v1345_v7, %v1349_v9  ;;  %10616 = vmatprep.subr.bf16.mxu1 %v14817_v6  ;;  %v14680_v24 = vcombine.low %v1345_v7, %v1349_v9 }
 0x17e   : > { %v1477_v11 = vld [vmem:[%s16552_s27 + $0x1d60] sm:$0xff]  ;;  %10617 = vmatpush1.bf16.msra.mxu1 %v14816_v15 }
 0x17f   : > { %v14809_v18 = vcombine.high %v1473_v10, %v1477_v11  ;;  %v1337_v19 = vld [vmem:[%s16552_s27 + $0x1900] sm:$0xff]  ;;  %10577 = vmatprep.subr.bf16.mxu0 %v14681_v17  ;;  %v14808_v26 = vcombine.low %v1473_v10, %v1477_v11 }
 0x180   : > { %v1341_v20 = vld [vmem:[%s16552_s27 + $0x1920] sm:$0xff]  ;;  %10578 = vmatpush1.bf16.msra.mxu0 %v14680_v24 }
 0x181   : > { %v1465_v21 = vld [vmem:[%s16552_s27 + $0x1d00] sm:$0xff]  ;;  %v14673_v27 = vcombine.high %v1337_v19, %v1341_v20  ;;  %10618 = vmatprep.subr.bf16.mxu1 %v14809_v18  ;;  %v14672_v35 = vcombine.low %v1337_v19, %v1341_v20 }
 0x182   : > { %v1469_v23 = vld [vmem:[%s16552_s27 + $0x1d20] sm:$0xff]  ;;  %10619 = vmatpush1.bf16.msra.mxu1 %v14808_v26 }
 0x183   : > { %v14801_v29 = vcombine.high %v1465_v21, %v1469_v23  ;;  %v1329_v30 = vld [vmem:[%s16552_s27 + $0x18c0] sm:$0xff]  ;;  %10579 = vmatprep.subr.bf16.mxu0 %v14673_v27  ;;  %v14800_v37 = vcombine.low %v1465_v21, %v1469_v23 }
 0x184   : > { %v1333_v31 = vld [vmem:[%s16552_s27 + $0x18e0] sm:$0xff]  ;;  %10580 = vmatpush1.bf16.msra.mxu0 %v14672_v35 }
 0x185   : > { %v1457_v33 = vld [vmem:[%s16552_s27 + $0x1cc0] sm:$0xff]  ;;  %v14665_v38 = vcombine.high %v1329_v30, %v1333_v31  ;;  %10620 = vmatprep.subr.bf16.mxu1 %v14801_v29  ;;  %v14664_v45 = vcombine.low %v1329_v30, %v1333_v31 }
 0x186   : > { %v1461_v34 = vld [vmem:[%s16552_s27 + $0x1ce0] sm:$0xff]  ;;  %10621 = vmatpush1.bf16.msra.mxu1 %v14800_v37 }
 0x187   : > { %v14793_v39 = vcombine.high %v1457_v33, %v1461_v34  ;;  %v1321_v40 = vld [vmem:[%s16552_s27 + $0x1880] sm:$0xff]  ;;  %10581 = vmatprep.subr.bf16.mxu0 %v14665_v38  ;;  %v14792_v47 = vcombine.low %v1457_v33, %v1461_v34 }
 0x188   : > { %v1325_v41 = vld [vmem:[%s16552_s27 + $0x18a0] sm:$0xff]  ;;  %10582 = vmatpush1.bf16.msra.mxu0 %v14664_v45 }
 0x189   : > { %v1449_v58 = vld [vmem:[%s16552_s27 + $0x1c80] sm:$0xff]  ;;  %v14657_v48 = vcombine.high %v1321_v40, %v1325_v41  ;;  %10622 = vmatprep.subr.bf16.mxu1 %v14793_v39  ;;  %v14656_v56 = vcombine.low %v1321_v40, %v1325_v41 }
 0x18a   : > { %v1453_v28 = vld [vmem:[%s16552_s27 + $0x1ca0] sm:$0xff]  ;;  %10623 = vmatpush1.bf16.msra.mxu1 %v14792_v47 }
 0x18b   : > { %v14785_v49 = vcombine.high %v1449_v58, %v1453_v28  ;;  %v1313_v50 = vld [vmem:[%s16552_s27 + $0x1840] sm:$0xff]  ;;  %10583 = vmatprep.subr.bf16.mxu0 %v14657_v48  ;;  %v14784_v57 = vcombine.low %v1449_v58, %v1453_v28 }
 0x18c   : > { %v1317_v51 = vld [vmem:[%s16552_s27 + $0x1860] sm:$0xff]  ;;  %10584 = vmatpush1.bf16.msra.mxu0 %v14656_v56 }
 0x18d   : > { %v1441_v52 = vld [vmem:[%s16552_s27 + $0x1c40] sm:$0xff]  ;;  %v14649_v59 = vcombine.high %v1313_v50, %v1317_v51  ;;  %10624 = vmatprep.subr.bf16.mxu1 %v14785_v49  ;;  %v14648_v4 = vcombine.low %v1313_v50, %v1317_v51 }
 0x18e   : > { %v1445_v53 = vld [vmem:[%s16552_s27 + $0x1c60] sm:$0xff]  ;;  %10625 = vmatpush1.bf16.msra.mxu1 %v14784_v57 }
 0x18f   : > { %v14777_v60 = vcombine.high %v1441_v52, %v1445_v53  ;;  %v1305_v61 = vld [vmem:[%s16552_s27 + $0x1800] sm:$0xff]  ;;  %10585 = vmatprep.subr.bf16.mxu0 %v14649_v59  ;;  %v14776_v5 = vcombine.low %v1441_v52, %v1445_v53 }
 0x190   : > { %v1309_v62 = vld [vmem:[%s16552_s27 + $0x1820] sm:$0xff]  ;;  %10586 = vmatpush1.bf16.msra.mxu0 %v14648_v4 }
 0x191   : > { %v1433_v0 = vld [vmem:[%s16552_s27 + $0x1c00] sm:$0xff]  ;;  %v14641_v6 = vcombine.high %v1305_v61, %v1309_v62  ;;  %10626 = vmatprep.subr.bf16.mxu1 %v14777_v60  ;;  %v14640_v15 = vcombine.low %v1305_v61, %v1309_v62 }
 0x192   : > { %v1437_v2 = vld [vmem:[%s16552_s27 + $0x1c20] sm:$0xff]  ;;  %10627 = vmatpush1.bf16.msra.mxu1 %v14776_v5 }
 0x193   : > { %v14769_v7 = vcombine.high %v1433_v0, %v1437_v2  ;;  %v1425_v9 = vld [vmem:[%s16552_s27 + $0x1bc0] sm:$0xff]  ;;  %10587 = vmatprep.subr.bf16.mxu0 %v14641_v6  ;;  %v14768_v17 = vcombine.low %v1433_v0, %v1437_v2 }
 0x194   : > { %v1429_v10 = vld [vmem:[%s16552_s27 + $0x1be0] sm:$0xff]  ;;  %10588 = vmatpush1.bf16.msra.mxu0 %v14640_v15 }
 0x195   : > { %v1553_v11 = vld [vmem:[%s16552_s27 + $0x1fc0] sm:$0xff]  ;;  %v14761_v18 = vcombine.high %v1425_v9, %v1429_v10  ;;  %10628 = vmatprep.subr.bf16.mxu1 %v14769_v7  ;;  %v14760_v26 = vcombine.low %v1425_v9, %v1429_v10 }
 0x196   : > { %v1557_v14 = vld [vmem:[%s16552_s27 + $0x1fe0] sm:$0xff]  ;;  %10629 = vmatpush1.bf16.msra.mxu1 %v14768_v17 }
 0x197   : > { %v14889_v19 = vcombine.high %v1553_v11, %v1557_v14  ;;  %v1417_v20 = vld [vmem:[%s16552_s27 + $0x1b80] sm:$0xff]  ;;  %10589 = vmatprep.subr.bf16.mxu0 %v14761_v18  ;;  %v14888_v27 = vcombine.low %v1553_v11, %v1557_v14 }
 0x198   : > { %v1421_v21 = vld [vmem:[%s16552_s27 + $0x1ba0] sm:$0xff]  ;;  %10590 = vmatpush2.bf16.msra.mxu0 %v14760_v26 }
 0x199   : > { %v1545_v23 = vld [vmem:[%s16552_s27 + $0x1f80] sm:$0xff]  ;;  %v14753_v29 = vcombine.high %v1417_v20, %v1421_v21  ;;  %10630 = vmatprep.subr.bf16.mxu1 %v14889_v19  ;;  %v14752_v37 = vcombine.low %v1417_v20, %v1421_v21 }
 0x19a   : > { %v1549_v24 = vld [vmem:[%s16552_s27 + $0x1fa0] sm:$0xff]  ;;  %10631 = vmatpush2.bf16.msra.mxu1 %v14888_v27 }
 0x19b   : > { %v14881_v30 = vcombine.high %v1545_v23, %v1549_v24  ;;  %v1409_v31 = vld [vmem:[%s16552_s27 + $0x1b40] sm:$0xff]  ;;  %10591 = vmatprep.subr.bf16.mxu0 %v14753_v29  ;;  %v14880_v38 = vcombine.low %v1545_v23, %v1549_v24 }
 0x19c   : > { %v1413_v33 = vld [vmem:[%s16552_s27 + $0x1b60] sm:$0xff]  ;;  %10592 = vmatpush2.bf16.msra.mxu0 %v14752_v37 }
 0x19d   : > { %v1537_v34 = vld [vmem:[%s16552_s27 + $0x1f40] sm:$0xff]  ;;  %v14745_v39 = vcombine.high %v1409_v31, %v1413_v33  ;;  %10632 = vmatprep.subr.bf16.mxu1 %v14881_v30  ;;  %v14744_v47 = vcombine.low %v1409_v31, %v1413_v33 }
 0x19e   : > { %v1541_v35 = vld [vmem:[%s16552_s27 + $0x1f60] sm:$0xff]  ;;  %10633 = vmatpush2.bf16.msra.mxu1 %v14880_v38 }
 0x19f   : > { %v14873_v40 = vcombine.high %v1537_v34, %v1541_v35  ;;  %v1401_v41 = vld [vmem:[%s16552_s27 + $0x1b00] sm:$0xff]  ;;  %10593 = vmatprep.subr.bf16.mxu0 %v14745_v39  ;;  %v14872_v48 = vcombine.low %v1537_v34, %v1541_v35 }
 0x1a0   : > { %v1405_v58 = vld [vmem:[%s16552_s27 + $0x1b20] sm:$0xff]  ;;  %10594 = vmatpush2.bf16.msra.mxu0 %v14744_v47 }
 0x1a1   : > { %v1529_v28 = vld [vmem:[%s16552_s27 + $0x1f00] sm:$0xff]  ;;  %v14737_v49 = vcombine.high %v1401_v41, %v1405_v58  ;;  %10634 = vmatprep.subr.bf16.mxu1 %v14873_v40  ;;  %v14736_v57 = vcombine.low %v1401_v41, %v1405_v58  ;;  %v16956_v58 = vrot.slane %v16854_v43, %v16611_v22 }
 0x1a2   : > { %v1533_v45 = vld [vmem:[%s16552_s27 + $0x1f20] sm:$0xff]  ;;  %10635 = vmatpush2.bf16.msra.mxu1 %v14872_v48 }
 0x1a3   : > { %v14865_v50 = vcombine.high %v1529_v28, %v1533_v45  ;;  %v1393_v51 = vld [vmem:[%s16552_s27 + $0x1ac0] sm:$0xff]  ;;  %10595 = vmatprep.subr.bf16.mxu0 %v14737_v49  ;;  %v14864_v59 = vcombine.low %v1529_v28, %v1533_v45  ;;  %v16967_v43 = vcombine.high %v16956_v58, %v16956_v58 }
 0x1a4   : > { %v1397_v52 = vld [vmem:[%s16552_s27 + $0x1ae0] sm:$0xff]  ;;  %10596 = vmatpush2.bf16.msra.mxu0 %v14736_v57 }
 0x1a5   : > { %v1521_v53 = vld [vmem:[%s16552_s27 + $0x1ec0] sm:$0xff]  ;;  %v14729_v60 = vcombine.high %v1393_v51, %v1397_v52  ;;  %10636 = vmatprep.subr.bf16.mxu1 %v14865_v50  ;;  %v14728_v5 = vcombine.low %v1393_v51, %v1397_v52 }
 0x1a6   : > { %v1525_v56 = vld [vmem:[%s16552_s27 + $0x1ee0] sm:$0xff]  ;;  %10637 = vmatpush2.bf16.msra.mxu1 %v14864_v59 }
 0x1a7   : > { %v14857_v61 = vcombine.high %v1521_v53, %v1525_v56  ;;  %v1385_v62 = vld [vmem:[%s16552_s27 + $0x1a80] sm:$0xff]  ;;  %10597 = vmatprep.subr.bf16.mxu0 %v14729_v60  ;;  %v14856_v6 = vcombine.low %v1521_v53, %v1525_v56 }
 0x1a8   : > { %v1389_v0 = vld [vmem:[%s16552_s27 + $0x1aa0] sm:$0xff]  ;;  %10598 = vmatpush2.bf16.msra.mxu0 %v14728_v5 }
 0x1a9   : > { %v1513_v2 = vld [vmem:[%s16552_s27 + $0x1e80] sm:$0xff]  ;;  %v14721_v7 = vcombine.high %v1385_v62, %v1389_v0  ;;  %10638 = vmatprep.subr.bf16.mxu1 %v14857_v61  ;;  %v14720_v17 = vcombine.low %v1385_v62, %v1389_v0 }
 0x1aa   : > { %v1517_v4 = vld [vmem:[%s16552_s27 + $0x1ea0] sm:$0xff]  ;;  %10639 = vmatpush2.bf16.msra.mxu1 %v14856_v6 }
 0x1ab   : > { %v14849_v9 = vcombine.high %v1513_v2, %v1517_v4  ;;  %v1377_v10 = vld [vmem:[%s16552_s27 + $0x1a40] sm:$0xff]  ;;  %10599 = vmatprep.subr.bf16.mxu0 %v14721_v7  ;;  %v14848_v19 = vcombine.low %v1513_v2, %v1517_v4 }
 0x1ac   : > { %v1381_v11 = vld [vmem:[%s16552_s27 + $0x1a60] sm:$0xff]  ;;  %10600 = vmatpush2.bf16.msra.mxu0 %v14720_v17 }
 0x1ad   : > { %v1505_v14 = vld [vmem:[%s16552_s27 + $0x1e40] sm:$0xff]  ;;  %v14713_v20 = vcombine.high %v1377_v10, %v1381_v11  ;;  %10640 = vmatprep.subr.bf16.mxu1 %v14849_v9  ;;  %v14712_v30 = vcombine.low %v1377_v10, %v1381_v11 }
 0x1ae   : > { %v1509_v15 = vld [vmem:[%s16552_s27 + $0x1e60] sm:$0xff]  ;;  %10641 = vmatpush2.bf16.msra.mxu1 %v14848_v19 }
 0x1af   : > { %v16938_v18 = vld [vmem:[%s16578_s30 + $0x10] sm:$0xff]  ;;  %v14841_v21 = vcombine.high %v1505_v14, %v1509_v15  ;;  %10601 = vmatprep.subr.bf16.mxu0 %v14713_v20  ;;  %v14840_v31 = vcombine.low %v1505_v14, %v1509_v15 }
 0x1b0   : > { %v1369_v23 = vld [vmem:[%s16552_s27 + $0x1a00] sm:$0xff]  ;;  %v16946_v29 = vrot.slane %v16938_v18, %v16611_v22  ;;  %10602 = vmatpush2.bf16.msra.mxu0 %v14712_v30 }
 0x1b1   : > { %v1373_v24 = vld [vmem:[%s16552_s27 + $0x1a20] sm:$0xff]  ;;  %10642 = vmatprep.subr.bf16.mxu1 %v14841_v21 }
 0x1b2   : > { %v1497_v26 = vld [vmem:[%s16552_s27 + $0x1e00] sm:$0xff]  ;;  %v14705_v33 = vcombine.high %v1369_v23, %v1373_v24  ;;  %v2254_v40 = vcombine.high %v16946_v29, %v16946_v29  ;;  %v14704_v41 = vcombine.low %v1369_v23, %v1373_v24  ;;  %10643 = vmatpush2.bf16.msra.mxu1 %v14840_v31 }
 0x1b3   : > { %v1501_v27 = vld [vmem:[%s16552_s27 + $0x1e20] sm:$0xff] }
 0x1b4   : > { %v14833_v34 = vcombine.high %v1497_v26, %v1501_v27  ;;  %v1617_v35 = vld [vmem:[%s16552_s27 + $0x21c0] sm:$0xff]  ;;  %10603 = vmatprep.subr.bf16.mxu0 %v14705_v33  ;;  %v14832_v28 = vcombine.low %v1497_v26, %v1501_v27  ;;  %v16963_v52 = vrot.slane %v2254_v40, %v16611_v22 }
 0x1b5   : > { %v1621_v37 = vld [vmem:[%s16552_s27 + $0x21e0] sm:$0xff]  ;;  %10604 = vmatpush2.bf16.msra.mxu0 %v14704_v41 }
 0x1b6   : > { %v1745_v38 = vld [vmem:[%s16552_s27 + $0x25c0] sm:$0xff]  ;;  %v14953_v45 = vcombine.high %v1617_v35, %v1621_v37  ;;  %10644 = vmatprep.subr.bf16.mxu1 %v14833_v34  ;;  %v14952_v53 = vcombine.low %v1617_v35, %v1621_v37  ;;  %v16976_v4 = vcombine.high %v16963_v52, %v16963_v52 }
 0x1b7   : > { %v1749_v39 = vld [vmem:[%s16552_s27 + $0x25e0] sm:$0xff]  ;;  %10645 = vmatpush2.bf16.msra.mxu1 %v14832_v28  ;;  %v10361_v62 = vpop.f32.mrf.mxu0 }
 0x1b8   : > { %v15081_v47 = vcombine.high %v1745_v38, %v1749_v39  ;;  %v1609_v48 = vld [vmem:[%s16552_s27 + $0x2180] sm:$0xff]  ;;  %10655 = vmatprep.subr.bf16.mxu0 %v14953_v45  ;;  %v15080_v56 = vcombine.low %v1745_v38, %v1749_v39  ;;  %10606 = vmatmul.mubr.bf16.vlgmr.msra.gmra.mxu0 %v16956_v58 }
 0x1b9   : > { %v1613_v49 = vld [vmem:[%s16552_s27 + $0x21a0] sm:$0xff]  ;;  %v10402_v5 = vpop.f32.mrf.mxu1  ;;  %10656 = vmatpush1.bf16.msra.mxu0 %v14952_v53  ;;  %v10363_v9 = vpop.f32.mrf.mxu0  ;;  %10687 = vmatprep.mubr.bf16.mxu0 %v16963_v52 }
 0x1ba   : > { %v1737_v50 = vld [vmem:[%s16552_s27 + $0x2580] sm:$0xff]  ;;  %v14945_v57 = vcombine.high %v1609_v48, %v1613_v49  ;;  %10696 = vmatprep.subr.bf16.mxu1 %v15081_v47  ;;  %10647 = vmatmul.mubr.bf16.vlgmr.msra.gmra.mxu1 %v16967_v43  ;;  %v14944_v6 = vcombine.low %v1609_v48, %v1613_v49  ;;  %v16979_v7 = vadd.f32 %v10402_v5, %v10361_v62 }
 0x1bb   : > { %v1741_v51 = vld [vmem:[%s16552_s27 + $0x25a0] sm:$0xff]  ;;  %10697 = vmatpush1.bf16.msra.mxu1 %v15080_v56  ;;  %v10404_v14 = vpop.f32.mrf.mxu1  ;;  %v10365_v21 = vpop.f32.mrf.mxu0  ;;  %10728 = vmatprep.mubr.bf16.mxu1 %v16976_v4 }
 0x1bc   : > { %v15073_v59 = vcombine.high %v1737_v50, %v1741_v51  ;;  %v1601_v60 = vld [vmem:[%s16552_s27 + $0x2140] sm:$0xff]  ;;  %10657 = vmatprep.subr.bf16.mxu0 %v14945_v57  ;;  %v15072_v10 = vcombine.low %v1737_v50, %v1741_v51  ;;  %v16984_v20 = vadd.f32 %v10404_v14, %v10363_v9 }
 0x1bd   : > { %v1605_v61 = vld [vmem:[%s16552_s27 + $0x2160] sm:$0xff]  ;;  %v10406_v26 = vpop.f32.mrf.mxu1  ;;  %10658 = vmatpush1.bf16.msra.mxu0 %v14944_v6  ;;  %v10366_v30 = vpop.f32.mrf.mxu0 }
 0x1be   : > { %v1729_v0 = vld [vmem:[%s16552_s27 + $0x2540] sm:$0xff]  ;;  %v14937_v11 = vcombine.high %v1601_v60, %v1605_v61  ;;  %10698 = vmatprep.subr.bf16.mxu1 %v15073_v59  ;;  %v14936_v27 = vcombine.low %v1601_v60, %v1605_v61 }
 0x1bf   : > { %v1733_v2 = vld [vmem:[%s16552_s27 + $0x2560] sm:$0xff]  ;;  %10699 = vmatpush1.bf16.msra.mxu1 %v15072_v10  ;;  %v10407_v34 = vpop.f32.mrf.mxu1 }
 0x1c0   : > { %v15065_v15 = vcombine.high %v1729_v0, %v1733_v2  ;;  %v1593_v17 = vld [vmem:[%s16552_s27 + $0x2100] sm:$0xff]  ;;  %10659 = vmatprep.subr.bf16.mxu0 %v14937_v11  ;;  %v15064_v31 = vcombine.low %v1729_v0, %v1733_v2 }
 0x1c1   : > { %v1597_v19 = vld [vmem:[%s16552_s27 + $0x2120] sm:$0xff]  ;;  %10660 = vmatpush1.bf16.msra.mxu0 %v14936_v27 }
 0x1c2   : > { %v1721_v23 = vld [vmem:[%s16552_s27 + $0x2500] sm:$0xff]  ;;  %v14929_v33 = vcombine.high %v1593_v17, %v1597_v19  ;;  %10700 = vmatprep.subr.bf16.mxu1 %v15065_v15  ;;  %v14928_v41 = vcombine.low %v1593_v17, %v1597_v19 }
 0x1c3   : > { %v1725_v24 = vld [vmem:[%s16552_s27 + $0x2520] sm:$0xff]  ;;  %10701 = vmatpush1.bf16.msra.mxu1 %v15064_v31 }
 0x1c4   : > { %v15057_v35 = vcombine.high %v1721_v23, %v1725_v24  ;;  %v1585_v37 = vld [vmem:[%s16552_s27 + $0x20c0] sm:$0xff]  ;;  %10661 = vmatprep.subr.bf16.mxu0 %v14929_v33  ;;  %v15056_v28 = vcombine.low %v1721_v23, %v1725_v24 }
 0x1c5   : > { %v1589_v38 = vld [vmem:[%s16552_s27 + $0x20e0] sm:$0xff]  ;;  %10662 = vmatpush1.bf16.msra.mxu0 %v14928_v41 }
 0x1c6   : > { %v1713_v39 = vld [vmem:[%s16552_s27 + $0x24c0] sm:$0xff]  ;;  %v14921_v45 = vcombine.high %v1585_v37, %v1589_v38  ;;  %10702 = vmatprep.subr.bf16.mxu1 %v15057_v35  ;;  %v14920_v53 = vcombine.low %v1585_v37, %v1589_v38 }
 0x1c7   : > { %v1717_v40 = vld [vmem:[%s16552_s27 + $0x24e0] sm:$0xff]  ;;  %10703 = vmatpush1.bf16.msra.mxu1 %v15056_v28 }
 0x1c8   : > { %v15049_v47 = vcombine.high %v1713_v39, %v1717_v40  ;;  %v1577_v48 = vld [vmem:[%s16552_s27 + $0x2080] sm:$0xff]  ;;  %10663 = vmatprep.subr.bf16.mxu0 %v14921_v45  ;;  %v15048_v56 = vcombine.low %v1713_v39, %v1717_v40 }
 0x1c9   : > { %v1581_v49 = vld [vmem:[%s16552_s27 + $0x20a0] sm:$0xff]  ;;  %10664 = vmatpush1.bf16.msra.mxu0 %v14920_v53 }
 0x1ca   : > { %v1705_v50 = vld [vmem:[%s16552_s27 + $0x2480] sm:$0xff]  ;;  %v14913_v57 = vcombine.high %v1577_v48, %v1581_v49  ;;  %10704 = vmatprep.subr.bf16.mxu1 %v15049_v47  ;;  %v14912_v2 = vcombine.low %v1577_v48, %v1581_v49 }
 0x1cb   : > { %v1709_v51 = vld [vmem:[%s16552_s27 + $0x24a0] sm:$0xff]  ;;  %10705 = vmatpush1.bf16.msra.mxu1 %v15048_v56 }
 0x1cc   : > { %v15041_v59 = vcombine.high %v1705_v50, %v1709_v51  ;;  %v1569_v60 = vld [vmem:[%s16552_s27 + $0x2040] sm:$0xff]  ;;  %10665 = vmatprep.subr.bf16.mxu0 %v14913_v57  ;;  %v15040_v5 = vcombine.low %v1705_v50, %v1709_v51 }
 0x1cd   : > { %v1573_v61 = vld [vmem:[%s16552_s27 + $0x2060] sm:$0xff]  ;;  %10666 = vmatpush1.bf16.msra.mxu0 %v14912_v2 }
 0x1ce   : > { %v1697_v62 = vld [vmem:[%s16552_s27 + $0x2440] sm:$0xff]  ;;  %v14905_v6 = vcombine.high %v1569_v60, %v1573_v61  ;;  %10706 = vmatprep.subr.bf16.mxu1 %v15041_v59  ;;  %v14904_v17 = vcombine.low %v1569_v60, %v1573_v61 }
 0x1cf   : > { %v1701_v0 = vld [vmem:[%s16552_s27 + $0x2460] sm:$0xff]  ;;  %10707 = vmatpush1.bf16.msra.mxu1 %v15040_v5 }
 0x1d0   : > { %v15033_v9 = vcombine.high %v1697_v62, %v1701_v0  ;;  %v1561_v10 = vld [vmem:[%s16552_s27 + $0x2000] sm:$0xff]  ;;  %10667 = vmatprep.subr.bf16.mxu0 %v14905_v6  ;;  %v15032_v19 = vcombine.low %v1697_v62, %v1701_v0 }
 0x1d1   : > { %v1565_v11 = vld [vmem:[%s16552_s27 + $0x2020] sm:$0xff]  ;;  %10668 = vmatpush1.bf16.msra.mxu0 %v14904_v17 }
 0x1d2   : > { %v1689_v14 = vld [vmem:[%s16552_s27 + $0x2400] sm:$0xff]  ;;  %v14897_v21 = vcombine.high %v1561_v10, %v1565_v11  ;;  %10708 = vmatprep.subr.bf16.mxu1 %v15033_v9  ;;  %v14896_v31 = vcombine.low %v1561_v10, %v1565_v11 }
 0x1d3   : > { %v1693_v15 = vld [vmem:[%s16552_s27 + $0x2420] sm:$0xff]  ;;  %10709 = vmatpush1.bf16.msra.mxu1 %v15032_v19 }
 0x1d4   : > { %v15025_v23 = vcombine.high %v1689_v14, %v1693_v15  ;;  %v1681_v24 = vld [vmem:[%s16552_s27 + $0x23c0] sm:$0xff]  ;;  %10669 = vmatprep.subr.bf16.mxu0 %v14897_v21  ;;  %v15024_v33 = vcombine.low %v1689_v14, %v1693_v15 }
 0x1d5   : > { %v1685_v26 = vld [vmem:[%s16552_s27 + $0x23e0] sm:$0xff]  ;;  %10670 = vmatpush1.bf16.msra.mxu0 %v14896_v31 }
 0x1d6   : > { %v1809_v27 = vld [vmem:[%s16552_s27 + $0x27c0] sm:$0xff]  ;;  %v15017_v34 = vcombine.high %v1681_v24, %v1685_v26  ;;  %10710 = vmatprep.subr.bf16.mxu1 %v15025_v23  ;;  %v15016_v41 = vcombine.low %v1681_v24, %v1685_v26 }
 0x1d7   : > { %v1813_v30 = vld [vmem:[%s16552_s27 + $0x27e0] sm:$0xff]  ;;  %10711 = vmatpush1.bf16.msra.mxu1 %v15024_v33 }
 0x1d8   : > { %v15145_v35 = vcombine.high %v1809_v27, %v1813_v30  ;;  %v1673_v37 = vld [vmem:[%s16552_s27 + $0x2380] sm:$0xff]  ;;  %10671 = vmatprep.subr.bf16.mxu0 %v15017_v34  ;;  %v15144_v28 = vcombine.low %v1809_v27, %v1813_v30 }
 0x1d9   : > { %v1677_v38 = vld [vmem:[%s16552_s27 + $0x23a0] sm:$0xff]  ;;  %10672 = vmatpush2.bf16.msra.mxu0 %v15016_v41  ;;  %v2239_v41 = vcombine.high %v16938_v18, %v16938_v18 }
 0x1da   : > { %v1801_v39 = vld [vmem:[%s16552_s27 + $0x2780] sm:$0xff]  ;;  %v15009_v45 = vcombine.high %v1673_v37, %v1677_v38  ;;  %10712 = vmatprep.subr.bf16.mxu1 %v15145_v35  ;;  %v15008_v53 = vcombine.low %v1673_v37, %v1677_v38 }
 0x1db   : > { %v1805_v40 = vld [vmem:[%s16552_s27 + $0x27a0] sm:$0xff]  ;;  %10713 = vmatpush2.bf16.msra.mxu1 %v15144_v28 }
 0x1dc   : > { %v15137_v47 = vcombine.high %v1801_v39, %v1805_v40  ;;  %v1665_v48 = vld [vmem:[%s16552_s27 + $0x2340] sm:$0xff]  ;;  %10673 = vmatprep.subr.bf16.mxu0 %v15009_v45  ;;  %v15136_v56 = vcombine.low %v1801_v39, %v1805_v40 }
 0x1dd   : > { %v1669_v49 = vld [vmem:[%s16552_s27 + $0x2360] sm:$0xff]  ;;  %10674 = vmatpush2.bf16.msra.mxu0 %v15008_v53 }
 0x1de   : > { %v1793_v50 = vld [vmem:[%s16552_s27 + $0x2740] sm:$0xff]  ;;  %v15001_v57 = vcombine.high %v1665_v48, %v1669_v49  ;;  %10714 = vmatprep.subr.bf16.mxu1 %v15137_v47  ;;  %v15000_v2 = vcombine.low %v1665_v48, %v1669_v49 }
 0x1df   : > { %v1797_v51 = vld [vmem:[%s16552_s27 + $0x2760] sm:$0xff]  ;;  %10715 = vmatpush2.bf16.msra.mxu1 %v15136_v56  ;;  %v17040_v56 = vrot.slane %v2239_v41, %v16611_v22 }
 0x1e0   : > { %v15129_v59 = vcombine.high %v1793_v50, %v1797_v51  ;;  %v1657_v60 = vld [vmem:[%s16552_s27 + $0x2300] sm:$0xff]  ;;  %10675 = vmatprep.subr.bf16.mxu0 %v15001_v57  ;;  %v15128_v5 = vcombine.low %v1793_v50, %v1797_v51 }
 0x1e1   : > { %v1661_v61 = vld [vmem:[%s16552_s27 + $0x2320] sm:$0xff]  ;;  %10676 = vmatpush2.bf16.msra.mxu0 %v15000_v2 }
 0x1e2   : > { %v1785_v62 = vld [vmem:[%s16552_s27 + $0x2700] sm:$0xff]  ;;  %v14993_v6 = vcombine.high %v1657_v60, %v1661_v61  ;;  %10716 = vmatprep.subr.bf16.mxu1 %v15129_v59  ;;  %v14992_v17 = vcombine.low %v1657_v60, %v1661_v61 }
 0x1e3   : > { %v1789_v0 = vld [vmem:[%s16552_s27 + $0x2720] sm:$0xff]  ;;  %10717 = vmatpush2.bf16.msra.mxu1 %v15128_v5  ;;  %v2255_v5 = vcombine.high %v17040_v56, %v17040_v56 }
 0x1e4   : > { %v15121_v9 = vcombine.high %v1785_v62, %v1789_v0  ;;  %v1649_v10 = vld [vmem:[%s16552_s27 + $0x22c0] sm:$0xff]  ;;  %10677 = vmatprep.subr.bf16.mxu0 %v14993_v6  ;;  %v15120_v19 = vcombine.low %v1785_v62, %v1789_v0 }
 0x1e5   : > { %v1653_v11 = vld [vmem:[%s16552_s27 + $0x22e0] sm:$0xff]  ;;  %10678 = vmatpush2.bf16.msra.mxu0 %v14992_v17 }
 0x1e6   : > { %v1777_v14 = vld [vmem:[%s16552_s27 + $0x26c0] sm:$0xff]  ;;  %v14985_v21 = vcombine.high %v1649_v10, %v1653_v11  ;;  %10718 = vmatprep.subr.bf16.mxu1 %v15121_v9  ;;  %v14984_v31 = vcombine.low %v1649_v10, %v1653_v11  ;;  %v17050_v9 = vrot.slane %v16946_v29, %v16611_v22 }
 0x1e7   : > { %v1781_v15 = vld [vmem:[%s16552_s27 + $0x26e0] sm:$0xff]  ;;  %10719 = vmatpush2.bf16.msra.mxu1 %v15120_v19 }
 0x1e8   : > { %v15113_v23 = vcombine.high %v1777_v14, %v1781_v15  ;;  %v1641_v24 = vld [vmem:[%s16552_s27 + $0x2280] sm:$0xff]  ;;  %10679 = vmatprep.subr.bf16.mxu0 %v14985_v21  ;;  %v15112_v33 = vcombine.low %v1777_v14, %v1781_v15  ;;  %v17061_v29 = vcombine.high %v17050_v9, %v17050_v9 }
 0x1e9   : > { %v1645_v26 = vld [vmem:[%s16552_s27 + $0x22a0] sm:$0xff]  ;;  %10680 = vmatpush2.bf16.msra.mxu0 %v14984_v31 }
 0x1ea   : > { %v1769_v27 = vld [vmem:[%s16552_s27 + $0x2680] sm:$0xff]  ;;  %v14977_v34 = vcombine.high %v1641_v24, %v1645_v26  ;;  %10720 = vmatprep.subr.bf16.mxu1 %v15113_v23  ;;  %v14976_v28 = vcombine.low %v1641_v24, %v1645_v26  ;;  %v17057_v23 = vrot.slane %v2255_v5, %v16611_v22 }
 0x1eb   : > { %v1773_v30 = vld [vmem:[%s16552_s27 + $0x26a0] sm:$0xff]  ;;  %10721 = vmatpush2.bf16.msra.mxu1 %v15112_v33 }
 0x1ec   : > { %v15105_v35 = vcombine.high %v1769_v27, %v1773_v30  ;;  %v1633_v37 = vld [vmem:[%s16552_s27 + $0x2240] sm:$0xff]  ;;  %10681 = vmatprep.subr.bf16.mxu0 %v14977_v34  ;;  %v15104_v45 = vcombine.low %v1769_v27, %v1773_v30 }
 0x1ed   : > { %v1637_v38 = vld [vmem:[%s16552_s27 + $0x2260] sm:$0xff]  ;;  %10682 = vmatpush2.bf16.msra.mxu0 %v14976_v28 }
 0x1ee   : > { %v1761_v39 = vld [vmem:[%s16552_s27 + $0x2640] sm:$0xff]  ;;  %v14969_v47 = vcombine.high %v1633_v37, %v1637_v38  ;;  %10722 = vmatprep.subr.bf16.mxu1 %v15105_v35  ;;  %v14968_v18 = vcombine.low %v1633_v37, %v1637_v38  ;;  %v17070_v38 = vcombine.high %v17057_v23, %v17057_v23 }
 0x1ef   : > { %v1765_v40 = vld [vmem:[%s16552_s27 + $0x2660] sm:$0xff]  ;;  %10723 = vmatpush2.bf16.msra.mxu1 %v15104_v45 }
 0x1f0   : > { %v15097_v48 = vcombine.high %v1761_v39, %v1765_v40  ;;  %v1625_v49 = vld [vmem:[%s16552_s27 + $0x2200] sm:$0xff]  ;;  %10683 = vmatprep.subr.bf16.mxu0 %v14969_v47  ;;  %v15096_v57 = vcombine.low %v1761_v39, %v1765_v40 }
 0x1f1   : > { %v1629_v50 = vld [vmem:[%s16552_s27 + $0x2220] sm:$0xff]  ;;  %10684 = vmatpush2.bf16.msra.mxu0 %v14968_v18 }
 0x1f2   : > { %v1753_v51 = vld [vmem:[%s16552_s27 + $0x2600] sm:$0xff]  ;;  %v14961_v59 = vcombine.high %v1625_v49, %v1629_v50  ;;  %10724 = vmatprep.subr.bf16.mxu1 %v15097_v48  ;;  %v14960_v6 = vcombine.low %v1625_v49, %v1629_v50 }
 0x1f3   : > { %v1757_v53 = vld [vmem:[%s16552_s27 + $0x2620] sm:$0xff]  ;;  %10725 = vmatpush2.bf16.msra.mxu1 %v15096_v57 }
 0x1f4   : > { %v15089_v60 = vcombine.high %v1753_v51, %v1757_v53  ;;  %v1873_v61 = vld [vmem:[%s16552_s27 + $0x29c0] sm:$0xff]  ;;  %10685 = vmatprep.subr.bf16.mxu0 %v14961_v59  ;;  %v15088_v10 = vcombine.low %v1753_v51, %v1757_v53 }
 0x1f5   : > { %v1877_v62 = vld [vmem:[%s16552_s27 + $0x29e0] sm:$0xff]  ;;  %10686 = vmatpush2.bf16.msra.mxu0 %v14960_v6 }
 0x1f6   : > { %v2001_v0 = vld [vmem:[%s16552_s27 + $0x2dc0] sm:$0xff]  ;;  %v15209_v11 = vcombine.high %v1873_v61, %v1877_v62  ;;  %10726 = vmatprep.subr.bf16.mxu1 %v15089_v60  ;;  %v15208_v24 = vcombine.low %v1873_v61, %v1877_v62 }
 0x1f7   : > { %v2005_v2 = vld [vmem:[%s16552_s27 + $0x2de0] sm:$0xff]  ;;  %10727 = vmatpush2.bf16.msra.mxu1 %v15088_v10  ;;  %v10443_v34 = vpop.f32.mrf.mxu0 }
 0x1f8   : > { %v15337_v14 = vcombine.high %v2001_v0, %v2005_v2  ;;  %v1865_v15 = vld [vmem:[%s16552_s27 + $0x2980] sm:$0xff]  ;;  %10737 = vmatprep.subr.bf16.mxu0 %v15209_v11  ;;  %v15336_v26 = vcombine.low %v2001_v0, %v2005_v2  ;;  %10688 = vmatmul.mubr.bf16.vlgmr.msra.gmra.mxu0 %v17050_v9  ;;  %v10444_v39 = vadd.f32 %v10443_v34, %v16979_v7 }
 0x1f9   : > { %v1869_v17 = vld [vmem:[%s16552_s27 + $0x29a0] sm:$0xff]  ;;  %v10484_v40 = vpop.f32.mrf.mxu1  ;;  %10738 = vmatpush1.bf16.msra.mxu0 %v15208_v24  ;;  %v10445_v28 = vpop.f32.mrf.mxu0  ;;  %10769 = vmatprep.mubr.bf16.mxu0 %v17057_v23 }
 0x1fa   : > { %v1993_v19 = vld [vmem:[%s16552_s27 + $0x2d80] sm:$0xff]  ;;  %v15201_v27 = vcombine.high %v1865_v15, %v1869_v17  ;;  %10778 = vmatprep.subr.bf16.mxu1 %v15337_v14  ;;  %10729 = vmatmul.mubr.bf16.vlgmr.msra.gmra.mxu1 %v17061_v29  ;;  %v15200_v41 = vcombine.low %v1865_v15, %v1869_v17  ;;  %v17074_v48 = vadd.f32 %v10484_v40, %v10444_v39 }
 0x1fb   : > { %v1997_v21 = vld [vmem:[%s16552_s27 + $0x2da0] sm:$0xff]  ;;  %10779 = vmatpush1.bf16.msra.mxu1 %v15336_v26  ;;  %v10446_v49 = vadd.f32 %v10445_v28, %v16984_v20  ;;  %v10486_v50 = vpop.f32.mrf.mxu1  ;;  %v10447_v18 = vpop.f32.mrf.mxu0  ;;  %10810 = vmatprep.mubr.bf16.mxu1 %v17070_v38 }
 0x1fc   : > { %v15329_v30 = vcombine.high %v1993_v19, %v1997_v21  ;;  %v1857_v31 = vld [vmem:[%s16552_s27 + $0x2940] sm:$0xff]  ;;  %10739 = vmatprep.subr.bf16.mxu0 %v15201_v27  ;;  %v15328_v45 = vcombine.low %v1993_v19, %v1997_v21 }
 0x1fd   : > { %v1861_v33 = vld [vmem:[%s16552_s27 + $0x2960] sm:$0xff]  ;;  %v17083_v60 = vadd.f32 %v10486_v50, %v10446_v49  ;;  %v10488_v61 = vpop.f32.mrf.mxu1  ;;  %10740 = vmatpush1.bf16.msra.mxu0 %v15200_v41  ;;  %v10448_v62 = vpop.f32.mrf.mxu0 }
 0x1fe   : > { %v1985_v35 = vld [vmem:[%s16552_s27 + $0x2d40] sm:$0xff]  ;;  %v15193_v47 = vcombine.high %v1857_v31, %v1861_v33  ;;  %10780 = vmatprep.subr.bf16.mxu1 %v15329_v30  ;;  %v15192_v20 = vcombine.low %v1857_v31, %v1861_v33 }
 0x1ff   : > { %v1989_v37 = vld [vmem:[%s16552_s27 + $0x2d60] sm:$0xff]  ;;  %10781 = vmatpush1.bf16.msra.mxu1 %v15328_v45  ;;  %v10489_v5 = vpop.f32.mrf.mxu1 }
 0x200   : > { %v15321_v7 = vcombine.high %v1985_v35, %v1989_v37  ;;  %v1849_v51 = vld [vmem:[%s16552_s27 + $0x2900] sm:$0xff]  ;;  %10741 = vmatprep.subr.bf16.mxu0 %v15193_v47  ;;  %v15320_v0 = vcombine.low %v1985_v35, %v1989_v37 }
 0x201   : > { %v1853_v53 = vld [vmem:[%s16552_s27 + $0x2920] sm:$0xff]  ;;  %10742 = vmatpush1.bf16.msra.mxu0 %v15192_v20 }
 0x202   : > { %v1977_v57 = vld [vmem:[%s16552_s27 + $0x2d00] sm:$0xff]  ;;  %v15185_v2 = vcombine.high %v1849_v51, %v1853_v53  ;;  %10782 = vmatprep.subr.bf16.mxu1 %v15321_v7  ;;  %v15184_v17 = vcombine.low %v1849_v51, %v1853_v53 }
 0x203   : > { %v1981_v59 = vld [vmem:[%s16552_s27 + $0x2d20] sm:$0xff]  ;;  %10783 = vmatpush1.bf16.msra.mxu1 %v15320_v0 }
 0x204   : > { %v15313_v6 = vcombine.high %v1977_v57, %v1981_v59  ;;  %v1841_v10 = vld [vmem:[%s16552_s27 + $0x28c0] sm:$0xff]  ;;  %10743 = vmatprep.subr.bf16.mxu0 %v15185_v2  ;;  %v15312_v19 = vcombine.low %v1977_v57, %v1981_v59 }
 0x205   : > { %v1845_v11 = vld [vmem:[%s16552_s27 + $0x28e0] sm:$0xff]  ;;  %10744 = vmatpush1.bf16.msra.mxu0 %v15184_v17 }
 0x206   : > { %v1969_v14 = vld [vmem:[%s16552_s27 + $0x2cc0] sm:$0xff]  ;;  %v15177_v21 = vcombine.high %v1841_v10, %v1845_v11  ;;  %10784 = vmatprep.subr.bf16.mxu1 %v15313_v6  ;;  %v15176_v33 = vcombine.low %v1841_v10, %v1845_v11 }
 0x207   : > { %v1973_v15 = vld [vmem:[%s16552_s27 + $0x2ce0] sm:$0xff]  ;;  %10785 = vmatpush1.bf16.msra.mxu1 %v15312_v19 }
 0x208   : > { %v15305_v24 = vcombine.high %v1969_v14, %v1973_v15  ;;  %v1833_v26 = vld [vmem:[%s16552_s27 + $0x2880] sm:$0xff]  ;;  %10745 = vmatprep.subr.bf16.mxu0 %v15177_v21  ;;  %v15304_v34 = vcombine.low %v1969_v14, %v1973_v15 }
 0x209   : > { %v1837_v27 = vld [vmem:[%s16552_s27 + $0x28a0] sm:$0xff]  ;;  %10746 = vmatpush1.bf16.msra.mxu0 %v15176_v33 }
 0x20a   : > { %v1961_v30 = vld [vmem:[%s16552_s27 + $0x2c80] sm:$0xff]  ;;  %v15169_v35 = vcombine.high %v1833_v26, %v1837_v27  ;;  %10786 = vmatprep.subr.bf16.mxu1 %v15305_v24  ;;  %v15168_v45 = vcombine.low %v1833_v26, %v1837_v27 }
 0x20b   : > { %v1965_v31 = vld [vmem:[%s16552_s27 + $0x2ca0] sm:$0xff]  ;;  %10787 = vmatpush1.bf16.msra.mxu1 %v15304_v34 }
 0x20c   : > { %v15297_v37 = vcombine.high %v1961_v30, %v1965_v31  ;;  %v1825_v39 = vld [vmem:[%s16552_s27 + $0x2840] sm:$0xff]  ;;  %10747 = vmatprep.subr.bf16.mxu0 %v15169_v35  ;;  %v15296_v47 = vcombine.low %v1961_v30, %v1965_v31 }
 0x20d   : > { %v1829_v40 = vld [vmem:[%s16552_s27 + $0x2860] sm:$0xff]  ;;  %10748 = vmatpush1.bf16.msra.mxu0 %v15168_v45 }
 0x20e   : > { %v1953_v41 = vld [vmem:[%s16552_s27 + $0x2c40] sm:$0xff]  ;;  %v15161_v49 = vcombine.high %v1825_v39, %v1829_v40  ;;  %10788 = vmatprep.subr.bf16.mxu1 %v15297_v37  ;;  %v15160_v57 = vcombine.low %v1825_v39, %v1829_v40 }
 0x20f   : > { %v1957_v28 = vld [vmem:[%s16552_s27 + $0x2c60] sm:$0xff]  ;;  %10789 = vmatpush1.bf16.msra.mxu1 %v15296_v47 }
 0x210   : > { %v15289_v50 = vcombine.high %v1953_v41, %v1957_v28  ;;  %v1817_v7 = vld [vmem:[%s16552_s27 + $0x2800] sm:$0xff]  ;;  %10749 = vmatprep.subr.bf16.mxu0 %v15161_v49  ;;  %v15288_v59 = vcombine.low %v1953_v41, %v1957_v28 }
 0x211   : > { %v1821_v51 = vld [vmem:[%s16552_s27 + $0x2820] sm:$0xff]  ;;  %10750 = vmatpush1.bf16.msra.mxu0 %v15160_v57 }
 0x212   : > { %v1945_v53 = vld [vmem:[%s16552_s27 + $0x2c00] sm:$0xff]  ;;  %v15153_v61 = vcombine.high %v1817_v7, %v1821_v51  ;;  %10790 = vmatprep.subr.bf16.mxu1 %v15289_v50  ;;  %v15152_v6 = vcombine.low %v1817_v7, %v1821_v51 }
 0x213   : > { %v1949_v18 = vld [vmem:[%s16552_s27 + $0x2c20] sm:$0xff]  ;;  %10791 = vmatpush1.bf16.msra.mxu1 %v15288_v59 }
 0x214   : > { %v15281_v20 = vcombine.high %v1945_v53, %v1949_v18  ;;  %v1937_v62 = vld [vmem:[%s16552_s27 + $0x2bc0] sm:$0xff]  ;;  %10751 = vmatprep.subr.bf16.mxu0 %v15153_v61  ;;  %v15280_v10 = vcombine.low %v1945_v53, %v1949_v18 }
 0x215   : > { %v1941_v0 = vld [vmem:[%s16552_s27 + $0x2be0] sm:$0xff]  ;;  %10752 = vmatpush1.bf16.msra.mxu0 %v15152_v6 }
 0x216   : > { %v2065_v2 = vld [vmem:[%s16552_s27 + $0x2fc0] sm:$0xff]  ;;  %v15273_v11 = vcombine.high %v1937_v62, %v1941_v0  ;;  %10792 = vmatprep.subr.bf16.mxu1 %v15281_v20  ;;  %v15272_v24 = vcombine.low %v1937_v62, %v1941_v0 }
 0x217   : > { %v2069_v5 = vld [vmem:[%s16552_s27 + $0x2fe0] sm:$0xff]  ;;  %10793 = vmatpush1.bf16.msra.mxu1 %v15280_v10 }
 0x218   : > { %v15401_v14 = vcombine.high %v2065_v2, %v2069_v5  ;;  %v1929_v15 = vld [vmem:[%s16552_s27 + $0x2b80] sm:$0xff]  ;;  %10753 = vmatprep.subr.bf16.mxu0 %v15273_v11  ;;  %v15400_v26 = vcombine.low %v2065_v2, %v2069_v5 }
 0x219   : > { %v1933_v17 = vld [vmem:[%s16552_s27 + $0x2ba0] sm:$0xff]  ;;  %10754 = vmatpush2.bf16.msra.mxu0 %v15272_v24 }
 0x21a   : > { %v2057_v19 = vld [vmem:[%s16552_s27 + $0x2f80] sm:$0xff]  ;;  %v15265_v27 = vcombine.high %v1929_v15, %v1933_v17  ;;  %10794 = vmatprep.subr.bf16.mxu1 %v15401_v14  ;;  %v15264_v37 = vcombine.low %v1929_v15, %v1933_v17 }
 0x21b   : > { %v2061_v21 = vld [vmem:[%s16552_s27 + $0x2fa0] sm:$0xff]  ;;  %10795 = vmatpush2.bf16.msra.mxu1 %v15400_v26 }
 0x21c   : > { %v15393_v30 = vcombine.high %v2057_v19, %v2061_v21  ;;  %v1921_v31 = vld [vmem:[%s16552_s27 + $0x2b40] sm:$0xff]  ;;  %10755 = vmatprep.subr.bf16.mxu0 %v15265_v27  ;;  %v15392_v39 = vcombine.low %v2057_v19, %v2061_v21 }
 0x21d   : > { %v1925_v33 = vld [vmem:[%s16552_s27 + $0x2b60] sm:$0xff]  ;;  %10756 = vmatpush2.bf16.msra.mxu0 %v15264_v37 }
 0x21e   : > { %v2049_v34 = vld [vmem:[%s16552_s27 + $0x2f40] sm:$0xff]  ;;  %v15257_v40 = vcombine.high %v1921_v31, %v1925_v33  ;;  %10796 = vmatprep.subr.bf16.mxu1 %v15393_v30  ;;  %v15256_v50 = vcombine.low %v1921_v31, %v1925_v33 }
 0x21f   : > { %v2053_v35 = vld [vmem:[%s16552_s27 + $0x2f60] sm:$0xff]  ;;  %10797 = vmatpush2.bf16.msra.mxu1 %v15392_v39 }
 0x220   : > { %v15385_v41 = vcombine.high %v2049_v34, %v2053_v35  ;;  %v1913_v28 = vld [vmem:[%s16552_s27 + $0x2b00] sm:$0xff]  ;;  %10757 = vmatprep.subr.bf16.mxu0 %v15257_v40  ;;  %v15384_v7 = vcombine.low %v2049_v34, %v2053_v35 }
 0x221   : > { %v1917_v45 = vld [vmem:[%s16552_s27 + $0x2b20] sm:$0xff]  ;;  %10758 = vmatpush2.bf16.msra.mxu0 %v15256_v50 }
 0x222   : > { %v2041_v47 = vld [vmem:[%s16552_s27 + $0x2f00] sm:$0xff]  ;;  %v15249_v51 = vcombine.high %v1913_v28, %v1917_v45  ;;  %10798 = vmatprep.subr.bf16.mxu1 %v15385_v41  ;;  %v15248_v20 = vcombine.low %v1913_v28, %v1917_v45 }
 0x223   : > { %v2045_v49 = vld [vmem:[%s16552_s27 + $0x2f20] sm:$0xff]  ;;  %10799 = vmatpush2.bf16.msra.mxu1 %v15384_v7  ;;  %v594_v7 = vld [vmem:[%s16552_s27 + $0x1c8] sm:$0xff] }
 0x224   : > { %v15377_v53 = vcombine.high %v2041_v47, %v2045_v49  ;;  %v1905_v18 = vld [vmem:[%s16552_s27 + $0x2ac0] sm:$0xff]  ;;  %10759 = vmatprep.subr.bf16.mxu0 %v15249_v51  ;;  %v15376_v62 = vcombine.low %v2041_v47, %v2045_v49  ;;  %v598_v51 = vld [vmem:[%s16552_s27 + $0x1e8] sm:$0xff] }
 0x225   : > { %v1909_v57 = vld [vmem:[%s16552_s27 + $0x2ae0] sm:$0xff]  ;;  %10760 = vmatpush2.bf16.msra.mxu0 %v15248_v20 }
 0x226   : > { %v2033_v59 = vld [vmem:[%s16552_s27 + $0x2ec0] sm:$0xff]  ;;  %v15241_v0 = vcombine.high %v1905_v18, %v1909_v57  ;;  %10800 = vmatprep.subr.bf16.mxu1 %v15377_v53  ;;  %v15240_v14 = vcombine.low %v1905_v18, %v1909_v57  ;;  %v17139_v18 = vrot.slane %v17040_v56, %v16611_v22 }
 0x227   : > { %v2037_v61 = vld [vmem:[%s16552_s27 + $0x2ee0] sm:$0xff]  ;;  %10801 = vmatpush2.bf16.msra.mxu1 %v15376_v62 }
 0x228   : > { %v15369_v2 = vcombine.high %v2033_v59, %v2037_v61  ;;  %v1897_v5 = vld [vmem:[%s16552_s27 + $0x2a80] sm:$0xff]  ;;  %10761 = vmatprep.subr.bf16.mxu0 %v15241_v0  ;;  %v15368_v15 = vcombine.low %v2033_v59, %v2037_v61  ;;  %v13931_v61 = vcombine.high %v594_v7, %v598_v51  ;;  %v586_v0 = vld [vmem:[%s16552_s27 + $0x188] sm:$0xff] }
 0x229   : > { %v1901_v6 = vld [vmem:[%s16552_s27 + $0x2aa0] sm:$0xff]  ;;  %10762 = vmatpush2.bf16.msra.mxu0 %v15240_v14 }
 0x22a   : > { %v2025_v10 = vld [vmem:[%s16552_s27 + $0x2e80] sm:$0xff]  ;;  %v15233_v17 = vcombine.high %v1897_v5, %v1901_v6  ;;  %10802 = vmatprep.subr.bf16.mxu1 %v15369_v2  ;;  %v15232_v30 = vcombine.low %v1897_v5, %v1901_v6  ;;  %v590_v2 = vld [vmem:[%s16552_s27 + $0x1a8] sm:$0xff]  ;;  %v17147_v5 = vcombine.high %v17139_v18, %v17139_v18  ;;  %v13930_v6 = vcombine.low %v594_v7, %v598_v51 }
 0x22b   : > { %v2029_v11 = vld [vmem:[%s16552_s27 + $0x2ea0] sm:$0xff]  ;;  %10803 = vmatpush2.bf16.msra.mxu1 %v15368_v15 }
 0x22c   : > { %v15361_v19 = vcombine.high %v2025_v10, %v2029_v11  ;;  %v1889_v21 = vld [vmem:[%s16552_s27 + $0x2a40] sm:$0xff]  ;;  %10763 = vmatprep.subr.bf16.mxu0 %v15233_v17  ;;  %v15360_v31 = vcombine.low %v2025_v10, %v2029_v11  ;;  %v13923_v11 = vcombine.high %v586_v0, %v590_v2 }
 0x22d   : > { %v1893_v24 = vld [vmem:[%s16552_s27 + $0x2a60] sm:$0xff]  ;;  %10764 = vmatpush2.bf16.msra.mxu0 %v15232_v30 }
 0x22e   : > { %v2017_v26 = vld [vmem:[%s16552_s27 + $0x2e40] sm:$0xff]  ;;  %v15225_v33 = vcombine.high %v1889_v21, %v1893_v24  ;;  %10804 = vmatprep.subr.bf16.mxu1 %v15361_v19  ;;  %v15224_v41 = vcombine.low %v1889_v21, %v1893_v24  ;;  %v578_v19 = vld [vmem:[%s16552_s27 + $0x148] sm:$0xff] }
 0x22f   : > { %v2021_v27 = vld [vmem:[%s16552_s27 + $0x2e60] sm:$0xff]  ;;  %10805 = vmatpush2.bf16.msra.mxu1 %v15360_v31  ;;  %v582_v21 = vld [vmem:[%s16552_s27 + $0x168] sm:$0xff]  ;;  %v13922_v31 = vcombine.low %v586_v0, %v590_v2 }
 0x230   : > { %v15353_v34 = vcombine.high %v2017_v26, %v2021_v27  ;;  %v1881_v35 = vld [vmem:[%s16552_s27 + $0x2a00] sm:$0xff]  ;;  %10765 = vmatprep.subr.bf16.mxu0 %v15225_v33  ;;  %v15352_v28 = vcombine.low %v2017_v26, %v2021_v27  ;;  %v13914_v51 = vcombine.low %v578_v19, %v582_v21  ;;  %v566_v0 = vld [vmem:[%s16552_s27 + $0xe8] sm:$0xff] }
 0x231   : > { %v1885_v37 = vld [vmem:[%s16552_s27 + $0x2a20] sm:$0xff]  ;;  %10766 = vmatpush2.bf16.msra.mxu0 %v15224_v41  ;;  %v16325_v41 = vmov 0  }
 0x232   : > { %v2009_v39 = vld [vmem:[%s16552_s27 + $0x2e00] sm:$0xff]  ;;  %v15217_v45 = vcombine.high %v1881_v35, %v1885_v37  ;;  %10806 = vmatprep.subr.bf16.mxu1 %v15353_v34  ;;  %v15216_v53 = vcombine.low %v1881_v35, %v1885_v37 }
 0x233   : > { %v2013_v40 = vld [vmem:[%s16552_s27 + $0x2e20] sm:$0xff]  ;;  %10807 = vmatpush2.bf16.msra.mxu1 %v15352_v28 }
 0x234   : > { %v15345_v47 = vcombine.high %v2009_v39, %v2013_v40  ;;  %v2129_v49 = vld [vmem:[%s16552_s27 + $0x31c0] sm:$0xff]  ;;  %10767 = vmatprep.subr.bf16.mxu0 %v15217_v45  ;;  %v15344_v57 = vcombine.low %v2009_v39, %v2013_v40  ;;  %v570_v45 = vld [vmem:[%s16552_s27 + $0x108] sm:$0xff] }
 0x235   : > { %v2133_v50 = vld [vmem:[%s16552_s27 + $0x31e0] sm:$0xff]  ;;  %10768 = vmatpush2.bf16.msra.mxu0 %v15216_v53 }
 0x236   : > { %v15465_v59 = vcombine.high %v2129_v49, %v2133_v50  ;;  %10808 = vmatprep.subr.bf16.mxu1 %v15345_v47  ;;  %v2121_v20 = vld [vmem:[%s16552_s27 + $0x3180] sm:$0xff]  ;;  %v15464_v56 = vcombine.low %v2129_v49, %v2133_v50  ;;  %v574_v47 = vld [vmem:[%s16552_s27 + $0x128] sm:$0xff] }
 0x237   : > { %v2125_v62 = vld [vmem:[%s16552_s27 + $0x31a0] sm:$0xff]  ;;  %10809 = vmatpush2.bf16.msra.mxu1 %v15344_v57  ;;  %v10525_v17 = vpop.f32.mrf.mxu0 }
 0x238   : > { %10819 = vmatprep.subr.bf16.mxu0 %v15465_v59  ;;  %v15457_v10 = vcombine.high %v2121_v20, %v2125_v62  ;;  %10860 = vmatprep.subr.bf16.mxu1 %v13931_v61  ;;  %v2113_v14 = vld [vmem:[%s16552_s27 + $0x3140] sm:$0xff]  ;;  %v10526_v24 = vadd.f32 %v10525_v17, %v17074_v48  ;;  %v15456_v27 = vcombine.low %v2121_v20, %v2125_v62  ;;  %v562_v62 = vld [vmem:[%s16552_s27 + $0xc8] sm:$0xff] }
 0x239   : > { %v2117_v15 = vld [vmem:[%s16552_s27 + $0x3160] sm:$0xff]  ;;  %10770 = vmatmul.mubr.bf16.vlgmr.msra.gmra.mxu0 %v17139_v18  ;;  %v10566_v26 = vpop.f32.mrf.mxu1  ;;  %v10527_v30 = vpop.f32.mrf.mxu0  ;;  %v13915_v48 = vcombine.high %v578_v19, %v582_v21  ;;  %v13907_v59 = vcombine.high %v570_v45, %v574_v47  ;;  %v558_v17 = vld [vmem:[%s16552_s27 + $0xa8] sm:$0xff]  ;;  %v13898_v21 = vcombine.low %v562_v62, %v566_v0 }
 0x23a   : > { %10811 = vmatmul.mubr.bf16.vlgmr.msra.gmra.mxu1 %v17147_v5  ;;  %10820 = vmatpush1.bf16.msra.mxu0 %v15464_v56  ;;  %v15449_v33 = vcombine.high %v2113_v14, %v2117_v15  ;;  %v17156_v34 = vadd.f32 %v10566_v26, %v10526_v24  ;;  %v10528_v35 = vadd.f32 %v10527_v30, %v17083_v60  ;;  %v2105_v39 = vld [vmem:[%s16552_s27 + $0x3100] sm:$0xff] }
 0x23b   : > { %10861 = vmatpush1.bf16.msra.mxu1 %v13930_v6  ;;  %10821 = vmatprep.subr.bf16.mxu0 %v15457_v10  ;;  %v10568_v37 = vpop.f32.mrf.mxu1  ;;  %v2109_v40 = vld [vmem:[%s16552_s27 + $0x3120] sm:$0xff]  ;;  %v10529_v28 = vpop.f32.mrf.mxu0  ;;  %v15448_v50 = vcombine.low %v2113_v14, %v2117_v15  ;;  %v13906_v56 = vcombine.low %v570_v45, %v574_v47  ;;  %v13899_v10 = vcombine.high %v562_v62, %v566_v0  ;;  %v554_v15 = vld [vmem:[%s16552_s27 + $0x88] sm:$0xff] }
 0x23c   : > { %10862 = vmatprep.subr.bf16.mxu1 %v13923_v11  ;;  %10851 = vmatprep.mubr.bf16.mxu0 %v16325_v41  ;;  %v17165_v49 = vadd.f32 %v10568_v37, %v10528_v35  ;;  %v15441_v53 = vcombine.high %v2105_v39, %v2109_v40  ;;  %v2097_v61 = vld [vmem:[%s16552_s27 + $0x30c0] sm:$0xff]  ;;  %v15440_v2 = vcombine.low %v2105_v39, %v2109_v40  ;;  %v538_v45 = vld [vmem:[%s16552_s27 + $0x8] sm:$0xff] }
 0x23d   : > { %10892 = vmatprep.mubr.bf16.mxu1 %v16631_v42  ;;  %v10570_v60 = vpop.f32.mrf.mxu1  ;;  %v10530_v7 = vpop.f32.mrf.mxu0  ;;  %v2101_v20 = vld [vmem:[%s16552_s27 + $0x30e0] sm:$0xff]  ;;  %v13891_v26 = vcombine.high %v554_v15, %v558_v17  ;;  %v13890_v37 = vcombine.low %v554_v15, %v558_v17  ;;  %v542_v47 = vld [vmem:[%s16552_s27 + $0x28] sm:$0xff] }
 0x23e   : > { %10822 = vmatpush1.bf16.msra.mxu0 %v15456_v27  ;;  %v15433_v6 = vcombine.high %v2097_v61, %v2101_v20  ;;  %v2089_v11 = vld [vmem:[%s16552_s27 + $0x3080] sm:$0xff]  ;;  %v15432_v19 = vcombine.low %v2097_v61, %v2101_v20  ;;  %v662_v61 = vld [vmem:[%s16552_s27 + $0x3e8] sm:$0xff]  ;;  %v13874_v0 = vcombine.low %v538_v45, %v542_v47 }
 0x23f   : > { %10863 = vmatpush1.bf16.msra.mxu1 %v13922_v31  ;;  %10823 = vmatprep.subr.bf16.mxu0 %v15449_v33  ;;  %v10571_v57 = vpop.f32.mrf.mxu1  ;;  %v2093_v14 = vld [vmem:[%s16552_s27 + $0x30a0] sm:$0xff]  ;;  %v546_v31 = vld [vmem:[%s16552_s27 + $0x48] sm:$0xff] }
 0x240   : > { %10864 = vmatprep.subr.bf16.mxu1 %v13915_v48  ;;  %v15425_v24 = vcombine.high %v2089_v11, %v2093_v14  ;;  %v2081_v27 = vld [vmem:[%s16552_s27 + $0x3040] sm:$0xff]  ;;  %v550_v33 = vld [vmem:[%s16552_s27 + $0x68] sm:$0xff]  ;;  %v15424_v35 = vcombine.low %v2089_v11, %v2093_v14 }
 0x241   : > { %v2085_v30 = vld [vmem:[%s16552_s27 + $0x3060] sm:$0xff]  ;;  %v13883_v39 = vcombine.high %v546_v31, %v550_v33  ;;  %v726_v57 = vld [vmem:[%s16552_s27 + $0x5e8] sm:$0xff] }
 0x242   : > { %10824 = vmatpush1.bf16.msra.mxu0 %v15448_v50  ;;  %v15417_v48 = vcombine.high %v2081_v27, %v2085_v30  ;;  %v2073_v40 = vld [vmem:[%s16552_s27 + $0x3000] sm:$0xff]  ;;  %v15416_v60 = vcombine.low %v2081_v27, %v2085_v30  ;;  %v13882_v50 = vcombine.low %v546_v31, %v550_v33  ;;  %v13871_v62 = vld.sshfl [vmem:[%s16578_s30 + $0x18] sm:$0x1 pattern:$0x75316420] }
 0x243   : > { %10865 = vmatpush1.bf16.msra.mxu1 %v13914_v51  ;;  %10825 = vmatprep.subr.bf16.mxu0 %v15441_v53  ;;  %v2077_v28 = vld [vmem:[%s16552_s27 + $0x3020] sm:$0xff]  ;;  %v13875_v51 = vcombine.high %v538_v45, %v542_v47  ;;  %v722_v53 = vld [vmem:[%s16552_s27 + $0x5c8] sm:$0xff]  ;;  %v17191_v11 = vrot.slane %v13871_v62, %v16611_v22 }
 0x244   : > { %10866 = vmatprep.subr.bf16.mxu1 %v13907_v59  ;;  %v15409_v7 = vcombine.high %v2073_v40, %v2077_v28  ;;  %v658_v59 = vld [vmem:[%s16552_s27 + $0x3c8] sm:$0xff]  ;;  %v15408_v20 = vcombine.low %v2073_v40, %v2077_v28  ;;  %v14058_v17 = vcombine.low %v722_v53, %v726_v57 }
 0x245   : > { %v650_v14 = vld [vmem:[%s16552_s27 + $0x388] sm:$0xff] }
 0x246   : > { %10826 = vmatpush1.bf16.msra.mxu0 %v15440_v2  ;;  %v14059_v2 = vcombine.high %v722_v53, %v726_v57  ;;  %v654_v15 = vld [vmem:[%s16552_s27 + $0x3a8] sm:$0xff] }
 0x247   : > { %10867 = vmatpush1.bf16.msra.mxu1 %v13906_v56  ;;  %10827 = vmatprep.subr.bf16.mxu0 %v15433_v6  ;;  %v13995_v56 = vcombine.high %v658_v59, %v662_v61  ;;  %v714_v6 = vld [vmem:[%s16552_s27 + $0x588] sm:$0xff]  ;;  %v13986_v33 = vcombine.low %v650_v14, %v654_v15 }
 0x248   : > { %10868 = vmatprep.subr.bf16.mxu1 %v13899_v10  ;;  %v718_v10 = vld [vmem:[%s16552_s27 + $0x5a8] sm:$0xff] }
 0x249   : > { %v710_v27 = vld [vmem:[%s16552_s27 + $0x568] sm:$0xff]  ;;  %v14050_v31 = vcombine.low %v714_v6, %v718_v10 }
 0x24a   : > { %10828 = vmatpush1.bf16.msra.mxu0 %v15432_v19  ;;  %v13994_v19 = vcombine.low %v658_v59, %v662_v61  ;;  %v642_v22 = vld [vmem:[%s16552_s27 + $0x348] sm:$0xff] }
 0x24b   : > { %10869 = vmatpush1.bf16.msra.mxu1 %v13898_v21  ;;  %10829 = vmatprep.subr.bf16.mxu0 %v15425_v24  ;;  %v14051_v21 = vcombine.high %v714_v6, %v718_v10  ;;  %v13987_v24 = vcombine.high %v650_v14, %v654_v15  ;;  %v646_v30 = vld [vmem:[%s16552_s27 + $0x368] sm:$0xff] }
 0x24c   : > { %10870 = vmatprep.subr.bf16.mxu1 %v13891_v26  ;;  %v706_v26 = vld [vmem:[%s16552_s27 + $0x548] sm:$0xff]  ;;  %v13978_v47 = vcombine.low %v642_v22, %v646_v30 }
 0x24d   : > { %v634_v40 = vld [vmem:[%s16552_s27 + $0x308] sm:$0xff]  ;;  %v14042_v45 = vcombine.low %v706_v26, %v710_v27 }
 0x24e   : > { %10830 = vmatpush1.bf16.msra.mxu0 %v15424_v35  ;;  %v14043_v35 = vcombine.high %v706_v26, %v710_v27  ;;  %v638_v28 = vld [vmem:[%s16552_s27 + $0x328] sm:$0xff] }
 0x24f   : > { %10871 = vmatpush1.bf16.msra.mxu1 %v13890_v37  ;;  %10831 = vmatprep.subr.bf16.mxu0 %v15417_v48  ;;  %v13979_v37 = vcombine.high %v642_v22, %v646_v30  ;;  %v698_v48 = vld [vmem:[%s16552_s27 + $0x508] sm:$0xff]  ;;  %v13970_v61 = vcombine.low %v634_v40, %v638_v28 }
 0x250   : > { %10872 = vmatprep.subr.bf16.mxu1 %v13883_v39  ;;  %v702_v39 = vld [vmem:[%s16552_s27 + $0x528] sm:$0xff] }
 0x251   : > { %v626_v53 = vld [vmem:[%s16552_s27 + $0x2c8] sm:$0xff]  ;;  %v14034_v59 = vcombine.low %v698_v48, %v702_v39 }
 0x252   : > { %10832 = vmatpush1.bf16.msra.mxu0 %v15416_v60  ;;  %v14035_v60 = vcombine.high %v698_v48, %v702_v39  ;;  %v630_v57 = vld [vmem:[%s16552_s27 + $0x2e8] sm:$0xff] }
 0x253   : > { %10873 = vmatpush1.bf16.msra.mxu1 %v13882_v50  ;;  %10833 = vmatprep.subr.bf16.mxu0 %v15409_v7  ;;  %v13971_v50 = vcombine.high %v634_v40, %v638_v28  ;;  %v690_v7 = vld [vmem:[%s16552_s27 + $0x4c8] sm:$0xff]  ;;  %v13963_v62 = vcombine.high %v626_v53, %v630_v57  ;;  %v13962_v14 = vcombine.low %v626_v53, %v630_v57 }
 0x254   : > { %10874 = vmatprep.subr.bf16.mxu1 %v13875_v51  ;;  %v694_v51 = vld [vmem:[%s16552_s27 + $0x4e8] sm:$0xff] }
 0x255   : > { %v622_v6 = vld [vmem:[%s16552_s27 + $0x2a8] sm:$0xff]  ;;  %v14026_v10 = vcombine.low %v690_v7, %v694_v51 }
 0x256   : > { %10834 = vmatpush1.bf16.msra.mxu0 %v15408_v20  ;;  %v14027_v20 = vcombine.high %v690_v7, %v694_v51  ;;  %v614_v26 = vld [vmem:[%s16552_s27 + $0x268] sm:$0xff] }
 0x257   : > { %10875 = vmatpush1.bf16.msra.mxu1 %v13874_v0  ;;  %10901 = vmatprep.subr.bf16.mxu0 %v14059_v2  ;;  %v682_v0 = vld [vmem:[%s16552_s27 + $0x488] sm:$0xff] }
 0x258   : > { %10876 = vmatprep.subr.bf16.mxu1 %v13995_v56  ;;  %v686_v2 = vld [vmem:[%s16552_s27 + $0x4a8] sm:$0xff] }
 0x259   : > { %10852 = vmatmul.mubr.bf16.vlgmr.msra.gmra.mxu0 %v17191_v11  ;;  %v618_v56 = vld [vmem:[%s16552_s27 + $0x288] sm:$0xff]  ;;  %v14019_v15 = vcombine.high %v682_v0, %v686_v2  ;;  %v14018_v27 = vcombine.low %v682_v0, %v686_v2 }
 0x25a   : > { %10902 = vmatpush1.bf16.msra.mxu0 %v14058_v17  ;;  %10933 = vmatprep.mubr.bf16.mxu0 %v16638_v46  ;;  %v13955_v17 = vcombine.high %v618_v56, %v622_v6  ;;  %v13954_v22 = vcombine.low %v618_v56, %v622_v6  ;;  %v606_v48 = vld [vmem:[%s16552_s27 + $0x228] sm:$0xff] }
 0x25b   : > { %10877 = vmatpush2.bf16.msra.mxu1 %v13994_v19  ;;  %10903 = vmatprep.subr.bf16.mxu0 %v14051_v21  ;;  %v674_v19 = vld [vmem:[%s16552_s27 + $0x448] sm:$0xff] }
 0x25c   : > { %10878 = vmatprep.subr.bf16.mxu1 %v13987_v24  ;;  %v678_v21 = vld [vmem:[%s16552_s27 + $0x468] sm:$0xff] }
 0x25d   : > { %v610_v24 = vld [vmem:[%s16552_s27 + $0x248] sm:$0xff]  ;;  %v14011_v30 = vcombine.high %v674_v19, %v678_v21  ;;  %v14010_v39 = vcombine.low %v674_v19, %v678_v21 }
 0x25e   : > { %10904 = vmatpush1.bf16.msra.mxu0 %v14050_v31  ;;  %v13947_v31 = vcombine.high %v610_v24, %v614_v26  ;;  %v13946_v40 = vcombine.low %v610_v24, %v614_v26  ;;  %v854_v7 = vld [vmem:[%s16552_s27 + $0x9e8] sm:$0xff] }
 0x25f   : > { %10879 = vmatpush2.bf16.msra.mxu1 %v13986_v33  ;;  %10905 = vmatprep.subr.bf16.mxu0 %v14043_v35  ;;  %v666_v33 = vld [vmem:[%s16552_s27 + $0x408] sm:$0xff] }
 0x260   : > { %10880 = vmatprep.subr.bf16.mxu1 %v13979_v37  ;;  %v670_v35 = vld [vmem:[%s16552_s27 + $0x428] sm:$0xff] }
 0x261   : > { %v602_v37 = vld [vmem:[%s16552_s27 + $0x208] sm:$0xff]  ;;  %v14003_v28 = vcombine.high %v666_v33, %v670_v35  ;;  %v14002_v51 = vcombine.low %v666_v33, %v670_v35 }
 0x262   : > { %10906 = vmatpush1.bf16.msra.mxu0 %v14042_v45  ;;  %v13939_v45 = vcombine.high %v602_v37, %v606_v48  ;;  %v13938_v53 = vcombine.low %v602_v37, %v606_v48  ;;  %v846_v0 = vld [vmem:[%s16552_s27 + $0x9a8] sm:$0xff] }
 0x263   : > { %10881 = vmatpush2.bf16.msra.mxu1 %v13978_v47  ;;  %10907 = vmatprep.subr.bf16.mxu0 %v14035_v60  ;;  %v786_v47 = vld [vmem:[%s16552_s27 + $0x7c8] sm:$0xff] }
 0x264   : > { %10882 = vmatprep.subr.bf16.mxu1 %v13971_v50  ;;  %v790_v60 = vld [vmem:[%s16552_s27 + $0x7e8] sm:$0xff] }
 0x265   : > { %v850_v50 = vld [vmem:[%s16552_s27 + $0x9c8] sm:$0xff]  ;;  %v14123_v57 = vcombine.high %v786_v47, %v790_v60  ;;  %v14122_v2 = vcombine.low %v786_v47, %v790_v60 }
 0x266   : > { %10908 = vmatpush1.bf16.msra.mxu0 %v14034_v59  ;;  %v14187_v59 = vcombine.high %v850_v50, %v854_v7  ;;  %v14186_v56 = vcombine.low %v850_v50, %v854_v7  ;;  %v834_v19 = vld [vmem:[%s16552_s27 + $0x948] sm:$0xff] }
 0x267   : > { %10883 = vmatpush2.bf16.msra.mxu1 %v13970_v61  ;;  %10909 = vmatprep.subr.bf16.mxu0 %v14027_v20  ;;  %v778_v61 = vld [vmem:[%s16552_s27 + $0x788] sm:$0xff] }
 0x268   : > { %10884 = vmatprep.subr.bf16.mxu1 %v13963_v62  ;;  %v782_v20 = vld [vmem:[%s16552_s27 + $0x7a8] sm:$0xff] }
 0x269   : > { %v842_v62 = vld [vmem:[%s16552_s27 + $0x988] sm:$0xff]  ;;  %v14115_v6 = vcombine.high %v778_v61, %v782_v20 }
 0x26a   : > { %10910 = vmatpush1.bf16.msra.mxu0 %v14026_v10  ;;  %v14179_v10 = vcombine.high %v842_v62, %v846_v0  ;;  %v838_v21 = vld [vmem:[%s16552_s27 + $0x968] sm:$0xff] }
 0x26b   : > { %10885 = vmatpush2.bf16.msra.mxu1 %v13962_v14  ;;  %10911 = vmatprep.subr.bf16.mxu0 %v14019_v15  ;;  %v770_v14 = vld [vmem:[%s16552_s27 + $0x748] sm:$0xff]  ;;  %v14170_v7 = vcombine.low %v834_v19, %v838_v21 }
 0x26c   : > { %10886 = vmatprep.subr.bf16.mxu1 %v13955_v17  ;;  %v774_v15 = vld [vmem:[%s16552_s27 + $0x768] sm:$0xff] }
 0x26d   : > { %v762_v48 = vld [vmem:[%s16552_s27 + $0x708] sm:$0xff]  ;;  %v14106_v50 = vcombine.low %v770_v14, %v774_v15 }
 0x26e   : > { %10912 = vmatpush1.bf16.msra.mxu0 %v14018_v27  ;;  %v14114_v27 = vcombine.low %v778_v61, %v782_v20  ;;  %v758_v61 = vld [vmem:[%s16552_s27 + $0x6e8] sm:$0xff] }
 0x26f   : > { %10887 = vmatpush2.bf16.msra.mxu1 %v13954_v22  ;;  %10913 = vmatprep.subr.bf16.mxu0 %v14011_v30  ;;  %v14178_v30 = vcombine.low %v842_v62, %v846_v0  ;;  %v818_v20 = vld [vmem:[%s16552_s27 + $0x8c8] sm:$0xff] }
 0x270   : > { %10888 = vmatprep.subr.bf16.mxu1 %v13947_v31  ;;  %v14107_v31 = vcombine.high %v770_v14, %v774_v15  ;;  %v822_v62 = vld [vmem:[%s16552_s27 + $0x8e8] sm:$0xff] }
 0x271   : > { %v750_v14 = vld [vmem:[%s16552_s27 + $0x6a8] sm:$0xff] }
 0x272   : > { %10914 = vmatpush1.bf16.msra.mxu0 %v14010_v39  ;;  %v766_v39 = vld [vmem:[%s16552_s27 + $0x728] sm:$0xff] }
 0x273   : > { %10889 = vmatpush2.bf16.msra.mxu1 %v13946_v40  ;;  %10915 = vmatprep.subr.bf16.mxu0 %v14003_v28  ;;  %v826_v28 = vld [vmem:[%s16552_s27 + $0x908] sm:$0xff]  ;;  %v14098_v0 = vcombine.low %v762_v48, %v766_v39 }
 0x274   : > { %10890 = vmatprep.subr.bf16.mxu1 %v13939_v45  ;;  %v830_v45 = vld [vmem:[%s16552_s27 + $0x928] sm:$0xff] }
 0x275   : > { %v810_v15 = vld [vmem:[%s16552_s27 + $0x888] sm:$0xff] }
 0x276   : > { %10916 = vmatpush1.bf16.msra.mxu0 %v14002_v51  ;;  %v14099_v51 = vcombine.high %v762_v48, %v766_v39  ;;  %v730_v39 = vld [vmem:[%s16552_s27 + $0x608] sm:$0xff] }
 0x277   : > { %10891 = vmatpush2.bf16.msra.mxu1 %v13938_v53  ;;  %10917 = vmatprep.subr.bf16.mxu0 %v14123_v57  ;;  %v14163_v57 = vcombine.high %v826_v28, %v830_v45 }
 0x278   : > { %10942 = vmatprep.subr.bf16.mxu1 %v14187_v59  ;;  %v10607_v17 = vpop.f32.mrf.mxu0  ;;  %v754_v59 = vld [vmem:[%s16552_s27 + $0x6c8] sm:$0xff] }
 0x279   : > { %v10608_v24 = vadd.f32 %v10607_v17, %v17156_v34  ;;  %v14171_v34 = vcombine.high %v834_v19, %v838_v21  ;;  %v814_v17 = vld [vmem:[%s16552_s27 + $0x8a8] sm:$0xff]  ;;  %v14090_v19 = vcombine.low %v754_v59, %v758_v61  ;;  %v14154_v21 = vcombine.low %v818_v20, %v822_v62 }
 0x27a   : > { %v10648_v26 = vpop.f32.mrf.mxu1  ;;  %10893 = vmatmul.mubr.bf16.vlgmr.msra.gmra.mxu1 %v16682_v55  ;;  %10918 = vmatpush2.bf16.msra.mxu0 %v14122_v2  ;;  %v10609_v22 = vpop.f32.mrf.mxu0  ;;  %v14162_v2 = vcombine.low %v826_v28, %v830_v45  ;;  %v794_v28 = vld [vmem:[%s16552_s27 + $0x808] sm:$0xff] }
 0x27b   : > { %10943 = vmatpush1.bf16.msra.mxu1 %v14186_v56  ;;  %10919 = vmatprep.subr.bf16.mxu0 %v14115_v6  ;;  %v17235_v33 = vadd.f32 %v10648_v26, %v10608_v24  ;;  %v10610_v35 = vadd.f32 %v10609_v22, %v17165_v49  ;;  %v14091_v56 = vcombine.high %v754_v59, %v758_v61  ;;  %v742_v22 = vld [vmem:[%s16552_s27 + $0x668] sm:$0xff] }
 0x27c   : > { %v10650_v37 = vpop.f32.mrf.mxu1  ;;  %10944 = vmatprep.subr.bf16.mxu1 %v14179_v10  ;;  %10974 = vmatprep.mubr.bf16.mxu1 %v16689_v63  ;;  %v10611_v40 = vpop.f32.mrf.mxu0  ;;  %v14155_v6 = vcombine.high %v818_v20, %v822_v62  ;;  %v746_v10 = vld [vmem:[%s16552_s27 + $0x688] sm:$0xff]  ;;  %v14147_v26 = vcombine.high %v810_v15, %v814_v17 }
 0x27d   : > { %v17243_v47 = vadd.f32 %v10650_v37, %v10610_v35  ;;  %v14083_v24 = vcombine.high %v746_v10, %v750_v14  ;;  %v14082_v35 = vcombine.low %v746_v10, %v750_v14  ;;  %v14146_v37 = vcombine.low %v810_v15, %v814_v17  ;;  %v734_v40 = vld [vmem:[%s16552_s27 + $0x628] sm:$0xff] }
 0x27e   : > { %v10652_v60 = vpop.f32.mrf.mxu1  ;;  %10920 = vmatpush2.bf16.msra.mxu0 %v14114_v27  ;;  %v10612_v49 = vpop.f32.mrf.mxu0  ;;  %v738_v27 = vld [vmem:[%s16552_s27 + $0x648] sm:$0xff]  ;;  %v14066_v61 = vcombine.low %v730_v39, %v734_v40 }
 0x27f   : > { %10945 = vmatpush1.bf16.msra.mxu1 %v14178_v30  ;;  %10921 = vmatprep.subr.bf16.mxu0 %v14107_v31  ;;  %v802_v30 = vld [vmem:[%s16552_s27 + $0x848] sm:$0xff]  ;;  %v14074_v60 = vcombine.low %v738_v27, %v742_v22  ;;  %v14067_v49 = vcombine.high %v730_v39, %v734_v40 }
 0x280   : > { %v10653_v53 = vpop.f32.mrf.mxu1  ;;  %10946 = vmatprep.subr.bf16.mxu1 %v14171_v34  ;;  %v806_v31 = vld [vmem:[%s16552_s27 + $0x868] sm:$0xff]  ;;  %v14075_v34 = vcombine.high %v738_v27, %v742_v22 }
 0x281   : > { %v14139_v48 = vcombine.high %v802_v30, %v806_v31  ;;  %v798_v45 = vld [vmem:[%s16552_s27 + $0x828] sm:$0xff] }
 0x282   : > { %10922 = vmatpush2.bf16.msra.mxu0 %v14106_v50  ;;  %v14138_v50 = vcombine.low %v802_v30, %v806_v31  ;;  %v982_v53 = vld [vmem:[%s16552_s27 + $0xde8] sm:$0xff]  ;;  %v14130_v20 = vcombine.low %v794_v28, %v798_v45 }
 0x283   : > { %10947 = vmatpush1.bf16.msra.mxu1 %v14170_v7  ;;  %10923 = vmatprep.subr.bf16.mxu0 %v14099_v51  ;;  %v14131_v7 = vcombine.high %v794_v28, %v798_v45  ;;  %v978_v51 = vld [vmem:[%s16552_s27 + $0xdc8] sm:$0xff] }
 0x284   : > { %10948 = vmatprep.subr.bf16.mxu1 %v14163_v57  ;;  %v914_v57 = vld [vmem:[%s16552_s27 + $0xbc8] sm:$0xff]  ;;  %v14315_v62 = vcombine.high %v978_v51, %v982_v53  ;;  %v14314_v14 = vcombine.low %v978_v51, %v982_v53 }
 0x285   : > { %v918_v59 = vld [vmem:[%s16552_s27 + $0xbe8] sm:$0xff] }
 0x286   : > { %10924 = vmatpush2.bf16.msra.mxu0 %v14098_v0  ;;  %v14251_v0 = vcombine.high %v914_v57, %v918_v59  ;;  %v910_v10 = vld [vmem:[%s16552_s27 + $0xba8] sm:$0xff]  ;;  %v14250_v15 = vcombine.low %v914_v57, %v918_v59 }
 0x287   : > { %10949 = vmatpush1.bf16.msra.mxu1 %v14162_v2  ;;  %10925 = vmatprep.subr.bf16.mxu0 %v14091_v56  ;;  %v970_v2 = vld [vmem:[%s16552_s27 + $0xd88] sm:$0xff] }
 0x288   : > { %10950 = vmatprep.subr.bf16.mxu1 %v14155_v6  ;;  %v974_v56 = vld [vmem:[%s16552_s27 + $0xda8] sm:$0xff] }
 0x289   : > { %v906_v6 = vld [vmem:[%s16552_s27 + $0xb88] sm:$0xff]  ;;  %v14307_v17 = vcombine.high %v970_v2, %v974_v56  ;;  %v14306_v22 = vcombine.low %v970_v2, %v974_v56 }
 0x28a   : > { %10926 = vmatpush2.bf16.msra.mxu0 %v14090_v19  ;;  %v14243_v19 = vcombine.high %v906_v6, %v910_v10  ;;  %v902_v27 = vld [vmem:[%s16552_s27 + $0xb68] sm:$0xff]  ;;  %v14242_v30 = vcombine.low %v906_v6, %v910_v10 }
 0x28b   : > { %10951 = vmatpush1.bf16.msra.mxu1 %v14154_v21  ;;  %10927 = vmatprep.subr.bf16.mxu0 %v14083_v24  ;;  %v962_v21 = vld [vmem:[%s16552_s27 + $0xd48] sm:$0xff] }
 0x28c   : > { %10952 = vmatprep.subr.bf16.mxu1 %v14147_v26  ;;  %v966_v24 = vld [vmem:[%s16552_s27 + $0xd68] sm:$0xff] }
 0x28d   : > { %v898_v26 = vld [vmem:[%s16552_s27 + $0xb48] sm:$0xff]  ;;  %v14299_v31 = vcombine.high %v962_v21, %v966_v24  ;;  %v14298_v40 = vcombine.low %v962_v21, %v966_v24 }
 0x28e   : > { %10928 = vmatpush2.bf16.msra.mxu0 %v14082_v35  ;;  %v14235_v35 = vcombine.high %v898_v26, %v902_v27  ;;  %v894_v39 = vld [vmem:[%s16552_s27 + $0xb28] sm:$0xff]  ;;  %v14234_v28 = vcombine.low %v898_v26, %v902_v27 }
 0x28f   : > { %10953 = vmatpush1.bf16.msra.mxu1 %v14146_v37  ;;  %10929 = vmatprep.subr.bf16.mxu0 %v14075_v34  ;;  %v954_v37 = vld [vmem:[%s16552_s27 + $0xd08] sm:$0xff] }
 0x290   : > { %10954 = vmatprep.subr.bf16.mxu1 %v14139_v48  ;;  %v958_v34 = vld [vmem:[%s16552_s27 + $0xd28] sm:$0xff] }
 0x291   : > { %v890_v48 = vld [vmem:[%s16552_s27 + $0xb08] sm:$0xff]  ;;  %v14291_v45 = vcombine.high %v954_v37, %v958_v34  ;;  %v14290_v53 = vcombine.low %v954_v37, %v958_v34 }
 0x292   : > { %10930 = vmatpush2.bf16.msra.mxu0 %v14074_v60  ;;  %v14227_v60 = vcombine.high %v890_v48, %v894_v39  ;;  %v886_v51 = vld [vmem:[%s16552_s27 + $0xae8] sm:$0xff]  ;;  %v14226_v57 = vcombine.low %v890_v48, %v894_v39 }
 0x293   : > { %10955 = vmatpush1.bf16.msra.mxu1 %v14138_v50  ;;  %10931 = vmatprep.subr.bf16.mxu0 %v14067_v49  ;;  %v946_v50 = vld [vmem:[%s16552_s27 + $0xcc8] sm:$0xff] }
 0x294   : > { %10956 = vmatprep.subr.bf16.mxu1 %v14131_v7  ;;  %v950_v49 = vld [vmem:[%s16552_s27 + $0xce8] sm:$0xff] }
 0x295   : > { %v882_v7 = vld [vmem:[%s16552_s27 + $0xac8] sm:$0xff]  ;;  %v14283_v59 = vcombine.high %v946_v50, %v950_v49  ;;  %v14282_v56 = vcombine.low %v946_v50, %v950_v49 }
 0x296   : > { %10932 = vmatpush2.bf16.msra.mxu0 %v14066_v61  ;;  %v14219_v61 = vcombine.high %v882_v7, %v886_v51  ;;  %v878_v2 = vld [vmem:[%s16552_s27 + $0xaa8] sm:$0xff]  ;;  %v14218_v6 = vcombine.low %v882_v7, %v886_v51 }
 0x297   : > { %10957 = vmatpush1.bf16.msra.mxu1 %v14130_v20  ;;  %10983 = vmatprep.subr.bf16.mxu0 %v14315_v62  ;;  %v938_v20 = vld [vmem:[%s16552_s27 + $0xc88] sm:$0xff] }
 0x298   : > { %10958 = vmatprep.subr.bf16.mxu1 %v14251_v0  ;;  %v942_v62 = vld [vmem:[%s16552_s27 + $0xca8] sm:$0xff] }
 0x299   : > { %10934 = vmatmul.mubr.bf16.vlgmr.msra.gmra.mxu0 %v16693_v32  ;;  %v874_v0 = vld [vmem:[%s16552_s27 + $0xa88] sm:$0xff]  ;;  %v14275_v10 = vcombine.high %v938_v20, %v942_v62  ;;  %v14274_v24 = vcombine.low %v938_v20, %v942_v62 }
 0x29a   : > { %10984 = vmatpush1.bf16.msra.mxu0 %v14314_v14  ;;  %11015 = vmatprep.mubr.bf16.mxu0 %v16702_v8  ;;  %v14211_v14 = vcombine.high %v874_v0, %v878_v2  ;;  %v870_v21 = vld [vmem:[%s16552_s27 + $0xa68] sm:$0xff]  ;;  %v14210_v26 = vcombine.low %v874_v0, %v878_v2 }
 0x29b   : > { %10959 = vmatpush2.bf16.msra.mxu1 %v14250_v15  ;;  %10985 = vmatprep.subr.bf16.mxu0 %v14307_v17  ;;  %v930_v15 = vld [vmem:[%s16552_s27 + $0xc48] sm:$0xff] }
 0x29c   : > { %10960 = vmatprep.subr.bf16.mxu1 %v14243_v19  ;;  %v934_v17 = vld [vmem:[%s16552_s27 + $0xc68] sm:$0xff] }
 0x29d   : > { %v866_v19 = vld [vmem:[%s16552_s27 + $0xa48] sm:$0xff]  ;;  %v14267_v27 = vcombine.high %v930_v15, %v934_v17  ;;  %v14266_v34 = vcombine.low %v930_v15, %v934_v17 }
 0x29e   : > { %10986 = vmatpush1.bf16.msra.mxu0 %v14306_v22  ;;  %v14203_v22 = vcombine.high %v866_v19, %v870_v21  ;;  %v862_v37 = vld [vmem:[%s16552_s27 + $0xa28] sm:$0xff]  ;;  %v14202_v48 = vcombine.low %v866_v19, %v870_v21 }
 0x29f   : > { %10961 = vmatpush2.bf16.msra.mxu1 %v14242_v30  ;;  %10987 = vmatprep.subr.bf16.mxu0 %v14299_v31  ;;  %v922_v30 = vld [vmem:[%s16552_s27 + $0xc08] sm:$0xff] }
 0x2a0   : > { %10962 = vmatprep.subr.bf16.mxu1 %v14235_v35  ;;  %v926_v31 = vld [vmem:[%s16552_s27 + $0xc28] sm:$0xff] }
 0x2a1   : > { %v858_v35 = vld [vmem:[%s16552_s27 + $0xa08] sm:$0xff]  ;;  %v14259_v39 = vcombine.high %v922_v30, %v926_v31  ;;  %v14258_v49 = vcombine.low %v922_v30, %v926_v31 }
 0x2a2   : > { %10988 = vmatpush1.bf16.msra.mxu0 %v14298_v40  ;;  %v14195_v40 = vcombine.high %v858_v35, %v862_v37  ;;  %v1110_v50 = vld [vmem:[%s16552_s27 + $0x11e8] sm:$0xff]  ;;  %v14194_v7 = vcombine.low %v858_v35, %v862_v37 }
 0x2a3   : > { %10963 = vmatpush2.bf16.msra.mxu1 %v14234_v28  ;;  %10989 = vmatprep.subr.bf16.mxu0 %v14291_v45  ;;  %v1042_v28 = vld [vmem:[%s16552_s27 + $0xfc8] sm:$0xff] }
 0x2a4   : > { %10964 = vmatprep.subr.bf16.mxu1 %v14227_v60  ;;  %v1046_v45 = vld [vmem:[%s16552_s27 + $0xfe8] sm:$0xff] }
 0x2a5   : > { %v1106_v60 = vld [vmem:[%s16552_s27 + $0x11c8] sm:$0xff]  ;;  %v14379_v51 = vcombine.high %v1042_v28, %v1046_v45  ;;  %v14378_v62 = vcombine.low %v1042_v28, %v1046_v45 }
 0x2a6   : > { %10990 = vmatpush1.bf16.msra.mxu0 %v14290_v53  ;;  %v14443_v53 = vcombine.high %v1106_v60, %v1110_v50  ;;  %v1102_v20 = vld [vmem:[%s16552_s27 + $0x11a8] sm:$0xff]  ;;  %v14442_v0 = vcombine.low %v1106_v60, %v1110_v50 }
 0x2a7   : > { %10965 = vmatpush2.bf16.msra.mxu1 %v14226_v57  ;;  %10991 = vmatprep.subr.bf16.mxu0 %v14283_v59  ;;  %v1034_v57 = vld [vmem:[%s16552_s27 + $0xf88] sm:$0xff] }
 0x2a8   : > { %10966 = vmatprep.subr.bf16.mxu1 %v14219_v61  ;;  %v1038_v59 = vld [vmem:[%s16552_s27 + $0xfa8] sm:$0xff] }
 0x2a9   : > { %v1098_v61 = vld [vmem:[%s16552_s27 + $0x1188] sm:$0xff]  ;;  %v14371_v2 = vcombine.high %v1034_v57, %v1038_v59 }
 0x2aa   : > { %10992 = vmatpush1.bf16.msra.mxu0 %v14282_v56  ;;  %v14435_v56 = vcombine.high %v1098_v61, %v1102_v20  ;;  %v1090_v15 = vld [vmem:[%s16552_s27 + $0x1148] sm:$0xff] }
 0x2ab   : > { %10967 = vmatpush2.bf16.msra.mxu1 %v14218_v6  ;;  %10993 = vmatprep.subr.bf16.mxu0 %v14275_v10  ;;  %v1026_v6 = vld [vmem:[%s16552_s27 + $0xf48] sm:$0xff] }
 0x2ac   : > { %10968 = vmatprep.subr.bf16.mxu1 %v14211_v14  ;;  %v1030_v10 = vld [vmem:[%s16552_s27 + $0xf68] sm:$0xff] }
 0x2ad   : > { %v1094_v17 = vld [vmem:[%s16552_s27 + $0x1168] sm:$0xff]  ;;  %v14362_v60 = vcombine.low %v1026_v6, %v1030_v10 }
 0x2ae   : > { %10994 = vmatpush1.bf16.msra.mxu0 %v14274_v24  ;;  %v14370_v24 = vcombine.low %v1034_v57, %v1038_v59  ;;  %v1018_v37 = vld [vmem:[%s16552_s27 + $0xf08] sm:$0xff]  ;;  %v14426_v50 = vcombine.low %v1090_v15, %v1094_v17 }
 0x2af   : > { %10969 = vmatpush2.bf16.msra.mxu1 %v14210_v26  ;;  %10995 = vmatprep.subr.bf16.mxu0 %v14267_v27  ;;  %v14434_v27 = vcombine.low %v1098_v61, %v1102_v20  ;;  %v1014_v57 = vld [vmem:[%s16552_s27 + $0xee8] sm:$0xff] }
 0x2b0   : > { %10970 = vmatprep.subr.bf16.mxu1 %v14203_v22  ;;  %v14363_v22 = vcombine.high %v1026_v6, %v1030_v10  ;;  %v1074_v59 = vld [vmem:[%s16552_s27 + $0x10c8] sm:$0xff] }
 0x2b1   : > { %v1078_v61 = vld [vmem:[%s16552_s27 + $0x10e8] sm:$0xff] }
 0x2b2   : > { %10996 = vmatpush1.bf16.msra.mxu0 %v14266_v34  ;;  %v1022_v34 = vld [vmem:[%s16552_s27 + $0xf28] sm:$0xff] }
 0x2b3   : > { %10971 = vmatpush2.bf16.msra.mxu1 %v14202_v48  ;;  %10997 = vmatprep.subr.bf16.mxu0 %v14259_v39  ;;  %v1082_v39 = vld [vmem:[%s16552_s27 + $0x1108] sm:$0xff]  ;;  %v14354_v20 = vcombine.low %v1018_v37, %v1022_v34 }
 0x2b4   : > { %10972 = vmatprep.subr.bf16.mxu1 %v14195_v40  ;;  %v1086_v40 = vld [vmem:[%s16552_s27 + $0x1128] sm:$0xff] }
 0x2b5   : > { %v1006_v6 = vld [vmem:[%s16552_s27 + $0xea8] sm:$0xff] }
 0x2b6   : > { %10998 = vmatpush1.bf16.msra.mxu0 %v14258_v49  ;;  %v14355_v49 = vcombine.high %v1018_v37, %v1022_v34  ;;  %v1066_v10 = vld [vmem:[%s16552_s27 + $0x1088] sm:$0xff] }
 0x2b7   : > { %10973 = vmatpush2.bf16.msra.mxu1 %v14194_v7  ;;  %10999 = vmatprep.subr.bf16.mxu0 %v14379_v51  ;;  %v14419_v51 = vcombine.high %v1082_v39, %v1086_v40  ;;  %v986_v34 = vld [vmem:[%s16552_s27 + $0xe08] sm:$0xff] }
 0x2b8   : > { %11024 = vmatprep.subr.bf16.mxu1 %v14443_v53  ;;  %v10689_v14 = vpop.f32.mrf.mxu0  ;;  %v1010_v53 = vld [vmem:[%s16552_s27 + $0xec8] sm:$0xff] }
 0x2b9   : > { %v10690_v19 = vadd.f32 %v10689_v14, %v17235_v33  ;;  %v14427_v33 = vcombine.high %v1090_v15, %v1094_v17  ;;  %v1070_v14 = vld [vmem:[%s16552_s27 + $0x10a8] sm:$0xff]  ;;  %v14346_v15 = vcombine.low %v1010_v53, %v1014_v57  ;;  %v14410_v17 = vcombine.low %v1074_v59, %v1078_v61 }
 0x2ba   : > { %v10730_v21 = vpop.f32.mrf.mxu1  ;;  %10975 = vmatmul.mubr.bf16.vlgmr.msra.gmra.mxu1 %v16774_v16  ;;  %11000 = vmatpush2.bf16.msra.mxu0 %v14378_v62  ;;  %v10691_v26 = vpop.f32.mrf.mxu0  ;;  %v14418_v62 = vcombine.low %v1082_v39, %v1086_v40  ;;  %v1050_v39 = vld [vmem:[%s16552_s27 + $0x1008] sm:$0xff] }
 0x2bb   : > { %11025 = vmatpush1.bf16.msra.mxu1 %v14442_v0  ;;  %11001 = vmatprep.subr.bf16.mxu0 %v14371_v2  ;;  %v17309_v30 = vadd.f32 %v10730_v21, %v10690_v19  ;;  %v10692_v31 = vadd.f32 %v10691_v26, %v17243_v47  ;;  %v14347_v0 = vcombine.high %v1010_v53, %v1014_v57  ;;  %v998_v26 = vld [vmem:[%s16552_s27 + $0xe68] sm:$0xff] }
 0x2bc   : > { %v10732_v35 = vpop.f32.mrf.mxu1  ;;  %11026 = vmatprep.subr.bf16.mxu1 %v14435_v56  ;;  %11056 = vmatprep.mubr.bf16.mxu1 %v16781_v25  ;;  %v10693_v48 = vpop.f32.mrf.mxu0  ;;  %v14411_v2 = vcombine.high %v1074_v59, %v1078_v61  ;;  %v1002_v56 = vld [vmem:[%s16552_s27 + $0xe88] sm:$0xff]  ;;  %v14403_v21 = vcombine.high %v1066_v10, %v1070_v14 }
 0x2bd   : > { %v17317_v28 = vadd.f32 %v10732_v35, %v10692_v31  ;;  %v14339_v19 = vcombine.high %v1002_v56, %v1006_v6  ;;  %v14338_v31 = vcombine.low %v1002_v56, %v1006_v6  ;;  %v14402_v35 = vcombine.low %v1066_v10, %v1070_v14  ;;  %v990_v48 = vld [vmem:[%s16552_s27 + $0xe28] sm:$0xff] }
 0x2be   : > { %v10734_v45 = vpop.f32.mrf.mxu1  ;;  %11002 = vmatpush2.bf16.msra.mxu0 %v14370_v24  ;;  %v10694_v47 = vpop.f32.mrf.mxu0  ;;  %v994_v24 = vld [vmem:[%s16552_s27 + $0xe48] sm:$0xff]  ;;  %v14322_v57 = vcombine.low %v986_v34, %v990_v48 }
 0x2bf   : > { %11027 = vmatpush1.bf16.msra.mxu1 %v14434_v27  ;;  %11003 = vmatprep.subr.bf16.mxu0 %v14363_v22  ;;  %v1058_v27 = vld [vmem:[%s16552_s27 + $0x1048] sm:$0xff]  ;;  %v14330_v45 = vcombine.low %v994_v24, %v998_v26  ;;  %v14323_v47 = vcombine.high %v986_v34, %v990_v48 }
 0x2c0   : > { %v10735_v7 = vpop.f32.mrf.mxu1  ;;  %11028 = vmatprep.subr.bf16.mxu1 %v14427_v33  ;;  %v1062_v22 = vld [vmem:[%s16552_s27 + $0x1068] sm:$0xff]  ;;  %v14331_v33 = vcombine.high %v994_v24, %v998_v26 }
 0x2c1   : > { %v14395_v37 = vcombine.high %v1058_v27, %v1062_v22  ;;  %v1054_v40 = vld [vmem:[%s16552_s27 + $0x1028] sm:$0xff] }
 0x2c2   : > { %11004 = vmatpush2.bf16.msra.mxu0 %v14362_v60  ;;  %v14394_v60 = vcombine.low %v1058_v27, %v1062_v22  ;;  %v1238_v7 = vld [vmem:[%s16552_s27 + $0x15e8] sm:$0xff]  ;;  %v14386_v59 = vcombine.low %v1050_v39, %v1054_v40 }
 0x2c3   : > { %11029 = vmatpush1.bf16.msra.mxu1 %v14426_v50  ;;  %11005 = vmatprep.subr.bf16.mxu0 %v14355_v49  ;;  %v14387_v50 = vcombine.high %v1050_v39, %v1054_v40  ;;  %v1234_v49 = vld [vmem:[%s16552_s27 + $0x15c8] sm:$0xff] }
 0x2c4   : > { %11030 = vmatprep.subr.bf16.mxu1 %v14419_v51  ;;  %v1170_v51 = vld [vmem:[%s16552_s27 + $0x13c8] sm:$0xff]  ;;  %v14571_v61 = vcombine.high %v1234_v49, %v1238_v7  ;;  %v14570_v6 = vcombine.low %v1234_v49, %v1238_v7 }
 0x2c5   : > { %v1174_v53 = vld [vmem:[%s16552_s27 + $0x13e8] sm:$0xff] }
 0x2c6   : > { %11006 = vmatpush2.bf16.msra.mxu0 %v14354_v20  ;;  %v14507_v20 = vcombine.high %v1170_v51, %v1174_v53  ;;  %v1166_v56 = vld [vmem:[%s16552_s27 + $0x13a8] sm:$0xff]  ;;  %v14506_v10 = vcombine.low %v1170_v51, %v1174_v53 }
 0x2c7   : > { %11031 = vmatpush1.bf16.msra.mxu1 %v14418_v62  ;;  %11007 = vmatprep.subr.bf16.mxu0 %v14347_v0  ;;  %v1226_v62 = vld [vmem:[%s16552_s27 + $0x1588] sm:$0xff] }
 0x2c8   : > { %11032 = vmatprep.subr.bf16.mxu1 %v14411_v2  ;;  %v1230_v0 = vld [vmem:[%s16552_s27 + $0x15a8] sm:$0xff] }
 0x2c9   : > { %v1162_v2 = vld [vmem:[%s16552_s27 + $0x1388] sm:$0xff]  ;;  %v14563_v14 = vcombine.high %v1226_v62, %v1230_v0  ;;  %v14562_v26 = vcombine.low %v1226_v62, %v1230_v0 }
 0x2ca   : > { %11008 = vmatpush2.bf16.msra.mxu0 %v14346_v15  ;;  %v14499_v15 = vcombine.high %v1162_v2, %v1166_v56  ;;  %v1158_v24 = vld [vmem:[%s16552_s27 + $0x1368] sm:$0xff]  ;;  %v14498_v27 = vcombine.low %v1162_v2, %v1166_v56 }
 0x2cb   : > { %11033 = vmatpush1.bf16.msra.mxu1 %v14410_v17  ;;  %11009 = vmatprep.subr.bf16.mxu0 %v14339_v19  ;;  %v1218_v17 = vld [vmem:[%s16552_s27 + $0x1548] sm:$0xff] }
 0x2cc   : > { %11034 = vmatprep.subr.bf16.mxu1 %v14403_v21  ;;  %v1222_v19 = vld [vmem:[%s16552_s27 + $0x1568] sm:$0xff] }
 0x2cd   : > { %v1154_v21 = vld [vmem:[%s16552_s27 + $0x1348] sm:$0xff]  ;;  %v14555_v22 = vcombine.high %v1218_v17, %v1222_v19  ;;  %v14554_v48 = vcombine.low %v1218_v17, %v1222_v19 }
 0x2ce   : > { %11010 = vmatpush2.bf16.msra.mxu0 %v14338_v31  ;;  %v14491_v31 = vcombine.high %v1154_v21, %v1158_v24  ;;  %v1150_v34 = vld [vmem:[%s16552_s27 + $0x1328] sm:$0xff]  ;;  %v14490_v39 = vcombine.low %v1154_v21, %v1158_v24 }
 0x2cf   : > { %11035 = vmatpush1.bf16.msra.mxu1 %v14402_v35  ;;  %11011 = vmatprep.subr.bf16.mxu0 %v14331_v33  ;;  %v1210_v35 = vld [vmem:[%s16552_s27 + $0x1508] sm:$0xff] }
 0x2d0   : > { %11036 = vmatprep.subr.bf16.mxu1 %v14395_v37  ;;  %v1214_v33 = vld [vmem:[%s16552_s27 + $0x1528] sm:$0xff] }
 0x2d1   : > { %v1146_v37 = vld [vmem:[%s16552_s27 + $0x1308] sm:$0xff]  ;;  %v14547_v40 = vcombine.high %v1210_v35, %v1214_v33  ;;  %v14546_v7 = vcombine.low %v1210_v35, %v1214_v33 }
 0x2d2   : > { %11012 = vmatpush2.bf16.msra.mxu0 %v14330_v45  ;;  %v14483_v45 = vcombine.high %v1146_v37, %v1150_v34  ;;  %v1142_v49 = vld [vmem:[%s16552_s27 + $0x12e8] sm:$0xff]  ;;  %v14482_v51 = vcombine.low %v1146_v37, %v1150_v34 }
 0x2d3   : > { %11037 = vmatpush1.bf16.msra.mxu1 %v14394_v60  ;;  %11013 = vmatprep.subr.bf16.mxu0 %v14323_v47  ;;  %v1202_v60 = vld [vmem:[%s16552_s27 + $0x14c8] sm:$0xff] }
 0x2d4   : > { %11038 = vmatprep.subr.bf16.mxu1 %v14387_v50  ;;  %v1206_v47 = vld [vmem:[%s16552_s27 + $0x14e8] sm:$0xff] }
 0x2d5   : > { %v1138_v50 = vld [vmem:[%s16552_s27 + $0x12c8] sm:$0xff]  ;;  %v14539_v53 = vcombine.high %v1202_v60, %v1206_v47  ;;  %v14538_v0 = vcombine.low %v1202_v60, %v1206_v47 }
 0x2d6   : > { %11014 = vmatpush2.bf16.msra.mxu0 %v14322_v57  ;;  %v14475_v57 = vcombine.high %v1138_v50, %v1142_v49  ;;  %v1134_v62 = vld [vmem:[%s16552_s27 + $0x12a8] sm:$0xff]  ;;  %v14474_v2 = vcombine.low %v1138_v50, %v1142_v49 }
 0x2d7   : > { %11039 = vmatpush1.bf16.msra.mxu1 %v14386_v59  ;;  %11065 = vmatprep.subr.bf16.mxu0 %v14571_v61  ;;  %v1194_v59 = vld [vmem:[%s16552_s27 + $0x1488] sm:$0xff] }
 0x2d8   : > { %11040 = vmatprep.subr.bf16.mxu1 %v14507_v20  ;;  %v1198_v61 = vld [vmem:[%s16552_s27 + $0x14a8] sm:$0xff] }
 0x2d9   : > { %11016 = vmatmul.mubr.bf16.vlgmr.msra.gmra.mxu0 %v16785_v44  ;;  %v1130_v20 = vld [vmem:[%s16552_s27 + $0x1288] sm:$0xff]  ;;  %v14531_v56 = vcombine.high %v1194_v59, %v1198_v61  ;;  %v14530_v19 = vcombine.low %v1194_v59, %v1198_v61 }
 0x2da   : > { %11066 = vmatpush1.bf16.msra.mxu0 %v14570_v6  ;;  %11097 = vmatprep.mubr.bf16.mxu0 %v16794_v36  ;;  %v14467_v6 = vcombine.high %v1130_v20, %v1134_v62  ;;  %v1126_v17 = vld [vmem:[%s16552_s27 + $0x1268] sm:$0xff]  ;;  %v14466_v21 = vcombine.low %v1130_v20, %v1134_v62 }
 0x2db   : > { %11041 = vmatpush2.bf16.msra.mxu1 %v14506_v10  ;;  %11067 = vmatprep.subr.bf16.mxu0 %v14563_v14  ;;  %v1186_v10 = vld [vmem:[%s16552_s27 + $0x1448] sm:$0xff] }
 0x2dc   : > { %11042 = vmatprep.subr.bf16.mxu1 %v14499_v15  ;;  %v1190_v14 = vld [vmem:[%s16552_s27 + $0x1468] sm:$0xff] }
 0x2dd   : > { %v1122_v15 = vld [vmem:[%s16552_s27 + $0x1248] sm:$0xff]  ;;  %v14523_v24 = vcombine.high %v1186_v10, %v1190_v14  ;;  %v14522_v33 = vcombine.low %v1186_v10, %v1190_v14 }
 0x2de   : > { %11068 = vmatpush1.bf16.msra.mxu0 %v14562_v26  ;;  %v14459_v26 = vcombine.high %v1122_v15, %v1126_v17  ;;  %v1118_v35 = vld [vmem:[%s16552_s27 + $0x1228] sm:$0xff]  ;;  %v14458_v37 = vcombine.low %v1122_v15, %v1126_v17 }
 0x2df   : > { %11043 = vmatpush2.bf16.msra.mxu1 %v14498_v27  ;;  %11069 = vmatprep.subr.bf16.mxu0 %v14555_v22  ;;  %v1178_v27 = vld [vmem:[%s16552_s27 + $0x1408] sm:$0xff] }
 0x2e0   : > { %11044 = vmatprep.subr.bf16.mxu1 %v14491_v31  ;;  %v1182_v22 = vld [vmem:[%s16552_s27 + $0x1428] sm:$0xff] }
 0x2e1   : > { %v1114_v31 = vld [vmem:[%s16552_s27 + $0x1208] sm:$0xff]  ;;  %v14515_v34 = vcombine.high %v1178_v27, %v1182_v22  ;;  %v14514_v47 = vcombine.low %v1178_v27, %v1182_v22 }
 0x2e2   : > { %11070 = vmatpush1.bf16.msra.mxu0 %v14554_v48  ;;  %v14451_v48 = vcombine.high %v1114_v31, %v1118_v35  ;;  %v1366_v60 = vld [vmem:[%s16552_s27 + $0x19e8] sm:$0xff]  ;;  %v14450_v50 = vcombine.low %v1114_v31, %v1118_v35 }
 0x2e3   : > { %11045 = vmatpush2.bf16.msra.mxu1 %v14490_v39  ;;  %11071 = vmatprep.subr.bf16.mxu0 %v14547_v40  ;;  %v1298_v39 = vld [vmem:[%s16552_s27 + $0x17c8] sm:$0xff] }
 0x2e4   : > { %11046 = vmatprep.subr.bf16.mxu1 %v14483_v45  ;;  %v1302_v40 = vld [vmem:[%s16552_s27 + $0x17e8] sm:$0xff] }
 0x2e5   : > { %v1362_v45 = vld [vmem:[%s16552_s27 + $0x19c8] sm:$0xff]  ;;  %v14635_v49 = vcombine.high %v1298_v39, %v1302_v40  ;;  %v14634_v61 = vcombine.low %v1298_v39, %v1302_v40 }
 0x2e6   : > { %11072 = vmatpush1.bf16.msra.mxu0 %v14546_v7  ;;  %v14699_v7 = vcombine.high %v1362_v45, %v1366_v60  ;;  %v1358_v59 = vld [vmem:[%s16552_s27 + $0x19a8] sm:$0xff]  ;;  %v14698_v20 = vcombine.low %v1362_v45, %v1366_v60 }
 0x2e7   : > { %11047 = vmatpush2.bf16.msra.mxu1 %v14482_v51  ;;  %11073 = vmatprep.subr.bf16.mxu0 %v14539_v53  ;;  %v1290_v51 = vld [vmem:[%s16552_s27 + $0x1788] sm:$0xff] }
 0x2e8   : > { %11048 = vmatprep.subr.bf16.mxu1 %v14475_v57  ;;  %v1294_v53 = vld [vmem:[%s16552_s27 + $0x17a8] sm:$0xff] }
 0x2e9   : > { %v1354_v57 = vld [vmem:[%s16552_s27 + $0x1988] sm:$0xff]  ;;  %v14627_v62 = vcombine.high %v1290_v51, %v1294_v53 }
 0x2ea   : > { %11074 = vmatpush1.bf16.msra.mxu0 %v14538_v0  ;;  %v14691_v0 = vcombine.high %v1354_v57, %v1358_v59  ;;  %v1346_v10 = vld [vmem:[%s16552_s27 + $0x1948] sm:$0xff] }
 0x2eb   : > { %11049 = vmatpush2.bf16.msra.mxu1 %v14474_v2  ;;  %11075 = vmatprep.subr.bf16.mxu0 %v14531_v56  ;;  %v1282_v2 = vld [vmem:[%s16552_s27 + $0x1748] sm:$0xff] }
 0x2ec   : > { %11050 = vmatprep.subr.bf16.mxu1 %v14467_v6  ;;  %v1286_v56 = vld [vmem:[%s16552_s27 + $0x1768] sm:$0xff] }
 0x2ed   : > { %v1350_v14 = vld [vmem:[%s16552_s27 + $0x1968] sm:$0xff]  ;;  %v14618_v45 = vcombine.low %v1282_v2, %v1286_v56 }
 0x2ee   : > { %11076 = vmatpush1.bf16.msra.mxu0 %v14530_v19  ;;  %v14626_v19 = vcombine.low %v1290_v51, %v1294_v53  ;;  %v1274_v35 = vld [vmem:[%s16552_s27 + $0x1708] sm:$0xff]  ;;  %v14682_v60 = vcombine.low %v1346_v10, %v1350_v14 }
 0x2ef   : > { %11051 = vmatpush2.bf16.msra.mxu1 %v14466_v21  ;;  %11077 = vmatprep.subr.bf16.mxu0 %v14523_v24  ;;  %v14690_v24 = vcombine.low %v1354_v57, %v1358_v59  ;;  %v1270_v51 = vld [vmem:[%s16552_s27 + $0x16e8] sm:$0xff] }
 0x2f0   : > { %11052 = vmatprep.subr.bf16.mxu1 %v14459_v26  ;;  %v14619_v26 = vcombine.high %v1282_v2, %v1286_v56  ;;  %v1330_v53 = vld [vmem:[%s16552_s27 + $0x18c8] sm:$0xff] }
 0x2f1   : > { %v1334_v57 = vld [vmem:[%s16552_s27 + $0x18e8] sm:$0xff] }
 0x2f2   : > { %11078 = vmatpush1.bf16.msra.mxu0 %v14522_v33  ;;  %v1278_v33 = vld [vmem:[%s16552_s27 + $0x1728] sm:$0xff] }
 0x2f3   : > { %11053 = vmatpush2.bf16.msra.mxu1 %v14458_v37  ;;  %11079 = vmatprep.subr.bf16.mxu0 %v14515_v34  ;;  %v1338_v34 = vld [vmem:[%s16552_s27 + $0x1908] sm:$0xff]  ;;  %v14610_v59 = vcombine.low %v1274_v35, %v1278_v33 }
 0x2f4   : > { %11054 = vmatprep.subr.bf16.mxu1 %v14451_v48  ;;  %v1342_v48 = vld [vmem:[%s16552_s27 + $0x1928] sm:$0xff] }
 0x2f5   : > { %v1262_v2 = vld [vmem:[%s16552_s27 + $0x16a8] sm:$0xff] }
 0x2f6   : > { %11080 = vmatpush1.bf16.msra.mxu0 %v14514_v47  ;;  %v14611_v47 = vcombine.high %v1274_v35, %v1278_v33  ;;  %v1322_v56 = vld [vmem:[%s16552_s27 + $0x1888] sm:$0xff] }
 0x2f7   : > { %11055 = vmatpush2.bf16.msra.mxu1 %v14450_v50  ;;  %11081 = vmatprep.subr.bf16.mxu0 %v14635_v49  ;;  %v14675_v49 = vcombine.high %v1338_v34, %v1342_v48  ;;  %v1242_v33 = vld [vmem:[%s16552_s27 + $0x1608] sm:$0xff] }
 0x2f8   : > { %11106 = vmatprep.subr.bf16.mxu1 %v14699_v7  ;;  %v1266_v7 = vld [vmem:[%s16552_s27 + $0x16c8] sm:$0xff] }
 0x2f9   : > { %v10771_v6 = vpop.f32.mrf.mxu0 }
 0x2fa   : > { %v10772_v15 = vadd.f32 %v10771_v6, %v17309_v30  ;;  %v10812_v17 = vpop.f32.mrf.mxu1  ;;  %11057 = vmatmul.mubr.bf16.vlgmr.msra.gmra.mxu1 %v16864_v54  ;;  %11082 = vmatpush2.bf16.msra.mxu0 %v14634_v61  ;;  %v14683_v30 = vcombine.high %v1346_v10, %v1350_v14  ;;  %v14674_v61 = vcombine.low %v1338_v34, %v1342_v48  ;;  %v1326_v6 = vld [vmem:[%s16552_s27 + $0x18a8] sm:$0xff] }
 0x2fb   : > { %11107 = vmatpush1.bf16.msra.mxu1 %v14698_v20  ;;  %v10773_v21 = vpop.f32.mrf.mxu0  ;;  %11083 = vmatprep.subr.bf16.mxu0 %v14627_v62  ;;  %v14603_v20 = vcombine.high %v1266_v7, %v1270_v51  ;;  %v14667_v62 = vcombine.high %v1330_v53, %v1334_v57  ;;  %v14602_v10 = vcombine.low %v1266_v7, %v1270_v51  ;;  %v1306_v34 = vld [vmem:[%s16552_s27 + $0x1808] sm:$0xff] }
 0x2fc   : > { %v17383_v27 = vadd.f32 %v10812_v17, %v10772_v15  ;;  %v10774_v22 = vadd.f32 %v10773_v21, %v17317_v28  ;;  %v10814_v31 = vpop.f32.mrf.mxu1  ;;  %11108 = vmatprep.subr.bf16.mxu1 %v14691_v0  ;;  %11138 = vmatprep.mubr.bf16.mxu1 %v16871_v1  ;;  %v1258_v0 = vld [vmem:[%s16552_s27 + $0x1688] sm:$0xff]  ;;  %v14666_v14 = vcombine.low %v1330_v53, %v1334_v57 }
 0x2fd   : > { %v10775_v37 = vpop.f32.mrf.mxu0  ;;  %v14595_v15 = vcombine.high %v1258_v0, %v1262_v2  ;;  %v14659_v17 = vcombine.high %v1322_v56, %v1326_v6  ;;  %v1254_v21 = vld [vmem:[%s16552_s27 + $0x1668] sm:$0xff] }
 0x2fe   : > { %v17391_v39 = vadd.f32 %v10814_v31, %v10774_v22  ;;  %v10816_v40 = vpop.f32.mrf.mxu1  ;;  %11084 = vmatpush2.bf16.msra.mxu0 %v14626_v19  ;;  %v1250_v19 = vld [vmem:[%s16552_s27 + $0x1648] sm:$0xff]  ;;  %v14594_v22 = vcombine.low %v1258_v0, %v1262_v2  ;;  %v14658_v31 = vcombine.low %v1322_v56, %v1326_v6 }
 0x2ff   : > { %11109 = vmatpush1.bf16.msra.mxu1 %v14690_v24  ;;  %v10776_v28 = vpop.f32.mrf.mxu0  ;;  %11085 = vmatprep.subr.bf16.mxu0 %v14619_v26  ;;  %v1314_v24 = vld [vmem:[%s16552_s27 + $0x1848] sm:$0xff]  ;;  %v14586_v40 = vcombine.low %v1250_v19, %v1254_v21 }
 0x300   : > { %v10817_v50 = vpop.f32.mrf.mxu1  ;;  %11110 = vmatprep.subr.bf16.mxu1 %v14683_v30  ;;  %v1318_v26 = vld [vmem:[%s16552_s27 + $0x1868] sm:$0xff]  ;;  %v14587_v30 = vcombine.high %v1250_v19, %v1254_v21 }
 0x301   : > { %v14651_v35 = vcombine.high %v1314_v24, %v1318_v26  ;;  %v1246_v37 = vld [vmem:[%s16552_s27 + $0x1628] sm:$0xff] }
 0x302   : > { %11086 = vmatpush2.bf16.msra.mxu0 %v14618_v45  ;;  %v1310_v48 = vld [vmem:[%s16552_s27 + $0x1828] sm:$0xff]  ;;  %v14650_v45 = vcombine.low %v1314_v24, %v1318_v26  ;;  %v14579_v28 = vcombine.high %v1242_v33, %v1246_v37  ;;  %v14578_v51 = vcombine.low %v1242_v33, %v1246_v37 }
 0x303   : > { %11111 = vmatpush1.bf16.msra.mxu1 %v14682_v60  ;;  %11087 = vmatprep.subr.bf16.mxu0 %v14611_v47  ;;  %v14643_v60 = vcombine.high %v1306_v34, %v1310_v48  ;;  %v1490_v47 = vld [vmem:[%s16552_s27 + $0x1dc8] sm:$0xff]  ;;  %v14642_v53 = vcombine.low %v1306_v34, %v1310_v48 }
 0x304   : > { %11112 = vmatprep.subr.bf16.mxu1 %v14675_v49  ;;  %v1494_v50 = vld [vmem:[%s16552_s27 + $0x1de8] sm:$0xff] }
 0x305   : > { %v1426_v49 = vld [vmem:[%s16552_s27 + $0x1bc8] sm:$0xff]  ;;  %v14827_v57 = vcombine.high %v1490_v47, %v1494_v50  ;;  %v14826_v2 = vcombine.low %v1490_v47, %v1494_v50 }
 0x306   : > { %11088 = vmatpush2.bf16.msra.mxu0 %v14610_v59  ;;  %v1430_v7 = vld [vmem:[%s16552_s27 + $0x1be8] sm:$0xff] }
 0x307   : > { %11113 = vmatpush1.bf16.msra.mxu1 %v14674_v61  ;;  %11089 = vmatprep.subr.bf16.mxu0 %v14603_v20  ;;  %v14763_v59 = vcombine.high %v1426_v49, %v1430_v7  ;;  %v1482_v61 = vld [vmem:[%s16552_s27 + $0x1d88] sm:$0xff]  ;;  %v14762_v56 = vcombine.low %v1426_v49, %v1430_v7 }
 0x308   : > { %11114 = vmatprep.subr.bf16.mxu1 %v14667_v62  ;;  %v1486_v20 = vld [vmem:[%s16552_s27 + $0x1da8] sm:$0xff] }
 0x309   : > { %v1418_v62 = vld [vmem:[%s16552_s27 + $0x1b88] sm:$0xff]  ;;  %v14819_v6 = vcombine.high %v1482_v61, %v1486_v20  ;;  %v14818_v26 = vcombine.low %v1482_v61, %v1486_v20 }
 0x30a   : > { %11090 = vmatpush2.bf16.msra.mxu0 %v14602_v10  ;;  %v1422_v0 = vld [vmem:[%s16552_s27 + $0x1ba8] sm:$0xff] }
 0x30b   : > { %11115 = vmatpush1.bf16.msra.mxu1 %v14666_v14  ;;  %11091 = vmatprep.subr.bf16.mxu0 %v14595_v15  ;;  %v14755_v10 = vcombine.high %v1418_v62, %v1422_v0  ;;  %v1474_v14 = vld [vmem:[%s16552_s27 + $0x1d48] sm:$0xff] }
 0x30c   : > { %11116 = vmatprep.subr.bf16.mxu1 %v14659_v17  ;;  %v1478_v15 = vld [vmem:[%s16552_s27 + $0x1d68] sm:$0xff] }
 0x30d   : > { %v1410_v19 = vld [vmem:[%s16552_s27 + $0x1b48] sm:$0xff] }
 0x30e   : > { %11092 = vmatpush2.bf16.msra.mxu0 %v14594_v22  ;;  %v1414_v21 = vld [vmem:[%s16552_s27 + $0x1b68] sm:$0xff] }
 0x30f   : > { %11117 = vmatpush1.bf16.msra.mxu1 %v14658_v31  ;;  %11093 = vmatprep.subr.bf16.mxu0 %v14587_v30  ;;  %v14754_v31 = vcombine.low %v1418_v62, %v1422_v0  ;;  %v14811_v30 = vcombine.high %v1474_v14, %v1478_v15  ;;  %v14747_v33 = vcombine.high %v1410_v19, %v1414_v21  ;;  %v1466_v37 = vld [vmem:[%s16552_s27 + $0x1d08] sm:$0xff] }
 0x310   : > { %11118 = vmatprep.subr.bf16.mxu1 %v14651_v35  ;;  %v1402_v48 = vld [vmem:[%s16552_s27 + $0x1b08] sm:$0xff] }
 0x311   : > { %v1458_v49 = vld [vmem:[%s16552_s27 + $0x1cc8] sm:$0xff] }
 0x312   : > { %11094 = vmatpush2.bf16.msra.mxu0 %v14586_v40  ;;  %v1406_v40 = vld [vmem:[%s16552_s27 + $0x1b28] sm:$0xff] }
 0x313   : > { %11119 = vmatpush1.bf16.msra.mxu1 %v14650_v45  ;;  %11095 = vmatprep.subr.bf16.mxu0 %v14579_v28  ;;  %v14810_v28 = vcombine.low %v1474_v14, %v1478_v15  ;;  %v14739_v50 = vcombine.high %v1402_v48, %v1406_v40  ;;  %v1462_v7 = vld [vmem:[%s16552_s27 + $0x1ce8] sm:$0xff] }
 0x314   : > { %11120 = vmatprep.subr.bf16.mxu1 %v14643_v60  ;;  %v14795_v61 = vcombine.high %v1458_v49, %v1462_v7  ;;  %v1450_v62 = vld [vmem:[%s16552_s27 + $0x1c88] sm:$0xff] }
 0x315   : > { %v1454_v0 = vld [vmem:[%s16552_s27 + $0x1ca8] sm:$0xff] }
 0x316   : > { %11096 = vmatpush2.bf16.msra.mxu0 %v14578_v51  ;;  %v1394_v51 = vld [vmem:[%s16552_s27 + $0x1ac8] sm:$0xff]  ;;  %v14787_v14 = vcombine.high %v1450_v62, %v1454_v0 }
 0x317   : > { %11121 = vmatpush1.bf16.msra.mxu1 %v14642_v53  ;;  %11147 = vmatprep.subr.bf16.mxu0 %v14827_v57  ;;  %v1398_v53 = vld [vmem:[%s16552_s27 + $0x1ae8] sm:$0xff] }
 0x318   : > { %11122 = vmatprep.subr.bf16.mxu1 %v14763_v59  ;;  %v14738_v59 = vcombine.low %v1402_v48, %v1406_v40  ;;  %v14731_v20 = vcombine.high %v1394_v51, %v1398_v53  ;;  %v1374_v48 = vld [vmem:[%s16552_s27 + $0x1a28] sm:$0xff] }
 0x319   : > { %v10853_v17 = vpop.f32.mrf.mxu0  ;;  %11098 = vmatmul.mubr.bf16.vlgmr.msra.gmra.mxu0 %v16875_v3 }
 0x31a   : > { %v17423_v24 = vadd.f32 %v10853_v17, %v17383_v27  ;;  %11148 = vmatpush1.bf16.msra.mxu0 %v14826_v2  ;;  %11179 = vmatprep.mubr.bf16.mxu0 %v16884_v12  ;;  %v1470_v27 = vld [vmem:[%s16552_s27 + $0x1d28] sm:$0xff] }
 0x31b   : > { %11123 = vmatpush2.bf16.msra.mxu1 %v14762_v56  ;;  %v10855_v22 = vpop.f32.mrf.mxu0  ;;  %11149 = vmatprep.subr.bf16.mxu0 %v14819_v6  ;;  %v14803_v47 = vcombine.high %v1466_v37, %v1470_v27  ;;  %v14802_v57 = vcombine.low %v1466_v37, %v1470_v27  ;;  %v1386_v2 = vld [vmem:[%s16552_s27 + $0x1a88] sm:$0xff]  ;;  %v14794_v6 = vcombine.low %v1458_v49, %v1462_v7 }
 0x31c   : > { %v17427_v35 = vadd.f32 %v10855_v22, %v17391_v39  ;;  %11124 = vmatprep.subr.bf16.mxu1 %v14755_v10  ;;  %v14746_v39 = vcombine.low %v1410_v19, %v1414_v21  ;;  %v1390_v56 = vld [vmem:[%s16552_s27 + $0x1aa8] sm:$0xff]  ;;  %v14730_v10 = vcombine.low %v1394_v51, %v1398_v53  ;;  %v14786_v22 = vcombine.low %v1450_v62, %v1454_v0 }
 0x31d   : > { %v10857_v34 = vpop.f32.mrf.mxu0  ;;  %v14723_v15 = vcombine.high %v1386_v2, %v1390_v56  ;;  %v1442_v17 = vld [vmem:[%s16552_s27 + $0x1c48] sm:$0xff] }
 0x31e   : > { %v12467_v45 = vcombine.low %v17423_v24, %v17427_v35  ;;  %11150 = vmatpush1.bf16.msra.mxu0 %v14818_v26  ;;  %v1446_v19 = vld [vmem:[%s16552_s27 + $0x1c68] sm:$0xff]  ;;  %v1451_v24 = vld [vmem:[%s16552_s27 + $0x1c90] sm:$0xff] }
 0x31f   : > { %11125 = vmatpush2.bf16.msra.mxu1 %v14754_v31  ;;  %v10858_v60 = vpop.f32.mrf.mxu0  ;;  %11151 = vmatprep.subr.bf16.mxu0 %v14811_v30  ;;  %v1378_v21 = vld [vmem:[%s16552_s27 + $0x1a48] sm:$0xff]  ;;  %v14722_v31 = vcombine.low %v1386_v2, %v1390_v56  ;;  %v14779_v30 = vcombine.high %v1442_v17, %v1446_v19  ;;  %v14778_v40 = vcombine.low %v1442_v17, %v1446_v19  ;;  %v1455_v35 = vld [vmem:[%s16552_s27 + $0x1cb0] sm:$0xff] }
 0x320   : > { %11126 = vmatprep.subr.bf16.mxu1 %v14747_v33  ;;  %v1382_v26 = vld [vmem:[%s16552_s27 + $0x1a68] sm:$0xff] }
 0x321   : > { %v14715_v33 = vcombine.high %v1378_v21, %v1382_v26  ;;  %v1434_v37 = vld [vmem:[%s16552_s27 + $0x1c08] sm:$0xff] }
 0x322   : > { %11152 = vmatpush1.bf16.msra.mxu0 %v14810_v28  ;;  %v1438_v27 = vld [vmem:[%s16552_s27 + $0x1c28] sm:$0xff]  ;;  %v14714_v28 = vcombine.low %v1378_v21, %v1382_v26 }
 0x323   : > { %11127 = vmatpush2.bf16.msra.mxu1 %v14746_v39  ;;  %11153 = vmatprep.subr.bf16.mxu0 %v14803_v47  ;;  %v1370_v34 = vld [vmem:[%s16552_s27 + $0x1a08] sm:$0xff]  ;;  %v14771_v60 = vcombine.high %v1434_v37, %v1438_v27  ;;  %v14770_v51 = vcombine.low %v1434_v37, %v1438_v27 }
 0x324   : > { %11128 = vmatprep.subr.bf16.mxu1 %v14739_v50  ;;  %v14707_v39 = vcombine.high %v1370_v34, %v1374_v48  ;;  %v1554_v47 = vld [vmem:[%s16552_s27 + $0x1fc8] sm:$0xff]  ;;  %v14706_v53 = vcombine.low %v1370_v34, %v1374_v48 }
 0x325   : > { %v1558_v50 = vld [vmem:[%s16552_s27 + $0x1fe8] sm:$0xff] }
 0x326   : > { %11154 = vmatpush1.bf16.msra.mxu0 %v14802_v57  ;;  %v1618_v49 = vld [vmem:[%s16552_s27 + $0x21c8] sm:$0xff]  ;;  %v14891_v57 = vcombine.high %v1554_v47, %v1558_v50  ;;  %v14890_v2 = vcombine.low %v1554_v47, %v1558_v50 }
 0x327   : > { %11129 = vmatpush2.bf16.msra.mxu1 %v14738_v59  ;;  %11155 = vmatprep.subr.bf16.mxu0 %v14795_v61  ;;  %v1622_v7 = vld [vmem:[%s16552_s27 + $0x21e8] sm:$0xff] }
 0x328   : > { %11130 = vmatprep.subr.bf16.mxu1 %v14731_v20  ;;  %v14955_v59 = vcombine.high %v1618_v49, %v1622_v7  ;;  %v1546_v61 = vld [vmem:[%s16552_s27 + $0x1f88] sm:$0xff]  ;;  %v14954_v56 = vcombine.low %v1618_v49, %v1622_v7 }
 0x329   : > { %v1550_v20 = vld [vmem:[%s16552_s27 + $0x1fa8] sm:$0xff] }
 0x32a   : > { %11156 = vmatpush1.bf16.msra.mxu0 %v14794_v6  ;;  %v1610_v62 = vld [vmem:[%s16552_s27 + $0x2188] sm:$0xff]  ;;  %v14883_v6 = vcombine.high %v1546_v61, %v1550_v20  ;;  %v14882_v26 = vcombine.low %v1546_v61, %v1550_v20 }
 0x32b   : > { %11131 = vmatpush2.bf16.msra.mxu1 %v14730_v10  ;;  %11157 = vmatprep.subr.bf16.mxu0 %v14787_v14  ;;  %v1614_v0 = vld [vmem:[%s16552_s27 + $0x21a8] sm:$0xff] }
 0x32c   : > { %11132 = vmatprep.subr.bf16.mxu1 %v14723_v15  ;;  %v14947_v10 = vcombine.high %v1610_v62, %v1614_v0  ;;  %v1538_v14 = vld [vmem:[%s16552_s27 + $0x1f48] sm:$0xff] }
 0x32d   : > { %v1542_v15 = vld [vmem:[%s16552_s27 + $0x1f68] sm:$0xff] }
 0x32e   : > { %11158 = vmatpush1.bf16.msra.mxu0 %v14786_v22  ;;  %v1602_v17 = vld [vmem:[%s16552_s27 + $0x2148] sm:$0xff]  ;;  %v14946_v22 = vcombine.low %v1610_v62, %v1614_v0 }
 0x32f   : > { %11133 = vmatpush2.bf16.msra.mxu1 %v14722_v31  ;;  %11159 = vmatprep.subr.bf16.mxu0 %v14779_v30  ;;  %v1606_v19 = vld [vmem:[%s16552_s27 + $0x2168] sm:$0xff]  ;;  %v14875_v31 = vcombine.high %v1538_v14, %v1542_v15 }
 0x330   : > { %11134 = vmatprep.subr.bf16.mxu1 %v14715_v33  ;;  %v14939_v33 = vcombine.high %v1602_v17, %v1606_v19  ;;  %v1530_v37 = vld [vmem:[%s16552_s27 + $0x1f08] sm:$0xff] }
 0x331   : > { %v1534_v27 = vld [vmem:[%s16552_s27 + $0x1f28] sm:$0xff] }
 0x332   : > { %11160 = vmatpush1.bf16.msra.mxu0 %v14778_v40  ;;  %v1594_v34 = vld [vmem:[%s16552_s27 + $0x2108] sm:$0xff] }
 0x333   : > { %11135 = vmatpush2.bf16.msra.mxu1 %v14714_v28  ;;  %11161 = vmatprep.subr.bf16.mxu0 %v14771_v60  ;;  %v1598_v48 = vld [vmem:[%s16552_s27 + $0x2128] sm:$0xff]  ;;  %v14874_v28 = vcombine.low %v1538_v14, %v1542_v15  ;;  %v14938_v60 = vcombine.low %v1602_v17, %v1606_v19 }
 0x334   : > { %11136 = vmatprep.subr.bf16.mxu1 %v14707_v39  ;;  %v14867_v39 = vcombine.high %v1530_v37, %v1534_v27  ;;  %v14931_v50 = vcombine.high %v1594_v34, %v1598_v48  ;;  %v1522_v49 = vld [vmem:[%s16552_s27 + $0x1ec8] sm:$0xff] }
 0x335   : > { %v1526_v7 = vld [vmem:[%s16552_s27 + $0x1ee8] sm:$0xff] }
 0x336   : > { %11162 = vmatpush1.bf16.msra.mxu0 %v14770_v51  ;;  %v1586_v51 = vld [vmem:[%s16552_s27 + $0x20c8] sm:$0xff]  ;;  %v14859_v61 = vcombine.high %v1522_v49, %v1526_v7 }
 0x337   : > { %11137 = vmatpush2.bf16.msra.mxu1 %v14706_v53  ;;  %11163 = vmatprep.subr.bf16.mxu0 %v14891_v57  ;;  %v1590_v53 = vld [vmem:[%s16552_s27 + $0x20e8] sm:$0xff]  ;;  %v14866_v57 = vcombine.low %v1530_v37, %v1534_v27 }
 0x338   : > { %11188 = vmatprep.subr.bf16.mxu1 %v14955_v59  ;;  %v14930_v59 = vcombine.low %v1594_v34, %v1598_v48  ;;  %v14923_v20 = vcombine.high %v1586_v51, %v1590_v53  ;;  %v1514_v62 = vld [vmem:[%s16552_s27 + $0x1e88] sm:$0xff] }
 0x339   : > { %v1518_v0 = vld [vmem:[%s16552_s27 + $0x1ea8] sm:$0xff] }
 0x33a   : > { %v17463_v21 = vpop.f32.mrf.mxu1  ;;  %11139 = vmatmul.mubr.bf16.vlgmr.msra.gmra.mxu1 %v16956_v58  ;;  %11164 = vmatpush2.bf16.msra.mxu0 %v14890_v2  ;;  %v1578_v2 = vld [vmem:[%s16552_s27 + $0x2088] sm:$0xff]  ;;  %v14851_v14 = vcombine.high %v1514_v62, %v1518_v0 }
 0x33b   : > { %11189 = vmatpush1.bf16.msra.mxu1 %v14954_v56  ;;  %11165 = vmatprep.subr.bf16.mxu0 %v14883_v6  ;;  %v1582_v56 = vld [vmem:[%s16552_s27 + $0x20a8] sm:$0xff]  ;;  %v14858_v6 = vcombine.low %v1522_v49, %v1526_v7 }
 0x33c   : > { %v17466_v30 = vpop.f32.mrf.mxu1  ;;  %11190 = vmatprep.subr.bf16.mxu1 %v14947_v10  ;;  %11220 = vmatprep.mubr.bf16.mxu1 %v16963_v52  ;;  %v14922_v10 = vcombine.low %v1586_v51, %v1590_v53  ;;  %v14915_v15 = vcombine.high %v1578_v2, %v1582_v56  ;;  %v1506_v17 = vld [vmem:[%s16552_s27 + $0x1e48] sm:$0xff] }
 0x33d   : > { %v1510_v19 = vld [vmem:[%s16552_s27 + $0x1e68] sm:$0xff] }
 0x33e   : > { %v10898_v40 = vpop.f32.mrf.mxu1  ;;  %11166 = vmatpush2.bf16.msra.mxu0 %v14882_v26  ;;  %v1570_v26 = vld [vmem:[%s16552_s27 + $0x2048] sm:$0xff]  ;;  %v14843_v37 = vcombine.high %v1506_v17, %v1510_v19 }
 0x33f   : > { %11191 = vmatpush1.bf16.msra.mxu1 %v14946_v22  ;;  %11167 = vmatprep.subr.bf16.mxu0 %v14875_v31  ;;  %v1574_v22 = vld [vmem:[%s16552_s27 + $0x2068] sm:$0xff]  ;;  %v14850_v31 = vcombine.low %v1514_v62, %v1518_v0 }
 0x340   : > { %v10899_v47 = vpop.f32.mrf.mxu1  ;;  %11192 = vmatprep.subr.bf16.mxu1 %v14939_v33  ;;  %v14914_v33 = vcombine.low %v1578_v2, %v1582_v56  ;;  %v14907_v27 = vcombine.high %v1570_v26, %v1574_v22  ;;  %v1498_v34 = vld [vmem:[%s16552_s27 + $0x1e08] sm:$0xff] }
 0x341   : > { %v1502_v48 = vld [vmem:[%s16552_s27 + $0x1e28] sm:$0xff] }
 0x342   : > { %11168 = vmatpush2.bf16.msra.mxu0 %v14874_v28  ;;  %v1562_v40 = vld [vmem:[%s16552_s27 + $0x2008] sm:$0xff]  ;;  %v14835_v47 = vcombine.high %v1498_v34, %v1502_v48 }
 0x343   : > { %11193 = vmatpush1.bf16.msra.mxu1 %v14938_v60  ;;  %11169 = vmatprep.subr.bf16.mxu0 %v14867_v39  ;;  %v1566_v28 = vld [vmem:[%s16552_s27 + $0x2028] sm:$0xff]  ;;  %v14842_v60 = vcombine.low %v1506_v17, %v1510_v19  ;;  %v14906_v39 = vcombine.low %v1570_v26, %v1574_v22 }
 0x344   : > { %11194 = vmatprep.subr.bf16.mxu1 %v14931_v50  ;;  %v14899_v50 = vcombine.high %v1562_v40, %v1566_v28  ;;  %v1746_v49 = vld [vmem:[%s16552_s27 + $0x25c8] sm:$0xff] }
 0x345   : > { %v1750_v7 = vld [vmem:[%s16552_s27 + $0x25e8] sm:$0xff] }
 0x346   : > { %11170 = vmatpush2.bf16.msra.mxu0 %v14866_v57  ;;  %v1682_v51 = vld [vmem:[%s16552_s27 + $0x23c8] sm:$0xff]  ;;  %v14834_v57 = vcombine.low %v1498_v34, %v1502_v48 }
 0x347   : > { %11195 = vmatpush1.bf16.msra.mxu1 %v14930_v59  ;;  %11171 = vmatprep.subr.bf16.mxu0 %v14859_v61  ;;  %v1686_v53 = vld [vmem:[%s16552_s27 + $0x23e8] sm:$0xff]  ;;  %v14898_v59 = vcombine.low %v1562_v40, %v1566_v28  ;;  %v15083_v61 = vcombine.high %v1746_v49, %v1750_v7 }
 0x348   : > { %11196 = vmatprep.subr.bf16.mxu1 %v14923_v20  ;;  %v15019_v20 = vcombine.high %v1682_v51, %v1686_v53  ;;  %v1738_v62 = vld [vmem:[%s16552_s27 + $0x2588] sm:$0xff] }
 0x349   : > { %v1742_v0 = vld [vmem:[%s16552_s27 + $0x25a8] sm:$0xff] }
 0x34a   : > { %11172 = vmatpush2.bf16.msra.mxu0 %v14858_v6  ;;  %v1674_v2 = vld [vmem:[%s16552_s27 + $0x2388] sm:$0xff]  ;;  %v15082_v6 = vcombine.low %v1746_v49, %v1750_v7 }
 0x34b   : > { %11197 = vmatpush1.bf16.msra.mxu1 %v14922_v10  ;;  %11173 = vmatprep.subr.bf16.mxu0 %v14851_v14  ;;  %v1678_v56 = vld [vmem:[%s16552_s27 + $0x23a8] sm:$0xff]  ;;  %v15018_v10 = vcombine.low %v1682_v51, %v1686_v53  ;;  %v15075_v14 = vcombine.high %v1738_v62, %v1742_v0 }
 0x34c   : > { %11198 = vmatprep.subr.bf16.mxu1 %v14915_v15  ;;  %v15011_v15 = vcombine.high %v1674_v2, %v1678_v56  ;;  %v1730_v17 = vld [vmem:[%s16552_s27 + $0x2548] sm:$0xff]  ;;  %v15010_v34 = vcombine.low %v1674_v2, %v1678_v56 }
 0x34d   : > { %v1734_v19 = vld [vmem:[%s16552_s27 + $0x2568] sm:$0xff] }
 0x34e   : > { %11174 = vmatpush2.bf16.msra.mxu0 %v14850_v31  ;;  %v1666_v22 = vld [vmem:[%s16552_s27 + $0x2348] sm:$0xff]  ;;  %v15067_v48 = vcombine.high %v1730_v17, %v1734_v19  ;;  %v15066_v49 = vcombine.low %v1730_v17, %v1734_v19 }
 0x34f   : > { %11199 = vmatpush1.bf16.msra.mxu1 %v14914_v33  ;;  %11175 = vmatprep.subr.bf16.mxu0 %v14843_v37  ;;  %v1670_v31 = vld [vmem:[%s16552_s27 + $0x2368] sm:$0xff]  ;;  %v15074_v37 = vcombine.low %v1738_v62, %v1742_v0 }
 0x350   : > { %11200 = vmatprep.subr.bf16.mxu1 %v14907_v27  ;;  %v15003_v28 = vcombine.high %v1666_v22, %v1670_v31  ;;  %v15002_v51 = vcombine.low %v1666_v22, %v1670_v31  ;;  %v1698_v31 = vld [vmem:[%s16552_s27 + $0x2448] sm:$0xff] }
 0x352   : > { %11176 = vmatpush2.bf16.msra.mxu0 %v14842_v60  ;;  %v1722_v60 = vld [vmem:[%s16552_s27 + $0x2508] sm:$0xff] }
 0x353   : > { %11201 = vmatpush1.bf16.msra.mxu1 %v14906_v39  ;;  %11177 = vmatprep.subr.bf16.mxu0 %v14835_v47  ;;  %v1658_v47 = vld [vmem:[%s16552_s27 + $0x2308] sm:$0xff] }
 0x354   : > { %11202 = vmatprep.subr.bf16.mxu1 %v14899_v50  ;;  %v1662_v50 = vld [vmem:[%s16552_s27 + $0x2328] sm:$0xff] }
 0x355   : > { %v14995_v53 = vcombine.high %v1658_v47, %v1662_v50  ;;  %v14994_v0 = vcombine.low %v1658_v47, %v1662_v50  ;;  %v1694_v47 = vld [vmem:[%s16552_s27 + $0x2428] sm:$0xff] }
 0x356   : > { %11178 = vmatpush2.bf16.msra.mxu0 %v14834_v57  ;;  %v1714_v57 = vld [vmem:[%s16552_s27 + $0x24c8] sm:$0xff] }
 0x357   : > { %11203 = vmatpush1.bf16.msra.mxu1 %v14898_v59  ;;  %11229 = vmatprep.subr.bf16.mxu0 %v15083_v61  ;;  %v1718_v59 = vld [vmem:[%s16552_s27 + $0x24e8] sm:$0xff] }
 0x358   : > { %11204 = vmatprep.subr.bf16.mxu1 %v15019_v20  ;;  %v1650_v61 = vld [vmem:[%s16552_s27 + $0x22c8] sm:$0xff]  ;;  %v15051_v2 = vcombine.high %v1714_v57, %v1718_v59  ;;  %v15050_v17 = vcombine.low %v1714_v57, %v1718_v59 }
 0x359   : > { %v10935_v26 = vpop.f32.mrf.mxu0  ;;  %11180 = vmatmul.mubr.bf16.vlgmr.msra.gmra.mxu0 %v16967_v43  ;;  %v1654_v20 = vld [vmem:[%s16552_s27 + $0x22e8] sm:$0xff] }
 0x35a   : > { %v17503_v33 = vadd.f32 %v10935_v26, %v17463_v21  ;;  %11230 = vmatpush1.bf16.msra.mxu0 %v15082_v6  ;;  %11261 = vmatprep.mubr.bf16.mxu0 %v16976_v4  ;;  %v1726_v21 = vld [vmem:[%s16552_s27 + $0x2528] sm:$0xff]  ;;  %v14987_v56 = vcombine.high %v1650_v61, %v1654_v20  ;;  %v14986_v19 = vcombine.low %v1650_v61, %v1654_v20 }
 0x35b   : > { %11205 = vmatpush2.bf16.msra.mxu1 %v15018_v10  ;;  %v10937_v27 = vpop.f32.mrf.mxu0  ;;  %11231 = vmatprep.subr.bf16.mxu0 %v15075_v14  ;;  %v15058_v62 = vcombine.low %v1722_v60, %v1726_v21  ;;  %v1706_v6 = vld [vmem:[%s16552_s27 + $0x2488] sm:$0xff] }
 0x35c   : > { %v17507_v40 = vadd.f32 %v10937_v27, %v17466_v30  ;;  %11206 = vmatprep.subr.bf16.mxu1 %v15011_v15  ;;  %v15059_v30 = vcombine.high %v1722_v60, %v1726_v21  ;;  %v1710_v10 = vld [vmem:[%s16552_s27 + $0x24a8] sm:$0xff] }
 0x35d   : > { %v10939_v39 = vpop.f32.mrf.mxu0  ;;  %v1642_v14 = vld [vmem:[%s16552_s27 + $0x2288] sm:$0xff]  ;;  %v15043_v26 = vcombine.high %v1706_v6, %v1710_v10 }
 0x35e   : > { %11232 = vmatpush1.bf16.msra.mxu0 %v15074_v37  ;;  %v1646_v15 = vld [vmem:[%s16552_s27 + $0x22a8] sm:$0xff] }
 0x35f   : > { %11207 = vmatpush2.bf16.msra.mxu1 %v15010_v34  ;;  %v10940_v7 = vpop.f32.mrf.mxu0  ;;  %11233 = vmatprep.subr.bf16.mxu0 %v15067_v48  ;;  %v14979_v22 = vcombine.high %v1642_v14, %v1646_v15  ;;  %v1702_v37 = vld [vmem:[%s16552_s27 + $0x2468] sm:$0xff]  ;;  %v15042_v48 = vcombine.low %v1706_v6, %v1710_v10 }
 0x360   : > { %11208 = vmatprep.subr.bf16.mxu1 %v15003_v28  ;;  %v1634_v27 = vld [vmem:[%s16552_s27 + $0x2248] sm:$0xff]  ;;  %v14978_v28 = vcombine.low %v1642_v14, %v1646_v15  ;;  %v15035_v60 = vcombine.high %v1698_v31, %v1702_v37  ;;  %v15034_v7 = vcombine.low %v1698_v31, %v1702_v37 }
 0x361   : > { %v1638_v34 = vld [vmem:[%s16552_s27 + $0x2268] sm:$0xff] }
 0x362   : > { %11234 = vmatpush1.bf16.msra.mxu0 %v15066_v49  ;;  %v14971_v21 = vcombine.high %v1634_v27, %v1638_v34  ;;  %v1690_v39 = vld [vmem:[%s16552_s27 + $0x2408] sm:$0xff] }
 0x363   : > { %11209 = vmatpush2.bf16.msra.mxu1 %v15002_v51  ;;  %11235 = vmatprep.subr.bf16.mxu0 %v15059_v30  ;;  %v1626_v50 = vld [vmem:[%s16552_s27 + $0x2208] sm:$0xff]  ;;  %v14970_v51 = vcombine.low %v1634_v27, %v1638_v34  ;;  %v15027_v30 = vcombine.high %v1690_v39, %v1694_v47 }
 0x364   : > { %11210 = vmatprep.subr.bf16.mxu1 %v14995_v53  ;;  %v1630_v49 = vld [vmem:[%s16552_s27 + $0x2228] sm:$0xff] }
 0x365   : > { %v14963_v53 = vcombine.high %v1626_v50, %v1630_v49  ;;  %v1810_v57 = vld [vmem:[%s16552_s27 + $0x27c8] sm:$0xff] }
 0x366   : > { %11236 = vmatpush1.bf16.msra.mxu0 %v15058_v62  ;;  %v1814_v59 = vld [vmem:[%s16552_s27 + $0x27e8] sm:$0xff]  ;;  %v15026_v62 = vcombine.low %v1690_v39, %v1694_v47 }
 0x367   : > { %11211 = vmatpush2.bf16.msra.mxu1 %v14994_v0  ;;  %11237 = vmatprep.subr.bf16.mxu0 %v15051_v2  ;;  %v1874_v61 = vld [vmem:[%s16552_s27 + $0x29c8] sm:$0xff]  ;;  %v14962_v0 = vcombine.low %v1626_v50, %v1630_v49  ;;  %v15147_v2 = vcombine.high %v1810_v57, %v1814_v59 }
 0x368   : > { %11212 = vmatprep.subr.bf16.mxu1 %v14987_v56  ;;  %v1878_v20 = vld [vmem:[%s16552_s27 + $0x29e8] sm:$0xff] }
 0x369   : > { %v15211_v56 = vcombine.high %v1874_v61, %v1878_v20  ;;  %v1802_v6 = vld [vmem:[%s16552_s27 + $0x2788] sm:$0xff] }
 0x36a   : > { %11238 = vmatpush1.bf16.msra.mxu0 %v15050_v17  ;;  %v1806_v10 = vld [vmem:[%s16552_s27 + $0x27a8] sm:$0xff]  ;;  %v15146_v17 = vcombine.low %v1810_v57, %v1814_v59 }
 0x36b   : > { %11213 = vmatpush2.bf16.msra.mxu1 %v14986_v19  ;;  %11239 = vmatprep.subr.bf16.mxu0 %v15043_v26  ;;  %v1866_v14 = vld [vmem:[%s16552_s27 + $0x2988] sm:$0xff]  ;;  %v15210_v19 = vcombine.low %v1874_v61, %v1878_v20  ;;  %v15139_v26 = vcombine.high %v1802_v6, %v1806_v10 }
 0x36c   : > { %11214 = vmatprep.subr.bf16.mxu1 %v14979_v22  ;;  %v1870_v15 = vld [vmem:[%s16552_s27 + $0x29a8] sm:$0xff] }
 0x36d   : > { %v15203_v22 = vcombine.high %v1866_v14, %v1870_v15  ;;  %v1794_v31 = vld [vmem:[%s16552_s27 + $0x2748] sm:$0xff] }
 0x36e   : > { %11240 = vmatpush1.bf16.msra.mxu0 %v15042_v48  ;;  %v1798_v37 = vld [vmem:[%s16552_s27 + $0x2768] sm:$0xff] }
 0x36f   : > { %11215 = vmatpush2.bf16.msra.mxu1 %v14978_v28  ;;  %11241 = vmatprep.subr.bf16.mxu0 %v15035_v60  ;;  %v1858_v27 = vld [vmem:[%s16552_s27 + $0x2948] sm:$0xff]  ;;  %v15138_v28 = vcombine.low %v1802_v6, %v1806_v10  ;;  %v15131_v39 = vcombine.high %v1794_v31, %v1798_v37  ;;  %v15130_v57 = vcombine.low %v1794_v31, %v1798_v37 }
 0x370   : > { %11216 = vmatprep.subr.bf16.mxu1 %v14971_v21  ;;  %v1862_v34 = vld [vmem:[%s16552_s27 + $0x2968] sm:$0xff]  ;;  %v15202_v21 = vcombine.low %v1866_v14, %v1870_v15 }
 0x371   : > { %v15195_v50 = vcombine.high %v1858_v27, %v1862_v34  ;;  %v1786_v49 = vld [vmem:[%s16552_s27 + $0x2708] sm:$0xff]  ;;  %v15194_v59 = vcombine.low %v1858_v27, %v1862_v34 }
 0x372   : > { %11242 = vmatpush1.bf16.msra.mxu0 %v15034_v7  ;;  %v1790_v7 = vld [vmem:[%s16552_s27 + $0x2728] sm:$0xff] }
 0x373   : > { %11217 = vmatpush2.bf16.msra.mxu1 %v14970_v51  ;;  %11243 = vmatprep.subr.bf16.mxu0 %v15027_v30  ;;  %v1854_v30 = vld [vmem:[%s16552_s27 + $0x2928] sm:$0xff]  ;;  %v15123_v61 = vcombine.high %v1786_v49, %v1790_v7  ;;  %v15122_v6 = vcombine.low %v1786_v49, %v1790_v7 }
 0x374   : > { %11218 = vmatprep.subr.bf16.mxu1 %v14963_v53 }
 0x376   : > { %11244 = vmatpush1.bf16.msra.mxu0 %v15026_v62 }
 0x377   : > { %11219 = vmatpush2.bf16.msra.mxu1 %v14962_v0  ;;  %11245 = vmatprep.subr.bf16.mxu0 %v15147_v2  ;;  %v1778_v0 = vld [vmem:[%s16552_s27 + $0x26c8] sm:$0xff] }
 0x378   : > { %11270 = vmatprep.subr.bf16.mxu1 %v15211_v56  ;;  %v1842_v2 = vld [vmem:[%s16552_s27 + $0x28c8] sm:$0xff] }
 0x379   : > { %v1846_v56 = vld [vmem:[%s16552_s27 + $0x28e8] sm:$0xff] }
 0x37a   : > { %v10976_v48 = vpop.f32.mrf.mxu1  ;;  %11221 = vmatmul.mubr.bf16.vlgmr.msra.gmra.mxu1 %v17050_v9  ;;  %11246 = vmatpush2.bf16.msra.mxu0 %v15146_v17  ;;  %v15179_v15 = vcombine.high %v1842_v2, %v1846_v56  ;;  %v1770_v17 = vld [vmem:[%s16552_s27 + $0x2688] sm:$0xff]  ;;  %v15178_v37 = vcombine.low %v1842_v2, %v1846_v56 }
 0x37b   : > { %v17543_v60 = vadd.f32 %v10976_v48, %v17503_v33  ;;  %11271 = vmatpush1.bf16.msra.mxu1 %v15210_v19  ;;  %11247 = vmatprep.subr.bf16.mxu0 %v15139_v26  ;;  %v1850_v33 = vld [vmem:[%s16552_s27 + $0x2908] sm:$0xff] }
 0x37c   : > { %v10978_v47 = vpop.f32.mrf.mxu1  ;;  %11272 = vmatprep.subr.bf16.mxu1 %v15203_v22  ;;  %11302 = vmatprep.mubr.bf16.mxu1 %v17057_v23  ;;  %v15187_v62 = vcombine.high %v1850_v33, %v1854_v30  ;;  %v15186_v10 = vcombine.low %v1850_v33, %v1854_v30  ;;  %v1774_v19 = vld [vmem:[%s16552_s27 + $0x26a8] sm:$0xff] }
 0x37d   : > { %v17549_v51 = vadd.f32 %v10978_v47, %v17507_v40  ;;  %v1782_v40 = vld [vmem:[%s16552_s27 + $0x26e8] sm:$0xff]  ;;  %v15107_v27 = vcombine.high %v1770_v17, %v1774_v19  ;;  %v15106_v47 = vcombine.low %v1770_v17, %v1774_v19 }
 0x37e   : > { %v10980_v53 = vpop.f32.mrf.mxu1  ;;  %11248 = vmatpush2.bf16.msra.mxu0 %v15138_v28  ;;  %v15115_v14 = vcombine.high %v1778_v0, %v1782_v40  ;;  %v1834_v26 = vld [vmem:[%s16552_s27 + $0x2888] sm:$0xff]  ;;  %v15114_v31 = vcombine.low %v1778_v0, %v1782_v40 }
 0x37f   : > { %11273 = vmatpush1.bf16.msra.mxu1 %v15202_v21  ;;  %11249 = vmatprep.subr.bf16.mxu0 %v15131_v39  ;;  %v1838_v22 = vld [vmem:[%s16552_s27 + $0x28a8] sm:$0xff] }
 0x380   : > { %v10981_v20 = vpop.f32.mrf.mxu1  ;;  %11274 = vmatprep.subr.bf16.mxu1 %v15195_v50  ;;  %v15171_v34 = vcombine.high %v1834_v26, %v1838_v22  ;;  %v1762_v48 = vld [vmem:[%s16552_s27 + $0x2648] sm:$0xff]  ;;  %v15170_v50 = vcombine.low %v1834_v26, %v1838_v22 }
 0x381   : > { %v1766_v28 = vld [vmem:[%s16552_s27 + $0x2668] sm:$0xff] }
 0x382   : > { %11250 = vmatpush2.bf16.msra.mxu0 %v15130_v57  ;;  %v1826_v21 = vld [vmem:[%s16552_s27 + $0x2848] sm:$0xff]  ;;  %v15099_v49 = vcombine.high %v1762_v48, %v1766_v28 }
 0x383   : > { %11275 = vmatpush1.bf16.msra.mxu1 %v15194_v59  ;;  %11251 = vmatprep.subr.bf16.mxu0 %v15123_v61  ;;  %v1830_v39 = vld [vmem:[%s16552_s27 + $0x2868] sm:$0xff]  ;;  %v15098_v59 = vcombine.low %v1762_v48, %v1766_v28 }
 0x384   : > { %11276 = vmatprep.subr.bf16.mxu1 %v15187_v62  ;;  %v15163_v7 = vcombine.high %v1826_v21, %v1830_v39  ;;  %v1754_v33 = vld [vmem:[%s16552_s27 + $0x2608] sm:$0xff]  ;;  %v15162_v61 = vcombine.low %v1826_v21, %v1830_v39 }
 0x385   : > { %v1758_v30 = vld [vmem:[%s16552_s27 + $0x2628] sm:$0xff] }
 0x386   : > { %11252 = vmatpush2.bf16.msra.mxu0 %v15122_v6  ;;  %v1818_v53 = vld [vmem:[%s16552_s27 + $0x2808] sm:$0xff]  ;;  %v15091_v20 = vcombine.high %v1754_v33, %v1758_v30  ;;  %v15090_v6 = vcombine.low %v1754_v33, %v1758_v30 }
 0x387   : > { %11277 = vmatpush1.bf16.msra.mxu1 %v15186_v10  ;;  %11253 = vmatprep.subr.bf16.mxu0 %v15115_v14  ;;  %v1822_v57 = vld [vmem:[%s16552_s27 + $0x2828] sm:$0xff] }
 0x388   : > { %11278 = vmatprep.subr.bf16.mxu1 %v15179_v15  ;;  %v15155_v62 = vcombine.high %v1818_v53, %v1822_v57  ;;  %v2002_v0 = vld [vmem:[%s16552_s27 + $0x2dc8] sm:$0xff]  ;;  %v15154_v10 = vcombine.low %v1818_v53, %v1822_v57 }
 0x389   : > { %v2006_v40 = vld [vmem:[%s16552_s27 + $0x2de8] sm:$0xff] }
 0x38a   : > { %11254 = vmatpush2.bf16.msra.mxu0 %v15114_v31  ;;  %v1938_v2 = vld [vmem:[%s16552_s27 + $0x2bc8] sm:$0xff]  ;;  %v15339_v14 = vcombine.high %v2002_v0, %v2006_v40  ;;  %v15338_v31 = vcombine.low %v2002_v0, %v2006_v40 }
 0x38b   : > { %11279 = vmatpush1.bf16.msra.mxu1 %v15178_v37  ;;  %11255 = vmatprep.subr.bf16.mxu0 %v15107_v27  ;;  %v1942_v56 = vld [vmem:[%s16552_s27 + $0x2be8] sm:$0xff] }
 0x38c   : > { %11280 = vmatprep.subr.bf16.mxu1 %v15171_v34  ;;  %v15275_v15 = vcombine.high %v1938_v2, %v1942_v56  ;;  %v1994_v17 = vld [vmem:[%s16552_s27 + $0x2d88] sm:$0xff]  ;;  %v15274_v37 = vcombine.low %v1938_v2, %v1942_v56 }
 0x38d   : > { %v1998_v19 = vld [vmem:[%s16552_s27 + $0x2da8] sm:$0xff] }
 0x38e   : > { %11256 = vmatpush2.bf16.msra.mxu0 %v15106_v47  ;;  %v1930_v26 = vld [vmem:[%s16552_s27 + $0x2b88] sm:$0xff]  ;;  %v15331_v27 = vcombine.high %v1994_v17, %v1998_v19 }
 0x38f   : > { %11281 = vmatpush1.bf16.msra.mxu1 %v15170_v50  ;;  %11257 = vmatprep.subr.bf16.mxu0 %v15099_v49  ;;  %v1934_v22 = vld [vmem:[%s16552_s27 + $0x2ba8] sm:$0xff]  ;;  %v15330_v49 = vcombine.low %v1994_v17, %v1998_v19 }
 0x390   : > { %11282 = vmatprep.subr.bf16.mxu1 %v15163_v7  ;;  %v15267_v34 = vcombine.high %v1930_v26, %v1934_v22  ;;  %v1986_v48 = vld [vmem:[%s16552_s27 + $0x2d48] sm:$0xff]  ;;  %v15266_v33 = vcombine.low %v1930_v26, %v1934_v22 }
 0x391   : > { %v1990_v28 = vld [vmem:[%s16552_s27 + $0x2d68] sm:$0xff] }
 0x392   : > { %11258 = vmatpush2.bf16.msra.mxu0 %v15098_v59  ;;  %v1922_v39 = vld [vmem:[%s16552_s27 + $0x2b48] sm:$0xff]  ;;  %v15323_v30 = vcombine.high %v1986_v48, %v1990_v28  ;;  %v15322_v0 = vcombine.low %v1986_v48, %v1990_v28 }
 0x393   : > { %11283 = vmatpush1.bf16.msra.mxu1 %v15162_v61  ;;  %11259 = vmatprep.subr.bf16.mxu0 %v15091_v20  ;;  %v1926_v47 = vld [vmem:[%s16552_s27 + $0x2b68] sm:$0xff] }
 0x394   : > { %11284 = vmatprep.subr.bf16.mxu1 %v15155_v62  ;;  %v15259_v57 = vcombine.high %v1922_v39, %v1926_v47  ;;  %v1978_v59 = vld [vmem:[%s16552_s27 + $0x2d08] sm:$0xff]  ;;  %v15258_v2 = vcombine.low %v1922_v39, %v1926_v47 }
 0x395   : > { %v1914_v20 = vld [vmem:[%s16552_s27 + $0x2b08] sm:$0xff] }
 0x396   : > { %11260 = vmatpush2.bf16.msra.mxu0 %v15090_v6  ;;  %v1918_v62 = vld [vmem:[%s16552_s27 + $0x2b28] sm:$0xff] }
 0x397   : > { %11285 = vmatpush1.bf16.msra.mxu1 %v15154_v10  ;;  %11311 = vmatprep.subr.bf16.mxu0 %v15339_v14  ;;  %v15251_v56 = vcombine.high %v1914_v20, %v1918_v62  ;;  %v1970_v6 = vld [vmem:[%s16552_s27 + $0x2cc8] sm:$0xff]  ;;  %v15250_v19 = vcombine.low %v1914_v20, %v1918_v62 }
 0x398   : > { %11286 = vmatprep.subr.bf16.mxu1 %v15275_v15  ;;  %v1974_v10 = vld [vmem:[%s16552_s27 + $0x2ce8] sm:$0xff] }
 0x399   : > { %v11017_v21 = vpop.f32.mrf.mxu0  ;;  %11262 = vmatmul.mubr.bf16.vlgmr.msra.gmra.mxu0 %v17061_v29  ;;  %v1906_v14 = vld [vmem:[%s16552_s27 + $0x2ac8] sm:$0xff]  ;;  %v15307_v26 = vcombine.high %v1970_v6, %v1974_v10  ;;  %v15306_v48 = vcombine.low %v1970_v6, %v1974_v10 }
 0x39a   : > { %v17583_v50 = vadd.f32 %v11017_v21, %v17543_v60  ;;  %11312 = vmatpush1.bf16.msra.mxu0 %v15338_v31  ;;  %11343 = vmatprep.mubr.bf16.mxu0 %v17070_v38  ;;  %v1982_v60 = vld [vmem:[%s16552_s27 + $0x2d28] sm:$0xff] }
 0x39b   : > { %11287 = vmatpush2.bf16.msra.mxu1 %v15274_v37  ;;  %v11019_v7 = vpop.f32.mrf.mxu0  ;;  %11313 = vmatprep.subr.bf16.mxu0 %v15331_v27  ;;  %v1910_v15 = vld [vmem:[%s16552_s27 + $0x2ae8] sm:$0xff]  ;;  %v15314_v17 = vcombine.low %v1978_v59, %v1982_v60 }
 0x39c   : > { %v17587_v53 = vadd.f32 %v11019_v7, %v17549_v51  ;;  %11288 = vmatprep.subr.bf16.mxu1 %v15267_v34  ;;  %v15315_v51 = vcombine.high %v1978_v59, %v1982_v60  ;;  %v15243_v22 = vcombine.high %v1906_v14, %v1910_v15  ;;  %v1962_v31 = vld [vmem:[%s16552_s27 + $0x2c88] sm:$0xff]  ;;  %v15242_v28 = vcombine.low %v1906_v14, %v1910_v15 }
 0x39d   : > { %v11021_v61 = vpop.f32.mrf.mxu0  ;;  %v1966_v37 = vld [vmem:[%s16552_s27 + $0x2ca8] sm:$0xff] }
 0x39e   : > { %11314 = vmatpush1.bf16.msra.mxu0 %v15330_v49  ;;  %v1898_v27 = vld [vmem:[%s16552_s27 + $0x2a88] sm:$0xff]  ;;  %v15299_v21 = vcombine.high %v1962_v31, %v1966_v37 }
 0x39f   : > { %11289 = vmatpush2.bf16.msra.mxu1 %v15266_v33  ;;  %v11022_v40 = vpop.f32.mrf.mxu0  ;;  %11315 = vmatprep.subr.bf16.mxu0 %v15323_v30  ;;  %v1902_v34 = vld [vmem:[%s16552_s27 + $0x2aa8] sm:$0xff]  ;;  %v15298_v30 = vcombine.low %v1962_v31, %v1966_v37 }
 0x3a0   : > { %11290 = vmatprep.subr.bf16.mxu1 %v15259_v57  ;;  %v15235_v39 = vcombine.high %v1898_v27, %v1902_v34  ;;  %v1954_v47 = vld [vmem:[%s16552_s27 + $0x2c48] sm:$0xff]  ;;  %v15234_v57 = vcombine.low %v1898_v27, %v1902_v34 }
 0x3a1   : > { %v1958_v49 = vld [vmem:[%s16552_s27 + $0x2c68] sm:$0xff] }
 0x3a2   : > { %11316 = vmatpush1.bf16.msra.mxu0 %v15322_v0  ;;  %v1890_v7 = vld [vmem:[%s16552_s27 + $0x2a48] sm:$0xff]  ;;  %v15291_v59 = vcombine.high %v1954_v47, %v1958_v49  ;;  %v15290_v40 = vcombine.low %v1954_v47, %v1958_v49 }
 0x3a3   : > { %11291 = vmatpush2.bf16.msra.mxu1 %v15258_v2  ;;  %11317 = vmatprep.subr.bf16.mxu0 %v15315_v51  ;;  %v1894_v33 = vld [vmem:[%s16552_s27 + $0x2a68] sm:$0xff] }
 0x3a4   : > { %11292 = vmatprep.subr.bf16.mxu1 %v15251_v56  ;;  %v15227_v60 = vcombine.high %v1890_v7, %v1894_v33  ;;  %v1946_v61 = vld [vmem:[%s16552_s27 + $0x2c08] sm:$0xff]  ;;  %v15226_v2 = vcombine.low %v1890_v7, %v1894_v33 }
 0x3a5   : > { %v1950_v20 = vld [vmem:[%s16552_s27 + $0x2c28] sm:$0xff] }
 0x3a6   : > { %11318 = vmatpush1.bf16.msra.mxu0 %v15314_v17  ;;  %v1882_v62 = vld [vmem:[%s16552_s27 + $0x2a08] sm:$0xff]  ;;  %v15283_v51 = vcombine.high %v1946_v61, %v1950_v20  ;;  %v15282_v17 = vcombine.low %v1946_v61, %v1950_v20 }
 0x3a7   : > { %11293 = vmatpush2.bf16.msra.mxu1 %v15250_v19  ;;  %11319 = vmatprep.subr.bf16.mxu0 %v15307_v26  ;;  %v1886_v0 = vld [vmem:[%s16552_s27 + $0x2a28] sm:$0xff] }
 0x3a8   : > { %11294 = vmatprep.subr.bf16.mxu1 %v15243_v22  ;;  %v15219_v56 = vcombine.high %v1882_v62, %v1886_v0  ;;  %v2066_v6 = vld [vmem:[%s16552_s27 + $0x2fc8] sm:$0xff]  ;;  %v15218_v19 = vcombine.low %v1882_v62, %v1886_v0 }
 0x3a9   : > { %v2070_v10 = vld [vmem:[%s16552_s27 + $0x2fe8] sm:$0xff] }
 0x3aa   : > { %11320 = vmatpush1.bf16.msra.mxu0 %v15306_v48  ;;  %v2130_v14 = vld [vmem:[%s16552_s27 + $0x31c8] sm:$0xff]  ;;  %v15403_v26 = vcombine.high %v2066_v6, %v2070_v10  ;;  %v15402_v48 = vcombine.low %v2066_v6, %v2070_v10 }
 0x3ab   : > { %11295 = vmatpush2.bf16.msra.mxu1 %v15242_v28  ;;  %11321 = vmatprep.subr.bf16.mxu0 %v15299_v21  ;;  %v2134_v15 = vld [vmem:[%s16552_s27 + $0x31e8] sm:$0xff] }
 0x3ac   : > { %11296 = vmatprep.subr.bf16.mxu1 %v15235_v39  ;;  %v15467_v22 = vcombine.high %v2130_v14, %v2134_v15  ;;  %v2058_v31 = vld [vmem:[%s16552_s27 + $0x2f88] sm:$0xff]  ;;  %v15466_v28 = vcombine.low %v2130_v14, %v2134_v15 }
 0x3ad   : > { %v2062_v37 = vld [vmem:[%s16552_s27 + $0x2fa8] sm:$0xff] }
 0x3ae   : > { %11322 = vmatpush1.bf16.msra.mxu0 %v15298_v30  ;;  %v2122_v27 = vld [vmem:[%s16552_s27 + $0x3188] sm:$0xff]  ;;  %v15395_v21 = vcombine.high %v2058_v31, %v2062_v37 }
 0x3af   : > { %11297 = vmatpush2.bf16.msra.mxu1 %v15234_v57  ;;  %11323 = vmatprep.subr.bf16.mxu0 %v15291_v59  ;;  %v2126_v34 = vld [vmem:[%s16552_s27 + $0x31a8] sm:$0xff]  ;;  %v15394_v57 = vcombine.low %v2058_v31, %v2062_v37 }
 0x3b0   : > { %11298 = vmatprep.subr.bf16.mxu1 %v15227_v60  ;;  %v15459_v39 = vcombine.high %v2122_v27, %v2126_v34  ;;  %v2050_v47 = vld [vmem:[%s16552_s27 + $0x2f48] sm:$0xff]  ;;  %v15458_v60 = vcombine.low %v2122_v27, %v2126_v34 }
 0x3b1   : > { %v2054_v49 = vld [vmem:[%s16552_s27 + $0x2f68] sm:$0xff] }
 0x3b2   : > { %11324 = vmatpush1.bf16.msra.mxu0 %v15290_v40  ;;  %v2114_v7 = vld [vmem:[%s16552_s27 + $0x3148] sm:$0xff]  ;;  %v15387_v61 = vcombine.high %v2050_v47, %v2054_v49  ;;  %v15386_v6 = vcombine.low %v2050_v47, %v2054_v49 }
 0x3b3   : > { %11299 = vmatpush2.bf16.msra.mxu1 %v15226_v2  ;;  %11325 = vmatprep.subr.bf16.mxu0 %v15283_v51  ;;  %v2118_v33 = vld [vmem:[%s16552_s27 + $0x3168] sm:$0xff] }
 0x3b4   : > { %11300 = vmatprep.subr.bf16.mxu1 %v15219_v56  ;;  %v15451_v62 = vcombine.high %v2114_v7, %v2118_v33  ;;  %v2042_v0 = vld [vmem:[%s16552_s27 + $0x2f08] sm:$0xff]  ;;  %v15450_v10 = vcombine.low %v2114_v7, %v2118_v33 }
 0x3b5   : > { %v2046_v40 = vld [vmem:[%s16552_s27 + $0x2f28] sm:$0xff] }
 0x3b6   : > { %11326 = vmatpush1.bf16.msra.mxu0 %v15282_v17  ;;  %v2110_v51 = vld [vmem:[%s16552_s27 + $0x3128] sm:$0xff]  ;;  %v15379_v14 = vcombine.high %v2042_v0, %v2046_v40  ;;  %v15378_v31 = vcombine.low %v2042_v0, %v2046_v40 }
 0x3b7   : > { %11301 = vmatpush2.bf16.msra.mxu1 %v15218_v19  ;;  %11327 = vmatprep.subr.bf16.mxu0 %v15403_v26  ;;  %v2034_v19 = vld [vmem:[%s16552_s27 + $0x2ec8] sm:$0xff] }
 0x3b8   : > { %11352 = vmatprep.subr.bf16.mxu1 %v15467_v22  ;;  %v2098_v26 = vld [vmem:[%s16552_s27 + $0x30c8] sm:$0xff] }
 0x3b9   : > { %v2102_v22 = vld [vmem:[%s16552_s27 + $0x30e8] sm:$0xff] }
 0x3ba   : > { %v11058_v30 = vpop.f32.mrf.mxu1  ;;  %11303 = vmatmul.mubr.bf16.vlgmr.msra.gmra.mxu1 %v17139_v18  ;;  %11328 = vmatpush2.bf16.msra.mxu0 %v15402_v48  ;;  %v15435_v34 = vcombine.high %v2098_v26, %v2102_v22  ;;  %v2026_v48 = vld [vmem:[%s16552_s27 + $0x2e88] sm:$0xff]  ;;  %v15434_v49 = vcombine.low %v2098_v26, %v2102_v22  ;;  %v723_v26 = vld [vmem:[%s16552_s27 + $0x5d0] sm:$0xff] }
 0x3bb   : > { %v17623_v59 = vadd.f32 %v11058_v30, %v17583_v50  ;;  %11353 = vmatpush1.bf16.msra.mxu1 %v15466_v28  ;;  %11329 = vmatprep.subr.bf16.mxu0 %v15395_v21  ;;  %v2106_v50 = vld [vmem:[%s16552_s27 + $0x3108] sm:$0xff]  ;;  %v727_v22 = vld [vmem:[%s16552_s27 + $0x5f0] sm:$0xff] }
 0x3bc   : > { %v11060_v20 = vpop.f32.mrf.mxu1  ;;  %11354 = vmatprep.subr.bf16.mxu1 %v15459_v39  ;;  %11384 = vmatprep.mubr.bf16.mxu1 %v16325_v41  ;;  %v15443_v17 = vcombine.high %v2106_v50, %v2110_v51  ;;  %v15442_v37 = vcombine.low %v2106_v50, %v2110_v51  ;;  %v2030_v28 = vld [vmem:[%s16552_s27 + $0x2ea8] sm:$0xff] }
 0x3bd   : > { %v17629_v2 = vadd.f32 %v11060_v20, %v17587_v53  ;;  %v2038_v53 = vld [vmem:[%s16552_s27 + $0x2ee8] sm:$0xff]  ;;  %v15363_v7 = vcombine.high %v2026_v48, %v2030_v28  ;;  %v15362_v20 = vcombine.low %v2026_v48, %v2030_v28  ;;  %v587_v48 = vld [vmem:[%s16552_s27 + $0x190] sm:$0xff] }
 0x3be   : > { %v11062_v56 = vpop.f32.mrf.mxu1  ;;  %11330 = vmatpush2.bf16.msra.mxu0 %v15394_v57  ;;  %v15371_v27 = vcombine.high %v2034_v19, %v2038_v53  ;;  %v2090_v21 = vld [vmem:[%s16552_s27 + $0x3088] sm:$0xff]  ;;  %v15370_v47 = vcombine.low %v2034_v19, %v2038_v53  ;;  %v595_v19 = vld [vmem:[%s16552_s27 + $0x1d0] sm:$0xff] }
 0x3bf   : > { %11355 = vmatpush1.bf16.msra.mxu1 %v15458_v60  ;;  %11331 = vmatprep.subr.bf16.mxu0 %v15387_v61  ;;  %v2094_v39 = vld [vmem:[%s16552_s27 + $0x30a8] sm:$0xff]  ;;  %v599_v53 = vld [vmem:[%s16552_s27 + $0x1f0] sm:$0xff] }
 0x3c0   : > { %v11063_v15 = vpop.f32.mrf.mxu1  ;;  %11356 = vmatprep.subr.bf16.mxu1 %v15451_v62  ;;  %v15427_v33 = vcombine.high %v2090_v21, %v2094_v39  ;;  %v2018_v30 = vld [vmem:[%s16552_s27 + $0x2e48] sm:$0xff]  ;;  %v15426_v62 = vcombine.low %v2090_v21, %v2094_v39  ;;  %v591_v28 = vld [vmem:[%s16552_s27 + $0x1b0] sm:$0xff] }
 0x3c1   : > { %v2022_v57 = vld [vmem:[%s16552_s27 + $0x2e68] sm:$0xff]  ;;  %v715_v21 = vld [vmem:[%s16552_s27 + $0x590] sm:$0xff] }
 0x3c2   : > { %11332 = vmatpush2.bf16.msra.mxu0 %v15386_v6  ;;  %v2082_v60 = vld [vmem:[%s16552_s27 + $0x3048] sm:$0xff]  ;;  %v15355_v0 = vcombine.high %v2018_v30, %v2022_v57  ;;  %v719_v39 = vld [vmem:[%s16552_s27 + $0x5b0] sm:$0xff] }
 0x3c3   : > { %11357 = vmatpush1.bf16.msra.mxu1 %v15450_v10  ;;  %11333 = vmatprep.subr.bf16.mxu0 %v15379_v14  ;;  %v2086_v61 = vld [vmem:[%s16552_s27 + $0x3068] sm:$0xff]  ;;  %v15354_v10 = vcombine.low %v2018_v30, %v2022_v57  ;;  %v579_v30 = vld [vmem:[%s16552_s27 + $0x150] sm:$0xff] }
 0x3c4   : > { %11358 = vmatprep.subr.bf16.mxu1 %v15443_v17  ;;  %v15419_v40 = vcombine.high %v2082_v60, %v2086_v61  ;;  %v2010_v50 = vld [vmem:[%s16552_s27 + $0x2e08] sm:$0xff]  ;;  %v15418_v14 = vcombine.low %v2082_v60, %v2086_v61  ;;  %v583_v57 = vld [vmem:[%s16552_s27 + $0x170] sm:$0xff] }
 0x3c5   : > { %v2014_v51 = vld [vmem:[%s16552_s27 + $0x2e28] sm:$0xff]  ;;  %v707_v61 = vld [vmem:[%s16552_s27 + $0x550] sm:$0xff] }
 0x3c6   : > { %11334 = vmatpush2.bf16.msra.mxu0 %v15378_v31  ;;  %v2074_v56 = vld [vmem:[%s16552_s27 + $0x3008] sm:$0xff]  ;;  %v15347_v15 = vcombine.high %v2010_v50, %v2014_v51  ;;  %v15346_v31 = vcombine.low %v2010_v50, %v2014_v51  ;;  %v14052_v50 = vcombine.low %v715_v21, %v719_v39  ;;  %v13917_v51 = vcombine.high %v579_v30, %v583_v57 }
 0x3c7   : > { %11359 = vmatpush1.bf16.msra.mxu1 %v15442_v37  ;;  %11335 = vmatprep.subr.bf16.mxu0 %v15371_v27  ;;  %v2078_v6 = vld [vmem:[%s16552_s27 + $0x3028] sm:$0xff]  ;;  %v13933_v27 = vcombine.high %v595_v19, %v599_v53 }
 0x3c8   : > { %11360 = vmatprep.subr.bf16.mxu1 %v15435_v34  ;;  %v15411_v17 = vcombine.high %v2074_v56, %v2078_v6  ;;  %v15410_v37 = vcombine.low %v2074_v56, %v2078_v6  ;;  %v14061_v34 = vcombine.high %v723_v26, %v727_v22 }
 0x3ca   : > { %11336 = vmatpush2.bf16.msra.mxu0 %v15370_v47  ;;  %v13932_v47 = vcombine.low %v595_v19, %v599_v53  ;;  %v13916_v19 = vcombine.low %v579_v30, %v583_v57 }
 0x3cb   : > { %11361 = vmatpush1.bf16.msra.mxu1 %v15434_v49  ;;  %11337 = vmatprep.subr.bf16.mxu0 %v15363_v7  ;;  %v14060_v49 = vcombine.low %v723_v26, %v727_v22  ;;  %v13925_v7 = vcombine.high %v587_v48, %v591_v28 }
 0x3cc   : > { %11362 = vmatprep.subr.bf16.mxu1 %v15427_v33  ;;  %v14053_v33 = vcombine.high %v715_v21, %v719_v39 }
 0x3ce   : > { %11338 = vmatpush2.bf16.msra.mxu0 %v15362_v20  ;;  %v711_v20 = vld [vmem:[%s16552_s27 + $0x570] sm:$0xff] }
 0x3cf   : > { %11363 = vmatpush1.bf16.msra.mxu1 %v15426_v62  ;;  %11339 = vmatprep.subr.bf16.mxu0 %v15355_v0  ;;  %v13924_v0 = vcombine.low %v587_v48, %v591_v28  ;;  %v14045_v6 = vcombine.high %v707_v61, %v711_v20  ;;  %v14044_v53 = vcombine.low %v707_v61, %v711_v20  ;;  %v547_v20 = vld [vmem:[%s16552_s27 + $0x50] sm:$0xff] }
 0x3d0   : > { %11364 = vmatprep.subr.bf16.mxu1 %v15419_v40 }
 0x3d2   : > { %11340 = vmatpush2.bf16.msra.mxu0 %v15354_v10  ;;  %v571_v10 = vld [vmem:[%s16552_s27 + $0x110] sm:$0xff] }
 0x3d3   : > { %11365 = vmatpush1.bf16.msra.mxu1 %v15418_v14  ;;  %11341 = vmatprep.subr.bf16.mxu0 %v15347_v15  ;;  %v699_v15 = vld [vmem:[%s16552_s27 + $0x510] sm:$0xff] }
 0x3d4   : > { %11366 = vmatprep.subr.bf16.mxu1 %v15411_v17  ;;  %v703_v17 = vld [vmem:[%s16552_s27 + $0x530] sm:$0xff] }
 0x3d5   : > { %v14037_v22 = vcombine.high %v699_v15, %v703_v17  ;;  %v14036_v28 = vcombine.low %v699_v15, %v703_v17  ;;  %v543_v15 = vld [vmem:[%s16552_s27 + $0x30] sm:$0xff] }
 0x3d6   : > { %11342 = vmatpush2.bf16.msra.mxu0 %v15346_v31  ;;  %v563_v31 = vld [vmem:[%s16552_s27 + $0xd0] sm:$0xff] }
 0x3d7   : > { %11367 = vmatpush1.bf16.msra.mxu1 %v15410_v37  ;;  %11393 = vmatprep.subr.bf16.mxu0 %v13933_v27  ;;  %v567_v37 = vld [vmem:[%s16552_s27 + $0xf0] sm:$0xff] }
 0x3d8   : > { %11434 = vmatprep.subr.bf16.mxu1 %v14061_v34  ;;  %v691_v27 = vld [vmem:[%s16552_s27 + $0x4d0] sm:$0xff]  ;;  %v13901_v21 = vcombine.high %v563_v31, %v567_v37  ;;  %v13900_v30 = vcombine.low %v563_v31, %v567_v37 }
 0x3d9   : > { %v11099_v60 = vpop.f32.mrf.mxu0  ;;  %11344 = vmatmul.mubr.bf16.vlgmr.msra.gmra.mxu0 %v17147_v5  ;;  %v695_v34 = vld [vmem:[%s16552_s27 + $0x4f0] sm:$0xff] }
 0x3da   : > { %v17663_v62 = vadd.f32 %v11099_v60, %v17623_v59  ;;  %11385 = vmatmul.mubr.bf16.vlgmr.msra.gmra.mxu1 %v17191_v11  ;;  %11394 = vmatpush1.bf16.msra.mxu0 %v13932_v47  ;;  %v575_v59 = vld [vmem:[%s16552_s27 + $0x130] sm:$0xff]  ;;  %v14029_v39 = vcombine.high %v691_v27, %v695_v34  ;;  %v14028_v57 = vcombine.low %v691_v27, %v695_v34 }
 0x3db   : > { %11435 = vmatpush1.bf16.msra.mxu1 %v14060_v49  ;;  %v11101_v40 = vpop.f32.mrf.mxu0  ;;  %11395 = vmatprep.subr.bf16.mxu0 %v13925_v7  ;;  %v13909_v26 = vcombine.high %v571_v10, %v575_v59  ;;  %v13908_v48 = vcombine.low %v571_v10, %v575_v59  ;;  %v555_v47 = vld [vmem:[%s16552_s27 + $0x90] sm:$0xff] }
 0x3dc   : > { %v17667_v56 = vadd.f32 %v11101_v40, %v17629_v2  ;;  %11436 = vmatprep.subr.bf16.mxu1 %v14053_v33  ;;  %11425 = vmatprep.mubr.bf16.mxu0 %v16631_v42  ;;  %v559_v49 = vld [vmem:[%s16552_s27 + $0xb0] sm:$0xff] }
 0x3dd   : > { %v11103_v14 = vpop.f32.mrf.mxu0  ;;  %11466 = vmatprep.mubr.bf16.mxu1 %v16638_v46  ;;  %v683_v7 = vld [vmem:[%s16552_s27 + $0x490] sm:$0xff]  ;;  %v13893_v60 = vcombine.high %v555_v47, %v559_v49 }
 0x3de   : > { %11396 = vmatpush1.bf16.msra.mxu0 %v13924_v0  ;;  %v687_v33 = vld [vmem:[%s16552_s27 + $0x4b0] sm:$0xff] }
 0x3df   : > { %11437 = vmatpush1.bf16.msra.mxu1 %v14052_v50  ;;  %v11104_v2 = vpop.f32.mrf.mxu0  ;;  %11397 = vmatprep.subr.bf16.mxu0 %v13917_v51  ;;  %v14021_v61 = vcombine.high %v683_v7, %v687_v33  ;;  %v551_v0 = vld [vmem:[%s16552_s27 + $0x70] sm:$0xff]  ;;  %v13892_v51 = vcombine.low %v555_v47, %v559_v49 }
 0x3e0   : > { %11438 = vmatprep.subr.bf16.mxu1 %v14045_v6  ;;  %v675_v40 = vld [vmem:[%s16552_s27 + $0x450] sm:$0xff]  ;;  %v14020_v6 = vcombine.low %v683_v7, %v687_v33  ;;  %v13885_v10 = vcombine.high %v547_v20, %v551_v0  ;;  %v13884_v2 = vcombine.low %v547_v20, %v551_v0 }
 0x3e1   : > { %v679_v50 = vld [vmem:[%s16552_s27 + $0x470] sm:$0xff] }
 0x3e2   : > { %11398 = vmatpush1.bf16.msra.mxu0 %v13916_v19  ;;  %v14013_v59 = vcombine.high %v675_v40, %v679_v50  ;;  %v539_v14 = vld [vmem:[%s16552_s27 + $0x10] sm:$0xff] }
 0x3e3   : > { %11439 = vmatpush1.bf16.msra.mxu1 %v14044_v53  ;;  %11399 = vmatprep.subr.bf16.mxu0 %v13909_v26  ;;  %v667_v17 = vld [vmem:[%s16552_s27 + $0x410] sm:$0xff]  ;;  %v14012_v53 = vcombine.low %v675_v40, %v679_v50  ;;  %v13877_v26 = vcombine.high %v539_v14, %v543_v15 }
 0x3e4   : > { %11440 = vmatprep.subr.bf16.mxu1 %v14037_v22  ;;  %v671_v19 = vld [vmem:[%s16552_s27 + $0x430] sm:$0xff] }
 0x3e5   : > { %v14005_v22 = vcombine.high %v667_v17, %v671_v19  ;;  %v659_v31 = vld [vmem:[%s16552_s27 + $0x3d0] sm:$0xff] }
 0x3e6   : > { %11400 = vmatpush1.bf16.msra.mxu0 %v13908_v48  ;;  %v663_v37 = vld [vmem:[%s16552_s27 + $0x3f0] sm:$0xff]  ;;  %v13876_v48 = vcombine.low %v539_v14, %v543_v15 }
 0x3e7   : > { %11441 = vmatpush1.bf16.msra.mxu1 %v14036_v28  ;;  %11401 = vmatprep.subr.bf16.mxu0 %v13901_v21  ;;  %v787_v27 = vld [vmem:[%s16552_s27 + $0x7d0] sm:$0xff]  ;;  %v14004_v28 = vcombine.low %v667_v17, %v671_v19  ;;  %v13997_v21 = vcombine.high %v659_v31, %v663_v37 }
 0x3e8   : > { %11442 = vmatprep.subr.bf16.mxu1 %v14029_v39  ;;  %v791_v34 = vld [vmem:[%s16552_s27 + $0x7f0] sm:$0xff] }
 0x3e9   : > { %v14125_v39 = vcombine.high %v787_v27, %v791_v34  ;;  %v651_v47 = vld [vmem:[%s16552_s27 + $0x390] sm:$0xff] }
 0x3ea   : > { %11402 = vmatpush1.bf16.msra.mxu0 %v13900_v30  ;;  %v655_v49 = vld [vmem:[%s16552_s27 + $0x3b0] sm:$0xff]  ;;  %v13996_v30 = vcombine.low %v659_v31, %v663_v37 }
 0x3eb   : > { %11443 = vmatpush1.bf16.msra.mxu1 %v14028_v57  ;;  %11403 = vmatprep.subr.bf16.mxu0 %v13893_v60  ;;  %v779_v7 = vld [vmem:[%s16552_s27 + $0x790] sm:$0xff]  ;;  %v14124_v57 = vcombine.low %v787_v27, %v791_v34  ;;  %v13989_v60 = vcombine.high %v651_v47, %v655_v49 }
 0x3ec   : > { %11444 = vmatprep.subr.bf16.mxu1 %v14021_v61  ;;  %v783_v33 = vld [vmem:[%s16552_s27 + $0x7b0] sm:$0xff] }
 0x3ed   : > { %v14117_v61 = vcombine.high %v779_v7, %v783_v33  ;;  %v643_v20 = vld [vmem:[%s16552_s27 + $0x350] sm:$0xff] }
 0x3ee   : > { %11404 = vmatpush1.bf16.msra.mxu0 %v13892_v51  ;;  %v647_v0 = vld [vmem:[%s16552_s27 + $0x370] sm:$0xff] }
 0x3ef   : > { %11445 = vmatpush1.bf16.msra.mxu1 %v14020_v6  ;;  %11405 = vmatprep.subr.bf16.mxu0 %v13885_v10  ;;  %v771_v40 = vld [vmem:[%s16552_s27 + $0x750] sm:$0xff]  ;;  %v13988_v6 = vcombine.low %v651_v47, %v655_v49  ;;  %v13981_v14 = vcombine.high %v643_v20, %v647_v0  ;;  %v13980_v31 = vcombine.low %v643_v20, %v647_v0 }
 0x3f0   : > { %11446 = vmatprep.subr.bf16.mxu1 %v14013_v59  ;;  %v775_v50 = vld [vmem:[%s16552_s27 + $0x770] sm:$0xff]  ;;  %v14116_v59 = vcombine.low %v779_v7, %v783_v33 }
 0x3f1   : > { %v14109_v17 = vcombine.high %v771_v40, %v775_v50  ;;  %v635_v19 = vld [vmem:[%s16552_s27 + $0x310] sm:$0xff]  ;;  %v14108_v37 = vcombine.low %v771_v40, %v775_v50 }
 0x3f2   : > { %11406 = vmatpush1.bf16.msra.mxu0 %v13884_v2  ;;  %v639_v2 = vld [vmem:[%s16552_s27 + $0x330] sm:$0xff] }
 0x3f3   : > { %11447 = vmatpush1.bf16.msra.mxu1 %v14012_v53  ;;  %11407 = vmatprep.subr.bf16.mxu0 %v13877_v26  ;;  %v763_v26 = vld [vmem:[%s16552_s27 + $0x710] sm:$0xff]  ;;  %v13973_v27 = vcombine.high %v635_v19, %v639_v2  ;;  %v13972_v47 = vcombine.low %v635_v19, %v639_v2 }
 0x3f4   : > { %11448 = vmatprep.subr.bf16.mxu1 %v14005_v22  ;;  %v767_v22 = vld [vmem:[%s16552_s27 + $0x730] sm:$0xff] }
 0x3f5   : > { %v14100_v49 = vcombine.low %v763_v26, %v767_v22 }
 0x3f6   : > { %11408 = vmatpush1.bf16.msra.mxu0 %v13876_v48  ;;  %v14101_v48 = vcombine.high %v763_v26, %v767_v22  ;;  %v603_v26 = vld [vmem:[%s16552_s27 + $0x210] sm:$0xff] }
 0x3f7   : > { %11449 = vmatpush1.bf16.msra.mxu1 %v14004_v28  ;;  %11409 = vmatprep.subr.bf16.mxu0 %v13997_v21  ;;  %v627_v28 = vld [vmem:[%s16552_s27 + $0x2d0] sm:$0xff] }
 0x3f8   : > { %11450 = vmatprep.subr.bf16.mxu1 %v14125_v39  ;;  %v755_v21 = vld [vmem:[%s16552_s27 + $0x6d0] sm:$0xff] }
 0x3f9   : > { %v759_v39 = vld [vmem:[%s16552_s27 + $0x6f0] sm:$0xff] }
 0x3fa   : > { %v11140_v51 = vpop.f32.mrf.mxu1  ;;  %11410 = vmatpush2.bf16.msra.mxu0 %v13996_v30  ;;  %v14093_v33 = vcombine.high %v755_v21, %v759_v39  ;;  %v619_v30 = vld [vmem:[%s16552_s27 + $0x290] sm:$0xff]  ;;  %v14092_v0 = vcombine.low %v755_v21, %v759_v39 }
 0x3fb   : > { %v17704_v10 = vadd.f32 %v11140_v51, %v17663_v62  ;;  %11451 = vmatpush2.bf16.msra.mxu1 %v14124_v57  ;;  %11411 = vmatprep.subr.bf16.mxu0 %v13989_v60  ;;  %v623_v57 = vld [vmem:[%s16552_s27 + $0x2b0] sm:$0xff] }
 0x3fc   : > { %v11142_v15 = vpop.f32.mrf.mxu1  ;;  %11452 = vmatprep.subr.bf16.mxu1 %v14117_v61  ;;  %v747_v60 = vld [vmem:[%s16552_s27 + $0x690] sm:$0xff]  ;;  %v13957_v40 = vcombine.high %v619_v30, %v623_v57 }
 0x3fd   : > { %v17709_v53 = vadd.f32 %v11142_v15, %v17667_v56  ;;  %v631_v56 = vld [vmem:[%s16552_s27 + $0x2f0] sm:$0xff]  ;;  %v13956_v15 = vcombine.low %v619_v30, %v623_v57 }
 0x3fe   : > { %v11144_v62 = vpop.f32.mrf.mxu1  ;;  %11412 = vmatpush2.bf16.msra.mxu0 %v13988_v6  ;;  %v13965_v7 = vcombine.high %v627_v28, %v631_v56  ;;  %v751_v61 = vld [vmem:[%s16552_s27 + $0x6b0] sm:$0xff]  ;;  %v13964_v20 = vcombine.low %v627_v28, %v631_v56 }
 0x3ff   : > { %11453 = vmatpush2.bf16.msra.mxu1 %v14116_v59  ;;  %11413 = vmatprep.subr.bf16.mxu0 %v13981_v14  ;;  %v14085_v50 = vcombine.high %v747_v60, %v751_v61  ;;  %v611_v51 = vld [vmem:[%s16552_s27 + $0x250] sm:$0xff] }
 0x400   : > { %v11145_v34 = vpop.f32.mrf.mxu1  ;;  %11454 = vmatprep.subr.bf16.mxu1 %v14109_v17  ;;  %v615_v6 = vld [vmem:[%s16552_s27 + $0x270] sm:$0xff]  ;;  %v14084_v17 = vcombine.low %v747_v60, %v751_v61 }
 0x401   : > { %v739_v59 = vld [vmem:[%s16552_s27 + $0x650] sm:$0xff]  ;;  %v13949_v19 = vcombine.high %v611_v51, %v615_v6 }
 0x402   : > { %11414 = vmatpush2.bf16.msra.mxu0 %v13980_v31  ;;  %v743_v14 = vld [vmem:[%s16552_s27 + $0x670] sm:$0xff] }
 0x403   : > { %11455 = vmatpush2.bf16.msra.mxu1 %v14108_v37  ;;  %11415 = vmatprep.subr.bf16.mxu0 %v13973_v27  ;;  %v14077_v2 = vcombine.high %v739_v59, %v743_v14  ;;  %v607_v22 = vld [vmem:[%s16552_s27 + $0x230] sm:$0xff]  ;;  %v13948_v37 = vcombine.low %v611_v51, %v615_v6  ;;  %v14076_v27 = vcombine.low %v739_v59, %v743_v14 }
 0x404   : > { %11456 = vmatprep.subr.bf16.mxu1 %v14101_v48  ;;  %v731_v62 = vld [vmem:[%s16552_s27 + $0x610] sm:$0xff]  ;;  %v13941_v34 = vcombine.high %v603_v26, %v607_v22 }
 0x405   : > { %v735_v31 = vld [vmem:[%s16552_s27 + $0x630] sm:$0xff] }
 0x406   : > { %11416 = vmatpush2.bf16.msra.mxu0 %v13972_v47  ;;  %v14069_v48 = vcombine.high %v731_v62, %v735_v31  ;;  %v851_v28 = vld [vmem:[%s16552_s27 + $0x9d0] sm:$0xff]  ;;  %v13940_v47 = vcombine.low %v603_v26, %v607_v22 }
 0x407   : > { %11457 = vmatpush2.bf16.msra.mxu1 %v14100_v49  ;;  %11417 = vmatprep.subr.bf16.mxu0 %v13965_v7  ;;  %v855_v56 = vld [vmem:[%s16552_s27 + $0x9f0] sm:$0xff]  ;;  %v14068_v49 = vcombine.low %v731_v62, %v735_v31 }
 0x408   : > { %11458 = vmatprep.subr.bf16.mxu1 %v14093_v33  ;;  %v979_v21 = vld [vmem:[%s16552_s27 + $0xdd0] sm:$0xff]  ;;  %v14189_v7 = vcombine.high %v851_v28, %v855_v56 }
 0x409   : > { %v983_v39 = vld [vmem:[%s16552_s27 + $0xdf0] sm:$0xff] }
 0x40a   : > { %11418 = vmatpush2.bf16.msra.mxu0 %v13964_v20  ;;  %v14317_v33 = vcombine.high %v979_v21, %v983_v39  ;;  %v843_v30 = vld [vmem:[%s16552_s27 + $0x990] sm:$0xff]  ;;  %v14188_v20 = vcombine.low %v851_v28, %v855_v56 }
 0x40b   : > { %11459 = vmatpush2.bf16.msra.mxu1 %v14092_v0  ;;  %11419 = vmatprep.subr.bf16.mxu0 %v13957_v40  ;;  %v847_v57 = vld [vmem:[%s16552_s27 + $0x9b0] sm:$0xff]  ;;  %v14316_v0 = vcombine.low %v979_v21, %v983_v39 }
 0x40c   : > { %11460 = vmatprep.subr.bf16.mxu1 %v14085_v50  ;;  %v971_v60 = vld [vmem:[%s16552_s27 + $0xd90] sm:$0xff]  ;;  %v14181_v40 = vcombine.high %v843_v30, %v847_v57 }
 0x40d   : > { %v975_v61 = vld [vmem:[%s16552_s27 + $0xdb0] sm:$0xff] }
 0x40e   : > { %11420 = vmatpush2.bf16.msra.mxu0 %v13956_v15  ;;  %v14309_v50 = vcombine.high %v971_v60, %v975_v61  ;;  %v835_v51 = vld [vmem:[%s16552_s27 + $0x950] sm:$0xff]  ;;  %v14308_v26 = vcombine.low %v971_v60, %v975_v61 }
 0x40f   : > { %11461 = vmatpush2.bf16.msra.mxu1 %v14084_v17  ;;  %11421 = vmatprep.subr.bf16.mxu0 %v13949_v19  ;;  %v839_v6 = vld [vmem:[%s16552_s27 + $0x970] sm:$0xff]  ;;  %v14180_v19 = vcombine.low %v843_v30, %v847_v57 }
 0x410   : > { %11462 = vmatprep.subr.bf16.mxu1 %v14077_v2  ;;  %v963_v14 = vld [vmem:[%s16552_s27 + $0xd50] sm:$0xff]  ;;  %v14173_v22 = vcombine.high %v835_v51, %v839_v6  ;;  %v14172_v28 = vcombine.low %v835_v51, %v839_v6 }
 0x411   : > { %v967_v15 = vld [vmem:[%s16552_s27 + $0xd70] sm:$0xff] }
 0x412   : > { %11422 = vmatpush2.bf16.msra.mxu0 %v13948_v37  ;;  %v14301_v31 = vcombine.high %v963_v14, %v967_v15  ;;  %v827_v37 = vld [vmem:[%s16552_s27 + $0x910] sm:$0xff]  ;;  %v14300_v56 = vcombine.low %v963_v14, %v967_v15 }
 0x413   : > { %11463 = vmatpush2.bf16.msra.mxu1 %v14076_v27  ;;  %11423 = vmatprep.subr.bf16.mxu0 %v13941_v34  ;;  %v955_v34 = vld [vmem:[%s16552_s27 + $0xd10] sm:$0xff] }
 0x414   : > { %11464 = vmatprep.subr.bf16.mxu1 %v14069_v48  ;;  %v959_v48 = vld [vmem:[%s16552_s27 + $0xd30] sm:$0xff] }
 0x415   : > { %v14293_v39 = vcombine.high %v955_v34, %v959_v48  ;;  %v14292_v57 = vcombine.low %v955_v34, %v959_v48  ;;  %v803_v15 = vld [vmem:[%s16552_s27 + $0x850] sm:$0xff] }
 0x416   : > { %11424 = vmatpush2.bf16.msra.mxu0 %v13940_v47  ;;  %v819_v47 = vld [vmem:[%s16552_s27 + $0x8d0] sm:$0xff] }
 0x417   : > { %11465 = vmatpush2.bf16.msra.mxu1 %v14068_v49  ;;  %11475 = vmatprep.subr.bf16.mxu0 %v14189_v7  ;;  %v823_v49 = vld [vmem:[%s16552_s27 + $0x8f0] sm:$0xff] }
 0x418   : > { %11516 = vmatprep.subr.bf16.mxu1 %v14317_v33  ;;  %v947_v7 = vld [vmem:[%s16552_s27 + $0xcd0] sm:$0xff]  ;;  %v14157_v60 = vcombine.high %v819_v47, %v823_v49  ;;  %v14156_v51 = vcombine.low %v819_v47, %v823_v49 }
 0x419   : > { %v11181_v59 = vpop.f32.mrf.mxu0  ;;  %11426 = vmatmul.mubr.bf16.vlgmr.msra.gmra.mxu0 %v16682_v55  ;;  %v951_v33 = vld [vmem:[%s16552_s27 + $0xcf0] sm:$0xff] }
 0x41a   : > { %v17743_v17 = vadd.f32 %v11181_v59, %v17704_v10  ;;  %11467 = vmatmul.mubr.bf16.vlgmr.msra.gmra.mxu1 %v16693_v32  ;;  %11476 = vmatpush1.bf16.msra.mxu0 %v14188_v20  ;;  %v831_v10 = vld [vmem:[%s16552_s27 + $0x930] sm:$0xff]  ;;  %v14285_v61 = vcombine.high %v947_v7, %v951_v33  ;;  %v14284_v6 = vcombine.low %v947_v7, %v951_v33 }
 0x41b   : > { %11517 = vmatpush1.bf16.msra.mxu1 %v14316_v0  ;;  %v11183_v2 = vpop.f32.mrf.mxu0  ;;  %11477 = vmatprep.subr.bf16.mxu0 %v14181_v40  ;;  %v14165_v21 = vcombine.high %v827_v37, %v831_v10  ;;  %v14164_v30 = vcombine.low %v827_v37, %v831_v10  ;;  %v811_v20 = vld [vmem:[%s16552_s27 + $0x890] sm:$0xff] }
 0x41c   : > { %v17747_v62 = vadd.f32 %v11183_v2, %v17709_v53  ;;  %11518 = vmatprep.subr.bf16.mxu1 %v14309_v50  ;;  %11507 = vmatprep.mubr.bf16.mxu0 %v16689_v63  ;;  %v815_v0 = vld [vmem:[%s16552_s27 + $0x8b0] sm:$0xff] }
 0x41d   : > { %v11185_v27 = vpop.f32.mrf.mxu0  ;;  %11548 = vmatprep.mubr.bf16.mxu1 %v16702_v8  ;;  %v939_v40 = vld [vmem:[%s16552_s27 + $0xc90] sm:$0xff]  ;;  %v14149_v59 = vcombine.high %v811_v20, %v815_v0 }
 0x41e   : > { %11478 = vmatpush1.bf16.msra.mxu0 %v14180_v19  ;;  %v943_v50 = vld [vmem:[%s16552_s27 + $0xcb0] sm:$0xff] }
 0x41f   : > { %11519 = vmatpush1.bf16.msra.mxu1 %v14308_v26  ;;  %v11186_v53 = vpop.f32.mrf.mxu0  ;;  %11479 = vmatprep.subr.bf16.mxu0 %v14173_v22  ;;  %v14277_v14 = vcombine.high %v939_v40, %v943_v50  ;;  %v807_v19 = vld [vmem:[%s16552_s27 + $0x870] sm:$0xff]  ;;  %v14148_v22 = vcombine.low %v811_v20, %v815_v0 }
 0x420   : > { %11520 = vmatprep.subr.bf16.mxu1 %v14301_v31  ;;  %v931_v2 = vld [vmem:[%s16552_s27 + $0xc50] sm:$0xff]  ;;  %v14276_v31 = vcombine.low %v939_v40, %v943_v50  ;;  %v14141_v37 = vcombine.high %v803_v15, %v807_v19  ;;  %v14140_v53 = vcombine.low %v803_v15, %v807_v19 }
 0x421   : > { %v935_v26 = vld [vmem:[%s16552_s27 + $0xc70] sm:$0xff] }
 0x422   : > { %11480 = vmatpush1.bf16.msra.mxu0 %v14172_v28  ;;  %v14269_v10 = vcombine.high %v931_v2, %v935_v26  ;;  %v795_v27 = vld [vmem:[%s16552_s27 + $0x810] sm:$0xff] }
 0x423   : > { %11521 = vmatpush1.bf16.msra.mxu1 %v14300_v56  ;;  %11481 = vmatprep.subr.bf16.mxu0 %v14165_v21  ;;  %v799_v34 = vld [vmem:[%s16552_s27 + $0x830] sm:$0xff]  ;;  %v14268_v56 = vcombine.low %v931_v2, %v935_v26 }
 0x424   : > { %11522 = vmatprep.subr.bf16.mxu1 %v14293_v39  ;;  %v923_v48 = vld [vmem:[%s16552_s27 + $0xc10] sm:$0xff]  ;;  %v14133_v21 = vcombine.high %v795_v27, %v799_v34 }
 0x425   : > { %v927_v28 = vld [vmem:[%s16552_s27 + $0xc30] sm:$0xff] }
 0x426   : > { %11482 = vmatpush1.bf16.msra.mxu0 %v14164_v30  ;;  %v14261_v39 = vcombine.high %v923_v48, %v927_v28  ;;  %v915_v47 = vld [vmem:[%s16552_s27 + $0xbd0] sm:$0xff]  ;;  %v14132_v30 = vcombine.low %v795_v27, %v799_v34 }
 0x427   : > { %11523 = vmatpush1.bf16.msra.mxu1 %v14292_v57  ;;  %11483 = vmatprep.subr.bf16.mxu0 %v14157_v60  ;;  %v919_v49 = vld [vmem:[%s16552_s27 + $0xbf0] sm:$0xff]  ;;  %v14260_v57 = vcombine.low %v923_v48, %v927_v28 }
 0x428   : > { %11524 = vmatprep.subr.bf16.mxu1 %v14285_v61  ;;  %v1043_v7 = vld [vmem:[%s16552_s27 + $0xfd0] sm:$0xff]  ;;  %v14253_v60 = vcombine.high %v915_v47, %v919_v49 }
 0x429   : > { %v1047_v33 = vld [vmem:[%s16552_s27 + $0xff0] sm:$0xff] }
 0x42a   : > { %11484 = vmatpush1.bf16.msra.mxu0 %v14156_v51  ;;  %v14381_v61 = vcombine.high %v1043_v7, %v1047_v33  ;;  %v907_v20 = vld [vmem:[%s16552_s27 + $0xb90] sm:$0xff]  ;;  %v14252_v51 = vcombine.low %v915_v47, %v919_v49 }
 0x42b   : > { %11525 = vmatpush1.bf16.msra.mxu1 %v14284_v6  ;;  %11485 = vmatprep.subr.bf16.mxu0 %v14149_v59  ;;  %v911_v0 = vld [vmem:[%s16552_s27 + $0xbb0] sm:$0xff]  ;;  %v14380_v6 = vcombine.low %v1043_v7, %v1047_v33 }
 0x42c   : > { %11526 = vmatprep.subr.bf16.mxu1 %v14277_v14  ;;  %v1035_v40 = vld [vmem:[%s16552_s27 + $0xf90] sm:$0xff]  ;;  %v14245_v59 = vcombine.high %v907_v20, %v911_v0 }
 0x42d   : > { %v1039_v50 = vld [vmem:[%s16552_s27 + $0xfb0] sm:$0xff] }
 0x42e   : > { %11486 = vmatpush1.bf16.msra.mxu0 %v14148_v22  ;;  %v14373_v14 = vcombine.high %v1035_v40, %v1039_v50  ;;  %v899_v15 = vld [vmem:[%s16552_s27 + $0xb50] sm:$0xff] }
 0x42f   : > { %11527 = vmatpush1.bf16.msra.mxu1 %v14276_v31  ;;  %11487 = vmatprep.subr.bf16.mxu0 %v14141_v37  ;;  %v903_v19 = vld [vmem:[%s16552_s27 + $0xb70] sm:$0xff]  ;;  %v14244_v31 = vcombine.low %v907_v20, %v911_v0 }
 0x430   : > { %11528 = vmatprep.subr.bf16.mxu1 %v14269_v10  ;;  %v1027_v2 = vld [vmem:[%s16552_s27 + $0xf50] sm:$0xff]  ;;  %v14372_v10 = vcombine.low %v1035_v40, %v1039_v50  ;;  %v14237_v27 = vcombine.high %v899_v15, %v903_v19  ;;  %v14236_v47 = vcombine.low %v899_v15, %v903_v19 }
 0x431   : > { %v1031_v26 = vld [vmem:[%s16552_s27 + $0xf70] sm:$0xff] }
 0x432   : > { %11488 = vmatpush1.bf16.msra.mxu0 %v14140_v53  ;;  %v14365_v48 = vcombine.high %v1027_v2, %v1031_v26  ;;  %v891_v28 = vld [vmem:[%s16552_s27 + $0xb10] sm:$0xff]  ;;  %v14364_v49 = vcombine.low %v1027_v2, %v1031_v26 }
 0x433   : > { %11529 = vmatpush1.bf16.msra.mxu1 %v14268_v56  ;;  %11489 = vmatprep.subr.bf16.mxu0 %v14133_v21  ;;  %v895_v53 = vld [vmem:[%s16552_s27 + $0xb30] sm:$0xff] }
 0x434   : > { %11530 = vmatprep.subr.bf16.mxu1 %v14261_v39  ;;  %v1019_v21 = vld [vmem:[%s16552_s27 + $0xf10] sm:$0xff]  ;;  %v14229_v7 = vcombine.high %v891_v28, %v895_v53  ;;  %v14228_v20 = vcombine.low %v891_v28, %v895_v53 }
 0x435   : > { %v1023_v39 = vld [vmem:[%s16552_s27 + $0xf30] sm:$0xff] }
 0x436   : > { %11490 = vmatpush1.bf16.msra.mxu0 %v14132_v30  ;;  %v14357_v30 = vcombine.high %v1019_v21, %v1023_v39  ;;  %v14356_v0 = vcombine.low %v1019_v21, %v1023_v39  ;;  %v859_v21 = vld [vmem:[%s16552_s27 + $0xa10] sm:$0xff] }
 0x437   : > { %11531 = vmatpush1.bf16.msra.mxu1 %v14260_v57  ;;  %11491 = vmatprep.subr.bf16.mxu0 %v14253_v60  ;;  %v883_v57 = vld [vmem:[%s16552_s27 + $0xad0] sm:$0xff] }
 0x438   : > { %11532 = vmatprep.subr.bf16.mxu1 %v14381_v61  ;;  %v1011_v60 = vld [vmem:[%s16552_s27 + $0xed0] sm:$0xff] }
 0x439   : > { %v1015_v61 = vld [vmem:[%s16552_s27 + $0xef0] sm:$0xff] }
 0x43a   : > { %v11222_v22 = vpop.f32.mrf.mxu1  ;;  %11492 = vmatpush2.bf16.msra.mxu0 %v14252_v51  ;;  %v14349_v50 = vcombine.high %v1011_v60, %v1015_v61  ;;  %v875_v51 = vld [vmem:[%s16552_s27 + $0xa90] sm:$0xff]  ;;  %v14348_v19 = vcombine.low %v1011_v60, %v1015_v61 }
 0x43b   : > { %v17784_v37 = vadd.f32 %v11222_v22, %v17743_v17  ;;  %11533 = vmatpush2.bf16.msra.mxu1 %v14380_v6  ;;  %11493 = vmatprep.subr.bf16.mxu0 %v14245_v59  ;;  %v879_v6 = vld [vmem:[%s16552_s27 + $0xab0] sm:$0xff] }
 0x43c   : > { %v11224_v34 = vpop.f32.mrf.mxu1  ;;  %11534 = vmatprep.subr.bf16.mxu1 %v14373_v14  ;;  %v1003_v59 = vld [vmem:[%s16552_s27 + $0xe90] sm:$0xff]  ;;  %v14213_v2 = vcombine.high %v875_v51, %v879_v6 }
 0x43d   : > { %v17789_v56 = vadd.f32 %v11224_v34, %v17747_v62  ;;  %v887_v62 = vld [vmem:[%s16552_s27 + $0xaf0] sm:$0xff]  ;;  %v14212_v34 = vcombine.low %v875_v51, %v879_v6 }
 0x43e   : > { %v11226_v17 = vpop.f32.mrf.mxu1  ;;  %11494 = vmatpush2.bf16.msra.mxu0 %v14244_v31  ;;  %v14221_v40 = vcombine.high %v883_v57, %v887_v62  ;;  %v1007_v14 = vld [vmem:[%s16552_s27 + $0xeb0] sm:$0xff]  ;;  %v14220_v15 = vcombine.low %v883_v57, %v887_v62 }
 0x43f   : > { %11535 = vmatpush2.bf16.msra.mxu1 %v14372_v10  ;;  %11495 = vmatprep.subr.bf16.mxu0 %v14237_v27  ;;  %v14341_v26 = vcombine.high %v1003_v59, %v1007_v14  ;;  %v867_v22 = vld [vmem:[%s16552_s27 + $0xa50] sm:$0xff] }
 0x440   : > { %v11227_v33 = vpop.f32.mrf.mxu1  ;;  %11536 = vmatprep.subr.bf16.mxu1 %v14365_v48  ;;  %v871_v31 = vld [vmem:[%s16552_s27 + $0xa70] sm:$0xff]  ;;  %v14340_v48 = vcombine.low %v1003_v59, %v1007_v14 }
 0x441   : > { %v995_v10 = vld [vmem:[%s16552_s27 + $0xe50] sm:$0xff]  ;;  %v14205_v28 = vcombine.high %v867_v22, %v871_v31 }
 0x442   : > { %11496 = vmatpush2.bf16.msra.mxu0 %v14236_v47  ;;  %v999_v27 = vld [vmem:[%s16552_s27 + $0xe70] sm:$0xff] }
 0x443   : > { %11537 = vmatpush2.bf16.msra.mxu1 %v14364_v49  ;;  %11497 = vmatprep.subr.bf16.mxu0 %v14229_v7  ;;  %v14333_v53 = vcombine.high %v995_v10, %v999_v27  ;;  %v863_v39 = vld [vmem:[%s16552_s27 + $0xa30] sm:$0xff]  ;;  %v14204_v49 = vcombine.low %v867_v22, %v871_v31  ;;  %v14332_v7 = vcombine.low %v995_v10, %v999_v27 }
 0x444   : > { %11538 = vmatprep.subr.bf16.mxu1 %v14357_v30  ;;  %v987_v17 = vld [vmem:[%s16552_s27 + $0xe10] sm:$0xff]  ;;  %v14197_v33 = vcombine.high %v859_v21, %v863_v39 }
 0x445   : > { %v991_v47 = vld [vmem:[%s16552_s27 + $0xe30] sm:$0xff] }
 0x446   : > { %11498 = vmatpush2.bf16.msra.mxu0 %v14228_v20  ;;  %v14325_v30 = vcombine.high %v987_v17, %v991_v47  ;;  %v1107_v57 = vld [vmem:[%s16552_s27 + $0x11d0] sm:$0xff]  ;;  %v14196_v20 = vcombine.low %v859_v21, %v863_v39 }
 0x447   : > { %11539 = vmatpush2.bf16.msra.mxu1 %v14356_v0  ;;  %11499 = vmatprep.subr.bf16.mxu0 %v14221_v40  ;;  %v1111_v62 = vld [vmem:[%s16552_s27 + $0x11f0] sm:$0xff]  ;;  %v14324_v0 = vcombine.low %v987_v17, %v991_v47 }
 0x448   : > { %11540 = vmatprep.subr.bf16.mxu1 %v14349_v50  ;;  %v1235_v60 = vld [vmem:[%s16552_s27 + $0x15d0] sm:$0xff]  ;;  %v14445_v40 = vcombine.high %v1107_v57, %v1111_v62 }
 0x449   : > { %v1239_v61 = vld [vmem:[%s16552_s27 + $0x15f0] sm:$0xff] }
 0x44a   : > { %11500 = vmatpush2.bf16.msra.mxu0 %v14220_v15  ;;  %v14573_v50 = vcombine.high %v1235_v60, %v1239_v61  ;;  %v1099_v51 = vld [vmem:[%s16552_s27 + $0x1190] sm:$0xff]  ;;  %v14444_v15 = vcombine.low %v1107_v57, %v1111_v62 }
 0x44b   : > { %11541 = vmatpush2.bf16.msra.mxu1 %v14348_v19  ;;  %11501 = vmatprep.subr.bf16.mxu0 %v14213_v2  ;;  %v1103_v6 = vld [vmem:[%s16552_s27 + $0x11b0] sm:$0xff]  ;;  %v14572_v19 = vcombine.low %v1235_v60, %v1239_v61 }
 0x44c   : > { %11542 = vmatprep.subr.bf16.mxu1 %v14341_v26  ;;  %v1227_v59 = vld [vmem:[%s16552_s27 + $0x1590] sm:$0xff]  ;;  %v14437_v2 = vcombine.high %v1099_v51, %v1103_v6 }
 0x44d   : > { %v1231_v14 = vld [vmem:[%s16552_s27 + $0x15b0] sm:$0xff] }
 0x44e   : > { %11502 = vmatpush2.bf16.msra.mxu0 %v14212_v34  ;;  %v14565_v26 = vcombine.high %v1227_v59, %v1231_v14  ;;  %v1091_v22 = vld [vmem:[%s16552_s27 + $0x1150] sm:$0xff] }
 0x44f   : > { %11543 = vmatpush2.bf16.msra.mxu1 %v14340_v48  ;;  %11503 = vmatprep.subr.bf16.mxu0 %v14205_v28  ;;  %v1095_v31 = vld [vmem:[%s16552_s27 + $0x1170] sm:$0xff]  ;;  %v14436_v48 = vcombine.low %v1099_v51, %v1103_v6 }
 0x450   : > { %11544 = vmatprep.subr.bf16.mxu1 %v14333_v53  ;;  %v1219_v27 = vld [vmem:[%s16552_s27 + $0x1550] sm:$0xff]  ;;  %v14564_v53 = vcombine.low %v1227_v59, %v1231_v14  ;;  %v14429_v21 = vcombine.high %v1091_v22, %v1095_v31 }
 0x451   : > { %v1223_v34 = vld [vmem:[%s16552_s27 + $0x1570] sm:$0xff] }
 0x452   : > { %11504 = vmatpush2.bf16.msra.mxu0 %v14204_v49  ;;  %v14557_v39 = vcombine.high %v1219_v27, %v1223_v34  ;;  %v1083_v17 = vld [vmem:[%s16552_s27 + $0x1110] sm:$0xff]  ;;  %v14556_v62 = vcombine.low %v1219_v27, %v1223_v34 }
 0x453   : > { %11545 = vmatpush2.bf16.msra.mxu1 %v14332_v7  ;;  %11505 = vmatprep.subr.bf16.mxu0 %v14197_v33  ;;  %v1087_v47 = vld [vmem:[%s16552_s27 + $0x1130] sm:$0xff] }
 0x454   : > { %11546 = vmatprep.subr.bf16.mxu1 %v14325_v30  ;;  %v1211_v7 = vld [vmem:[%s16552_s27 + $0x1510] sm:$0xff]  ;;  %v14428_v30 = vcombine.low %v1091_v22, %v1095_v31  ;;  %v14421_v60 = vcombine.high %v1083_v17, %v1087_v47  ;;  %v14420_v51 = vcombine.low %v1083_v17, %v1087_v47 }
 0x455   : > { %v1215_v33 = vld [vmem:[%s16552_s27 + $0x1530] sm:$0xff] }
 0x456   : > { %11506 = vmatpush2.bf16.msra.mxu0 %v14196_v20  ;;  %v14549_v61 = vcombine.high %v1211_v7, %v1215_v33  ;;  %v1075_v20 = vld [vmem:[%s16552_s27 + $0x10d0] sm:$0xff]  ;;  %v14548_v6 = vcombine.low %v1211_v7, %v1215_v33 }
 0x457   : > { %11547 = vmatpush2.bf16.msra.mxu1 %v14324_v0  ;;  %11557 = vmatprep.subr.bf16.mxu0 %v14445_v40  ;;  %v1079_v0 = vld [vmem:[%s16552_s27 + $0x10f0] sm:$0xff] }
 0x458   : > { %11598 = vmatprep.subr.bf16.mxu1 %v14573_v50  ;;  %v1203_v40 = vld [vmem:[%s16552_s27 + $0x14d0] sm:$0xff]  ;;  %v14413_v59 = vcombine.high %v1075_v20, %v1079_v0  ;;  %v14412_v22 = vcombine.low %v1075_v20, %v1079_v0 }
 0x459   : > { %v17819_v10 = vpop.f32.mrf.mxu0  ;;  %11508 = vmatmul.mubr.bf16.vlgmr.msra.gmra.mxu0 %v16774_v16  ;;  %v1207_v50 = vld [vmem:[%s16552_s27 + $0x14f0] sm:$0xff] }
 0x45a   : > { %11549 = vmatmul.mubr.bf16.vlgmr.msra.gmra.mxu1 %v16785_v44  ;;  %11558 = vmatpush1.bf16.msra.mxu0 %v14444_v15  ;;  %v14541_v14 = vcombine.high %v1203_v40, %v1207_v50  ;;  %v1067_v15 = vld [vmem:[%s16552_s27 + $0x1090] sm:$0xff]  ;;  %v14540_v31 = vcombine.low %v1203_v40, %v1207_v50 }
 0x45b   : > { %11599 = vmatpush1.bf16.msra.mxu1 %v14572_v19  ;;  %v17825_v28 = vpop.f32.mrf.mxu0  ;;  %11559 = vmatprep.subr.bf16.mxu0 %v14437_v2  ;;  %v1071_v19 = vld [vmem:[%s16552_s27 + $0x10b0] sm:$0xff] }
 0x45c   : > { %11600 = vmatprep.subr.bf16.mxu1 %v14565_v26  ;;  %11589 = vmatprep.mubr.bf16.mxu0 %v16781_v25  ;;  %v1195_v2 = vld [vmem:[%s16552_s27 + $0x1490] sm:$0xff]  ;;  %v14405_v27 = vcombine.high %v1067_v15, %v1071_v19  ;;  %v14404_v17 = vcombine.low %v1067_v15, %v1071_v19 }
 0x45d   : > { %v11267_v49 = vpop.f32.mrf.mxu0  ;;  %11630 = vmatprep.mubr.bf16.mxu1 %v16794_v36  ;;  %v1199_v26 = vld [vmem:[%s16552_s27 + $0x14b0] sm:$0xff] }
 0x45e   : > { %11560 = vmatpush1.bf16.msra.mxu0 %v14436_v48  ;;  %v14533_v34 = vcombine.high %v1195_v2, %v1199_v26  ;;  %v1059_v48 = vld [vmem:[%s16552_s27 + $0x1050] sm:$0xff]  ;;  %v14532_v47 = vcombine.low %v1195_v2, %v1199_v26 }
 0x45f   : > { %11601 = vmatpush1.bf16.msra.mxu1 %v14564_v53  ;;  %v11268_v57 = vpop.f32.mrf.mxu0  ;;  %11561 = vmatprep.subr.bf16.mxu0 %v14429_v21  ;;  %v1063_v53 = vld [vmem:[%s16552_s27 + $0x1070] sm:$0xff] }
 0x460   : > { %11602 = vmatprep.subr.bf16.mxu1 %v14557_v39  ;;  %v1187_v21 = vld [vmem:[%s16552_s27 + $0x1450] sm:$0xff]  ;;  %v14397_v49 = vcombine.high %v1059_v48, %v1063_v53 }
 0x461   : > { %v1191_v39 = vld [vmem:[%s16552_s27 + $0x1470] sm:$0xff] }
 0x462   : > { %11562 = vmatpush1.bf16.msra.mxu0 %v14428_v30  ;;  %v14525_v7 = vcombine.high %v1187_v21, %v1191_v39  ;;  %v1051_v33 = vld [vmem:[%s16552_s27 + $0x1010] sm:$0xff] }
 0x463   : > { %11603 = vmatpush1.bf16.msra.mxu1 %v14556_v62  ;;  %11563 = vmatprep.subr.bf16.mxu0 %v14421_v60  ;;  %v1055_v30 = vld [vmem:[%s16552_s27 + $0x1030] sm:$0xff]  ;;  %v14396_v60 = vcombine.low %v1059_v48, %v1063_v53 }
 0x464   : > { %11604 = vmatprep.subr.bf16.mxu1 %v14549_v61  ;;  %v1179_v57 = vld [vmem:[%s16552_s27 + $0x1410] sm:$0xff]  ;;  %v14524_v61 = vcombine.low %v1187_v21, %v1191_v39  ;;  %v14389_v20 = vcombine.high %v1051_v33, %v1055_v30 }
 0x465   : > { %v1183_v62 = vld [vmem:[%s16552_s27 + $0x1430] sm:$0xff] }
 0x466   : > { %11564 = vmatpush1.bf16.msra.mxu0 %v14420_v51  ;;  %v14517_v0 = vcombine.high %v1179_v57, %v1183_v62  ;;  %v1171_v40 = vld [vmem:[%s16552_s27 + $0x13d0] sm:$0xff] }
 0x467   : > { %11605 = vmatpush1.bf16.msra.mxu1 %v14548_v6  ;;  %11565 = vmatprep.subr.bf16.mxu0 %v14413_v59  ;;  %v1175_v50 = vld [vmem:[%s16552_s27 + $0x13f0] sm:$0xff]  ;;  %v14388_v59 = vcombine.low %v1051_v33, %v1055_v30 }
 0x468   : > { %11606 = vmatprep.subr.bf16.mxu1 %v14541_v14  ;;  %v1299_v51 = vld [vmem:[%s16552_s27 + $0x17d0] sm:$0xff]  ;;  %v14516_v14 = vcombine.low %v1179_v57, %v1183_v62  ;;  %v14509_v15 = vcombine.high %v1171_v40, %v1175_v50 }
 0x469   : > { %v1303_v6 = vld [vmem:[%s16552_s27 + $0x17f0] sm:$0xff] }
 0x46a   : > { %11566 = vmatpush1.bf16.msra.mxu0 %v14412_v22  ;;  %v14637_v19 = vcombine.high %v1299_v51, %v1303_v6  ;;  %v1163_v2 = vld [vmem:[%s16552_s27 + $0x1390] sm:$0xff] }
 0x46b   : > { %11607 = vmatpush1.bf16.msra.mxu1 %v14540_v31  ;;  %11567 = vmatprep.subr.bf16.mxu0 %v14405_v27  ;;  %v1167_v26 = vld [vmem:[%s16552_s27 + $0x13b0] sm:$0xff]  ;;  %v14508_v27 = vcombine.low %v1171_v40, %v1175_v50 }
 0x46c   : > { %11608 = vmatprep.subr.bf16.mxu1 %v14533_v34  ;;  %v1291_v22 = vld [vmem:[%s16552_s27 + $0x1790] sm:$0xff]  ;;  %v14636_v34 = vcombine.low %v1299_v51, %v1303_v6  ;;  %v14501_v48 = vcombine.high %v1163_v2, %v1167_v26 }
 0x46d   : > { %v1295_v31 = vld [vmem:[%s16552_s27 + $0x17b0] sm:$0xff] }
 0x46e   : > { %11568 = vmatpush1.bf16.msra.mxu0 %v14404_v17  ;;  %v14629_v53 = vcombine.high %v1291_v22, %v1295_v31  ;;  %v1155_v21 = vld [vmem:[%s16552_s27 + $0x1350] sm:$0xff]  ;;  %v14628_v33 = vcombine.low %v1291_v22, %v1295_v31 }
 0x46f   : > { %11609 = vmatpush1.bf16.msra.mxu1 %v14532_v47  ;;  %11569 = vmatprep.subr.bf16.mxu0 %v14397_v49  ;;  %v1159_v39 = vld [vmem:[%s16552_s27 + $0x1370] sm:$0xff] }
 0x470   : > { %11610 = vmatprep.subr.bf16.mxu1 %v14525_v7  ;;  %v1283_v17 = vld [vmem:[%s16552_s27 + $0x1750] sm:$0xff]  ;;  %v14500_v7 = vcombine.low %v1163_v2, %v1167_v26  ;;  %v14493_v30 = vcombine.high %v1155_v21, %v1159_v39  ;;  %v14492_v50 = vcombine.low %v1155_v21, %v1159_v39 }
 0x471   : > { %v1287_v47 = vld [vmem:[%s16552_s27 + $0x1770] sm:$0xff] }
 0x472   : > { %11570 = vmatpush1.bf16.msra.mxu0 %v14396_v60  ;;  %v14621_v62 = vcombine.high %v1283_v17, %v1287_v47  ;;  %v1147_v60 = vld [vmem:[%s16552_s27 + $0x1310] sm:$0xff]  ;;  %v14620_v51 = vcombine.low %v1283_v17, %v1287_v47 }
 0x473   : > { %11611 = vmatpush1.bf16.msra.mxu1 %v14524_v61  ;;  %11571 = vmatprep.subr.bf16.mxu0 %v14389_v20  ;;  %v1151_v61 = vld [vmem:[%s16552_s27 + $0x1330] sm:$0xff] }
 0x474   : > { %11612 = vmatprep.subr.bf16.mxu1 %v14517_v0  ;;  %v1275_v20 = vld [vmem:[%s16552_s27 + $0x1710] sm:$0xff]  ;;  %v14485_v6 = vcombine.high %v1147_v60, %v1151_v61  ;;  %v14484_v22 = vcombine.low %v1147_v60, %v1151_v61 }
 0x475   : > { %v1279_v0 = vld [vmem:[%s16552_s27 + $0x1730] sm:$0xff] }
 0x476   : > { %11572 = vmatpush1.bf16.msra.mxu0 %v14388_v59  ;;  %v1267_v2 = vld [vmem:[%s16552_s27 + $0x16d0] sm:$0xff]  ;;  %v14612_v31 = vcombine.low %v1275_v20, %v1279_v0 }
 0x477   : > { %11613 = vmatpush1.bf16.msra.mxu1 %v14516_v14  ;;  %11573 = vmatprep.subr.bf16.mxu0 %v14509_v15  ;;  %v14613_v14 = vcombine.high %v1275_v20, %v1279_v0  ;;  %v1139_v15 = vld [vmem:[%s16552_s27 + $0x12d0] sm:$0xff] }
 0x478   : > { %11614 = vmatprep.subr.bf16.mxu1 %v14637_v19  ;;  %v1143_v19 = vld [vmem:[%s16552_s27 + $0x12f0] sm:$0xff] }
 0x479   : > { %v1271_v26 = vld [vmem:[%s16552_s27 + $0x16f0] sm:$0xff]  ;;  %v14476_v17 = vcombine.low %v1139_v15, %v1143_v19 }
 0x47a   : > { %v17861_v49 = vpop.f32.mrf.mxu1  ;;  %11574 = vmatpush2.bf16.msra.mxu0 %v14508_v27  ;;  %v14477_v27 = vcombine.high %v1139_v15, %v1143_v19  ;;  %v1259_v21 = vld [vmem:[%s16552_s27 + $0x1690] sm:$0xff]  ;;  %v14604_v47 = vcombine.low %v1267_v2, %v1271_v26 }
 0x47b   : > { %11615 = vmatpush2.bf16.msra.mxu1 %v14636_v34  ;;  %11575 = vmatprep.subr.bf16.mxu0 %v14501_v48  ;;  %v14605_v34 = vcombine.high %v1267_v2, %v1271_v26  ;;  %v1131_v48 = vld [vmem:[%s16552_s27 + $0x1290] sm:$0xff] }
 0x47c   : > { %v17863_v57 = vpop.f32.mrf.mxu1  ;;  %11616 = vmatprep.subr.bf16.mxu1 %v14629_v53  ;;  %v1135_v53 = vld [vmem:[%s16552_s27 + $0x12b0] sm:$0xff] }
 0x47d   : > { %v1263_v39 = vld [vmem:[%s16552_s27 + $0x16b0] sm:$0xff]  ;;  %v14468_v20 = vcombine.low %v1131_v48, %v1135_v53 }
 0x47e   : > { %v11308_v40 = vpop.f32.mrf.mxu1  ;;  %11576 = vmatpush2.bf16.msra.mxu0 %v14500_v7  ;;  %v14469_v7 = vcombine.high %v1131_v48, %v1135_v53  ;;  %v1251_v60 = vld [vmem:[%s16552_s27 + $0x1650] sm:$0xff]  ;;  %v14596_v0 = vcombine.low %v1259_v21, %v1263_v39 }
 0x47f   : > { %11617 = vmatpush2.bf16.msra.mxu1 %v14628_v33  ;;  %11577 = vmatprep.subr.bf16.mxu0 %v14493_v30  ;;  %v14597_v33 = vcombine.high %v1259_v21, %v1263_v39  ;;  %v1123_v30 = vld [vmem:[%s16552_s27 + $0x1250] sm:$0xff] }
 0x480   : > { %v11309_v59 = vpop.f32.mrf.mxu1  ;;  %11618 = vmatprep.subr.bf16.mxu1 %v14621_v62  ;;  %v1127_v62 = vld [vmem:[%s16552_s27 + $0x1270] sm:$0xff] }
 0x481   : > { %v1255_v61 = vld [vmem:[%s16552_s27 + $0x1670] sm:$0xff]  ;;  %v14461_v40 = vcombine.high %v1123_v30, %v1127_v62  ;;  %v14460_v15 = vcombine.low %v1123_v30, %v1127_v62  ;;  %v16326_v30 = vmov 1983009808  }
 0x482   : > { %11578 = vmatpush2.bf16.msra.mxu0 %v14492_v50  ;;  %v14589_v50 = vcombine.high %v1251_v60, %v1255_v61  ;;  %v1243_v59 = vld [vmem:[%s16552_s27 + $0x1610] sm:$0xff]  ;;  %v14588_v19 = vcombine.low %v1251_v60, %v1255_v61  ;;  %v12470_v62 = vunpack.c.l.s4 %v16326_v30  ;;  %v11264_v60 = vadd.f32 %v17819_v10, %v17784_v37 }
 0x483   : > { %11619 = vmatpush2.bf16.msra.mxu1 %v14620_v51  ;;  %11579 = vmatprep.subr.bf16.mxu0 %v14485_v6  ;;  %v1115_v51 = vld [vmem:[%s16552_s27 + $0x1210] sm:$0xff] }
 0x484   : > { %11620 = vmatprep.subr.bf16.mxu1 %v14613_v14  ;;  %v1119_v6 = vld [vmem:[%s16552_s27 + $0x1230] sm:$0xff] }
 0x485   : > { %v1247_v14 = vld [vmem:[%s16552_s27 + $0x1630] sm:$0xff]  ;;  %v14453_v2 = vcombine.high %v1115_v51, %v1119_v6  ;;  %v14452_v48 = vcombine.low %v1115_v51, %v1119_v6 }
 0x486   : > { %11580 = vmatpush2.bf16.msra.mxu0 %v14484_v22  ;;  %v14581_v26 = vcombine.high %v1243_v59, %v1247_v14  ;;  %v1363_v22 = vld [vmem:[%s16552_s27 + $0x19d0] sm:$0xff]  ;;  %v14580_v53 = vcombine.low %v1243_v59, %v1247_v14 }
 0x487   : > { %11621 = vmatpush2.bf16.msra.mxu1 %v14612_v31  ;;  %11581 = vmatprep.subr.bf16.mxu0 %v14477_v27  ;;  %v1367_v31 = vld [vmem:[%s16552_s27 + $0x19f0] sm:$0xff] }
 0x488   : > { %11622 = vmatprep.subr.bf16.mxu1 %v14605_v34  ;;  %v1491_v27 = vld [vmem:[%s16552_s27 + $0x1dd0] sm:$0xff]  ;;  %v14701_v21 = vcombine.high %v1363_v22, %v1367_v31  ;;  %v14700_v61 = vcombine.low %v1363_v22, %v1367_v31 }
 0x489   : > { %v1495_v34 = vld [vmem:[%s16552_s27 + $0x1df0] sm:$0xff] }
 0x48a   : > { %11582 = vmatpush2.bf16.msra.mxu0 %v14476_v17  ;;  %v14829_v39 = vcombine.high %v1491_v27, %v1495_v34  ;;  %v1355_v17 = vld [vmem:[%s16552_s27 + $0x1990] sm:$0xff] }
 0x48b   : > { %11623 = vmatpush2.bf16.msra.mxu1 %v14604_v47  ;;  %11583 = vmatprep.subr.bf16.mxu0 %v14469_v7  ;;  %v1359_v47 = vld [vmem:[%s16552_s27 + $0x19b0] sm:$0xff] }
 0x48c   : > { %11624 = vmatprep.subr.bf16.mxu1 %v14597_v33  ;;  %v1483_v7 = vld [vmem:[%s16552_s27 + $0x1d90] sm:$0xff] }
 0x48d   : > { %v1487_v33 = vld [vmem:[%s16552_s27 + $0x1db0] sm:$0xff] }
 0x48e   : > { %11584 = vmatpush2.bf16.msra.mxu0 %v14468_v20  ;;  %v14828_v20 = vcombine.low %v1491_v27, %v1495_v34  ;;  %v14821_v51 = vcombine.high %v1483_v7, %v1487_v33  ;;  %v1347_v6 = vld [vmem:[%s16552_s27 + $0x1950] sm:$0xff] }
 0x48f   : > { %11625 = vmatpush2.bf16.msra.mxu1 %v14596_v0  ;;  %11585 = vmatprep.subr.bf16.mxu0 %v14461_v40  ;;  %v14693_v0 = vcombine.high %v1355_v17, %v1359_v47  ;;  %v11266_v40 = vadd.f32 %v17825_v28, %v17789_v56  ;;  %v1351_v59 = vld [vmem:[%s16552_s27 + $0x1970] sm:$0xff]  ;;  %v14692_v56 = vcombine.low %v1355_v17, %v1359_v47 }
 0x490   : > { %11626 = vmatprep.subr.bf16.mxu1 %v14589_v50  ;;  %v11305_v50 = vadd.f32 %v17861_v49, %v11264_v60  ;;  %v1475_v37 = vld [vmem:[%s16552_s27 + $0x1d50] sm:$0xff]  ;;  %v14820_v49 = vcombine.low %v1483_v7, %v1487_v33  ;;  %v14685_v22 = vcombine.high %v1347_v6, %v1351_v59  ;;  %v14684_v30 = vcombine.low %v1347_v6, %v1351_v59 }
 0x491   : > { %v1479_v10 = vld [vmem:[%s16552_s27 + $0x1d70] sm:$0xff] }
 0x492   : > { %11586 = vmatpush2.bf16.msra.mxu0 %v14460_v15  ;;  %v12471_v15 = vunpack.c.0.s8 %v12470_v62  ;;  %v14813_v34 = vcombine.high %v1475_v37, %v1479_v10  ;;  %v14812_v60 = vcombine.low %v1475_v37, %v1479_v10  ;;  %v531_v10 = vld [vmem:[#allocation2] sm:$0xff] }
 0x493   : > { %11627 = vmatpush2.bf16.msra.mxu1 %v14588_v19  ;;  %11587 = vmatprep.subr.bf16.mxu0 %v14453_v2  ;;  %v11307_v19 = vadd.f32 %v17863_v57, %v11266_v40  ;;  %v1343_v57 = vld [vmem:[%s16552_s27 + $0x1930] sm:$0xff] }
 0x494   : > { %11628 = vmatprep.subr.bf16.mxu1 %v14581_v26  ;;  %v17912_v17 = vsub.s32 %v12471_v15, %v16604_v13  ;;  %v1463_v15 = vld [vmem:[%s16552_s27 + $0x1cf0] sm:$0xff] }
 0x496   : > { %11588 = vmatpush2.bf16.msra.mxu0 %v14452_v48  ;;  %v1339_v48 = vld [vmem:[%s16552_s27 + $0x1910] sm:$0xff]  ;;  %v12475_v6 = vrot.slane %v12467_v45, %v17912_v17 }
 0x497   : > { %11629 = vmatpush2.bf16.msra.mxu1 %v14580_v53  ;;  %11639 = vmatprep.subr.bf16.mxu0 %v14701_v21  ;;  %v1467_v21 = vld [vmem:[%s16552_s27 + $0x1d10] sm:$0xff]  ;;  %v14676_v37 = vcombine.low %v1339_v48, %v1343_v57 }
 0x498   : > { %11680 = vmatprep.subr.bf16.mxu1 %v14829_v39  ;;  %v1471_v39 = vld [vmem:[%s16552_s27 + $0x1d30] sm:$0xff] }
 0x499   : > { %v11345_v14 = vpop.f32.mrf.mxu0  ;;  %11590 = vmatmul.mubr.bf16.vlgmr.msra.gmra.mxu0 %v16864_v54  ;;  %v14805_v40 = vcombine.high %v1467_v21, %v1471_v39 }
 0x49a   : > { %v11346_v2 = vadd.f32 %v11345_v14, %v11305_v50  ;;  %v11386_v26 = vpop.f32.mrf.mxu1  ;;  %11631 = vmatmul.mubr.bf16.vlgmr.msra.gmra.mxu1 %v16875_v3  ;;  %11640 = vmatpush1.bf16.msra.mxu0 %v14700_v61  ;;  %v14677_v61 = vcombine.high %v1339_v48, %v1343_v57  ;;  %v1331_v50 = vld [vmem:[%s16552_s27 + $0x18d0] sm:$0xff] }
 0x49b   : > { %11681 = vmatpush1.bf16.msra.mxu1 %v14828_v20  ;;  %v11347_v28 = vpop.f32.mrf.mxu0  ;;  %11641 = vmatprep.subr.bf16.mxu0 %v14693_v0  ;;  %v1459_v14 = vld [vmem:[%s16552_s27 + $0x1cd0] sm:$0xff] }
 0x49c   : > { %v11348_v31 = vadd.f32 %v11347_v28, %v11307_v19  ;;  %v11388_v27 = vpop.f32.mrf.mxu1  ;;  %11682 = vmatprep.subr.bf16.mxu1 %v14821_v51  ;;  %11671 = vmatprep.mubr.bf16.mxu0 %v16871_v1  ;;  %v11387_v47 = vadd.f32 %v11386_v26, %v11346_v2  ;;  %v1335_v51 = vld [vmem:[%s16552_s27 + $0x18f0] sm:$0xff]  ;;  %v14804_v19 = vcombine.low %v1467_v21, %v1471_v39 }
 0x49d   : > { %v11349_v53 = vpop.f32.mrf.mxu0  ;;  %11712 = vmatprep.mubr.bf16.mxu1 %v16884_v12  ;;  %v14669_v2 = vcombine.high %v1331_v50, %v1335_v51  ;;  %v1323_v28 = vld [vmem:[%s16552_s27 + $0x1890] sm:$0xff] }
 0x49e   : > { %v11389_v7 = vadd.f32 %v11388_v27, %v11348_v31  ;;  %v11390_v33 = vpop.f32.mrf.mxu1  ;;  %11642 = vmatpush1.bf16.msra.mxu0 %v14692_v56  ;;  %v14797_v56 = vcombine.high %v1459_v14, %v1463_v15  ;;  %v14796_v31 = vcombine.low %v1459_v14, %v1463_v15  ;;  %v1315_v48 = vld [vmem:[%s16552_s27 + $0x1850] sm:$0xff] }
 0x49f   : > { %11683 = vmatpush1.bf16.msra.mxu1 %v14820_v49  ;;  %v11350_v62 = vpop.f32.mrf.mxu0  ;;  %11643 = vmatprep.subr.bf16.mxu0 %v14685_v22  ;;  %v1327_v49 = vld [vmem:[%s16552_s27 + $0x18b0] sm:$0xff]  ;;  %v14668_v22 = vcombine.low %v1331_v50, %v1335_v51 }
 0x4a0   : > { %v12468_v20 = vcombine.low %v11387_v47, %v11389_v7  ;;  %v11391_v0 = vpop.f32.mrf.mxu1  ;;  %11684 = vmatprep.subr.bf16.mxu1 %v14813_v34  ;;  %v14661_v27 = vcombine.high %v1323_v28, %v1327_v49  ;;  %v14789_v34 = vcombine.high %v1451_v24, %v1455_v35  ;;  %v1319_v57 = vld [vmem:[%s16552_s27 + $0x1870] sm:$0xff]  ;;  %v14660_v39 = vcombine.low %v1323_v28, %v1327_v49 }
 0x4a1   : > { %v1443_v53 = vld [vmem:[%s16552_s27 + $0x1c50] sm:$0xff]  ;;  %v14788_v47 = vcombine.low %v1451_v24, %v1455_v35  ;;  %v14653_v7 = vcombine.high %v1315_v48, %v1319_v57 }
 0x4a2   : > { %v12482_v59 = vrot.slane %v12468_v20, %v17912_v17  ;;  %11644 = vmatpush1.bf16.msra.mxu0 %v14684_v30  ;;  %v1447_v21 = vld [vmem:[%s16552_s27 + $0x1c70] sm:$0xff]  ;;  %v14652_v20 = vcombine.low %v1315_v48, %v1319_v57 }
 0x4a3   : > { %11685 = vmatpush1.bf16.msra.mxu1 %v14812_v60  ;;  %11645 = vmatprep.subr.bf16.mxu0 %v14677_v61  ;;  %v14781_v33 = vcombine.high %v1443_v53, %v1447_v21  ;;  %v1307_v30 = vld [vmem:[%s16552_s27 + $0x1810] sm:$0xff]  ;;  %v14780_v0 = vcombine.low %v1443_v53, %v1447_v21 }
 0x4a4   : > { %v12483_v26 = vcombine.low %v12475_v6, %v12482_v59  ;;  %11686 = vmatprep.subr.bf16.mxu1 %v14805_v40  ;;  %v1311_v62 = vld [vmem:[%s16552_s27 + $0x1830] sm:$0xff] }
 0x4a5   : > { %v1435_v60 = vld [vmem:[%s16552_s27 + $0x1c10] sm:$0xff]  ;;  %v14645_v40 = vcombine.high %v1307_v30, %v1311_v62  ;;  %v14644_v59 = vcombine.low %v1307_v30, %v1311_v62 }
 0x4a6   : > { %v12503_v45 = vadd.f32 %v12483_v26, %v531_v10  ;;  %11646 = vmatpush1.bf16.msra.mxu0 %v14676_v37  ;;  %v1439_v61 = vld [vmem:[%s16552_s27 + $0x1c30] sm:$0xff] }
 0x4a7   : > { %11687 = vmatpush1.bf16.msra.mxu1 %v14804_v19  ;;  %11647 = vmatprep.subr.bf16.mxu0 %v14669_v2  ;;  %v14773_v50 = vcombine.high %v1435_v60, %v1439_v61  ;;  %v1427_v51 = vld [vmem:[%s16552_s27 + $0x1bd0] sm:$0xff]  ;;  %v14772_v37 = vcombine.low %v1435_v60, %v1439_v61 }
 0x4a8   : > { %12505 = vst [vmem:[#allocation2] sm:$0xff] %v12503_v45  ;;  %11688 = vmatprep.subr.bf16.mxu1 %v14797_v56  ;;  %v1431_v14 = vld [vmem:[%s16552_s27 + $0x1bf0] sm:$0xff] }
 0x4a9   : > { %v1555_v15 = vld [vmem:[%s16552_s27 + $0x1fd0] sm:$0xff]  ;;  %v14765_v10 = vcombine.high %v1427_v51, %v1431_v14  ;;  %v14764_v49 = vcombine.low %v1427_v51, %v1431_v14 }
 0x4aa   : > { %11648 = vmatpush1.bf16.msra.mxu0 %v14668_v22  ;;  %v1559_v6 = vld [vmem:[%s16552_s27 + $0x1ff0] sm:$0xff] }
 0x4ab   : > { %11689 = vmatpush1.bf16.msra.mxu1 %v14796_v31  ;;  %11649 = vmatprep.subr.bf16.mxu0 %v14661_v27  ;;  %v14893_v19 = vcombine.high %v1555_v15, %v1559_v6  ;;  %v1419_v2 = vld [vmem:[%s16552_s27 + $0x1b90] sm:$0xff]  ;;  %v14892_v24 = vcombine.low %v1555_v15, %v1559_v6 }
 0x4ac   : > { %11690 = vmatprep.subr.bf16.mxu1 %v14789_v34  ;;  %v1423_v26 = vld [vmem:[%s16552_s27 + $0x1bb0] sm:$0xff] }
 0x4ad   : > { %v1547_v56 = vld [vmem:[%s16552_s27 + $0x1f90] sm:$0xff]  ;;  %v14757_v35 = vcombine.high %v1419_v2, %v1423_v26  ;;  %v14756_v48 = vcombine.low %v1419_v2, %v1423_v26 }
 0x4ae   : > { %11650 = vmatpush1.bf16.msra.mxu0 %v14660_v39  ;;  %v1551_v28 = vld [vmem:[%s16552_s27 + $0x1fb0] sm:$0xff] }
 0x4af   : > { %11691 = vmatpush1.bf16.msra.mxu1 %v14788_v47  ;;  %11651 = vmatprep.subr.bf16.mxu0 %v14653_v7  ;;  %v14885_v45 = vcombine.high %v1547_v56, %v1551_v28  ;;  %v1411_v22 = vld [vmem:[%s16552_s27 + $0x1b50] sm:$0xff]  ;;  %v14884_v57 = vcombine.low %v1547_v56, %v1551_v28 }
 0x4b0   : > { %11692 = vmatprep.subr.bf16.mxu1 %v14781_v33  ;;  %v1415_v31 = vld [vmem:[%s16552_s27 + $0x1b70] sm:$0xff] }
 0x4b1   : > { %v1539_v27 = vld [vmem:[%s16552_s27 + $0x1f50] sm:$0xff]  ;;  %v14749_v53 = vcombine.high %v1411_v22, %v1415_v31  ;;  %v14748_v30 = vcombine.low %v1411_v22, %v1415_v31 }
 0x4b2   : > { %11652 = vmatpush1.bf16.msra.mxu0 %v14652_v20  ;;  %v1543_v34 = vld [vmem:[%s16552_s27 + $0x1f70] sm:$0xff] }
 0x4b3   : > { %11693 = vmatpush1.bf16.msra.mxu1 %v14780_v0  ;;  %11653 = vmatprep.subr.bf16.mxu0 %v14645_v40  ;;  %v14877_v21 = vcombine.high %v1539_v27, %v1543_v34  ;;  %v1403_v39 = vld [vmem:[%s16552_s27 + $0x1b10] sm:$0xff]  ;;  %v14876_v62 = vcombine.low %v1539_v27, %v1543_v34 }
 0x4b4   : > { %11694 = vmatprep.subr.bf16.mxu1 %v14773_v50  ;;  %v1407_v47 = vld [vmem:[%s16552_s27 + $0x1b30] sm:$0xff] }
 0x4b5   : > { %v1531_v7 = vld [vmem:[%s16552_s27 + $0x1f10] sm:$0xff]  ;;  %v14741_v60 = vcombine.high %v1403_v39, %v1407_v47  ;;  %v14740_v51 = vcombine.low %v1403_v39, %v1407_v47 }
 0x4b6   : > { %11654 = vmatpush1.bf16.msra.mxu0 %v14644_v59  ;;  %v1535_v33 = vld [vmem:[%s16552_s27 + $0x1f30] sm:$0xff] }
 0x4b7   : > { %11695 = vmatpush1.bf16.msra.mxu1 %v14772_v37  ;;  %11655 = vmatprep.subr.bf16.mxu0 %v14765_v10  ;;  %v14869_v61 = vcombine.high %v1531_v7, %v1535_v33  ;;  %v1395_v20 = vld [vmem:[%s16552_s27 + $0x1ad0] sm:$0xff]  ;;  %v14868_v14 = vcombine.low %v1531_v7, %v1535_v33 }
 0x4b8   : > { %11696 = vmatprep.subr.bf16.mxu1 %v14893_v19  ;;  %v1399_v0 = vld [vmem:[%s16552_s27 + $0x1af0] sm:$0xff] }
 0x4b9   : > { %v1523_v40 = vld [vmem:[%s16552_s27 + $0x1ed0] sm:$0xff]  ;;  %v14733_v15 = vcombine.high %v1395_v20, %v1399_v0  ;;  %v14732_v2 = vcombine.low %v1395_v20, %v1399_v0 }
 0x4ba   : > { %11656 = vmatpush2.bf16.msra.mxu0 %v14764_v49  ;;  %v1527_v50 = vld [vmem:[%s16552_s27 + $0x1ef0] sm:$0xff] }
 0x4bb   : > { %11697 = vmatpush2.bf16.msra.mxu1 %v14892_v24  ;;  %11657 = vmatprep.subr.bf16.mxu0 %v14757_v35  ;;  %v14861_v6 = vcombine.high %v1523_v40, %v1527_v50  ;;  %v1387_v59 = vld [vmem:[%s16552_s27 + $0x1a90] sm:$0xff]  ;;  %v14860_v26 = vcombine.low %v1523_v40, %v1527_v50 }
 0x4bc   : > { %11698 = vmatprep.subr.bf16.mxu1 %v14885_v45  ;;  %v1391_v37 = vld [vmem:[%s16552_s27 + $0x1ab0] sm:$0xff] }
 0x4bd   : > { %v1515_v10 = vld [vmem:[%s16552_s27 + $0x1e90] sm:$0xff]  ;;  %v14725_v56 = vcombine.high %v1387_v59, %v1391_v37  ;;  %v14724_v22 = vcombine.low %v1387_v59, %v1391_v37 }
 0x4be   : > { %11658 = vmatpush2.bf16.msra.mxu0 %v14756_v48  ;;  %v1519_v19 = vld [vmem:[%s16552_s27 + $0x1eb0] sm:$0xff] }
 0x4bf   : > { %11699 = vmatpush2.bf16.msra.mxu1 %v14884_v57  ;;  %11659 = vmatprep.subr.bf16.mxu0 %v14749_v53  ;;  %v14853_v28 = vcombine.high %v1515_v10, %v1519_v19  ;;  %v1379_v49 = vld [vmem:[%s16552_s27 + $0x1a50] sm:$0xff]  ;;  %v14852_v31 = vcombine.low %v1515_v10, %v1519_v19 }
 0x4c0   : > { %11700 = vmatprep.subr.bf16.mxu1 %v14877_v21  ;;  %v1383_v24 = vld [vmem:[%s16552_s27 + $0x1a70] sm:$0xff] }
 0x4c1   : > { %v1507_v35 = vld [vmem:[%s16552_s27 + $0x1e50] sm:$0xff]  ;;  %v14717_v27 = vcombine.high %v1379_v49, %v1383_v24  ;;  %v14716_v39 = vcombine.low %v1379_v49, %v1383_v24 }
 0x4c2   : > { %11660 = vmatpush2.bf16.msra.mxu0 %v14748_v30  ;;  %v1511_v45 = vld [vmem:[%s16552_s27 + $0x1e70] sm:$0xff] }
 0x4c3   : > { %11701 = vmatpush2.bf16.msra.mxu1 %v14876_v62  ;;  %11661 = vmatprep.subr.bf16.mxu0 %v14741_v60  ;;  %v14845_v34 = vcombine.high %v1507_v35, %v1511_v45  ;;  %v1371_v48 = vld [vmem:[%s16552_s27 + $0x1a10] sm:$0xff]  ;;  %v14844_v47 = vcombine.low %v1507_v35, %v1511_v45 }
 0x4c4   : > { %11702 = vmatprep.subr.bf16.mxu1 %v14869_v61  ;;  %v1375_v57 = vld [vmem:[%s16552_s27 + $0x1a30] sm:$0xff] }
 0x4c5   : > { %v1499_v53 = vld [vmem:[%s16552_s27 + $0x1e10] sm:$0xff]  ;;  %v14709_v7 = vcombine.high %v1371_v48, %v1375_v57  ;;  %v14708_v20 = vcombine.low %v1371_v48, %v1375_v57 }
 0x4c6   : > { %11662 = vmatpush2.bf16.msra.mxu0 %v14740_v51  ;;  %v1503_v21 = vld [vmem:[%s16552_s27 + $0x1e30] sm:$0xff] }
 0x4c7   : > { %11703 = vmatpush2.bf16.msra.mxu1 %v14868_v14  ;;  %11663 = vmatprep.subr.bf16.mxu0 %v14733_v15  ;;  %v14837_v33 = vcombine.high %v1499_v53, %v1503_v21  ;;  %v1619_v30 = vld [vmem:[%s16552_s27 + $0x21d0] sm:$0xff]  ;;  %v14836_v0 = vcombine.low %v1499_v53, %v1503_v21 }
 0x4c8   : > { %11704 = vmatprep.subr.bf16.mxu1 %v14861_v6  ;;  %v1623_v62 = vld [vmem:[%s16552_s27 + $0x21f0] sm:$0xff] }
 0x4c9   : > { %v1747_v60 = vld [vmem:[%s16552_s27 + $0x25d0] sm:$0xff]  ;;  %v14957_v40 = vcombine.high %v1619_v30, %v1623_v62  ;;  %v14956_v59 = vcombine.low %v1619_v30, %v1623_v62 }
 0x4ca   : > { %11664 = vmatpush2.bf16.msra.mxu0 %v14732_v2  ;;  %v1751_v61 = vld [vmem:[%s16552_s27 + $0x25f0] sm:$0xff] }
 0x4cb   : > { %11705 = vmatpush2.bf16.msra.mxu1 %v14860_v26  ;;  %11665 = vmatprep.subr.bf16.mxu0 %v14725_v56  ;;  %v15085_v50 = vcombine.high %v1747_v60, %v1751_v61  ;;  %v1611_v51 = vld [vmem:[%s16552_s27 + $0x2190] sm:$0xff]  ;;  %v15084_v37 = vcombine.low %v1747_v60, %v1751_v61 }
 0x4cc   : > { %11706 = vmatprep.subr.bf16.mxu1 %v14853_v28  ;;  %v1615_v14 = vld [vmem:[%s16552_s27 + $0x21b0] sm:$0xff] }
 0x4cd   : > { %v1739_v15 = vld [vmem:[%s16552_s27 + $0x2590] sm:$0xff]  ;;  %v14949_v10 = vcombine.high %v1611_v51, %v1615_v14  ;;  %v14948_v35 = vcombine.low %v1611_v51, %v1615_v14 }
 0x4ce   : > { %11666 = vmatpush2.bf16.msra.mxu0 %v14724_v22  ;;  %v1743_v6 = vld [vmem:[%s16552_s27 + $0x25b0] sm:$0xff] }
 0x4cf   : > { %11707 = vmatpush2.bf16.msra.mxu1 %v14852_v31  ;;  %11667 = vmatprep.subr.bf16.mxu0 %v14717_v27  ;;  %v15077_v19 = vcombine.high %v1739_v15, %v1743_v6  ;;  %v1603_v2 = vld [vmem:[%s16552_s27 + $0x2150] sm:$0xff]  ;;  %v15076_v31 = vcombine.low %v1739_v15, %v1743_v6 }
 0x4d0   : > { %11708 = vmatprep.subr.bf16.mxu1 %v14845_v34  ;;  %v1607_v26 = vld [vmem:[%s16552_s27 + $0x2170] sm:$0xff] }
 0x4d1   : > { %v1731_v28 = vld [vmem:[%s16552_s27 + $0x2550] sm:$0xff]  ;;  %v14941_v27 = vcombine.high %v1603_v2, %v1607_v26  ;;  %v14940_v30 = vcombine.low %v1603_v2, %v1607_v26 }
 0x4d2   : > { %11668 = vmatpush2.bf16.msra.mxu0 %v14716_v39  ;;  %v1735_v49 = vld [vmem:[%s16552_s27 + $0x2570] sm:$0xff] }
 0x4d3   : > { %11709 = vmatpush2.bf16.msra.mxu1 %v14844_v47  ;;  %11669 = vmatprep.subr.bf16.mxu0 %v14709_v7  ;;  %v15069_v48 = vcombine.high %v1731_v28, %v1735_v49  ;;  %v1595_v57 = vld [vmem:[%s16552_s27 + $0x2110] sm:$0xff]  ;;  %v15068_v60 = vcombine.low %v1731_v28, %v1735_v49 }
 0x4d4   : > { %11710 = vmatprep.subr.bf16.mxu1 %v14837_v33  ;;  %v1599_v53 = vld [vmem:[%s16552_s27 + $0x2130] sm:$0xff] }
 0x4d5   : > { %v1723_v47 = vld [vmem:[%s16552_s27 + $0x2510] sm:$0xff]  ;;  %v14933_v61 = vcombine.high %v1595_v57, %v1599_v53  ;;  %v14932_v15 = vcombine.low %v1595_v57, %v1599_v53 }
 0x4d6   : > { %11670 = vmatpush2.bf16.msra.mxu0 %v14708_v20  ;;  %v1727_v7 = vld [vmem:[%s16552_s27 + $0x2530] sm:$0xff] }
 0x4d7   : > { %11711 = vmatpush2.bf16.msra.mxu1 %v14836_v0  ;;  %11721 = vmatprep.subr.bf16.mxu0 %v14957_v40  ;;  %v15061_v0 = vcombine.high %v1723_v47, %v1727_v7  ;;  %v1587_v40 = vld [vmem:[%s16552_s27 + $0x20d0] sm:$0xff]  ;;  %v15060_v6 = vcombine.low %v1723_v47, %v1727_v7 }
 0x4d8   : > { %11762 = vmatprep.subr.bf16.mxu1 %v15085_v50  ;;  %v1591_v50 = vld [vmem:[%s16552_s27 + $0x20f0] sm:$0xff] }
 0x4d9   : > { %v11427_v56 = vpop.f32.mrf.mxu0  ;;  %11672 = vmatmul.mubr.bf16.vlgmr.msra.gmra.mxu0 %v16956_v58  ;;  %v1715_v51 = vld [vmem:[%s16552_s27 + $0x24d0] sm:$0xff] }
 0x4da   : > { %v11468_v24 = vpop.f32.mrf.mxu1  ;;  %11713 = vmatmul.mubr.bf16.vlgmr.msra.gmra.mxu1 %v16967_v43  ;;  %11722 = vmatpush1.bf16.msra.mxu0 %v14956_v59  ;;  %v1719_v14 = vld [vmem:[%s16552_s27 + $0x24f0] sm:$0xff]  ;;  %v14925_v59 = vcombine.high %v1587_v40, %v1591_v50 }
 0x4db   : > { %v17981_v45 = vadd.f32 %v11468_v24, %v11427_v56  ;;  %11763 = vmatpush1.bf16.msra.mxu1 %v15084_v37  ;;  %v11429_v22 = vpop.f32.mrf.mxu0  ;;  %11723 = vmatprep.subr.bf16.mxu0 %v14949_v10  ;;  %v15053_v37 = vcombine.high %v1715_v51, %v1719_v14  ;;  %v1579_v10 = vld [vmem:[%s16552_s27 + $0x2090] sm:$0xff]  ;;  %v14924_v56 = vcombine.low %v1587_v40, %v1591_v50 }
 0x4dc   : > { %v11470_v34 = vpop.f32.mrf.mxu1  ;;  %11764 = vmatprep.subr.bf16.mxu1 %v15077_v19  ;;  %11753 = vmatprep.mubr.bf16.mxu0 %v16963_v52  ;;  %v1583_v19 = vld [vmem:[%s16552_s27 + $0x20b0] sm:$0xff]  ;;  %v15052_v28 = vcombine.low %v1715_v51, %v1719_v14 }
 0x4dd   : > { %v17986_v21 = vadd.f32 %v11470_v34, %v11429_v22  ;;  %v11431_v39 = vpop.f32.mrf.mxu0  ;;  %11794 = vmatprep.mubr.bf16.mxu1 %v16976_v4  ;;  %v1707_v2 = vld [vmem:[%s16552_s27 + $0x2490] sm:$0xff]  ;;  %v14917_v49 = vcombine.high %v1579_v10, %v1583_v19  ;;  %v14916_v34 = vcombine.low %v1579_v10, %v1583_v19 }
 0x4de   : > { %v11472_v33 = vpop.f32.mrf.mxu1  ;;  %11724 = vmatpush1.bf16.msra.mxu0 %v14948_v35  ;;  %v1711_v26 = vld [vmem:[%s16552_s27 + $0x24b0] sm:$0xff] }
 0x4df   : > { %11765 = vmatpush1.bf16.msra.mxu1 %v15076_v31  ;;  %v11432_v62 = vpop.f32.mrf.mxu0  ;;  %11725 = vmatprep.subr.bf16.mxu0 %v14941_v27  ;;  %v15045_v24 = vcombine.high %v1707_v2, %v1711_v26  ;;  %v1571_v35 = vld [vmem:[%s16552_s27 + $0x2050] sm:$0xff] }
 0x4e0   : > { %v11473_v20 = vpop.f32.mrf.mxu1  ;;  %11766 = vmatprep.subr.bf16.mxu1 %v15069_v48  ;;  %v1575_v22 = vld [vmem:[%s16552_s27 + $0x2070] sm:$0xff]  ;;  %v15044_v48 = vcombine.low %v1707_v2, %v1711_v26 }
 0x4e1   : > { %v1699_v31 = vld [vmem:[%s16552_s27 + $0x2450] sm:$0xff]  ;;  %v14909_v57 = vcombine.high %v1571_v35, %v1575_v22 }
 0x4e2   : > { %11726 = vmatpush1.bf16.msra.mxu0 %v14940_v30  ;;  %v1703_v27 = vld [vmem:[%s16552_s27 + $0x2470] sm:$0xff]  ;;  %v14908_v30 = vcombine.low %v1571_v35, %v1575_v22 }
 0x4e3   : > { %11767 = vmatpush1.bf16.msra.mxu1 %v15068_v60  ;;  %11727 = vmatprep.subr.bf16.mxu0 %v14933_v61  ;;  %v15037_v53 = vcombine.high %v1699_v31, %v1703_v27  ;;  %v1563_v39 = vld [vmem:[%s16552_s27 + $0x2010] sm:$0xff]  ;;  %v15036_v62 = vcombine.low %v1699_v31, %v1703_v27 }
 0x4e4   : > { %11768 = vmatprep.subr.bf16.mxu1 %v15061_v0  ;;  %v1567_v47 = vld [vmem:[%s16552_s27 + $0x2030] sm:$0xff] }
 0x4e5   : > { %v1691_v7 = vld [vmem:[%s16552_s27 + $0x2410] sm:$0xff]  ;;  %v14901_v60 = vcombine.high %v1563_v39, %v1567_v47  ;;  %v14900_v51 = vcombine.low %v1563_v39, %v1567_v47 }
 0x4e6   : > { %11728 = vmatpush1.bf16.msra.mxu0 %v14932_v15  ;;  %v1695_v33 = vld [vmem:[%s16552_s27 + $0x2430] sm:$0xff] }
 0x4e7   : > { %11769 = vmatpush1.bf16.msra.mxu1 %v15060_v6  ;;  %11729 = vmatprep.subr.bf16.mxu0 %v14925_v59  ;;  %v15029_v61 = vcombine.high %v1691_v7, %v1695_v33  ;;  %v1683_v20 = vld [vmem:[%s16552_s27 + $0x23d0] sm:$0xff]  ;;  %v15028_v14 = vcombine.low %v1691_v7, %v1695_v33 }
 0x4e8   : > { %11770 = vmatprep.subr.bf16.mxu1 %v15053_v37  ;;  %v1687_v0 = vld [vmem:[%s16552_s27 + $0x23f0] sm:$0xff] }
 0x4e9   : > { %v1811_v40 = vld [vmem:[%s16552_s27 + $0x27d0] sm:$0xff]  ;;  %v15021_v15 = vcombine.high %v1683_v20, %v1687_v0  ;;  %v15020_v2 = vcombine.low %v1683_v20, %v1687_v0 }
 0x4ea   : > { %11730 = vmatpush1.bf16.msra.mxu0 %v14924_v56  ;;  %v1815_v50 = vld [vmem:[%s16552_s27 + $0x27f0] sm:$0xff] }
 0x4eb   : > { %11771 = vmatpush1.bf16.msra.mxu1 %v15052_v28  ;;  %11731 = vmatprep.subr.bf16.mxu0 %v14917_v49  ;;  %v15149_v6 = vcombine.high %v1811_v40, %v1815_v50  ;;  %v1675_v59 = vld [vmem:[%s16552_s27 + $0x2390] sm:$0xff]  ;;  %v15148_v26 = vcombine.low %v1811_v40, %v1815_v50 }
 0x4ec   : > { %11772 = vmatprep.subr.bf16.mxu1 %v15045_v24  ;;  %v1679_v37 = vld [vmem:[%s16552_s27 + $0x23b0] sm:$0xff] }
 0x4ed   : > { %v1803_v10 = vld [vmem:[%s16552_s27 + $0x2790] sm:$0xff]  ;;  %v15013_v56 = vcombine.high %v1675_v59, %v1679_v37  ;;  %v15012_v31 = vcombine.low %v1675_v59, %v1679_v37 }
 0x4ee   : > { %11732 = vmatpush1.bf16.msra.mxu0 %v14916_v34  ;;  %v1807_v19 = vld [vmem:[%s16552_s27 + $0x27b0] sm:$0xff] }
 0x4ef   : > { %11773 = vmatpush1.bf16.msra.mxu1 %v15044_v48  ;;  %11733 = vmatprep.subr.bf16.mxu0 %v14909_v57  ;;  %v15141_v28 = vcombine.high %v1803_v10, %v1807_v19  ;;  %v1667_v49 = vld [vmem:[%s16552_s27 + $0x2350] sm:$0xff]  ;;  %v15140_v27 = vcombine.low %v1803_v10, %v1807_v19 }
 0x4f0   : > { %11774 = vmatprep.subr.bf16.mxu1 %v15037_v53  ;;  %v1671_v24 = vld [vmem:[%s16552_s27 + $0x2370] sm:$0xff] }
 0x4f1   : > { %v1795_v35 = vld [vmem:[%s16552_s27 + $0x2750] sm:$0xff]  ;;  %v15005_v34 = vcombine.high %v1667_v49, %v1671_v24  ;;  %v15004_v7 = vcombine.low %v1667_v49, %v1671_v24 }
 0x4f2   : > { %11734 = vmatpush1.bf16.msra.mxu0 %v14908_v30  ;;  %v1799_v22 = vld [vmem:[%s16552_s27 + $0x2770] sm:$0xff] }
 0x4f3   : > { %11775 = vmatpush1.bf16.msra.mxu1 %v15036_v62  ;;  %11735 = vmatprep.subr.bf16.mxu0 %v14901_v60  ;;  %v15133_v48 = vcombine.high %v1795_v35, %v1799_v22  ;;  %v1659_v57 = vld [vmem:[%s16552_s27 + $0x2310] sm:$0xff]  ;;  %v15132_v33 = vcombine.low %v1795_v35, %v1799_v22 }
 0x4f4   : > { %11776 = vmatprep.subr.bf16.mxu1 %v15029_v61  ;;  %v1663_v53 = vld [vmem:[%s16552_s27 + $0x2330] sm:$0xff] }
 0x4f5   : > { %v1787_v39 = vld [vmem:[%s16552_s27 + $0x2710] sm:$0xff]  ;;  %v14997_v30 = vcombine.high %v1659_v57, %v1663_v53  ;;  %v14996_v40 = vcombine.low %v1659_v57, %v1663_v53 }
 0x4f6   : > { %11736 = vmatpush1.bf16.msra.mxu0 %v14900_v51  ;;  %v1791_v47 = vld [vmem:[%s16552_s27 + $0x2730] sm:$0xff] }
 0x4f7   : > { %11777 = vmatpush1.bf16.msra.mxu1 %v15028_v14  ;;  %11737 = vmatprep.subr.bf16.mxu0 %v15021_v15  ;;  %v15125_v62 = vcombine.high %v1787_v39, %v1791_v47  ;;  %v1651_v60 = vld [vmem:[%s16552_s27 + $0x22d0] sm:$0xff]  ;;  %v15124_v50 = vcombine.low %v1787_v39, %v1791_v47 }
 0x4f8   : > { %11778 = vmatprep.subr.bf16.mxu1 %v15149_v6  ;;  %v1655_v61 = vld [vmem:[%s16552_s27 + $0x22f0] sm:$0xff] }
 0x4f9   : > { %v1779_v20 = vld [vmem:[%s16552_s27 + $0x26d0] sm:$0xff]  ;;  %v14989_v51 = vcombine.high %v1651_v60, %v1655_v61  ;;  %v14988_v10 = vcombine.low %v1651_v60, %v1655_v61 }
 0x4fa   : > { %11738 = vmatpush2.bf16.msra.mxu0 %v15020_v2  ;;  %v1783_v0 = vld [vmem:[%s16552_s27 + $0x26f0] sm:$0xff] }
 0x4fb   : > { %11779 = vmatpush2.bf16.msra.mxu1 %v15148_v26  ;;  %11739 = vmatprep.subr.bf16.mxu0 %v15013_v56  ;;  %v15117_v14 = vcombine.high %v1779_v20, %v1783_v0  ;;  %v1643_v15 = vld [vmem:[%s16552_s27 + $0x2290] sm:$0xff]  ;;  %v15116_v19 = vcombine.low %v1779_v20, %v1783_v0 }
 0x4fc   : > { %11780 = vmatprep.subr.bf16.mxu1 %v15141_v28  ;;  %v1647_v6 = vld [vmem:[%s16552_s27 + $0x22b0] sm:$0xff] }
 0x4fd   : > { %v1771_v59 = vld [vmem:[%s16552_s27 + $0x2690] sm:$0xff]  ;;  %v14981_v2 = vcombine.high %v1643_v15, %v1647_v6  ;;  %v14980_v35 = vcombine.low %v1643_v15, %v1647_v6 }
 0x4fe   : > { %11740 = vmatpush2.bf16.msra.mxu0 %v15012_v31  ;;  %v1775_v37 = vld [vmem:[%s16552_s27 + $0x26b0] sm:$0xff] }
 0x4ff   : > { %11781 = vmatpush2.bf16.msra.mxu1 %v15140_v27  ;;  %11741 = vmatprep.subr.bf16.mxu0 %v15005_v34  ;;  %v15109_v26 = vcombine.high %v1771_v59, %v1775_v37  ;;  %v1635_v56 = vld [vmem:[%s16552_s27 + $0x2250] sm:$0xff]  ;;  %v15108_v22 = vcombine.low %v1771_v59, %v1775_v37 }
 0x500   : > { %11782 = vmatprep.subr.bf16.mxu1 %v15133_v48  ;;  %v1639_v28 = vld [vmem:[%s16552_s27 + $0x2270] sm:$0xff] }
 0x501   : > { %v1763_v49 = vld [vmem:[%s16552_s27 + $0x2650] sm:$0xff]  ;;  %v14973_v31 = vcombine.high %v1635_v56, %v1639_v28  ;;  %v14972_v39 = vcombine.low %v1635_v56, %v1639_v28 }
 0x502   : > { %11742 = vmatpush2.bf16.msra.mxu0 %v15004_v7  ;;  %v1767_v24 = vld [vmem:[%s16552_s27 + $0x2670] sm:$0xff] }
 0x503   : > { %11783 = vmatpush2.bf16.msra.mxu1 %v15132_v33  ;;  %11743 = vmatprep.subr.bf16.mxu0 %v14997_v30  ;;  %v15101_v27 = vcombine.high %v1763_v49, %v1767_v24  ;;  %v1627_v34 = vld [vmem:[%s16552_s27 + $0x2210] sm:$0xff]  ;;  %v15100_v47 = vcombine.low %v1763_v49, %v1767_v24 }
 0x504   : > { %11784 = vmatprep.subr.bf16.mxu1 %v15125_v62  ;;  %v1631_v48 = vld [vmem:[%s16552_s27 + $0x2230] sm:$0xff] }
 0x505   : > { %v1755_v57 = vld [vmem:[%s16552_s27 + $0x2610] sm:$0xff]  ;;  %v14965_v7 = vcombine.high %v1627_v34, %v1631_v48  ;;  %v14964_v20 = vcombine.low %v1627_v34, %v1631_v48 }
 0x506   : > { %11744 = vmatpush2.bf16.msra.mxu0 %v14996_v40  ;;  %v1759_v53 = vld [vmem:[%s16552_s27 + $0x2630] sm:$0xff] }
 0x507   : > { %11785 = vmatpush2.bf16.msra.mxu1 %v15124_v50  ;;  %11745 = vmatprep.subr.bf16.mxu0 %v14989_v51  ;;  %v15093_v33 = vcombine.high %v1755_v57, %v1759_v53  ;;  %v1875_v30 = vld [vmem:[%s16552_s27 + $0x29d0] sm:$0xff]  ;;  %v15092_v0 = vcombine.low %v1755_v57, %v1759_v53 }
 0x508   : > { %11786 = vmatprep.subr.bf16.mxu1 %v15117_v14  ;;  %v1879_v62 = vld [vmem:[%s16552_s27 + $0x29f0] sm:$0xff] }
 0x509   : > { %v2003_v60 = vld [vmem:[%s16552_s27 + $0x2dd0] sm:$0xff]  ;;  %v15213_v40 = vcombine.high %v1875_v30, %v1879_v62  ;;  %v15212_v59 = vcombine.low %v1875_v30, %v1879_v62 }
 0x50a   : > { %11746 = vmatpush2.bf16.msra.mxu0 %v14988_v10  ;;  %v2007_v61 = vld [vmem:[%s16552_s27 + $0x2df0] sm:$0xff] }
 0x50b   : > { %11787 = vmatpush2.bf16.msra.mxu1 %v15116_v19  ;;  %11747 = vmatprep.subr.bf16.mxu0 %v14981_v2  ;;  %v15341_v50 = vcombine.high %v2003_v60, %v2007_v61  ;;  %v1867_v51 = vld [vmem:[%s16552_s27 + $0x2990] sm:$0xff]  ;;  %v15340_v37 = vcombine.low %v2003_v60, %v2007_v61 }
 0x50c   : > { %11788 = vmatprep.subr.bf16.mxu1 %v15109_v26  ;;  %v1871_v14 = vld [vmem:[%s16552_s27 + $0x29b0] sm:$0xff] }
 0x50d   : > { %v1995_v15 = vld [vmem:[%s16552_s27 + $0x2d90] sm:$0xff]  ;;  %v15205_v10 = vcombine.high %v1867_v51, %v1871_v14 }
 0x50e   : > { %11748 = vmatpush2.bf16.msra.mxu0 %v14980_v35  ;;  %v1999_v6 = vld [vmem:[%s16552_s27 + $0x2db0] sm:$0xff] }
 0x50f   : > { %11789 = vmatpush2.bf16.msra.mxu1 %v15108_v22  ;;  %11749 = vmatprep.subr.bf16.mxu0 %v14973_v31  ;;  %v15333_v19 = vcombine.high %v1995_v15, %v1999_v6  ;;  %v1859_v2 = vld [vmem:[%s16552_s27 + $0x2950] sm:$0xff]  ;;  %v15204_v22 = vcombine.low %v1867_v51, %v1871_v14 }
 0x510   : > { %11790 = vmatprep.subr.bf16.mxu1 %v15101_v27  ;;  %v1863_v26 = vld [vmem:[%s16552_s27 + $0x2970] sm:$0xff]  ;;  %v15332_v27 = vcombine.low %v1995_v15, %v1999_v6 }
 0x511   : > { %v1987_v28 = vld [vmem:[%s16552_s27 + $0x2d50] sm:$0xff]  ;;  %v15197_v34 = vcombine.high %v1859_v2, %v1863_v26 }
 0x512   : > { %11750 = vmatpush2.bf16.msra.mxu0 %v14972_v39  ;;  %v1991_v49 = vld [vmem:[%s16552_s27 + $0x2d70] sm:$0xff] }
 0x513   : > { %11791 = vmatpush2.bf16.msra.mxu1 %v15100_v47  ;;  %11751 = vmatprep.subr.bf16.mxu0 %v14965_v7  ;;  %v1851_v39 = vld [vmem:[%s16552_s27 + $0x2910] sm:$0xff] }
 0x514   : > { %11792 = vmatprep.subr.bf16.mxu1 %v15093_v33  ;;  %v1855_v47 = vld [vmem:[%s16552_s27 + $0x2930] sm:$0xff] }
 0x515   : > { %v1979_v33 = vld [vmem:[%s16552_s27 + $0x2d10] sm:$0xff] }
 0x516   : > { %11752 = vmatpush2.bf16.msra.mxu0 %v14964_v20  ;;  %v1983_v30 = vld [vmem:[%s16552_s27 + $0x2d30] sm:$0xff]  ;;  %v15324_v20 = vcombine.low %v1987_v28, %v1991_v49 }
 0x517   : > { %11793 = vmatpush2.bf16.msra.mxu1 %v15092_v0  ;;  %11803 = vmatprep.subr.bf16.mxu0 %v15213_v40  ;;  %v15189_v0 = vcombine.high %v1851_v39, %v1855_v47  ;;  %v1843_v51 = vld [vmem:[%s16552_s27 + $0x28d0] sm:$0xff] }
 0x518   : > { %11844 = vmatprep.subr.bf16.mxu1 %v15341_v50  ;;  %v15317_v50 = vcombine.high %v1979_v33, %v1983_v30  ;;  %v1847_v14 = vld [vmem:[%s16552_s27 + $0x28f0] sm:$0xff] }
 0x519   : > { %v11509_v56 = vpop.f32.mrf.mxu0  ;;  %11754 = vmatmul.mubr.bf16.vlgmr.msra.gmra.mxu0 %v17050_v9  ;;  %v1971_v15 = vld [vmem:[%s16552_s27 + $0x2cd0] sm:$0xff] }
 0x51a   : > { %v11510_v24 = vadd.f32 %v11509_v56, %v17981_v45  ;;  %v11550_v35 = vpop.f32.mrf.mxu1  ;;  %11795 = vmatmul.mubr.bf16.vlgmr.msra.gmra.mxu1 %v17061_v29  ;;  %11804 = vmatpush1.bf16.msra.mxu0 %v15212_v59  ;;  %v15325_v45 = vcombine.high %v1987_v28, %v1991_v49  ;;  %v1975_v6 = vld [vmem:[%s16552_s27 + $0x2cf0] sm:$0xff]  ;;  %v15188_v59 = vcombine.low %v1851_v39, %v1855_v47 }
 0x51b   : > { %11845 = vmatpush1.bf16.msra.mxu1 %v15340_v37  ;;  %v11511_v31 = vpop.f32.mrf.mxu0  ;;  %11805 = vmatprep.subr.bf16.mxu0 %v15205_v10  ;;  %v15316_v37 = vcombine.low %v1979_v33, %v1983_v30  ;;  %v15181_v10 = vcombine.high %v1843_v51, %v1847_v14  ;;  %v1963_v56 = vld [vmem:[%s16552_s27 + $0x2c90] sm:$0xff]  ;;  %v15180_v49 = vcombine.low %v1843_v51, %v1847_v14 }
 0x51c   : > { %v18054_v48 = vadd.f32 %v11550_v35, %v11510_v24  ;;  %v11512_v57 = vadd.f32 %v11511_v31, %v17986_v21  ;;  %v11552_v53 = vpop.f32.mrf.mxu1  ;;  %11846 = vmatprep.subr.bf16.mxu1 %v15333_v19  ;;  %11835 = vmatprep.mubr.bf16.mxu0 %v17057_v23  ;;  %v15196_v21 = vcombine.low %v1859_v2, %v1863_v26  ;;  %v1835_v2 = vld [vmem:[%s16552_s27 + $0x2890] sm:$0xff] }
 0x51d   : > { %v11513_v7 = vpop.f32.mrf.mxu0  ;;  %11876 = vmatprep.mubr.bf16.mxu1 %v17070_v38  ;;  %v15309_v19 = vcombine.high %v1971_v15, %v1975_v6  ;;  %v1839_v26 = vld [vmem:[%s16552_s27 + $0x28b0] sm:$0xff]  ;;  %v15308_v24 = vcombine.low %v1971_v15, %v1975_v6 }
 0x51e   : > { %v18063_v62 = vadd.f32 %v11552_v53, %v11512_v57  ;;  %v11554_v60 = vpop.f32.mrf.mxu1  ;;  %11806 = vmatpush1.bf16.msra.mxu0 %v15204_v22  ;;  %v1967_v28 = vld [vmem:[%s16552_s27 + $0x2cb0] sm:$0xff]  ;;  %v15173_v35 = vcombine.high %v1835_v2, %v1839_v26  ;;  %v15172_v53 = vcombine.low %v1835_v2, %v1839_v26 }
 0x51f   : > { %11847 = vmatpush1.bf16.msra.mxu1 %v15332_v27  ;;  %v11514_v61 = vpop.f32.mrf.mxu0  ;;  %11807 = vmatprep.subr.bf16.mxu0 %v15197_v34  ;;  %v15301_v22 = vcombine.high %v1963_v56, %v1967_v28  ;;  %v1827_v31 = vld [vmem:[%s16552_s27 + $0x2850] sm:$0xff] }
 0x520   : > { %v11555_v40 = vpop.f32.mrf.mxu1  ;;  %11848 = vmatprep.subr.bf16.mxu1 %v15325_v45  ;;  %v1831_v27 = vld [vmem:[%s16552_s27 + $0x2870] sm:$0xff]  ;;  %v15300_v45 = vcombine.low %v1963_v56, %v1967_v28 }
 0x521   : > { %v1955_v34 = vld [vmem:[%s16552_s27 + $0x2c50] sm:$0xff]  ;;  %v15165_v39 = vcombine.high %v1827_v31, %v1831_v27 }
 0x522   : > { %11808 = vmatpush1.bf16.msra.mxu0 %v15196_v21  ;;  %v1959_v57 = vld [vmem:[%s16552_s27 + $0x2c70] sm:$0xff]  ;;  %v15164_v21 = vcombine.low %v1827_v31, %v1831_v27 }
 0x523   : > { %11849 = vmatpush1.bf16.msra.mxu1 %v15324_v20  ;;  %11809 = vmatprep.subr.bf16.mxu0 %v15189_v0  ;;  %v15293_v47 = vcombine.high %v1955_v34, %v1959_v57  ;;  %v1819_v7 = vld [vmem:[%s16552_s27 + $0x2810] sm:$0xff]  ;;  %v15292_v61 = vcombine.low %v1955_v34, %v1959_v57 }
 0x524   : > { %11850 = vmatprep.subr.bf16.mxu1 %v15317_v50  ;;  %v1823_v33 = vld [vmem:[%s16552_s27 + $0x2830] sm:$0xff] }
 0x525   : > { %v1947_v30 = vld [vmem:[%s16552_s27 + $0x2c10] sm:$0xff]  ;;  %v15157_v20 = vcombine.high %v1819_v7, %v1823_v33  ;;  %v15156_v15 = vcombine.low %v1819_v7, %v1823_v33 }
 0x526   : > { %11810 = vmatpush1.bf16.msra.mxu0 %v15188_v59  ;;  %v1951_v60 = vld [vmem:[%s16552_s27 + $0x2c30] sm:$0xff] }
 0x527   : > { %11851 = vmatpush1.bf16.msra.mxu1 %v15316_v37  ;;  %11811 = vmatprep.subr.bf16.mxu0 %v15181_v10  ;;  %v15285_v0 = vcombine.high %v1947_v30, %v1951_v60  ;;  %v1939_v40 = vld [vmem:[%s16552_s27 + $0x2bd0] sm:$0xff]  ;;  %v15284_v6 = vcombine.low %v1947_v30, %v1951_v60 }
 0x528   : > { %11852 = vmatprep.subr.bf16.mxu1 %v15309_v19  ;;  %v1943_v50 = vld [vmem:[%s16552_s27 + $0x2bf0] sm:$0xff] }
 0x529   : > { %v2067_v51 = vld [vmem:[%s16552_s27 + $0x2fd0] sm:$0xff]  ;;  %v15277_v59 = vcombine.high %v1939_v40, %v1943_v50  ;;  %v15276_v56 = vcombine.low %v1939_v40, %v1943_v50 }
 0x52a   : > { %11812 = vmatpush1.bf16.msra.mxu0 %v15180_v49  ;;  %v2071_v14 = vld [vmem:[%s16552_s27 + $0x2ff0] sm:$0xff] }
 0x52b   : > { %11853 = vmatpush1.bf16.msra.mxu1 %v15308_v24  ;;  %11813 = vmatprep.subr.bf16.mxu0 %v15173_v35  ;;  %v15405_v37 = vcombine.high %v2067_v51, %v2071_v14  ;;  %v1931_v10 = vld [vmem:[%s16552_s27 + $0x2b90] sm:$0xff]  ;;  %v15404_v28 = vcombine.low %v2067_v51, %v2071_v14 }
 0x52c   : > { %11854 = vmatprep.subr.bf16.mxu1 %v15301_v22  ;;  %v1935_v19 = vld [vmem:[%s16552_s27 + $0x2bb0] sm:$0xff] }
 0x52d   : > { %v2059_v2 = vld [vmem:[%s16552_s27 + $0x2f90] sm:$0xff]  ;;  %v15269_v49 = vcombine.high %v1931_v10, %v1935_v19  ;;  %v15268_v34 = vcombine.low %v1931_v10, %v1935_v19 }
 0x52e   : > { %11814 = vmatpush1.bf16.msra.mxu0 %v15172_v53  ;;  %v2063_v26 = vld [vmem:[%s16552_s27 + $0x2fb0] sm:$0xff] }
 0x52f   : > { %11855 = vmatpush1.bf16.msra.mxu1 %v15300_v45  ;;  %11815 = vmatprep.subr.bf16.mxu0 %v15165_v39  ;;  %v15397_v24 = vcombine.high %v2059_v2, %v2063_v26  ;;  %v1923_v35 = vld [vmem:[%s16552_s27 + $0x2b50] sm:$0xff]  ;;  %v15396_v57 = vcombine.low %v2059_v2, %v2063_v26 }
 0x530   : > { %11856 = vmatprep.subr.bf16.mxu1 %v15293_v47  ;;  %v1927_v22 = vld [vmem:[%s16552_s27 + $0x2b70] sm:$0xff] }
 0x531   : > { %v2051_v31 = vld [vmem:[%s16552_s27 + $0x2f50] sm:$0xff]  ;;  %v15261_v53 = vcombine.high %v1923_v35, %v1927_v22  ;;  %v15260_v30 = vcombine.low %v1923_v35, %v1927_v22 }
 0x532   : > { %11816 = vmatpush1.bf16.msra.mxu0 %v15164_v21  ;;  %v2055_v27 = vld [vmem:[%s16552_s27 + $0x2f70] sm:$0xff] }
 0x533   : > { %11857 = vmatpush1.bf16.msra.mxu1 %v15292_v61  ;;  %11817 = vmatprep.subr.bf16.mxu0 %v15157_v20  ;;  %v15389_v45 = vcombine.high %v2051_v31, %v2055_v27  ;;  %v1915_v39 = vld [vmem:[%s16552_s27 + $0x2b10] sm:$0xff]  ;;  %v15388_v60 = vcombine.low %v2051_v31, %v2055_v27 }
 0x534   : > { %11858 = vmatprep.subr.bf16.mxu1 %v15285_v0  ;;  %v1919_v47 = vld [vmem:[%s16552_s27 + $0x2b30] sm:$0xff] }
 0x535   : > { %v2043_v7 = vld [vmem:[%s16552_s27 + $0x2f10] sm:$0xff]  ;;  %v15253_v21 = vcombine.high %v1915_v39, %v1919_v47  ;;  %v15252_v51 = vcombine.low %v1915_v39, %v1919_v47 }
 0x536   : > { %11818 = vmatpush1.bf16.msra.mxu0 %v15156_v15  ;;  %v2047_v33 = vld [vmem:[%s16552_s27 + $0x2f30] sm:$0xff] }
 0x537   : > { %11859 = vmatpush1.bf16.msra.mxu1 %v15284_v6  ;;  %11819 = vmatprep.subr.bf16.mxu0 %v15277_v59  ;;  %v15381_v61 = vcombine.high %v2043_v7, %v2047_v33  ;;  %v1907_v20 = vld [vmem:[%s16552_s27 + $0x2ad0] sm:$0xff]  ;;  %v15380_v14 = vcombine.low %v2043_v7, %v2047_v33 }
 0x538   : > { %11860 = vmatprep.subr.bf16.mxu1 %v15405_v37  ;;  %v1911_v0 = vld [vmem:[%s16552_s27 + $0x2af0] sm:$0xff] }
 0x539   : > { %v2035_v40 = vld [vmem:[%s16552_s27 + $0x2ed0] sm:$0xff]  ;;  %v15245_v15 = vcombine.high %v1907_v20, %v1911_v0  ;;  %v15244_v2 = vcombine.low %v1907_v20, %v1911_v0  ;;  %v596_v20 = vld [vmem:[%s16552_s27 + $0x1d8] sm:$0xff] }
 0x53a   : > { %11820 = vmatpush2.bf16.msra.mxu0 %v15276_v56  ;;  %v2039_v50 = vld [vmem:[%s16552_s27 + $0x2ef0] sm:$0xff]  ;;  %v600_v0 = vld [vmem:[%s16552_s27 + $0x1f8] sm:$0xff] }
 0x53b   : > { %11861 = vmatpush2.bf16.msra.mxu1 %v15404_v28  ;;  %11821 = vmatprep.subr.bf16.mxu0 %v15269_v49  ;;  %v15373_v6 = vcombine.high %v2035_v40, %v2039_v50  ;;  %v1899_v59 = vld [vmem:[%s16552_s27 + $0x2a90] sm:$0xff]  ;;  %v15372_v26 = vcombine.low %v2035_v40, %v2039_v50 }
 0x53c   : > { %11862 = vmatprep.subr.bf16.mxu1 %v15397_v24  ;;  %v1903_v37 = vld [vmem:[%s16552_s27 + $0x2ab0] sm:$0xff] }
 0x53d   : > { %v2027_v10 = vld [vmem:[%s16552_s27 + $0x2e90] sm:$0xff]  ;;  %v15237_v56 = vcombine.high %v1899_v59, %v1903_v37  ;;  %v15236_v31 = vcombine.low %v1899_v59, %v1903_v37  ;;  %v588_v59 = vld [vmem:[%s16552_s27 + $0x198] sm:$0xff] }
 0x53e   : > { %11822 = vmatpush2.bf16.msra.mxu0 %v15268_v34  ;;  %v2031_v19 = vld [vmem:[%s16552_s27 + $0x2eb0] sm:$0xff]  ;;  %v592_v37 = vld [vmem:[%s16552_s27 + $0x1b8] sm:$0xff] }
 0x53f   : > { %11863 = vmatpush2.bf16.msra.mxu1 %v15396_v57  ;;  %11823 = vmatprep.subr.bf16.mxu0 %v15261_v53  ;;  %v15365_v28 = vcombine.high %v2027_v10, %v2031_v19  ;;  %v1891_v49 = vld [vmem:[%s16552_s27 + $0x2a50] sm:$0xff]  ;;  %v15364_v27 = vcombine.low %v2027_v10, %v2031_v19  ;;  %v13934_v19 = vcombine.low %v596_v20, %v600_v0 }
 0x540   : > { %11864 = vmatprep.subr.bf16.mxu1 %v15389_v45  ;;  %v1895_v24 = vld [vmem:[%s16552_s27 + $0x2a70] sm:$0xff] }
 0x541   : > { %v2019_v35 = vld [vmem:[%s16552_s27 + $0x2e50] sm:$0xff]  ;;  %v15229_v34 = vcombine.high %v1891_v49, %v1895_v24  ;;  %v15228_v7 = vcombine.low %v1891_v49, %v1895_v24  ;;  %v580_v24 = vld [vmem:[%s16552_s27 + $0x158] sm:$0xff] }
 0x542   : > { %11824 = vmatpush2.bf16.msra.mxu0 %v15260_v30  ;;  %v2023_v22 = vld [vmem:[%s16552_s27 + $0x2e70] sm:$0xff] }
 0x543   : > { %11865 = vmatpush2.bf16.msra.mxu1 %v15388_v60  ;;  %11825 = vmatprep.subr.bf16.mxu0 %v15253_v21  ;;  %v15357_v57 = vcombine.high %v2019_v35, %v2023_v22  ;;  %v1883_v53 = vld [vmem:[%s16552_s27 + $0x2a10] sm:$0xff]  ;;  %v15356_v33 = vcombine.low %v2019_v35, %v2023_v22  ;;  %v584_v35 = vld [vmem:[%s16552_s27 + $0x178] sm:$0xff] }
 0x544   : > { %11866 = vmatprep.subr.bf16.mxu1 %v15381_v61  ;;  %v1887_v45 = vld [vmem:[%s16552_s27 + $0x2a30] sm:$0xff] }
 0x545   : > { %v2011_v39 = vld [vmem:[%s16552_s27 + $0x2e10] sm:$0xff]  ;;  %v15221_v30 = vcombine.high %v1883_v53, %v1887_v45  ;;  %v15220_v40 = vcombine.low %v1883_v53, %v1887_v45 }
 0x546   : > { %11826 = vmatpush2.bf16.msra.mxu0 %v15252_v51  ;;  %v2015_v47 = vld [vmem:[%s16552_s27 + $0x2e30] sm:$0xff] }
 0x547   : > { %11867 = vmatpush2.bf16.msra.mxu1 %v15380_v14  ;;  %11827 = vmatprep.subr.bf16.mxu0 %v15245_v15  ;;  %v15349_v60 = vcombine.high %v2011_v39, %v2015_v47  ;;  %v2131_v21 = vld [vmem:[%s16552_s27 + $0x31d0] sm:$0xff]  ;;  %v15348_v50 = vcombine.low %v2011_v39, %v2015_v47  ;;  %v13935_v14 = vcombine.high %v596_v20, %v600_v0 }
 0x548   : > { %11868 = vmatprep.subr.bf16.mxu1 %v15373_v6  ;;  %v2135_v61 = vld [vmem:[%s16552_s27 + $0x31f0] sm:$0xff] }
 0x549   : > { %v15469_v51 = vcombine.high %v2131_v21, %v2135_v61  ;;  %v2123_v15 = vld [vmem:[%s16552_s27 + $0x3190] sm:$0xff]  ;;  %v15468_v10 = vcombine.low %v2131_v21, %v2135_v61  ;;  %v576_v21 = vld [vmem:[%s16552_s27 + $0x138] sm:$0xff] }
 0x54a   : > { %11828 = vmatpush2.bf16.msra.mxu0 %v15244_v2  ;;  %v2127_v6 = vld [vmem:[%s16552_s27 + $0x31b0] sm:$0xff] }
 0x54b   : > { %11869 = vmatpush2.bf16.msra.mxu1 %v15372_v26  ;;  %11829 = vmatprep.subr.bf16.mxu0 %v15237_v56  ;;  %v15461_v2 = vcombine.high %v2123_v15, %v2127_v6  ;;  %v13927_v26 = vcombine.high %v588_v59, %v592_v37  ;;  %v2115_v56 = vld [vmem:[%s16552_s27 + $0x3150] sm:$0xff] }
 0x54c   : > { %11870 = vmatprep.subr.bf16.mxu1 %v15365_v28  ;;  %v2119_v28 = vld [vmem:[%s16552_s27 + $0x3170] sm:$0xff] }
 0x54d   : > { %v15453_v53 = vcombine.high %v2115_v56, %v2119_v28 }
 0x54e   : > { %11830 = vmatpush2.bf16.msra.mxu0 %v15236_v31 }
 0x54f   : > { %11871 = vmatpush2.bf16.msra.mxu1 %v15364_v27  ;;  %11831 = vmatprep.subr.bf16.mxu0 %v15229_v34  ;;  %v15460_v27 = vcombine.low %v2123_v15, %v2127_v6  ;;  %v2099_v15 = vld [vmem:[%s16552_s27 + $0x30d0] sm:$0xff]  ;;  %v564_v6 = vld [vmem:[%s16552_s27 + $0xd8] sm:$0xff] }
 0x550   : > { %11872 = vmatprep.subr.bf16.mxu1 %v15357_v57  ;;  %v13926_v57 = vcombine.low %v588_v59, %v592_v37  ;;  %v568_v59 = vld [vmem:[%s16552_s27 + $0xf8] sm:$0xff] }
 0x552   : > { %11832 = vmatpush2.bf16.msra.mxu0 %v15228_v7  ;;  %v2107_v7 = vld [vmem:[%s16552_s27 + $0x3110] sm:$0xff] }
 0x553   : > { %11873 = vmatpush2.bf16.msra.mxu1 %v15356_v33  ;;  %11833 = vmatprep.subr.bf16.mxu0 %v15221_v30  ;;  %v2111_v33 = vld [vmem:[%s16552_s27 + $0x3130] sm:$0xff] }
 0x554   : > { %11874 = vmatprep.subr.bf16.mxu1 %v15349_v60  ;;  %v572_v60 = vld [vmem:[%s16552_s27 + $0x118] sm:$0xff]  ;;  %v15444_v37 = vcombine.low %v2107_v7, %v2111_v33 }
 0x556   : > { %11834 = vmatpush2.bf16.msra.mxu0 %v15220_v40  ;;  %v13918_v40 = vcombine.low %v580_v24, %v584_v35 }
 0x557   : > { %11875 = vmatpush2.bf16.msra.mxu1 %v15348_v50  ;;  %11885 = vmatprep.subr.bf16.mxu0 %v15469_v51  ;;  %v15445_v50 = vcombine.high %v2107_v7, %v2111_v33  ;;  %v2075_v33 = vld [vmem:[%s16552_s27 + $0x3010] sm:$0xff] }
 0x558   : > { %11926 = vmatprep.subr.bf16.mxu1 %v13935_v14  ;;  %v13911_v14 = vcombine.high %v572_v60, %v576_v21 }
 0x559   : > { %v11591_v49 = vpop.f32.mrf.mxu0  ;;  %11836 = vmatmul.mubr.bf16.vlgmr.msra.gmra.mxu0 %v17139_v18 }
 0x55a   : > { %v11592_v22 = vadd.f32 %v11591_v49, %v18054_v48  ;;  %v11632_v31 = vpop.f32.mrf.mxu1  ;;  %11877 = vmatmul.mubr.bf16.vlgmr.msra.gmra.mxu1 %v17147_v5  ;;  %11886 = vmatpush1.bf16.msra.mxu0 %v15468_v10  ;;  %v13919_v48 = vcombine.high %v580_v24, %v584_v35  ;;  %v13910_v10 = vcombine.low %v572_v60, %v576_v21  ;;  %v560_v49 = vld [vmem:[%s16552_s27 + $0xb8] sm:$0xff] }
 0x55b   : > { %11927 = vmatpush1.bf16.msra.mxu1 %v13934_v19  ;;  %v11593_v34 = vpop.f32.mrf.mxu0  ;;  %11887 = vmatprep.subr.bf16.mxu0 %v15461_v2  ;;  %v13903_v2 = vcombine.high %v564_v6, %v568_v59  ;;  %v13902_v35 = vcombine.low %v564_v6, %v568_v59  ;;  %v540_v60 = vld [vmem:[%s16552_s27 + $0x18] sm:$0xff] }
 0x55c   : > { %v18128_v45 = vadd.f32 %v11632_v31, %v11592_v22  ;;  %v11594_v39 = vadd.f32 %v11593_v34, %v18063_v62  ;;  %v11634_v47 = vpop.f32.mrf.mxu1  ;;  %11928 = vmatprep.subr.bf16.mxu1 %v13927_v26  ;;  %11917 = vmatprep.mubr.bf16.mxu0 %v16325_v41  ;;  %v15452_v62 = vcombine.low %v2115_v56, %v2119_v28  ;;  %v2091_v26 = vld [vmem:[%s16552_s27 + $0x3090] sm:$0xff]  ;;  %v556_v28 = vld [vmem:[%s16552_s27 + $0x98] sm:$0xff] }
 0x55d   : > { %v11595_v30 = vpop.f32.mrf.mxu0  ;;  %11958 = vmatprep.mubr.bf16.mxu1 %v16631_v42  ;;  %v2103_v42 = vld [vmem:[%s16552_s27 + $0x30f0] sm:$0xff]  ;;  %v13895_v31 = vcombine.high %v556_v28, %v560_v49  ;;  %v544_v21 = vld [vmem:[%s16552_s27 + $0x38] sm:$0xff] }
 0x55e   : > { %v18137_v61 = vadd.f32 %v11634_v47, %v11594_v39  ;;  %v11636_v20 = vpop.f32.mrf.mxu1  ;;  %11888 = vmatpush1.bf16.msra.mxu0 %v15460_v27  ;;  %v15437_v19 = vcombine.high %v2099_v15, %v2103_v42  ;;  %v2095_v56 = vld [vmem:[%s16552_s27 + $0x30b0] sm:$0xff]  ;;  %v15436_v24 = vcombine.low %v2099_v15, %v2103_v42  ;;  %v13894_v47 = vcombine.low %v556_v28, %v560_v49  ;;  %v664_v15 = vld [vmem:[%s16552_s27 + $0x3f8] sm:$0xff] }
 0x55f   : > { %11929 = vmatpush1.bf16.msra.mxu1 %v13926_v57  ;;  %v11596_v0 = vpop.f32.mrf.mxu0  ;;  %11889 = vmatprep.subr.bf16.mxu0 %v15453_v53  ;;  %v15429_v22 = vcombine.high %v2091_v26, %v2095_v56  ;;  %v2083_v27 = vld [vmem:[%s16552_s27 + $0x3050] sm:$0xff]  ;;  %v548_v57 = vld [vmem:[%s16552_s27 + $0x58] sm:$0xff]  ;;  %v15428_v39 = vcombine.low %v2091_v26, %v2095_v56  ;;  %v13878_v6 = vcombine.low %v540_v60, %v544_v21 }
 0x560   : > { %v11637_v51 = vpop.f32.mrf.mxu1  ;;  %11930 = vmatprep.subr.bf16.mxu1 %v13919_v48  ;;  %v2087_v34 = vld [vmem:[%s16552_s27 + $0x3070] sm:$0xff]  ;;  %v552_v53 = vld [vmem:[%s16552_s27 + $0x78] sm:$0xff] }
 0x561   : > { %v15421_v48 = vcombine.high %v2083_v27, %v2087_v34  ;;  %v13887_v7 = vcombine.high %v548_v57, %v552_v53  ;;  %v2079_v30 = vld [vmem:[%s16552_s27 + $0x3030] sm:$0xff]  ;;  %v15420_v20 = vcombine.low %v2083_v27, %v2087_v34  ;;  %v728_v51 = vld [vmem:[%s16552_s27 + $0x5f8] sm:$0xff] }
 0x562   : > { %11890 = vmatpush1.bf16.msra.mxu0 %v15452_v62  ;;  %v13886_v62 = vcombine.low %v548_v57, %v552_v53  ;;  %v15413_v0 = vcombine.high %v2075_v33, %v2079_v30  ;;  %v15412_v42 = vcombine.low %v2075_v33, %v2079_v30  ;;  %v656_v26 = vld [vmem:[%s16552_s27 + $0x3b8] sm:$0xff] }
 0x563   : > { %11931 = vmatpush1.bf16.msra.mxu1 %v13918_v40  ;;  %11891 = vmatprep.subr.bf16.mxu0 %v15445_v50  ;;  %v13879_v40 = vcombine.high %v540_v60, %v544_v21  ;;  %v724_v50 = vld [vmem:[%s16552_s27 + $0x5d8] sm:$0xff] }
 0x564   : > { %11932 = vmatprep.subr.bf16.mxu1 %v13911_v14  ;;  %v660_v14 = vld [vmem:[%s16552_s27 + $0x3d8] sm:$0xff]  ;;  %v14063_v59 = vcombine.high %v724_v50, %v728_v51  ;;  %v14062_v56 = vcombine.low %v724_v50, %v728_v51 }
 0x565   : > { %v13998_v28 = vcombine.low %v660_v14, %v664_v15  ;;  %v648_v27 = vld [vmem:[%s16552_s27 + $0x378] sm:$0xff] }
 0x566   : > { %11892 = vmatpush1.bf16.msra.mxu0 %v15444_v37  ;;  %v13999_v37 = vcombine.high %v660_v14, %v664_v15  ;;  %v640_v33 = vld [vmem:[%s16552_s27 + $0x338] sm:$0xff] }
 0x567   : > { %11933 = vmatpush1.bf16.msra.mxu1 %v13910_v10  ;;  %11893 = vmatprep.subr.bf16.mxu0 %v15437_v19  ;;  %v716_v10 = vld [vmem:[%s16552_s27 + $0x598] sm:$0xff] }
 0x568   : > { %11934 = vmatprep.subr.bf16.mxu1 %v13903_v2  ;;  %v720_v19 = vld [vmem:[%s16552_s27 + $0x5b8] sm:$0xff] }
 0x569   : > { %v652_v2 = vld [vmem:[%s16552_s27 + $0x398] sm:$0xff]  ;;  %v14055_v49 = vcombine.high %v716_v10, %v720_v19  ;;  %v14054_v34 = vcombine.low %v716_v10, %v720_v19 }
 0x56a   : > { %11894 = vmatpush1.bf16.msra.mxu0 %v15436_v24  ;;  %v13991_v24 = vcombine.high %v652_v2, %v656_v26  ;;  %v13990_v57 = vcombine.low %v652_v2, %v656_v26 }
 0x56b   : > { %11935 = vmatpush1.bf16.msra.mxu1 %v13902_v35  ;;  %11895 = vmatprep.subr.bf16.mxu0 %v15429_v22  ;;  %v708_v35 = vld [vmem:[%s16552_s27 + $0x558] sm:$0xff] }
 0x56c   : > { %11936 = vmatprep.subr.bf16.mxu1 %v13895_v31  ;;  %v712_v22 = vld [vmem:[%s16552_s27 + $0x578] sm:$0xff] }
 0x56d   : > { %v644_v31 = vld [vmem:[%s16552_s27 + $0x358] sm:$0xff]  ;;  %v14047_v53 = vcombine.high %v708_v35, %v712_v22  ;;  %v14046_v30 = vcombine.low %v708_v35, %v712_v22 }
 0x56e   : > { %11896 = vmatpush1.bf16.msra.mxu0 %v15428_v39  ;;  %v13983_v39 = vcombine.high %v644_v31, %v648_v27  ;;  %v13982_v60 = vcombine.low %v644_v31, %v648_v27 }
 0x56f   : > { %11937 = vmatpush1.bf16.msra.mxu1 %v13894_v47  ;;  %11897 = vmatprep.subr.bf16.mxu0 %v15421_v48  ;;  %v700_v47 = vld [vmem:[%s16552_s27 + $0x518] sm:$0xff] }
 0x570   : > { %11938 = vmatprep.subr.bf16.mxu1 %v13887_v7  ;;  %v704_v48 = vld [vmem:[%s16552_s27 + $0x538] sm:$0xff] }
 0x571   : > { %v636_v7 = vld [vmem:[%s16552_s27 + $0x318] sm:$0xff]  ;;  %v14038_v50 = vcombine.low %v700_v47, %v704_v48 }
 0x572   : > { %11898 = vmatpush1.bf16.msra.mxu0 %v15420_v20  ;;  %v13975_v21 = vcombine.high %v636_v7, %v640_v33  ;;  %v692_v20 = vld [vmem:[%s16552_s27 + $0x4d8] sm:$0xff]  ;;  %v13974_v51 = vcombine.low %v636_v7, %v640_v33 }
 0x573   : > { %11939 = vmatpush1.bf16.msra.mxu1 %v13886_v62  ;;  %11899 = vmatprep.subr.bf16.mxu0 %v15413_v0  ;;  %v696_v62 = vld [vmem:[%s16552_s27 + $0x4f8] sm:$0xff] }
 0x574   : > { %11940 = vmatprep.subr.bf16.mxu1 %v13879_v40  ;;  %v628_v0 = vld [vmem:[%s16552_s27 + $0x2d8] sm:$0xff]  ;;  %v14031_v14 = vcombine.high %v692_v20, %v696_v62  ;;  %v14030_v10 = vcombine.low %v692_v20, %v696_v62 }
 0x575   : > { %v632_v40 = vld [vmem:[%s16552_s27 + $0x2f8] sm:$0xff] }
 0x576   : > { %11900 = vmatpush1.bf16.msra.mxu0 %v15412_v42  ;;  %v13967_v15 = vcombine.high %v628_v0, %v632_v40  ;;  %v684_v42 = vld [vmem:[%s16552_s27 + $0x498] sm:$0xff]  ;;  %v13966_v19 = vcombine.low %v628_v0, %v632_v40 }
 0x577   : > { %11941 = vmatpush1.bf16.msra.mxu1 %v13878_v6  ;;  %11967 = vmatprep.subr.bf16.mxu0 %v14063_v59  ;;  %v688_v6 = vld [vmem:[%s16552_s27 + $0x4b8] sm:$0xff] }
 0x578   : > { %11942 = vmatprep.subr.bf16.mxu1 %v13999_v37  ;;  %v620_v59 = vld [vmem:[%s16552_s27 + $0x298] sm:$0xff]  ;;  %v14023_v2 = vcombine.high %v684_v42, %v688_v6  ;;  %v14022_v35 = vcombine.low %v684_v42, %v688_v6 }
 0x579   : > { %11918 = vmatmul.mubr.bf16.vlgmr.msra.gmra.mxu0 %v17191_v11  ;;  %v624_v37 = vld [vmem:[%s16552_s27 + $0x2b8] sm:$0xff] }
 0x57a   : > { %11968 = vmatpush1.bf16.msra.mxu0 %v14062_v56  ;;  %11999 = vmatprep.mubr.bf16.mxu0 %v16638_v46  ;;  %v14039_v46 = vcombine.high %v700_v47, %v704_v48  ;;  %v13959_v26 = vcombine.high %v620_v59, %v624_v37  ;;  %v676_v56 = vld [vmem:[%s16552_s27 + $0x458] sm:$0xff]  ;;  %v13958_v22 = vcombine.low %v620_v59, %v624_v37 }
 0x57b   : > { %11943 = vmatpush2.bf16.msra.mxu1 %v13998_v28  ;;  %11969 = vmatprep.subr.bf16.mxu0 %v14055_v49  ;;  %v680_v28 = vld [vmem:[%s16552_s27 + $0x478] sm:$0xff] }
 0x57c   : > { %11944 = vmatprep.subr.bf16.mxu1 %v13991_v24  ;;  %v612_v49 = vld [vmem:[%s16552_s27 + $0x258] sm:$0xff]  ;;  %v14015_v31 = vcombine.high %v676_v56, %v680_v28  ;;  %v14014_v47 = vcombine.low %v676_v56, %v680_v28 }
 0x57d   : > { %v616_v24 = vld [vmem:[%s16552_s27 + $0x278] sm:$0xff] }
 0x57e   : > { %11970 = vmatpush1.bf16.msra.mxu0 %v14054_v34  ;;  %v13951_v27 = vcombine.high %v612_v49, %v616_v24  ;;  %v668_v34 = vld [vmem:[%s16552_s27 + $0x418] sm:$0xff]  ;;  %v13950_v48 = vcombine.low %v612_v49, %v616_v24 }
 0x57f   : > { %11945 = vmatpush2.bf16.msra.mxu1 %v13990_v57  ;;  %11971 = vmatprep.subr.bf16.mxu0 %v14047_v53  ;;  %v672_v57 = vld [vmem:[%s16552_s27 + $0x438] sm:$0xff] }
 0x580   : > { %11946 = vmatprep.subr.bf16.mxu1 %v13983_v39  ;;  %v604_v53 = vld [vmem:[%s16552_s27 + $0x218] sm:$0xff]  ;;  %v14007_v7 = vcombine.high %v668_v34, %v672_v57  ;;  %v14006_v20 = vcombine.low %v668_v34, %v672_v57 }
 0x581   : > { %v608_v39 = vld [vmem:[%s16552_s27 + $0x238] sm:$0xff] }
 0x582   : > { %11972 = vmatpush1.bf16.msra.mxu0 %v14046_v30  ;;  %v13943_v33 = vcombine.high %v604_v53, %v608_v39  ;;  %v788_v30 = vld [vmem:[%s16552_s27 + $0x7d8] sm:$0xff]  ;;  %v13942_v62 = vcombine.low %v604_v53, %v608_v39 }
 0x583   : > { %11947 = vmatpush2.bf16.msra.mxu1 %v13982_v60  ;;  %11973 = vmatprep.subr.bf16.mxu0 %v14039_v46  ;;  %v792_v60 = vld [vmem:[%s16552_s27 + $0x7f8] sm:$0xff] }
 0x584   : > { %11948 = vmatprep.subr.bf16.mxu1 %v13975_v21  ;;  %v852_v46 = vld [vmem:[%s16552_s27 + $0x9d8] sm:$0xff]  ;;  %v14127_v0 = vcombine.high %v788_v30, %v792_v60  ;;  %v14126_v42 = vcombine.low %v788_v30, %v792_v60 }
 0x585   : > { %v856_v21 = vld [vmem:[%s16552_s27 + $0x9f8] sm:$0xff] }
 0x586   : > { %11974 = vmatpush1.bf16.msra.mxu0 %v14038_v50  ;;  %v14191_v40 = vcombine.high %v852_v46, %v856_v21  ;;  %v780_v50 = vld [vmem:[%s16552_s27 + $0x798] sm:$0xff]  ;;  %v14190_v6 = vcombine.low %v852_v46, %v856_v21 }
 0x587   : > { %11949 = vmatpush2.bf16.msra.mxu1 %v13974_v51  ;;  %11975 = vmatprep.subr.bf16.mxu0 %v14031_v14  ;;  %v784_v51 = vld [vmem:[%s16552_s27 + $0x7b8] sm:$0xff] }
 0x588   : > { %11950 = vmatprep.subr.bf16.mxu1 %v13967_v15  ;;  %v844_v14 = vld [vmem:[%s16552_s27 + $0x998] sm:$0xff]  ;;  %v14119_v59 = vcombine.high %v780_v50, %v784_v51  ;;  %v14118_v24 = vcombine.low %v780_v50, %v784_v51 }
 0x589   : > { %v848_v15 = vld [vmem:[%s16552_s27 + $0x9b8] sm:$0xff] }
 0x58a   : > { %11976 = vmatpush1.bf16.msra.mxu0 %v14030_v10  ;;  %v14183_v37 = vcombine.high %v844_v14, %v848_v15  ;;  %v772_v10 = vld [vmem:[%s16552_s27 + $0x758] sm:$0xff] }
 0x58b   : > { %11951 = vmatpush2.bf16.msra.mxu1 %v13966_v19  ;;  %11977 = vmatprep.subr.bf16.mxu0 %v14023_v2  ;;  %v776_v19 = vld [vmem:[%s16552_s27 + $0x778] sm:$0xff] }
 0x58c   : > { %11952 = vmatprep.subr.bf16.mxu1 %v13959_v26  ;;  %v836_v26 = vld [vmem:[%s16552_s27 + $0x958] sm:$0xff]  ;;  %v14110_v30 = vcombine.low %v772_v10, %v776_v19 }
 0x58d   : > { %v840_v56 = vld [vmem:[%s16552_s27 + $0x978] sm:$0xff] }
 0x58e   : > { %11978 = vmatpush1.bf16.msra.mxu0 %v14022_v35  ;;  %v764_v53 = vld [vmem:[%s16552_s27 + $0x718] sm:$0xff]  ;;  %v14174_v60 = vcombine.low %v836_v26, %v840_v56 }
 0x58f   : > { %11953 = vmatpush2.bf16.msra.mxu1 %v13958_v22  ;;  %11979 = vmatprep.subr.bf16.mxu0 %v14015_v31  ;;  %v14182_v22 = vcombine.low %v844_v14, %v848_v15  ;;  %v14111_v31 = vcombine.high %v772_v10, %v776_v19  ;;  %v768_v39 = vld [vmem:[%s16552_s27 + $0x738] sm:$0xff] }
 0x590   : > { %11954 = vmatprep.subr.bf16.mxu1 %v13951_v27  ;;  %v14103_v46 = vcombine.high %v764_v53, %v768_v39  ;;  %v14102_v50 = vcombine.low %v764_v53, %v768_v39  ;;  %v796_v53 = vld [vmem:[%s16552_s27 + $0x818] sm:$0xff] }
 0x591   : > { %v800_v39 = vld [vmem:[%s16552_s27 + $0x838] sm:$0xff] }
 0x592   : > { %11980 = vmatpush1.bf16.msra.mxu0 %v14014_v47  ;;  %v828_v47 = vld [vmem:[%s16552_s27 + $0x918] sm:$0xff] }
 0x593   : > { %11955 = vmatpush2.bf16.msra.mxu1 %v13950_v48  ;;  %11981 = vmatprep.subr.bf16.mxu0 %v14007_v7  ;;  %v832_v48 = vld [vmem:[%s16552_s27 + $0x938] sm:$0xff] }
 0x594   : > { %11956 = vmatprep.subr.bf16.mxu1 %v13943_v33  ;;  %v14166_v51 = vcombine.low %v828_v47, %v832_v48 }
 0x596   : > { %11982 = vmatpush1.bf16.msra.mxu0 %v14006_v20  ;;  %v756_v20 = vld [vmem:[%s16552_s27 + $0x6d8] sm:$0xff] }
 0x597   : > { %11957 = vmatpush2.bf16.msra.mxu1 %v13942_v62  ;;  %11983 = vmatprep.subr.bf16.mxu0 %v14127_v0  ;;  %v760_v62 = vld [vmem:[%s16552_s27 + $0x6f8] sm:$0xff] }
 0x598   : > { %12008 = vmatprep.subr.bf16.mxu1 %v14191_v40  ;;  %v820_v0 = vld [vmem:[%s16552_s27 + $0x8d8] sm:$0xff]  ;;  %v14095_v14 = vcombine.high %v756_v20, %v760_v62  ;;  %v14094_v10 = vcombine.low %v756_v20, %v760_v62 }
 0x599   : > { %v11673_v2 = vpop.f32.mrf.mxu0  ;;  %v824_v40 = vld [vmem:[%s16552_s27 + $0x8f8] sm:$0xff] }
 0x59a   : > { %v11674_v28 = vadd.f32 %v11673_v2, %v18128_v45  ;;  %v11714_v49 = vpop.f32.mrf.mxu1  ;;  %11959 = vmatmul.mubr.bf16.vlgmr.msra.gmra.mxu1 %v16682_v55  ;;  %11984 = vmatpush2.bf16.msra.mxu0 %v14126_v42  ;;  %v14175_v45 = vcombine.high %v836_v26, %v840_v56  ;;  %v14159_v15 = vcombine.high %v820_v0, %v824_v40  ;;  %v748_v42 = vld [vmem:[%s16552_s27 + $0x698] sm:$0xff] }
 0x59b   : > { %12009 = vmatpush1.bf16.msra.mxu1 %v14190_v6  ;;  %v11675_v35 = vpop.f32.mrf.mxu0  ;;  %11985 = vmatprep.subr.bf16.mxu0 %v14119_v59  ;;  %v752_v6 = vld [vmem:[%s16552_s27 + $0x6b8] sm:$0xff]  ;;  %v14158_v19 = vcombine.low %v820_v0, %v824_v40 }
 0x59c   : > { %v18203_v27 = vadd.f32 %v11714_v49, %v11674_v28  ;;  %v11676_v34 = vadd.f32 %v11675_v35, %v18137_v61  ;;  %v11716_v57 = vpop.f32.mrf.mxu1  ;;  %12010 = vmatprep.subr.bf16.mxu1 %v14183_v37  ;;  %12040 = vmatprep.mubr.bf16.mxu1 %v16689_v63  ;;  %v14167_v63 = vcombine.high %v828_v47, %v832_v48  ;;  %v812_v59 = vld [vmem:[%s16552_s27 + $0x898] sm:$0xff] }
 0x59d   : > { %v11677_v55 = vpop.f32.mrf.mxu0  ;;  %v816_v37 = vld [vmem:[%s16552_s27 + $0x8b8] sm:$0xff]  ;;  %v14087_v2 = vcombine.high %v748_v42, %v752_v6  ;;  %v14086_v35 = vcombine.low %v748_v42, %v752_v6 }
 0x59e   : > { %v18211_v7 = vadd.f32 %v11716_v57, %v11676_v34  ;;  %v11718_v33 = vpop.f32.mrf.mxu1  ;;  %11986 = vmatpush2.bf16.msra.mxu0 %v14118_v24  ;;  %v14151_v26 = vcombine.high %v812_v59, %v816_v37  ;;  %v740_v56 = vld [vmem:[%s16552_s27 + $0x658] sm:$0xff] }
 0x59f   : > { %12011 = vmatpush1.bf16.msra.mxu1 %v14182_v22  ;;  %v11678_v61 = vpop.f32.mrf.mxu0  ;;  %11987 = vmatprep.subr.bf16.mxu0 %v14111_v31  ;;  %v744_v28 = vld [vmem:[%s16552_s27 + $0x678] sm:$0xff]  ;;  %v14150_v22 = vcombine.low %v812_v59, %v816_v37  ;;  %v14135_v33 = vcombine.high %v796_v53, %v800_v39 }
 0x5a0   : > { %v11719_v21 = vpop.f32.mrf.mxu1  ;;  %12012 = vmatprep.subr.bf16.mxu1 %v14175_v45  ;;  %v804_v49 = vld [vmem:[%s16552_s27 + $0x858] sm:$0xff]  ;;  %v14079_v31 = vcombine.high %v740_v56, %v744_v28  ;;  %v14078_v55 = vcombine.low %v740_v56, %v744_v28 }
 0x5a1   : > { %v808_v24 = vld [vmem:[%s16552_s27 + $0x878] sm:$0xff] }
 0x5a2   : > { %11988 = vmatpush2.bf16.msra.mxu0 %v14110_v30  ;;  %v14143_v34 = vcombine.high %v804_v49, %v808_v24  ;;  %v732_v57 = vld [vmem:[%s16552_s27 + $0x618] sm:$0xff]  ;;  %v14142_v47 = vcombine.low %v804_v49, %v808_v24 }
 0x5a3   : > { %12013 = vmatpush1.bf16.msra.mxu1 %v14174_v60  ;;  %11989 = vmatprep.subr.bf16.mxu0 %v14103_v46  ;;  %v736_v45 = vld [vmem:[%s16552_s27 + $0x638] sm:$0xff] }
 0x5a4   : > { %12014 = vmatprep.subr.bf16.mxu1 %v14167_v63  ;;  %v14071_v48 = vcombine.high %v732_v57, %v736_v45  ;;  %v980_v30 = vld [vmem:[%s16552_s27 + $0xdd8] sm:$0xff]  ;;  %v14070_v21 = vcombine.low %v732_v57, %v736_v45  ;;  %v14134_v63 = vcombine.low %v796_v53, %v800_v39 }
 0x5a5   : > { %v984_v61 = vld [vmem:[%s16552_s27 + $0xdf8] sm:$0xff] }
 0x5a6   : > { %11990 = vmatpush2.bf16.msra.mxu0 %v14102_v50  ;;  %v916_v60 = vld [vmem:[%s16552_s27 + $0xbd8] sm:$0xff]  ;;  %v14319_v20 = vcombine.high %v980_v30, %v984_v61 }
 0x5a7   : > { %12015 = vmatpush1.bf16.msra.mxu1 %v14166_v51  ;;  %11991 = vmatprep.subr.bf16.mxu0 %v14095_v14  ;;  %v920_v46 = vld [vmem:[%s16552_s27 + $0xbf8] sm:$0xff]  ;;  %v14318_v14 = vcombine.low %v980_v30, %v984_v61 }
 0x5a8   : > { %12016 = vmatprep.subr.bf16.mxu1 %v14159_v15  ;;  %v14255_v62 = vcombine.high %v916_v60, %v920_v46  ;;  %v972_v0 = vld [vmem:[%s16552_s27 + $0xd98] sm:$0xff]  ;;  %v14254_v15 = vcombine.low %v916_v60, %v920_v46 }
 0x5a9   : > { %v976_v40 = vld [vmem:[%s16552_s27 + $0xdb8] sm:$0xff] }
 0x5aa   : > { %11992 = vmatpush2.bf16.msra.mxu0 %v14094_v10  ;;  %v908_v50 = vld [vmem:[%s16552_s27 + $0xb98] sm:$0xff]  ;;  %v14311_v42 = vcombine.high %v972_v0, %v976_v40 }
 0x5ab   : > { %12017 = vmatpush1.bf16.msra.mxu1 %v14158_v19  ;;  %11993 = vmatprep.subr.bf16.mxu0 %v14087_v2  ;;  %v912_v51 = vld [vmem:[%s16552_s27 + $0xbb8] sm:$0xff]  ;;  %v14310_v2 = vcombine.low %v972_v0, %v976_v40 }
 0x5ac   : > { %12018 = vmatprep.subr.bf16.mxu1 %v14151_v26  ;;  %v14247_v6 = vcombine.high %v908_v50, %v912_v51  ;;  %v964_v59 = vld [vmem:[%s16552_s27 + $0xd58] sm:$0xff]  ;;  %v14246_v26 = vcombine.low %v908_v50, %v912_v51 }
 0x5ad   : > { %v968_v37 = vld [vmem:[%s16552_s27 + $0xd78] sm:$0xff] }
 0x5ae   : > { %11994 = vmatpush2.bf16.msra.mxu0 %v14086_v35  ;;  %v900_v10 = vld [vmem:[%s16552_s27 + $0xb58] sm:$0xff]  ;;  %v14303_v56 = vcombine.high %v964_v59, %v968_v37 }
 0x5af   : > { %12019 = vmatpush1.bf16.msra.mxu1 %v14150_v22  ;;  %11995 = vmatprep.subr.bf16.mxu0 %v14079_v31  ;;  %v904_v19 = vld [vmem:[%s16552_s27 + $0xb78] sm:$0xff]  ;;  %v14302_v22 = vcombine.low %v964_v59, %v968_v37 }
 0x5b0   : > { %12020 = vmatprep.subr.bf16.mxu1 %v14143_v34  ;;  %v14239_v28 = vcombine.high %v900_v10, %v904_v19  ;;  %v956_v49 = vld [vmem:[%s16552_s27 + $0xd18] sm:$0xff]  ;;  %v14238_v31 = vcombine.low %v900_v10, %v904_v19 }
 0x5b1   : > { %v960_v24 = vld [vmem:[%s16552_s27 + $0xd38] sm:$0xff] }
 0x5b2   : > { %11996 = vmatpush2.bf16.msra.mxu0 %v14078_v55  ;;  %v892_v35 = vld [vmem:[%s16552_s27 + $0xb18] sm:$0xff]  ;;  %v14294_v55 = vcombine.low %v956_v49, %v960_v24 }
 0x5b3   : > { %12021 = vmatpush1.bf16.msra.mxu1 %v14142_v47  ;;  %11997 = vmatprep.subr.bf16.mxu0 %v14071_v48  ;;  %v948_v57 = vld [vmem:[%s16552_s27 + $0xcd8] sm:$0xff] }
 0x5b4   : > { %12022 = vmatprep.subr.bf16.mxu1 %v14135_v33  ;;  %v952_v45 = vld [vmem:[%s16552_s27 + $0xcf8] sm:$0xff] }
 0x5b5   : > { %v884_v53 = vld [vmem:[%s16552_s27 + $0xad8] sm:$0xff]  ;;  %v14287_v48 = vcombine.high %v948_v57, %v952_v45 }
 0x5b6   : > { %11998 = vmatpush2.bf16.msra.mxu0 %v14070_v21  ;;  %v888_v39 = vld [vmem:[%s16552_s27 + $0xaf8] sm:$0xff]  ;;  %v14286_v21 = vcombine.low %v948_v57, %v952_v45 }
 0x5b7   : > { %12023 = vmatpush1.bf16.msra.mxu1 %v14134_v63  ;;  %12049 = vmatprep.subr.bf16.mxu0 %v14319_v20  ;;  %v14223_v33 = vcombine.high %v884_v53, %v888_v39  ;;  %v940_v30 = vld [vmem:[%s16552_s27 + $0xc98] sm:$0xff]  ;;  %v14222_v63 = vcombine.low %v884_v53, %v888_v39 }
 0x5b8   : > { %12024 = vmatprep.subr.bf16.mxu1 %v14255_v62  ;;  %v944_v61 = vld [vmem:[%s16552_s27 + $0xcb8] sm:$0xff] }
 0x5b9   : > { %12000 = vmatmul.mubr.bf16.vlgmr.msra.gmra.mxu0 %v16693_v32  ;;  %v896_v32 = vld [vmem:[%s16552_s27 + $0xb38] sm:$0xff]  ;;  %v14279_v20 = vcombine.high %v940_v30, %v944_v61 }
 0x5ba   : > { %12050 = vmatpush1.bf16.msra.mxu0 %v14318_v14  ;;  %12081 = vmatprep.mubr.bf16.mxu0 %v16702_v8  ;;  %v14295_v8 = vcombine.high %v956_v49, %v960_v24  ;;  %v14231_v34 = vcombine.high %v892_v35, %v896_v32  ;;  %v14230_v47 = vcombine.low %v892_v35, %v896_v32  ;;  %v876_v60 = vld [vmem:[%s16552_s27 + $0xa98] sm:$0xff] }
 0x5bb   : > { %12025 = vmatpush2.bf16.msra.mxu1 %v14254_v15  ;;  %12051 = vmatprep.subr.bf16.mxu0 %v14311_v42  ;;  %v880_v46 = vld [vmem:[%s16552_s27 + $0xab8] sm:$0xff]  ;;  %v14278_v14 = vcombine.low %v940_v30, %v944_v61 }
 0x5bc   : > { %12026 = vmatprep.subr.bf16.mxu1 %v14247_v6  ;;  %v14215_v62 = vcombine.high %v876_v60, %v880_v46  ;;  %v932_v0 = vld [vmem:[%s16552_s27 + $0xc58] sm:$0xff]  ;;  %v14214_v15 = vcombine.low %v876_v60, %v880_v46 }
 0x5bd   : > { %v936_v40 = vld [vmem:[%s16552_s27 + $0xc78] sm:$0xff] }
 0x5be   : > { %12052 = vmatpush1.bf16.msra.mxu0 %v14310_v2  ;;  %v868_v50 = vld [vmem:[%s16552_s27 + $0xa58] sm:$0xff]  ;;  %v14271_v42 = vcombine.high %v932_v0, %v936_v40  ;;  %v14270_v2 = vcombine.low %v932_v0, %v936_v40 }
 0x5bf   : > { %12027 = vmatpush2.bf16.msra.mxu1 %v14246_v26  ;;  %12053 = vmatprep.subr.bf16.mxu0 %v14303_v56  ;;  %v872_v51 = vld [vmem:[%s16552_s27 + $0xa78] sm:$0xff] }
 0x5c0   : > { %12028 = vmatprep.subr.bf16.mxu1 %v14239_v28  ;;  %v14207_v6 = vcombine.high %v868_v50, %v872_v51  ;;  %v924_v59 = vld [vmem:[%s16552_s27 + $0xc18] sm:$0xff]  ;;  %v14206_v26 = vcombine.low %v868_v50, %v872_v51 }
 0x5c1   : > { %v928_v37 = vld [vmem:[%s16552_s27 + $0xc38] sm:$0xff] }
 0x5c2   : > { %12054 = vmatpush1.bf16.msra.mxu0 %v14302_v22  ;;  %v860_v10 = vld [vmem:[%s16552_s27 + $0xa18] sm:$0xff]  ;;  %v14263_v56 = vcombine.high %v924_v59, %v928_v37  ;;  %v14262_v22 = vcombine.low %v924_v59, %v928_v37 }
 0x5c3   : > { %12029 = vmatpush2.bf16.msra.mxu1 %v14238_v31  ;;  %12055 = vmatprep.subr.bf16.mxu0 %v14295_v8  ;;  %v864_v19 = vld [vmem:[%s16552_s27 + $0xa38] sm:$0xff] }
 0x5c4   : > { %12030 = vmatprep.subr.bf16.mxu1 %v14231_v34  ;;  %v14199_v28 = vcombine.high %v860_v10, %v864_v19  ;;  %v1044_v49 = vld [vmem:[%s16552_s27 + $0xfd8] sm:$0xff]  ;;  %v14198_v31 = vcombine.low %v860_v10, %v864_v19 }
 0x5c5   : > { %v1048_v24 = vld [vmem:[%s16552_s27 + $0xff8] sm:$0xff] }
 0x5c6   : > { %12056 = vmatpush1.bf16.msra.mxu0 %v14294_v55  ;;  %v1108_v35 = vld [vmem:[%s16552_s27 + $0x11d8] sm:$0xff]  ;;  %v14383_v8 = vcombine.high %v1044_v49, %v1048_v24  ;;  %v14382_v55 = vcombine.low %v1044_v49, %v1048_v24 }
 0x5c7   : > { %12031 = vmatpush2.bf16.msra.mxu1 %v14230_v47  ;;  %12057 = vmatprep.subr.bf16.mxu0 %v14287_v48  ;;  %v1112_v32 = vld [vmem:[%s16552_s27 + $0x11f8] sm:$0xff] }
 0x5c8   : > { %12032 = vmatprep.subr.bf16.mxu1 %v14223_v33  ;;  %v14447_v34 = vcombine.high %v1108_v35, %v1112_v32  ;;  %v1036_v57 = vld [vmem:[%s16552_s27 + $0xf98] sm:$0xff]  ;;  %v14446_v47 = vcombine.low %v1108_v35, %v1112_v32 }
 0x5c9   : > { %v1040_v45 = vld [vmem:[%s16552_s27 + $0xfb8] sm:$0xff] }
 0x5ca   : > { %12058 = vmatpush1.bf16.msra.mxu0 %v14286_v21  ;;  %v1100_v53 = vld [vmem:[%s16552_s27 + $0x1198] sm:$0xff]  ;;  %v14375_v48 = vcombine.high %v1036_v57, %v1040_v45 }
 0x5cb   : > { %12033 = vmatpush2.bf16.msra.mxu1 %v14222_v63  ;;  %12059 = vmatprep.subr.bf16.mxu0 %v14279_v20  ;;  %v1104_v39 = vld [vmem:[%s16552_s27 + $0x11b8] sm:$0xff] }
 0x5cc   : > { %12034 = vmatprep.subr.bf16.mxu1 %v14215_v62  ;;  %v14439_v33 = vcombine.high %v1100_v53, %v1104_v39  ;;  %v1028_v30 = vld [vmem:[%s16552_s27 + $0xf58] sm:$0xff]  ;;  %v14374_v62 = vcombine.low %v1036_v57, %v1040_v45  ;;  %v14438_v40 = vcombine.low %v1100_v53, %v1104_v39 }
 0x5cd   : > { %v1032_v61 = vld [vmem:[%s16552_s27 + $0xf78] sm:$0xff] }
 0x5ce   : > { %12060 = vmatpush1.bf16.msra.mxu0 %v14278_v14  ;;  %v1092_v46 = vld [vmem:[%s16552_s27 + $0x1158] sm:$0xff]  ;;  %v14367_v50 = vcombine.high %v1028_v30, %v1032_v61 }
 0x5cf   : > { %12035 = vmatpush2.bf16.msra.mxu1 %v14214_v15  ;;  %12061 = vmatprep.subr.bf16.mxu0 %v14271_v42  ;;  %v1096_v21 = vld [vmem:[%s16552_s27 + $0x1178] sm:$0xff] }
 0x5d0   : > { %12036 = vmatprep.subr.bf16.mxu1 %v14207_v6  ;;  %v1020_v42 = vld [vmem:[%s16552_s27 + $0xf18] sm:$0xff] }
 0x5d1   : > { %v1024_v6 = vld [vmem:[%s16552_s27 + $0xf38] sm:$0xff] }
 0x5d2   : > { %12062 = vmatpush1.bf16.msra.mxu0 %v14270_v2  ;;  %v1084_v59 = vld [vmem:[%s16552_s27 + $0x1118] sm:$0xff]  ;;  %v14366_v2 = vcombine.low %v1028_v30, %v1032_v61 }
 0x5d3   : > { %12037 = vmatpush2.bf16.msra.mxu1 %v14206_v26  ;;  %12063 = vmatprep.subr.bf16.mxu0 %v14263_v56  ;;  %v1088_v37 = vld [vmem:[%s16552_s27 + $0x1138] sm:$0xff]  ;;  %v14430_v26 = vcombine.low %v1092_v46, %v1096_v21  ;;  %v14359_v56 = vcombine.high %v1020_v42, %v1024_v6 }
 0x5d4   : > { %12038 = vmatprep.subr.bf16.mxu1 %v14199_v28  ;;  %v1012_v49 = vld [vmem:[%s16552_s27 + $0xed8] sm:$0xff] }
 0x5d5   : > { %v1016_v24 = vld [vmem:[%s16552_s27 + $0xef8] sm:$0xff] }
 0x5d6   : > { %12064 = vmatpush1.bf16.msra.mxu0 %v14262_v22  ;;  %v1076_v35 = vld [vmem:[%s16552_s27 + $0x10d8] sm:$0xff]  ;;  %v14358_v22 = vcombine.low %v1020_v42, %v1024_v6 }
 0x5d7   : > { %12039 = vmatpush2.bf16.msra.mxu1 %v14198_v31  ;;  %12065 = vmatprep.subr.bf16.mxu0 %v14383_v8  ;;  %v1080_v32 = vld [vmem:[%s16552_s27 + $0x10f8] sm:$0xff]  ;;  %v14422_v31 = vcombine.low %v1084_v59, %v1088_v37  ;;  %v14351_v8 = vcombine.high %v1012_v49, %v1016_v24 }
 0x5d8   : > { %12090 = vmatprep.subr.bf16.mxu1 %v14447_v34  ;;  %v14415_v34 = vcombine.high %v1076_v35, %v1080_v32  ;;  %v1004_v57 = vld [vmem:[%s16552_s27 + $0xe98] sm:$0xff] }
 0x5d9   : > { %v11755_v60 = vpop.f32.mrf.mxu0  ;;  %v1008_v45 = vld [vmem:[%s16552_s27 + $0xeb8] sm:$0xff] }
 0x5da   : > { %v11756_v63 = vadd.f32 %v11755_v60, %v18203_v27  ;;  %v11796_v20 = vpop.f32.mrf.mxu1  ;;  %12041 = vmatmul.mubr.bf16.vlgmr.msra.gmra.mxu1 %v16774_v16  ;;  %12066 = vmatpush2.bf16.msra.mxu0 %v14382_v55  ;;  %v14431_v27 = vcombine.high %v1092_v46, %v1096_v21  ;;  %v1068_v53 = vld [vmem:[%s16552_s27 + $0x1098] sm:$0xff]  ;;  %v14350_v55 = vcombine.low %v1012_v49, %v1016_v24 }
 0x5db   : > { %12091 = vmatpush1.bf16.msra.mxu1 %v14446_v47  ;;  %v11757_v0 = vpop.f32.mrf.mxu0  ;;  %12067 = vmatprep.subr.bf16.mxu0 %v14375_v48  ;;  %v1072_v39 = vld [vmem:[%s16552_s27 + $0x10b8] sm:$0xff]  ;;  %v14414_v47 = vcombine.low %v1076_v35, %v1080_v32  ;;  %v14343_v48 = vcombine.high %v1004_v57, %v1008_v45  ;;  %v14342_v21 = vcombine.low %v1004_v57, %v1008_v45 }
 0x5dc   : > { %v18277_v51 = vadd.f32 %v11796_v20, %v11756_v63  ;;  %v11758_v14 = vadd.f32 %v11757_v0, %v18211_v7  ;;  %v11798_v15 = vpop.f32.mrf.mxu1  ;;  %12092 = vmatprep.subr.bf16.mxu1 %v14439_v33  ;;  %12122 = vmatprep.mubr.bf16.mxu1 %v16781_v25  ;;  %v14423_v25 = vcombine.high %v1084_v59, %v1088_v37  ;;  %v996_v30 = vld [vmem:[%s16552_s27 + $0xe58] sm:$0xff] }
 0x5dd   : > { %v11759_v16 = vpop.f32.mrf.mxu0  ;;  %v14407_v33 = vcombine.high %v1068_v53, %v1072_v39  ;;  %v1000_v61 = vld [vmem:[%s16552_s27 + $0xe78] sm:$0xff]  ;;  %v14406_v63 = vcombine.low %v1068_v53, %v1072_v39 }
 0x5de   : > { %v18285_v10 = vadd.f32 %v11798_v15, %v11758_v14  ;;  %v11800_v19 = vpop.f32.mrf.mxu1  ;;  %12068 = vmatpush2.bf16.msra.mxu0 %v14374_v62  ;;  %v1060_v60 = vld [vmem:[%s16552_s27 + $0x1058] sm:$0xff]  ;;  %v14335_v20 = vcombine.high %v996_v30, %v1000_v61  ;;  %v14334_v15 = vcombine.low %v996_v30, %v1000_v61 }
 0x5df   : > { %12093 = vmatpush1.bf16.msra.mxu1 %v14438_v40  ;;  %v11760_v7 = vpop.f32.mrf.mxu0  ;;  %12069 = vmatprep.subr.bf16.mxu0 %v14367_v50  ;;  %v1064_v46 = vld [vmem:[%s16552_s27 + $0x1078] sm:$0xff] }
 0x5e0   : > { %v11801_v28 = vpop.f32.mrf.mxu1  ;;  %12094 = vmatprep.subr.bf16.mxu1 %v14431_v27  ;;  %v14399_v62 = vcombine.high %v1060_v60, %v1064_v46  ;;  %v988_v0 = vld [vmem:[%s16552_s27 + $0xe18] sm:$0xff]  ;;  %v14398_v27 = vcombine.low %v1060_v60, %v1064_v46 }
 0x5e1   : > { %v992_v40 = vld [vmem:[%s16552_s27 + $0xe38] sm:$0xff] }
 0x5e2   : > { %12070 = vmatpush2.bf16.msra.mxu0 %v14366_v2  ;;  %v1052_v50 = vld [vmem:[%s16552_s27 + $0x1018] sm:$0xff]  ;;  %v14327_v42 = vcombine.high %v988_v0, %v992_v40  ;;  %v14326_v2 = vcombine.low %v988_v0, %v992_v40 }
 0x5e3   : > { %12095 = vmatpush1.bf16.msra.mxu1 %v14430_v26  ;;  %12071 = vmatprep.subr.bf16.mxu0 %v14359_v56  ;;  %v1056_v14 = vld [vmem:[%s16552_s27 + $0x1038] sm:$0xff] }
 0x5e4   : > { %12096 = vmatprep.subr.bf16.mxu1 %v14423_v25  ;;  %v14391_v6 = vcombine.high %v1052_v50, %v1056_v14  ;;  %v1236_v16 = vld [vmem:[%s16552_s27 + $0x15d8] sm:$0xff]  ;;  %v14390_v7 = vcombine.low %v1052_v50, %v1056_v14 }
 0x5e5   : > { %v1240_v59 = vld [vmem:[%s16552_s27 + $0x15f8] sm:$0xff] }
 0x5e6   : > { %12072 = vmatpush2.bf16.msra.mxu0 %v14358_v22  ;;  %v1172_v37 = vld [vmem:[%s16552_s27 + $0x13d8] sm:$0xff]  ;;  %v14575_v26 = vcombine.high %v1236_v16, %v1240_v59  ;;  %v14574_v35 = vcombine.low %v1236_v16, %v1240_v59 }
 0x5e7   : > { %12097 = vmatpush1.bf16.msra.mxu1 %v14422_v31  ;;  %12073 = vmatprep.subr.bf16.mxu0 %v14351_v8  ;;  %v1176_v19 = vld [vmem:[%s16552_s27 + $0x13f8] sm:$0xff] }
 0x5e8   : > { %12098 = vmatprep.subr.bf16.mxu1 %v14415_v34  ;;  %v14511_v56 = vcombine.high %v1172_v37, %v1176_v19  ;;  %v1228_v28 = vld [vmem:[%s16552_s27 + $0x1598] sm:$0xff]  ;;  %v14510_v32 = vcombine.low %v1172_v37, %v1176_v19 }
 0x5e9   : > { %v1232_v25 = vld [vmem:[%s16552_s27 + $0x15b8] sm:$0xff] }
 0x5ea   : > { %12074 = vmatpush2.bf16.msra.mxu0 %v14350_v55  ;;  %v1164_v49 = vld [vmem:[%s16552_s27 + $0x1398] sm:$0xff]  ;;  %v14567_v22 = vcombine.high %v1228_v28, %v1232_v25  ;;  %v14566_v53 = vcombine.low %v1228_v28, %v1232_v25 }
 0x5eb   : > { %12099 = vmatpush1.bf16.msra.mxu1 %v14414_v47  ;;  %12075 = vmatprep.subr.bf16.mxu0 %v14343_v48  ;;  %v1168_v24 = vld [vmem:[%s16552_s27 + $0x13b8] sm:$0xff] }
 0x5ec   : > { %12100 = vmatprep.subr.bf16.mxu1 %v14407_v33  ;;  %v14503_v31 = vcombine.high %v1164_v49, %v1168_v24  ;;  %v1220_v8 = vld [vmem:[%s16552_s27 + $0x1558] sm:$0xff]  ;;  %v14502_v39 = vcombine.low %v1164_v49, %v1168_v24 }
 0x5ed   : > { %v1224_v34 = vld [vmem:[%s16552_s27 + $0x1578] sm:$0xff] }
 0x5ee   : > { %12076 = vmatpush2.bf16.msra.mxu0 %v14342_v21  ;;  %v1156_v57 = vld [vmem:[%s16552_s27 + $0x1358] sm:$0xff]  ;;  %v14559_v55 = vcombine.high %v1220_v8, %v1224_v34  ;;  %v14558_v61 = vcombine.low %v1220_v8, %v1224_v34 }
 0x5ef   : > { %12101 = vmatpush1.bf16.msra.mxu1 %v14406_v63  ;;  %12077 = vmatprep.subr.bf16.mxu0 %v14335_v20  ;;  %v1160_v45 = vld [vmem:[%s16552_s27 + $0x1378] sm:$0xff] }
 0x5f0   : > { %12102 = vmatprep.subr.bf16.mxu1 %v14399_v62  ;;  %v14495_v47 = vcombine.high %v1156_v57, %v1160_v45  ;;  %v1212_v48 = vld [vmem:[%s16552_s27 + $0x1518] sm:$0xff]  ;;  %v14494_v60 = vcombine.low %v1156_v57, %v1160_v45 }
 0x5f1   : > { %v1216_v33 = vld [vmem:[%s16552_s27 + $0x1538] sm:$0xff] }
 0x5f2   : > { %12078 = vmatpush2.bf16.msra.mxu0 %v14334_v15  ;;  %v1148_v30 = vld [vmem:[%s16552_s27 + $0x1318] sm:$0xff]  ;;  %v14550_v0 = vcombine.low %v1212_v48, %v1216_v33 }
 0x5f3   : > { %12103 = vmatpush1.bf16.msra.mxu1 %v14398_v27  ;;  %12079 = vmatprep.subr.bf16.mxu0 %v14327_v42  ;;  %v1204_v21 = vld [vmem:[%s16552_s27 + $0x14d8] sm:$0xff] }
 0x5f4   : > { %12104 = vmatprep.subr.bf16.mxu1 %v14391_v6  ;;  %v1208_v63 = vld [vmem:[%s16552_s27 + $0x14f8] sm:$0xff] }
 0x5f5   : > { %v1140_v20 = vld [vmem:[%s16552_s27 + $0x12d8] sm:$0xff]  ;;  %v14543_v50 = vcombine.high %v1204_v21, %v1208_v63  ;;  %v14542_v16 = vcombine.low %v1204_v21, %v1208_v63 }
 0x5f6   : > { %12080 = vmatpush2.bf16.msra.mxu0 %v14326_v2  ;;  %v1144_v62 = vld [vmem:[%s16552_s27 + $0x12f8] sm:$0xff] }
 0x5f7   : > { %12105 = vmatpush1.bf16.msra.mxu1 %v14390_v7  ;;  %12131 = vmatprep.subr.bf16.mxu0 %v14575_v26  ;;  %v14479_v14 = vcombine.high %v1140_v20, %v1144_v62  ;;  %v1196_v15 = vld [vmem:[%s16552_s27 + $0x1498] sm:$0xff]  ;;  %v14478_v59 = vcombine.low %v1140_v20, %v1144_v62 }
 0x5f8   : > { %12106 = vmatprep.subr.bf16.mxu1 %v14511_v56  ;;  %v1200_v27 = vld [vmem:[%s16552_s27 + $0x14b8] sm:$0xff] }
 0x5f9   : > { %12082 = vmatmul.mubr.bf16.vlgmr.msra.gmra.mxu0 %v16785_v44  ;;  %v1152_v44 = vld [vmem:[%s16552_s27 + $0x1338] sm:$0xff]  ;;  %v14535_v37 = vcombine.high %v1196_v15, %v1200_v27  ;;  %v14534_v28 = vcombine.low %v1196_v15, %v1200_v27 }
 0x5fa   : > { %12132 = vmatpush1.bf16.msra.mxu0 %v14574_v35  ;;  %12163 = vmatprep.mubr.bf16.mxu0 %v16794_v36  ;;  %v14551_v36 = vcombine.high %v1212_v48, %v1216_v33  ;;  %v14487_v46 = vcombine.high %v1148_v30, %v1152_v44  ;;  %v14486_v40 = vcombine.low %v1148_v30, %v1152_v44  ;;  %v1132_v42 = vld [vmem:[%s16552_s27 + $0x1298] sm:$0xff] }
 0x5fb   : > { %12107 = vmatpush2.bf16.msra.mxu1 %v14510_v32  ;;  %12133 = vmatprep.subr.bf16.mxu0 %v14567_v22  ;;  %v1136_v6 = vld [vmem:[%s16552_s27 + $0x12b8] sm:$0xff] }
 0x5fc   : > { %12108 = vmatprep.subr.bf16.mxu1 %v14503_v31  ;;  %v14471_v19 = vcombine.high %v1132_v42, %v1136_v6  ;;  %v1188_v2 = vld [vmem:[%s16552_s27 + $0x1458] sm:$0xff]  ;;  %v14470_v25 = vcombine.low %v1132_v42, %v1136_v6 }
 0x5fd   : > { %v1192_v7 = vld [vmem:[%s16552_s27 + $0x1478] sm:$0xff] }
 0x5fe   : > { %12134 = vmatpush1.bf16.msra.mxu0 %v14566_v53  ;;  %v1124_v26 = vld [vmem:[%s16552_s27 + $0x1258] sm:$0xff]  ;;  %v14527_v49 = vcombine.high %v1188_v2, %v1192_v7  ;;  %v14526_v8 = vcombine.low %v1188_v2, %v1192_v7 }
 0x5ff   : > { %12109 = vmatpush2.bf16.msra.mxu1 %v14502_v39  ;;  %12135 = vmatprep.subr.bf16.mxu0 %v14559_v55  ;;  %v1128_v56 = vld [vmem:[%s16552_s27 + $0x1278] sm:$0xff] }
 0x600   : > { %12110 = vmatprep.subr.bf16.mxu1 %v14495_v47  ;;  %v14463_v24 = vcombine.high %v1124_v26, %v1128_v56  ;;  %v1180_v35 = vld [vmem:[%s16552_s27 + $0x1418] sm:$0xff]  ;;  %v14462_v34 = vcombine.low %v1124_v26, %v1128_v56 }
 0x601   : > { %v1184_v32 = vld [vmem:[%s16552_s27 + $0x1438] sm:$0xff] }
 0x602   : > { %12136 = vmatpush1.bf16.msra.mxu0 %v14558_v61  ;;  %v1116_v22 = vld [vmem:[%s16552_s27 + $0x1218] sm:$0xff]  ;;  %v14519_v57 = vcombine.high %v1180_v35, %v1184_v32  ;;  %v14518_v48 = vcombine.low %v1180_v35, %v1184_v32 }
 0x603   : > { %12111 = vmatpush2.bf16.msra.mxu1 %v14494_v60  ;;  %12137 = vmatprep.subr.bf16.mxu0 %v14551_v36  ;;  %v1120_v31 = vld [vmem:[%s16552_s27 + $0x1238] sm:$0xff] }
 0x604   : > { %12112 = vmatprep.subr.bf16.mxu1 %v14487_v46  ;;  %v14455_v45 = vcombine.high %v1116_v22, %v1120_v31  ;;  %v1300_v53 = vld [vmem:[%s16552_s27 + $0x17d8] sm:$0xff]  ;;  %v14454_v33 = vcombine.low %v1116_v22, %v1120_v31 }
 0x605   : > { %v1304_v39 = vld [vmem:[%s16552_s27 + $0x17f8] sm:$0xff] }
 0x606   : > { %12138 = vmatpush1.bf16.msra.mxu0 %v14550_v0  ;;  %v1364_v55 = vld [vmem:[%s16552_s27 + $0x19d8] sm:$0xff]  ;;  %v14639_v30 = vcombine.high %v1300_v53, %v1304_v39  ;;  %v14638_v21 = vcombine.low %v1300_v53, %v1304_v39 }
 0x607   : > { %12113 = vmatpush2.bf16.msra.mxu1 %v14486_v40  ;;  %12139 = vmatprep.subr.bf16.mxu0 %v14543_v50  ;;  %v1368_v47 = vld [vmem:[%s16552_s27 + $0x19f8] sm:$0xff] }
 0x608   : > { %12114 = vmatprep.subr.bf16.mxu1 %v14479_v14  ;;  %v14703_v44 = vcombine.high %v1364_v55, %v1368_v47  ;;  %v1292_v61 = vld [vmem:[%s16552_s27 + $0x1798] sm:$0xff]  ;;  %v14702_v63 = vcombine.low %v1364_v55, %v1368_v47 }
 0x609   : > { %v1296_v60 = vld [vmem:[%s16552_s27 + $0x17b8] sm:$0xff] }
 0x60a   : > { %12140 = vmatpush1.bf16.msra.mxu0 %v14542_v16  ;;  %v1356_v36 = vld [vmem:[%s16552_s27 + $0x1998] sm:$0xff]  ;;  %v14631_v20 = vcombine.high %v1292_v61, %v1296_v60  ;;  %v14630_v6 = vcombine.low %v1292_v61, %v1296_v60 }
 0x60b   : > { %12115 = vmatpush2.bf16.msra.mxu1 %v14478_v59  ;;  %12141 = vmatprep.subr.bf16.mxu0 %v14535_v37  ;;  %v1360_v46 = vld [vmem:[%s16552_s27 + $0x19b8] sm:$0xff] }
 0x60c   : > { %12116 = vmatprep.subr.bf16.mxu1 %v14471_v19  ;;  %v14695_v62 = vcombine.high %v1356_v36, %v1360_v46  ;;  %v1284_v0 = vld [vmem:[%s16552_s27 + $0x1758] sm:$0xff]  ;;  %v14694_v59 = vcombine.low %v1356_v36, %v1360_v46 }
 0x60d   : > { %v1288_v40 = vld [vmem:[%s16552_s27 + $0x1778] sm:$0xff] }
 0x60e   : > { %12142 = vmatpush1.bf16.msra.mxu0 %v14534_v28  ;;  %v1348_v14 = vld [vmem:[%s16552_s27 + $0x1958] sm:$0xff]  ;;  %v14623_v37 = vcombine.high %v1284_v0, %v1288_v40  ;;  %v14622_v35 = vcombine.low %v1284_v0, %v1288_v40 }
 0x60f   : > { %12117 = vmatpush2.bf16.msra.mxu1 %v14470_v25  ;;  %12143 = vmatprep.subr.bf16.mxu0 %v14527_v49  ;;  %v1352_v15 = vld [vmem:[%s16552_s27 + $0x1978] sm:$0xff] }
 0x610   : > { %12118 = vmatprep.subr.bf16.mxu1 %v14463_v24  ;;  %v1276_v26 = vld [vmem:[%s16552_s27 + $0x1718] sm:$0xff]  ;;  %v14686_v32 = vcombine.low %v1348_v14, %v1352_v15 }
 0x611   : > { %v1280_v56 = vld [vmem:[%s16552_s27 + $0x1738] sm:$0xff] }
 0x612   : > { %12144 = vmatpush1.bf16.msra.mxu0 %v14526_v8  ;;  %v1340_v28 = vld [vmem:[%s16552_s27 + $0x1918] sm:$0xff]  ;;  %v14615_v22 = vcombine.high %v1276_v26, %v1280_v56  ;;  %v14614_v53 = vcombine.low %v1276_v26, %v1280_v56 }
 0x613   : > { %12119 = vmatpush2.bf16.msra.mxu1 %v14462_v34  ;;  %12145 = vmatprep.subr.bf16.mxu0 %v14519_v57  ;;  %v1344_v25 = vld [vmem:[%s16552_s27 + $0x1938] sm:$0xff] }
 0x614   : > { %12120 = vmatprep.subr.bf16.mxu1 %v14455_v45  ;;  %v1268_v8 = vld [vmem:[%s16552_s27 + $0x16d8] sm:$0xff]  ;;  %v14678_v39 = vcombine.low %v1340_v28, %v1344_v25 }
 0x615   : > { %v1272_v34 = vld [vmem:[%s16552_s27 + $0x16f8] sm:$0xff] }
 0x616   : > { %12146 = vmatpush1.bf16.msra.mxu0 %v14518_v48  ;;  %v1332_v57 = vld [vmem:[%s16552_s27 + $0x18d8] sm:$0xff]  ;;  %v14607_v55 = vcombine.high %v1268_v8, %v1272_v34  ;;  %v14606_v61 = vcombine.low %v1268_v8, %v1272_v34 }
 0x617   : > { %12121 = vmatpush2.bf16.msra.mxu1 %v14454_v33  ;;  %12147 = vmatprep.subr.bf16.mxu0 %v14639_v30  ;;  %v1336_v45 = vld [vmem:[%s16552_s27 + $0x18f8] sm:$0xff] }
 0x618   : > { %12172 = vmatprep.subr.bf16.mxu1 %v14703_v44  ;;  %v14671_v47 = vcombine.high %v1332_v57, %v1336_v45  ;;  %v1260_v48 = vld [vmem:[%s16552_s27 + $0x1698] sm:$0xff]  ;;  %v14670_v60 = vcombine.low %v1332_v57, %v1336_v45 }
 0x619   : > { %v11837_v50 = vpop.f32.mrf.mxu0  ;;  %v1264_v33 = vld [vmem:[%s16552_s27 + $0x16b8] sm:$0xff] }
 0x61a   : > { %v11838_v27 = vadd.f32 %v11837_v50, %v18277_v51  ;;  %v11878_v42 = vpop.f32.mrf.mxu1  ;;  %12123 = vmatmul.mubr.bf16.vlgmr.msra.gmra.mxu1 %v16864_v54  ;;  %12148 = vmatpush2.bf16.msra.mxu0 %v14638_v21  ;;  %v14687_v51 = vcombine.high %v1348_v14, %v1352_v15  ;;  %v1324_v30 = vld [vmem:[%s16552_s27 + $0x1898] sm:$0xff]  ;;  %v14599_v36 = vcombine.high %v1260_v48, %v1264_v33 }
 0x61b   : > { %12173 = vmatpush1.bf16.msra.mxu1 %v14702_v63  ;;  %v11839_v16 = vpop.f32.mrf.mxu0  ;;  %12149 = vmatprep.subr.bf16.mxu0 %v14631_v20  ;;  %v1328_v44 = vld [vmem:[%s16552_s27 + $0x18b8] sm:$0xff]  ;;  %v14598_v0 = vcombine.low %v1260_v48, %v1264_v33 }
 0x61c   : > { %v18351_v19 = vadd.f32 %v11878_v42, %v11838_v27  ;;  %v11840_v2 = vadd.f32 %v11839_v16, %v18285_v10  ;;  %v11880_v7 = vpop.f32.mrf.mxu1  ;;  %12174 = vmatprep.subr.bf16.mxu1 %v14695_v62  ;;  %12204 = vmatprep.mubr.bf16.mxu1 %v16871_v1  ;;  %v14679_v1 = vcombine.high %v1340_v28, %v1344_v25  ;;  %v1252_v21 = vld [vmem:[%s16552_s27 + $0x1658] sm:$0xff] }
 0x61d   : > { %v11841_v54 = vpop.f32.mrf.mxu0  ;;  %v14663_v46 = vcombine.high %v1324_v30, %v1328_v44  ;;  %v1256_v63 = vld [vmem:[%s16552_s27 + $0x1678] sm:$0xff]  ;;  %v14662_v40 = vcombine.low %v1324_v30, %v1328_v44 }
 0x61e   : > { %v18359_v49 = vadd.f32 %v11880_v7, %v11840_v2  ;;  %v11882_v24 = vpop.f32.mrf.mxu1  ;;  %12150 = vmatpush2.bf16.msra.mxu0 %v14630_v6  ;;  %v1316_v20 = vld [vmem:[%s16552_s27 + $0x1858] sm:$0xff]  ;;  %v14591_v50 = vcombine.high %v1252_v21, %v1256_v63  ;;  %v14590_v16 = vcombine.low %v1252_v21, %v1256_v63 }
 0x61f   : > { %12175 = vmatpush1.bf16.msra.mxu1 %v14694_v59  ;;  %v11842_v10 = vpop.f32.mrf.mxu0  ;;  %12151 = vmatprep.subr.bf16.mxu0 %v14623_v37  ;;  %v1320_v62 = vld [vmem:[%s16552_s27 + $0x1878] sm:$0xff] }
 0x620   : > { %v11883_v31 = vpop.f32.mrf.mxu1  ;;  %12176 = vmatprep.subr.bf16.mxu1 %v14687_v51  ;;  %v14655_v14 = vcombine.high %v1316_v20, %v1320_v62  ;;  %v1244_v15 = vld [vmem:[%s16552_s27 + $0x1618] sm:$0xff]  ;;  %v14654_v59 = vcombine.low %v1316_v20, %v1320_v62 }
 0x621   : > { %v1248_v27 = vld [vmem:[%s16552_s27 + $0x1638] sm:$0xff] }
 0x622   : > { %12152 = vmatpush2.bf16.msra.mxu0 %v14622_v35  ;;  %v1308_v42 = vld [vmem:[%s16552_s27 + $0x1818] sm:$0xff]  ;;  %v14583_v37 = vcombine.high %v1244_v15, %v1248_v27  ;;  %v14582_v54 = vcombine.low %v1244_v15, %v1248_v27 }
 0x623   : > { %12177 = vmatpush1.bf16.msra.mxu1 %v14686_v32  ;;  %12153 = vmatprep.subr.bf16.mxu0 %v14615_v22  ;;  %v1312_v6 = vld [vmem:[%s16552_s27 + $0x1838] sm:$0xff] }
 0x624   : > { %12178 = vmatprep.subr.bf16.mxu1 %v14679_v1  ;;  %v14647_v2 = vcombine.high %v1308_v42, %v1312_v6  ;;  %v1492_v7 = vld [vmem:[%s16552_s27 + $0x1dd8] sm:$0xff]  ;;  %v14646_v28 = vcombine.low %v1308_v42, %v1312_v6 }
 0x625   : > { %v1496_v51 = vld [vmem:[%s16552_s27 + $0x1df8] sm:$0xff] }
 0x626   : > { %12154 = vmatpush2.bf16.msra.mxu0 %v14614_v53  ;;  %v1428_v26 = vld [vmem:[%s16552_s27 + $0x1bd8] sm:$0xff]  ;;  %v14831_v25 = vcombine.high %v1492_v7, %v1496_v51  ;;  %v14830_v31 = vcombine.low %v1492_v7, %v1496_v51 }
 0x627   : > { %12179 = vmatpush1.bf16.msra.mxu1 %v14678_v39  ;;  %12155 = vmatprep.subr.bf16.mxu0 %v14607_v55  ;;  %v1432_v56 = vld [vmem:[%s16552_s27 + $0x1bf8] sm:$0xff] }
 0x628   : > { %12180 = vmatprep.subr.bf16.mxu1 %v14671_v47  ;;  %v14767_v24 = vcombine.high %v1428_v26, %v1432_v56  ;;  %v1484_v35 = vld [vmem:[%s16552_s27 + $0x1d98] sm:$0xff]  ;;  %v14766_v1 = vcombine.low %v1428_v26, %v1432_v56 }
 0x629   : > { %v1488_v10 = vld [vmem:[%s16552_s27 + $0x1db8] sm:$0xff] }
 0x62a   : > { %12156 = vmatpush2.bf16.msra.mxu0 %v14606_v61  ;;  %v1420_v32 = vld [vmem:[%s16552_s27 + $0x1b98] sm:$0xff]  ;;  %v14823_v8 = vcombine.high %v1484_v35, %v1488_v10  ;;  %v14822_v48 = vcombine.low %v1484_v35, %v1488_v10 }
 0x62b   : > { %12181 = vmatpush1.bf16.msra.mxu1 %v14670_v60  ;;  %12157 = vmatprep.subr.bf16.mxu0 %v14599_v36  ;;  %v1424_v22 = vld [vmem:[%s16552_s27 + $0x1bb8] sm:$0xff] }
 0x62c   : > { %12182 = vmatprep.subr.bf16.mxu1 %v14663_v46  ;;  %v14759_v34 = vcombine.high %v1420_v32, %v1424_v22  ;;  %v1476_v57 = vld [vmem:[%s16552_s27 + $0x1d58] sm:$0xff]  ;;  %v14758_v30 = vcombine.low %v1420_v32, %v1424_v22 }
 0x62d   : > { %v1480_v45 = vld [vmem:[%s16552_s27 + $0x1d78] sm:$0xff] }
 0x62e   : > { %12158 = vmatpush2.bf16.msra.mxu0 %v14598_v0  ;;  %v1412_v39 = vld [vmem:[%s16552_s27 + $0x1b58] sm:$0xff]  ;;  %v14815_v44 = vcombine.high %v1476_v57, %v1480_v45  ;;  %v14814_v63 = vcombine.low %v1476_v57, %v1480_v45 }
 0x62f   : > { %12183 = vmatpush1.bf16.msra.mxu1 %v14662_v40  ;;  %12159 = vmatprep.subr.bf16.mxu0 %v14591_v50  ;;  %v1416_v55 = vld [vmem:[%s16552_s27 + $0x1b78] sm:$0xff] }
 0x630   : > { %12184 = vmatprep.subr.bf16.mxu1 %v14655_v14  ;;  %v1468_v60 = vld [vmem:[%s16552_s27 + $0x1d18] sm:$0xff] }
 0x631   : > { %v1404_v46 = vld [vmem:[%s16552_s27 + $0x1b18] sm:$0xff] }
 0x632   : > { %12160 = vmatpush2.bf16.msra.mxu0 %v14590_v16  ;;  %v1408_v21 = vld [vmem:[%s16552_s27 + $0x1b38] sm:$0xff] }
 0x633   : > { %12185 = vmatpush1.bf16.msra.mxu1 %v14654_v59  ;;  %12161 = vmatprep.subr.bf16.mxu0 %v14583_v37  ;;  %v14743_v0 = vcombine.high %v1404_v46, %v1408_v21  ;;  %v1460_v40 = vld [vmem:[%s16552_s27 + $0x1cd8] sm:$0xff]  ;;  %v14742_v42 = vcombine.low %v1404_v46, %v1408_v21 }
 0x634   : > { %12186 = vmatprep.subr.bf16.mxu1 %v14647_v2  ;;  %v1464_v50 = vld [vmem:[%s16552_s27 + $0x1cf8] sm:$0xff] }
 0x635   : > { %v1396_v14 = vld [vmem:[%s16552_s27 + $0x1ad8] sm:$0xff]  ;;  %v14799_v6 = vcombine.high %v1460_v40, %v1464_v50  ;;  %v14798_v51 = vcombine.low %v1460_v40, %v1464_v50 }
 0x636   : > { %12162 = vmatpush2.bf16.msra.mxu0 %v14582_v54  ;;  %v1400_v15 = vld [vmem:[%s16552_s27 + $0x1af8] sm:$0xff] }
 0x637   : > { %12187 = vmatpush1.bf16.msra.mxu1 %v14646_v28  ;;  %12213 = vmatprep.subr.bf16.mxu0 %v14831_v25  ;;  %v14735_v16 = vcombine.high %v1396_v14, %v1400_v15  ;;  %v1452_v59 = vld [vmem:[%s16552_s27 + $0x1c98] sm:$0xff]  ;;  %v14734_v26 = vcombine.low %v1396_v14, %v1400_v15 }
 0x638   : > { %12188 = vmatprep.subr.bf16.mxu1 %v14767_v24  ;;  %v1456_v37 = vld [vmem:[%s16552_s27 + $0x1cb8] sm:$0xff] }
 0x639   : > { %v11919_v53 = vpop.f32.mrf.mxu0  ;;  %12164 = vmatmul.mubr.bf16.vlgmr.msra.gmra.mxu0 %v16875_v3  ;;  %v14751_v3 = vcombine.high %v1412_v39, %v1416_v55  ;;  %v1388_v2 = vld [vmem:[%s16552_s27 + $0x1a98] sm:$0xff]  ;;  %v14791_v56 = vcombine.high %v1452_v59, %v1456_v37  ;;  %v14790_v10 = vcombine.low %v1452_v59, %v1456_v37 }
 0x63a   : > { %v18391_v47 = vadd.f32 %v11919_v53, %v18351_v19  ;;  %12214 = vmatpush1.bf16.msra.mxu0 %v14830_v31  ;;  %12245 = vmatprep.mubr.bf16.mxu0 %v16884_v12  ;;  %v1472_v19 = vld [vmem:[%s16552_s27 + $0x1d38] sm:$0xff] }
 0x63b   : > { %12189 = vmatpush2.bf16.msra.mxu1 %v14766_v1  ;;  %v11921_v33 = vpop.f32.mrf.mxu0  ;;  %12215 = vmatprep.subr.bf16.mxu0 %v14823_v8  ;;  %v14807_v62 = vcombine.high %v1468_v60, %v1472_v19  ;;  %v14806_v27 = vcombine.low %v1468_v60, %v1472_v19  ;;  %v1392_v7 = vld [vmem:[%s16552_s27 + $0x1ab8] sm:$0xff] }
 0x63c   : > { %v18395_v61 = vadd.f32 %v11921_v33, %v18359_v49  ;;  %12190 = vmatprep.subr.bf16.mxu1 %v14759_v34  ;;  %v14750_v49 = vcombine.low %v1412_v39, %v1416_v55  ;;  %v14727_v54 = vcombine.high %v1388_v2, %v1392_v7  ;;  %v1444_v28 = vld [vmem:[%s16552_s27 + $0x1c58] sm:$0xff]  ;;  %v14726_v32 = vcombine.low %v1388_v2, %v1392_v7 }
 0x63d   : > { %v11923_v36 = vpop.f32.mrf.mxu0  ;;  %v1448_v25 = vld [vmem:[%s16552_s27 + $0x1c78] sm:$0xff] }
 0x63e   : > { %v12484_v12 = vcombine.low %v18391_v47, %v18395_v61  ;;  %12216 = vmatpush1.bf16.msra.mxu0 %v14822_v48  ;;  %v1380_v24 = vld [vmem:[%s16552_s27 + $0x1a58] sm:$0xff]  ;;  %v14783_v22 = vcombine.high %v1444_v28, %v1448_v25  ;;  %v14782_v45 = vcombine.low %v1444_v28, %v1448_v25 }
 0x63f   : > { %12191 = vmatpush2.bf16.msra.mxu1 %v14758_v30  ;;  %v11924_v20 = vpop.f32.mrf.mxu0  ;;  %12217 = vmatprep.subr.bf16.mxu0 %v14815_v44  ;;  %v1384_v35 = vld [vmem:[%s16552_s27 + $0x1a78] sm:$0xff] }
 0x640   : > { %12192 = vmatprep.subr.bf16.mxu1 %v14751_v3  ;;  %v14719_v31 = vcombine.high %v1380_v24, %v1384_v35  ;;  %v1436_v1 = vld [vmem:[%s16552_s27 + $0x1c18] sm:$0xff]  ;;  %v14718_v53 = vcombine.low %v1380_v24, %v1384_v35 }
 0x641   : > { %v1440_v8 = vld [vmem:[%s16552_s27 + $0x1c38] sm:$0xff] }
 0x642   : > { %12218 = vmatpush1.bf16.msra.mxu0 %v14814_v63  ;;  %v1372_v34 = vld [vmem:[%s16552_s27 + $0x1a18] sm:$0xff]  ;;  %v14775_v39 = vcombine.high %v1436_v1, %v1440_v8  ;;  %v14774_v3 = vcombine.low %v1436_v1, %v1440_v8 }
 0x643   : > { %12193 = vmatpush2.bf16.msra.mxu1 %v14750_v49  ;;  %12219 = vmatprep.subr.bf16.mxu0 %v14807_v62  ;;  %v1376_v57 = vld [vmem:[%s16552_s27 + $0x1a38] sm:$0xff] }
 0x644   : > { %12194 = vmatprep.subr.bf16.mxu1 %v14743_v0  ;;  %v14711_v55 = vcombine.high %v1372_v34, %v1376_v57  ;;  %v1556_v48 = vld [vmem:[%s16552_s27 + $0x1fd8] sm:$0xff]  ;;  %v14710_v60 = vcombine.low %v1372_v34, %v1376_v57 }
 0x645   : > { %v1560_v33 = vld [vmem:[%s16552_s27 + $0x1ff8] sm:$0xff] }
 0x646   : > { %12220 = vmatpush1.bf16.msra.mxu0 %v14806_v27  ;;  %v1620_v30 = vld [vmem:[%s16552_s27 + $0x21d8] sm:$0xff]  ;;  %v14895_v19 = vcombine.high %v1556_v48, %v1560_v33  ;;  %v14894_v49 = vcombine.low %v1556_v48, %v1560_v33 }
 0x647   : > { %12195 = vmatpush2.bf16.msra.mxu1 %v14742_v42  ;;  %12221 = vmatprep.subr.bf16.mxu0 %v14799_v6  ;;  %v1624_v44 = vld [vmem:[%s16552_s27 + $0x21f8] sm:$0xff] }
 0x648   : > { %12196 = vmatprep.subr.bf16.mxu1 %v14735_v16  ;;  %v14959_v36 = vcombine.high %v1620_v30, %v1624_v44  ;;  %v1548_v46 = vld [vmem:[%s16552_s27 + $0x1f98] sm:$0xff]  ;;  %v14958_v62 = vcombine.low %v1620_v30, %v1624_v44 }
 0x649   : > { %v1552_v21 = vld [vmem:[%s16552_s27 + $0x1fb8] sm:$0xff] }
 0x64a   : > { %12222 = vmatpush1.bf16.msra.mxu0 %v14798_v51  ;;  %v1612_v63 = vld [vmem:[%s16552_s27 + $0x2198] sm:$0xff]  ;;  %v14887_v0 = vcombine.high %v1548_v46, %v1552_v21  ;;  %v14886_v6 = vcombine.low %v1548_v46, %v1552_v21 }
 0x64b   : > { %12197 = vmatpush2.bf16.msra.mxu1 %v14734_v26  ;;  %12223 = vmatprep.subr.bf16.mxu0 %v14791_v56  ;;  %v1616_v20 = vld [vmem:[%s16552_s27 + $0x21b8] sm:$0xff] }
 0x64c   : > { %12198 = vmatprep.subr.bf16.mxu1 %v14727_v54  ;;  %v14951_v40 = vcombine.high %v1612_v63, %v1616_v20  ;;  %v1540_v50 = vld [vmem:[%s16552_s27 + $0x1f58] sm:$0xff]  ;;  %v14950_v16 = vcombine.low %v1612_v63, %v1616_v20 }
 0x64d   : > { %v1544_v14 = vld [vmem:[%s16552_s27 + $0x1f78] sm:$0xff] }
 0x64e   : > { %12224 = vmatpush1.bf16.msra.mxu0 %v14790_v10  ;;  %v1604_v15 = vld [vmem:[%s16552_s27 + $0x2158] sm:$0xff]  ;;  %v14879_v59 = vcombine.high %v1540_v50, %v1544_v14  ;;  %v14878_v54 = vcombine.low %v1540_v50, %v1544_v14 }
 0x64f   : > { %12199 = vmatpush2.bf16.msra.mxu1 %v14726_v32  ;;  %12225 = vmatprep.subr.bf16.mxu0 %v14783_v22  ;;  %v1608_v27 = vld [vmem:[%s16552_s27 + $0x2178] sm:$0xff] }
 0x650   : > { %12200 = vmatprep.subr.bf16.mxu1 %v14719_v31  ;;  %v14943_v2 = vcombine.high %v1604_v15, %v1608_v27  ;;  %v1532_v7 = vld [vmem:[%s16552_s27 + $0x1f18] sm:$0xff]  ;;  %v14942_v28 = vcombine.low %v1604_v15, %v1608_v27 }
 0x651   : > { %v1536_v51 = vld [vmem:[%s16552_s27 + $0x1f38] sm:$0xff] }
 0x652   : > { %12226 = vmatpush1.bf16.msra.mxu0 %v14782_v45  ;;  %v1596_v26 = vld [vmem:[%s16552_s27 + $0x2118] sm:$0xff]  ;;  %v14871_v25 = vcombine.high %v1532_v7, %v1536_v51  ;;  %v14870_v31 = vcombine.low %v1532_v7, %v1536_v51 }
 0x653   : > { %12201 = vmatpush2.bf16.msra.mxu1 %v14718_v53  ;;  %12227 = vmatprep.subr.bf16.mxu0 %v14775_v39  ;;  %v1524_v10 = vld [vmem:[%s16552_s27 + $0x1ed8] sm:$0xff] }
 0x654   : > { %12202 = vmatprep.subr.bf16.mxu1 %v14711_v55  ;;  %v1528_v32 = vld [vmem:[%s16552_s27 + $0x1ef8] sm:$0xff] }
 0x655   : > { %v1592_v22 = vld [vmem:[%s16552_s27 + $0x20f8] sm:$0xff]  ;;  %v14863_v8 = vcombine.high %v1524_v10, %v1528_v32  ;;  %v14862_v55 = vcombine.low %v1524_v10, %v1528_v32 }
 0x656   : > { %12228 = vmatpush1.bf16.msra.mxu0 %v14774_v3  ;;  %v1516_v57 = vld [vmem:[%s16552_s27 + $0x1e98] sm:$0xff] }
 0x657   : > { %12203 = vmatpush2.bf16.msra.mxu1 %v14710_v60  ;;  %12229 = vmatprep.subr.bf16.mxu0 %v14895_v19  ;;  %v1520_v45 = vld [vmem:[%s16552_s27 + $0x1eb8] sm:$0xff] }
 0x658   : > { %12254 = vmatprep.subr.bf16.mxu1 %v14959_v36  ;;  %v1580_v53 = vld [vmem:[%s16552_s27 + $0x2098] sm:$0xff]  ;;  %v14855_v33 = vcombine.high %v1516_v57, %v1520_v45  ;;  %v14854_v36 = vcombine.low %v1516_v57, %v1520_v45 }
 0x659   : > { %v1584_v39 = vld [vmem:[%s16552_s27 + $0x20b8] sm:$0xff] }
 0x65a   : > { %v18431_v42 = vpop.f32.mrf.mxu1  ;;  %12205 = vmatmul.mubr.bf16.vlgmr.msra.gmra.mxu1 %v16956_v58  ;;  %12230 = vmatpush2.bf16.msra.mxu0 %v14894_v49  ;;  %v1600_v58 = vld [vmem:[%s16552_s27 + $0x2138] sm:$0xff]  ;;  %v14919_v30 = vcombine.high %v1580_v53, %v1584_v39  ;;  %v14918_v46 = vcombine.low %v1580_v53, %v1584_v39 }
 0x65b   : > { %12255 = vmatpush1.bf16.msra.mxu1 %v14958_v62  ;;  %12231 = vmatprep.subr.bf16.mxu0 %v14887_v0  ;;  %v14935_v35 = vcombine.high %v1596_v26, %v1600_v58  ;;  %v14934_v1 = vcombine.low %v1596_v26, %v1600_v58  ;;  %v1508_v44 = vld [vmem:[%s16552_s27 + $0x1e58] sm:$0xff] }
 0x65c   : > { %v18434_v37 = vpop.f32.mrf.mxu1  ;;  %12256 = vmatprep.subr.bf16.mxu1 %v14951_v40  ;;  %12286 = vmatprep.mubr.bf16.mxu1 %v16963_v52  ;;  %v1588_v52 = vld [vmem:[%s16552_s27 + $0x20d8] sm:$0xff] }
 0x65d   : > { %v14927_v34 = vcombine.high %v1588_v52, %v1592_v22  ;;  %v14926_v48 = vcombine.low %v1588_v52, %v1592_v22  ;;  %v1512_v3 = vld [vmem:[%s16552_s27 + $0x1e78] sm:$0xff] }
 0x65e   : > { %v11964_v56 = vpop.f32.mrf.mxu1  ;;  %12232 = vmatpush2.bf16.msra.mxu0 %v14886_v6  ;;  %v1572_v60 = vld [vmem:[%s16552_s27 + $0x2058] sm:$0xff]  ;;  %v14847_v21 = vcombine.high %v1508_v44, %v1512_v3  ;;  %v14846_v40 = vcombine.low %v1508_v44, %v1512_v3 }
 0x65f   : > { %12257 = vmatpush1.bf16.msra.mxu1 %v14950_v16  ;;  %12233 = vmatprep.subr.bf16.mxu0 %v14879_v59  ;;  %v1576_v19 = vld [vmem:[%s16552_s27 + $0x2078] sm:$0xff] }
 0x660   : > { %v11965_v24 = vpop.f32.mrf.mxu1  ;;  %12258 = vmatprep.subr.bf16.mxu1 %v14943_v2  ;;  %v14911_v63 = vcombine.high %v1572_v60, %v1576_v19  ;;  %v1500_v20 = vld [vmem:[%s16552_s27 + $0x1e18] sm:$0xff]  ;;  %v14910_v50 = vcombine.low %v1572_v60, %v1576_v19 }
 0x661   : > { %v1504_v49 = vld [vmem:[%s16552_s27 + $0x1e38] sm:$0xff] }
 0x662   : > { %12234 = vmatpush2.bf16.msra.mxu0 %v14878_v54  ;;  %v1564_v62 = vld [vmem:[%s16552_s27 + $0x2018] sm:$0xff]  ;;  %v14839_v14 = vcombine.high %v1500_v20, %v1504_v49  ;;  %v14838_v2 = vcombine.low %v1500_v20, %v1504_v49 }
 0x663   : > { %12259 = vmatpush1.bf16.msra.mxu1 %v14942_v28  ;;  %12235 = vmatprep.subr.bf16.mxu0 %v14871_v25  ;;  %v1568_v0 = vld [vmem:[%s16552_s27 + $0x2038] sm:$0xff] }
 0x664   : > { %12260 = vmatprep.subr.bf16.mxu1 %v14935_v35  ;;  %v14903_v15 = vcombine.high %v1564_v62, %v1568_v0  ;;  %v1748_v27 = vld [vmem:[%s16552_s27 + $0x25d8] sm:$0xff]  ;;  %v14902_v7 = vcombine.low %v1564_v62, %v1568_v0 }
 0x665   : > { %v1752_v6 = vld [vmem:[%s16552_s27 + $0x25f8] sm:$0xff] }
 0x666   : > { %12236 = vmatpush2.bf16.msra.mxu0 %v14870_v31  ;;  %v1684_v16 = vld [vmem:[%s16552_s27 + $0x23d8] sm:$0xff]  ;;  %v15087_v51 = vcombine.high %v1748_v27, %v1752_v6  ;;  %v15086_v25 = vcombine.low %v1748_v27, %v1752_v6 }
 0x667   : > { %12261 = vmatpush1.bf16.msra.mxu1 %v14934_v1  ;;  %12237 = vmatprep.subr.bf16.mxu0 %v14863_v8  ;;  %v1688_v59 = vld [vmem:[%s16552_s27 + $0x23f8] sm:$0xff] }
 0x668   : > { %12262 = vmatprep.subr.bf16.mxu1 %v14927_v34  ;;  %v15023_v26 = vcombine.high %v1684_v16, %v1688_v59  ;;  %v1740_v58 = vld [vmem:[%s16552_s27 + $0x2598] sm:$0xff]  ;;  %v15022_v24 = vcombine.low %v1684_v16, %v1688_v59 }
 0x669   : > { %v1744_v56 = vld [vmem:[%s16552_s27 + $0x25b8] sm:$0xff] }
 0x66a   : > { %12238 = vmatpush2.bf16.msra.mxu0 %v14862_v55  ;;  %v1676_v54 = vld [vmem:[%s16552_s27 + $0x2398] sm:$0xff]  ;;  %v15079_v35 = vcombine.high %v1740_v58, %v1744_v56  ;;  %v15078_v34 = vcombine.low %v1740_v58, %v1744_v56 }
 0x66b   : > { %12263 = vmatpush1.bf16.msra.mxu1 %v14926_v48  ;;  %12239 = vmatprep.subr.bf16.mxu0 %v14855_v33  ;;  %v1680_v28 = vld [vmem:[%s16552_s27 + $0x23b8] sm:$0xff] }
 0x66c   : > { %12264 = vmatprep.subr.bf16.mxu1 %v14919_v30  ;;  %v15015_v10 = vcombine.high %v1676_v54, %v1680_v28  ;;  %v1732_v32 = vld [vmem:[%s16552_s27 + $0x2558] sm:$0xff]  ;;  %v15014_v45 = vcombine.low %v1676_v54, %v1680_v28 }
 0x66d   : > { %v1736_v52 = vld [vmem:[%s16552_s27 + $0x2578] sm:$0xff] }
 0x66e   : > { %12240 = vmatpush2.bf16.msra.mxu0 %v14854_v36  ;;  %v1668_v31 = vld [vmem:[%s16552_s27 + $0x2358] sm:$0xff]  ;;  %v15071_v53 = vcombine.high %v1732_v32, %v1736_v52 }
 0x66f   : > { %12265 = vmatpush1.bf16.msra.mxu1 %v14918_v46  ;;  %12241 = vmatprep.subr.bf16.mxu0 %v14847_v21  ;;  %v1672_v1 = vld [vmem:[%s16552_s27 + $0x2378] sm:$0xff] }
 0x670   : > { %12266 = vmatprep.subr.bf16.mxu1 %v14911_v63  ;;  %v1724_v55 = vld [vmem:[%s16552_s27 + $0x2518] sm:$0xff]  ;;  %v15006_v3 = vcombine.low %v1668_v31, %v1672_v1 }
 0x671   : > { %v1660_v33 = vld [vmem:[%s16552_s27 + $0x2318] sm:$0xff] }
 0x672   : > { %12242 = vmatpush2.bf16.msra.mxu0 %v14846_v40  ;;  %v1664_v30 = vld [vmem:[%s16552_s27 + $0x2338] sm:$0xff] }
 0x673   : > { %12267 = vmatpush1.bf16.msra.mxu1 %v14910_v50  ;;  %12243 = vmatprep.subr.bf16.mxu0 %v14839_v14  ;;  %v14999_v60 = vcombine.high %v1660_v33, %v1664_v30  ;;  %v1716_v19 = vld [vmem:[%s16552_s27 + $0x24d8] sm:$0xff]  ;;  %v14998_v20 = vcombine.low %v1660_v33, %v1664_v30 }
 0x674   : > { %12268 = vmatprep.subr.bf16.mxu1 %v14903_v15  ;;  %v1720_v36 = vld [vmem:[%s16552_s27 + $0x24f8] sm:$0xff] }
 0x675   : > { %v1652_v46 = vld [vmem:[%s16552_s27 + $0x22d8] sm:$0xff]  ;;  %v15055_v49 = vcombine.high %v1716_v19, %v1720_v36  ;;  %v15054_v15 = vcombine.low %v1716_v19, %v1720_v36 }
 0x676   : > { %12244 = vmatpush2.bf16.msra.mxu0 %v14838_v2  ;;  %v1656_v21 = vld [vmem:[%s16552_s27 + $0x22f8] sm:$0xff] }
 0x677   : > { %12269 = vmatpush1.bf16.msra.mxu1 %v14902_v7  ;;  %12295 = vmatprep.subr.bf16.mxu0 %v15087_v51  ;;  %v14991_v62 = vcombine.high %v1652_v46, %v1656_v21  ;;  %v1708_v0 = vld [vmem:[%s16552_s27 + $0x2498] sm:$0xff]  ;;  %v14990_v27 = vcombine.low %v1652_v46, %v1656_v21 }
 0x678   : > { %12270 = vmatprep.subr.bf16.mxu1 %v15023_v26  ;;  %v1712_v40 = vld [vmem:[%s16552_s27 + $0x24b8] sm:$0xff] }
 0x679   : > { %v12001_v22 = vpop.f32.mrf.mxu0  ;;  %12246 = vmatmul.mubr.bf16.vlgmr.msra.gmra.mxu0 %v16967_v43  ;;  %v15007_v43 = vcombine.high %v1668_v31, %v1672_v1  ;;  %v1644_v50 = vld [vmem:[%s16552_s27 + $0x2298] sm:$0xff]  ;;  %v15047_v6 = vcombine.high %v1708_v0, %v1712_v40  ;;  %v15046_v26 = vcombine.low %v1708_v0, %v1712_v40 }
 0x67a   : > { %v18471_v8 = vadd.f32 %v12001_v22, %v18431_v42  ;;  %12296 = vmatpush1.bf16.msra.mxu0 %v15086_v25  ;;  %12327 = vmatprep.mubr.bf16.mxu0 %v16976_v4  ;;  %v1728_v42 = vld [vmem:[%s16552_s27 + $0x2538] sm:$0xff]  ;;  %v15070_v4 = vcombine.low %v1732_v32, %v1736_v52 }
 0x67b   : > { %12271 = vmatpush2.bf16.msra.mxu1 %v15022_v24  ;;  %v12003_v57 = vpop.f32.mrf.mxu0  ;;  %12297 = vmatprep.subr.bf16.mxu0 %v15079_v35  ;;  %v15062_v63 = vcombine.low %v1724_v55, %v1728_v42  ;;  %v1648_v14 = vld [vmem:[%s16552_s27 + $0x22b8] sm:$0xff] }
 0x67c   : > { %v18475_v39 = vadd.f32 %v12003_v57, %v18434_v37  ;;  %12272 = vmatprep.subr.bf16.mxu1 %v15015_v10  ;;  %v15063_v37 = vcombine.high %v1724_v55, %v1728_v42  ;;  %v14983_v16 = vcombine.high %v1644_v50, %v1648_v14  ;;  %v1700_v59 = vld [vmem:[%s16552_s27 + $0x2458] sm:$0xff]  ;;  %v14982_v58 = vcombine.low %v1644_v50, %v1648_v14 }
 0x67d   : > { %v12005_v48 = vpop.f32.mrf.mxu0  ;;  %v1704_v2 = vld [vmem:[%s16552_s27 + $0x2478] sm:$0xff] }
 0x67e   : > { %12298 = vmatpush1.bf16.msra.mxu0 %v15078_v34  ;;  %v1636_v7 = vld [vmem:[%s16552_s27 + $0x2258] sm:$0xff]  ;;  %v15039_v56 = vcombine.high %v1700_v59, %v1704_v2  ;;  %v15038_v10 = vcombine.low %v1700_v59, %v1704_v2 }
 0x67f   : > { %12273 = vmatpush2.bf16.msra.mxu1 %v15014_v45  ;;  %v12006_v44 = vpop.f32.mrf.mxu0  ;;  %12299 = vmatprep.subr.bf16.mxu0 %v15071_v53  ;;  %v1640_v51 = vld [vmem:[%s16552_s27 + $0x2278] sm:$0xff] }
 0x680   : > { %12274 = vmatprep.subr.bf16.mxu1 %v15007_v43  ;;  %v14975_v54 = vcombine.high %v1636_v7, %v1640_v51  ;;  %v1692_v28 = vld [vmem:[%s16552_s27 + $0x2418] sm:$0xff]  ;;  %v14974_v32 = vcombine.low %v1636_v7, %v1640_v51 }
 0x681   : > { %v1696_v25 = vld [vmem:[%s16552_s27 + $0x2438] sm:$0xff] }
 0x682   : > { %12300 = vmatpush1.bf16.msra.mxu0 %v15070_v4  ;;  %v1628_v24 = vld [vmem:[%s16552_s27 + $0x2218] sm:$0xff]  ;;  %v15031_v52 = vcombine.high %v1692_v28, %v1696_v25  ;;  %v15030_v45 = vcombine.low %v1692_v28, %v1696_v25 }
 0x683   : > { %12275 = vmatpush2.bf16.msra.mxu1 %v15006_v3  ;;  %12301 = vmatprep.subr.bf16.mxu0 %v15063_v37  ;;  %v1632_v35 = vld [vmem:[%s16552_s27 + $0x2238] sm:$0xff] }
 0x684   : > { %12276 = vmatprep.subr.bf16.mxu1 %v14999_v60  ;;  %v14967_v22 = vcombine.high %v1628_v24, %v1632_v35  ;;  %v1812_v31 = vld [vmem:[%s16552_s27 + $0x27d8] sm:$0xff]  ;;  %v14966_v53 = vcombine.low %v1628_v24, %v1632_v35 }
 0x685   : > { %v1816_v1 = vld [vmem:[%s16552_s27 + $0x27f8] sm:$0xff] }
 0x686   : > { %12302 = vmatpush1.bf16.msra.mxu0 %v15062_v63  ;;  %v1876_v34 = vld [vmem:[%s16552_s27 + $0x29d8] sm:$0xff]  ;;  %v15151_v43 = vcombine.high %v1812_v31, %v1816_v1  ;;  %v15150_v4 = vcombine.low %v1812_v31, %v1816_v1 }
 0x687   : > { %12277 = vmatpush2.bf16.msra.mxu1 %v14998_v20  ;;  %12303 = vmatprep.subr.bf16.mxu0 %v15055_v49  ;;  %v1880_v57 = vld [vmem:[%s16552_s27 + $0x29f8] sm:$0xff] }
 0x688   : > { %12278 = vmatprep.subr.bf16.mxu1 %v14991_v62  ;;  %v15215_v55 = vcombine.high %v1876_v34, %v1880_v57  ;;  %v1804_v42 = vld [vmem:[%s16552_s27 + $0x2798] sm:$0xff]  ;;  %v15214_v44 = vcombine.low %v1876_v34, %v1880_v57 }
 0x689   : > { %v1808_v48 = vld [vmem:[%s16552_s27 + $0x27b8] sm:$0xff] }
 0x68a   : > { %12304 = vmatpush1.bf16.msra.mxu0 %v15054_v15  ;;  %v1868_v33 = vld [vmem:[%s16552_s27 + $0x2998] sm:$0xff]  ;;  %v15143_v3 = vcombine.high %v1804_v42, %v1808_v48  ;;  %v15142_v63 = vcombine.low %v1804_v42, %v1808_v48 }
 0x68b   : > { %12279 = vmatpush2.bf16.msra.mxu1 %v14990_v27  ;;  %12305 = vmatprep.subr.bf16.mxu0 %v15047_v6  ;;  %v1872_v30 = vld [vmem:[%s16552_s27 + $0x29b8] sm:$0xff] }
 0x68c   : > { %12280 = vmatprep.subr.bf16.mxu1 %v14983_v16  ;;  %v15207_v37 = vcombine.high %v1868_v33, %v1872_v30  ;;  %v1796_v60 = vld [vmem:[%s16552_s27 + $0x2758] sm:$0xff]  ;;  %v15206_v49 = vcombine.low %v1868_v33, %v1872_v30 }
 0x68d   : > { %v1800_v19 = vld [vmem:[%s16552_s27 + $0x2778] sm:$0xff] }
 0x68e   : > { %12306 = vmatpush1.bf16.msra.mxu0 %v15046_v26  ;;  %v1860_v36 = vld [vmem:[%s16552_s27 + $0x2958] sm:$0xff]  ;;  %v15135_v62 = vcombine.high %v1796_v60, %v1800_v19  ;;  %v15134_v6 = vcombine.low %v1796_v60, %v1800_v19 }
 0x68f   : > { %12281 = vmatpush2.bf16.msra.mxu1 %v14982_v58  ;;  %12307 = vmatprep.subr.bf16.mxu0 %v15039_v56  ;;  %v1864_v46 = vld [vmem:[%s16552_s27 + $0x2978] sm:$0xff] }
 0x690   : > { %12282 = vmatprep.subr.bf16.mxu1 %v14975_v54  ;;  %v15199_v40 = vcombine.high %v1860_v36, %v1864_v46  ;;  %v1788_v50 = vld [vmem:[%s16552_s27 + $0x2718] sm:$0xff]  ;;  %v15198_v16 = vcombine.low %v1860_v36, %v1864_v46 }
 0x691   : > { %v1792_v14 = vld [vmem:[%s16552_s27 + $0x2738] sm:$0xff] }
 0x692   : > { %12308 = vmatpush1.bf16.msra.mxu0 %v15038_v10  ;;  %v1856_v15 = vld [vmem:[%s16552_s27 + $0x2938] sm:$0xff]  ;;  %v15127_v59 = vcombine.high %v1788_v50, %v1792_v14  ;;  %v15126_v58 = vcombine.low %v1788_v50, %v1792_v14 }
 0x693   : > { %12283 = vmatpush2.bf16.msra.mxu1 %v14974_v32  ;;  %12309 = vmatprep.subr.bf16.mxu0 %v15031_v52  ;;  %v1780_v7 = vld [vmem:[%s16552_s27 + $0x26d8] sm:$0xff] }
 0x694   : > { %12284 = vmatprep.subr.bf16.mxu1 %v14967_v22  ;;  %v1844_v51 = vld [vmem:[%s16552_s27 + $0x28d8] sm:$0xff] }
 0x695   : > { %v1848_v26 = vld [vmem:[%s16552_s27 + $0x28f8] sm:$0xff] }
 0x696   : > { %12310 = vmatpush1.bf16.msra.mxu0 %v15030_v45  ;;  %v15183_v28 = vcombine.high %v1844_v51, %v1848_v26  ;;  %v1772_v25 = vld [vmem:[%s16552_s27 + $0x2698] sm:$0xff]  ;;  %v15182_v52 = vcombine.low %v1844_v51, %v1848_v26 }
 0x697   : > { %12285 = vmatpush2.bf16.msra.mxu1 %v14966_v53  ;;  %12311 = vmatprep.subr.bf16.mxu0 %v15151_v43  ;;  %v1776_v24 = vld [vmem:[%s16552_s27 + $0x26b8] sm:$0xff] }
 0x698   : > { %12336 = vmatprep.subr.bf16.mxu1 %v15215_v55  ;;  %v1836_v35 = vld [vmem:[%s16552_s27 + $0x2898] sm:$0xff]  ;;  %v15111_v22 = vcombine.high %v1772_v25, %v1776_v24  ;;  %v15110_v53 = vcombine.low %v1772_v25, %v1776_v24 }
 0x699   : > { %v1840_v10 = vld [vmem:[%s16552_s27 + $0x28b8] sm:$0xff] }
 0x69a   : > { %v12042_v21 = vpop.f32.mrf.mxu1  ;;  %12287 = vmatmul.mubr.bf16.vlgmr.msra.gmra.mxu1 %v17050_v9  ;;  %12312 = vmatpush2.bf16.msra.mxu0 %v15150_v4  ;;  %v15175_v31 = vcombine.high %v1836_v35, %v1840_v10  ;;  %v1764_v1 = vld [vmem:[%s16552_s27 + $0x2658] sm:$0xff]  ;;  %v15174_v43 = vcombine.low %v1836_v35, %v1840_v10 }
 0x69b   : > { %v18511_v20 = vadd.f32 %v12042_v21, %v18471_v8  ;;  %12337 = vmatpush1.bf16.msra.mxu1 %v15214_v44  ;;  %12313 = vmatprep.subr.bf16.mxu0 %v15143_v3  ;;  %v1852_v8 = vld [vmem:[%s16552_s27 + $0x2918] sm:$0xff] }
 0x69c   : > { %v12044_v0 = vpop.f32.mrf.mxu1  ;;  %12338 = vmatprep.subr.bf16.mxu1 %v15207_v37  ;;  %12368 = vmatprep.mubr.bf16.mxu1 %v17057_v23  ;;  %v15191_v23 = vcombine.high %v1852_v8, %v1856_v15  ;;  %v15190_v56 = vcombine.low %v1852_v8, %v1856_v15  ;;  %v1768_v34 = vld [vmem:[%s16552_s27 + $0x2678] sm:$0xff] }
 0x69d   : > { %v18517_v9 = vadd.f32 %v12044_v0, %v18475_v39  ;;  %v1784_v39 = vld [vmem:[%s16552_s27 + $0x26f8] sm:$0xff]  ;;  %v15103_v55 = vcombine.high %v1764_v1, %v1768_v34  ;;  %v15102_v44 = vcombine.low %v1764_v1, %v1768_v34 }
 0x69e   : > { %v12046_v27 = vpop.f32.mrf.mxu1  ;;  %12314 = vmatpush2.bf16.msra.mxu0 %v15142_v63  ;;  %v15119_v54 = vcombine.high %v1780_v7, %v1784_v39  ;;  %v15118_v32 = vcombine.low %v1780_v7, %v1784_v39  ;;  %v1828_v57 = vld [vmem:[%s16552_s27 + $0x2858] sm:$0xff] }
 0x69f   : > { %12339 = vmatpush1.bf16.msra.mxu1 %v15206_v49  ;;  %12315 = vmatprep.subr.bf16.mxu0 %v15135_v62  ;;  %v1832_v45 = vld [vmem:[%s16552_s27 + $0x2878] sm:$0xff] }
 0x6a0   : > { %v12047_v2 = vpop.f32.mrf.mxu1  ;;  %12340 = vmatprep.subr.bf16.mxu1 %v15199_v40  ;;  %v15167_v42 = vcombine.high %v1828_v57, %v1832_v45  ;;  %v1756_v48 = vld [vmem:[%s16552_s27 + $0x2618] sm:$0xff]  ;;  %v15166_v3 = vcombine.low %v1828_v57, %v1832_v45 }
 0x6a1   : > { %v1760_v33 = vld [vmem:[%s16552_s27 + $0x2638] sm:$0xff] }
 0x6a2   : > { %12316 = vmatpush2.bf16.msra.mxu0 %v15134_v6  ;;  %v1820_v30 = vld [vmem:[%s16552_s27 + $0x2818] sm:$0xff]  ;;  %v15095_v37 = vcombine.high %v1756_v48, %v1760_v33  ;;  %v15094_v63 = vcombine.low %v1756_v48, %v1760_v33 }
 0x6a3   : > { %12341 = vmatpush1.bf16.msra.mxu1 %v15198_v16  ;;  %12317 = vmatprep.subr.bf16.mxu0 %v15127_v59  ;;  %v1824_v4 = vld [vmem:[%s16552_s27 + $0x2838] sm:$0xff] }
 0x6a4   : > { %12342 = vmatprep.subr.bf16.mxu1 %v15191_v23  ;;  %v15159_v60 = vcombine.high %v1820_v30, %v1824_v4  ;;  %v2004_v19 = vld [vmem:[%s16552_s27 + $0x2dd8] sm:$0xff]  ;;  %v15158_v49 = vcombine.low %v1820_v30, %v1824_v4 }
 0x6a5   : > { %v2008_v36 = vld [vmem:[%s16552_s27 + $0x2df8] sm:$0xff] }
 0x6a6   : > { %12318 = vmatpush2.bf16.msra.mxu0 %v15126_v58  ;;  %v1940_v46 = vld [vmem:[%s16552_s27 + $0x2bd8] sm:$0xff]  ;;  %v15343_v62 = vcombine.high %v2004_v19, %v2008_v36  ;;  %v15342_v15 = vcombine.low %v2004_v19, %v2008_v36 }
 0x6a7   : > { %12343 = vmatpush1.bf16.msra.mxu1 %v15190_v56  ;;  %12319 = vmatprep.subr.bf16.mxu0 %v15119_v54  ;;  %v1944_v21 = vld [vmem:[%s16552_s27 + $0x2bf8] sm:$0xff] }
 0x6a8   : > { %12344 = vmatprep.subr.bf16.mxu1 %v15183_v28  ;;  %v15279_v0 = vcombine.high %v1940_v46, %v1944_v21  ;;  %v1996_v40 = vld [vmem:[%s16552_s27 + $0x2d98] sm:$0xff]  ;;  %v15278_v27 = vcombine.low %v1940_v46, %v1944_v21 }
 0x6a9   : > { %v2000_v50 = vld [vmem:[%s16552_s27 + $0x2db8] sm:$0xff] }
 0x6aa   : > { %12320 = vmatpush2.bf16.msra.mxu0 %v15118_v32  ;;  %v1932_v14 = vld [vmem:[%s16552_s27 + $0x2b98] sm:$0xff]  ;;  %v15335_v6 = vcombine.high %v1996_v40, %v2000_v50  ;;  %v15334_v26 = vcombine.low %v1996_v40, %v2000_v50 }
 0x6ab   : > { %12345 = vmatpush1.bf16.msra.mxu1 %v15182_v52  ;;  %12321 = vmatprep.subr.bf16.mxu0 %v15111_v22  ;;  %v1936_v8 = vld [vmem:[%s16552_s27 + $0x2bb8] sm:$0xff] }
 0x6ac   : > { %12346 = vmatprep.subr.bf16.mxu1 %v15175_v31  ;;  %v15271_v16 = vcombine.high %v1932_v14, %v1936_v8  ;;  %v1988_v59 = vld [vmem:[%s16552_s27 + $0x2d58] sm:$0xff]  ;;  %v15270_v56 = vcombine.low %v1932_v14, %v1936_v8 }
 0x6ad   : > { %v1992_v2 = vld [vmem:[%s16552_s27 + $0x2d78] sm:$0xff] }
 0x6ae   : > { %12322 = vmatpush2.bf16.msra.mxu0 %v15110_v53  ;;  %v1924_v7 = vld [vmem:[%s16552_s27 + $0x2b58] sm:$0xff]  ;;  %v15327_v54 = vcombine.high %v1988_v59, %v1992_v2 }
 0x6af   : > { %12347 = vmatpush1.bf16.msra.mxu1 %v15174_v43  ;;  %12323 = vmatprep.subr.bf16.mxu0 %v15103_v55  ;;  %v1928_v39 = vld [vmem:[%s16552_s27 + $0x2b78] sm:$0xff] }
 0x6b0   : > { %12348 = vmatprep.subr.bf16.mxu1 %v15167_v42  ;;  %v1980_v25 = vld [vmem:[%s16552_s27 + $0x2d18] sm:$0xff]  ;;  %v15262_v52 = vcombine.low %v1924_v7, %v1928_v39 }
 0x6b1   : > { %v1916_v35 = vld [vmem:[%s16552_s27 + $0x2b18] sm:$0xff] }
 0x6b2   : > { %12324 = vmatpush2.bf16.msra.mxu0 %v15102_v44  ;;  %v1920_v10 = vld [vmem:[%s16552_s27 + $0x2b38] sm:$0xff] }
 0x6b3   : > { %12349 = vmatpush1.bf16.msra.mxu1 %v15166_v3  ;;  %12325 = vmatprep.subr.bf16.mxu0 %v15095_v37  ;;  %v15255_v22 = vcombine.high %v1916_v35, %v1920_v10  ;;  %v1972_v31 = vld [vmem:[%s16552_s27 + $0x2cd8] sm:$0xff]  ;;  %v15254_v53 = vcombine.low %v1916_v35, %v1920_v10 }
 0x6b4   : > { %12350 = vmatprep.subr.bf16.mxu1 %v15159_v60  ;;  %v1976_v1 = vld [vmem:[%s16552_s27 + $0x2cf8] sm:$0xff] }
 0x6b5   : > { %v1908_v34 = vld [vmem:[%s16552_s27 + $0x2ad8] sm:$0xff]  ;;  %v15311_v43 = vcombine.high %v1972_v31, %v1976_v1  ;;  %v15310_v4 = vcombine.low %v1972_v31, %v1976_v1 }
 0x6b6   : > { %12326 = vmatpush2.bf16.msra.mxu0 %v15094_v63  ;;  %v1912_v57 = vld [vmem:[%s16552_s27 + $0x2af8] sm:$0xff] }
 0x6b7   : > { %12351 = vmatpush1.bf16.msra.mxu1 %v15158_v49  ;;  %12377 = vmatprep.subr.bf16.mxu0 %v15343_v62  ;;  %v15247_v55 = vcombine.high %v1908_v34, %v1912_v57  ;;  %v1964_v42 = vld [vmem:[%s16552_s27 + $0x2c98] sm:$0xff]  ;;  %v15246_v44 = vcombine.low %v1908_v34, %v1912_v57 }
 0x6b8   : > { %12352 = vmatprep.subr.bf16.mxu1 %v15279_v0  ;;  %v1968_v48 = vld [vmem:[%s16552_s27 + $0x2cb8] sm:$0xff] }
 0x6b9   : > { %v12083_v23 = vpop.f32.mrf.mxu0  ;;  %12328 = vmatmul.mubr.bf16.vlgmr.msra.gmra.mxu0 %v17061_v29  ;;  %v15263_v29 = vcombine.high %v1924_v7, %v1928_v39  ;;  %v1900_v33 = vld [vmem:[%s16552_s27 + $0x2a98] sm:$0xff]  ;;  %v15303_v3 = vcombine.high %v1964_v42, %v1968_v48  ;;  %v15302_v21 = vcombine.low %v1964_v42, %v1968_v48 }
 0x6ba   : > { %v18551_v51 = vadd.f32 %v12083_v23, %v18511_v20  ;;  %12378 = vmatpush1.bf16.msra.mxu0 %v15342_v15  ;;  %12409 = vmatprep.mubr.bf16.mxu0 %v17070_v38  ;;  %v1984_v20 = vld [vmem:[%s16552_s27 + $0x2d38] sm:$0xff]  ;;  %v15326_v38 = vcombine.low %v1988_v59, %v1992_v2 }
 0x6bb   : > { %12353 = vmatpush2.bf16.msra.mxu1 %v15278_v27  ;;  %v12085_v58 = vpop.f32.mrf.mxu0  ;;  %12379 = vmatprep.subr.bf16.mxu0 %v15335_v6  ;;  %v15318_v45 = vcombine.low %v1980_v25, %v1984_v20  ;;  %v1904_v30 = vld [vmem:[%s16552_s27 + $0x2ab8] sm:$0xff] }
 0x6bc   : > { %v18555_v28 = vadd.f32 %v12085_v58, %v18517_v9  ;;  %12354 = vmatprep.subr.bf16.mxu1 %v15271_v16  ;;  %v15319_v9 = vcombine.high %v1980_v25, %v1984_v20  ;;  %v15239_v37 = vcombine.high %v1900_v33, %v1904_v30  ;;  %v1956_v60 = vld [vmem:[%s16552_s27 + $0x2c58] sm:$0xff]  ;;  %v15238_v63 = vcombine.low %v1900_v33, %v1904_v30 }
 0x6bd   : > { %v12087_v24 = vpop.f32.mrf.mxu0  ;;  %v1960_v19 = vld [vmem:[%s16552_s27 + $0x2c78] sm:$0xff] }
 0x6be   : > { %12380 = vmatpush1.bf16.msra.mxu0 %v15334_v26  ;;  %v1892_v36 = vld [vmem:[%s16552_s27 + $0x2a58] sm:$0xff]  ;;  %v15295_v49 = vcombine.high %v1956_v60, %v1960_v19  ;;  %v15294_v8 = vcombine.low %v1956_v60, %v1960_v19 }
 0x6bf   : > { %12355 = vmatpush2.bf16.msra.mxu1 %v15270_v56  ;;  %v12088_v32 = vpop.f32.mrf.mxu0  ;;  %12381 = vmatprep.subr.bf16.mxu0 %v15327_v54  ;;  %v1896_v46 = vld [vmem:[%s16552_s27 + $0x2a78] sm:$0xff] }
 0x6c0   : > { %12356 = vmatprep.subr.bf16.mxu1 %v15263_v29  ;;  %v15231_v62 = vcombine.high %v1892_v36, %v1896_v46  ;;  %v1948_v0 = vld [vmem:[%s16552_s27 + $0x2c18] sm:$0xff]  ;;  %v15230_v15 = vcombine.low %v1892_v36, %v1896_v46 }
 0x6c1   : > { %v1952_v40 = vld [vmem:[%s16552_s27 + $0x2c38] sm:$0xff] }
 0x6c2   : > { %12382 = vmatpush1.bf16.msra.mxu0 %v15326_v38  ;;  %v1884_v50 = vld [vmem:[%s16552_s27 + $0x2a18] sm:$0xff]  ;;  %v15287_v27 = vcombine.high %v1948_v0, %v1952_v40  ;;  %v15286_v7 = vcombine.low %v1948_v0, %v1952_v40 }
 0x6c3   : > { %12357 = vmatpush2.bf16.msra.mxu1 %v15262_v52  ;;  %12383 = vmatprep.subr.bf16.mxu0 %v15319_v9  ;;  %v1888_v14 = vld [vmem:[%s16552_s27 + $0x2a38] sm:$0xff] }
 0x6c4   : > { %12358 = vmatprep.subr.bf16.mxu1 %v15255_v22  ;;  %v15223_v6 = vcombine.high %v1884_v50, %v1888_v14  ;;  %v2068_v16 = vld [vmem:[%s16552_s27 + $0x2fd8] sm:$0xff]  ;;  %v15222_v39 = vcombine.low %v1884_v50, %v1888_v14 }
 0x6c5   : > { %v2072_v59 = vld [vmem:[%s16552_s27 + $0x2ff8] sm:$0xff] }
 0x6c6   : > { %12384 = vmatpush1.bf16.msra.mxu0 %v15318_v45  ;;  %v2132_v2 = vld [vmem:[%s16552_s27 + $0x31d8] sm:$0xff]  ;;  %v15407_v26 = vcombine.high %v2068_v16, %v2072_v59  ;;  %v15406_v20 = vcombine.low %v2068_v16, %v2072_v59 }
 0x6c7   : > { %12359 = vmatpush2.bf16.msra.mxu1 %v15254_v53  ;;  %12385 = vmatprep.subr.bf16.mxu0 %v15311_v43  ;;  %v2136_v23 = vld [vmem:[%s16552_s27 + $0x31f8] sm:$0xff] }
 0x6c8   : > { %12360 = vmatprep.subr.bf16.mxu1 %v15247_v55  ;;  %v15471_v58 = vcombine.high %v2132_v2, %v2136_v23  ;;  %v2060_v56 = vld [vmem:[%s16552_s27 + $0x2f98] sm:$0xff]  ;;  %v15470_v24 = vcombine.low %v2132_v2, %v2136_v23 }
 0x6c9   : > { %v2064_v54 = vld [vmem:[%s16552_s27 + $0x2fb8] sm:$0xff] }
 0x6ca   : > { %12386 = vmatpush1.bf16.msra.mxu0 %v15310_v4  ;;  %v2124_v29 = vld [vmem:[%s16552_s27 + $0x3198] sm:$0xff]  ;;  %v15399_v35 = vcombine.high %v2060_v56, %v2064_v54  ;;  %v15398_v31 = vcombine.low %v2060_v56, %v2064_v54 }
 0x6cb   : > { %12361 = vmatpush2.bf16.msra.mxu1 %v15246_v44  ;;  %12387 = vmatprep.subr.bf16.mxu0 %v15303_v3  ;;  %v2128_v25 = vld [vmem:[%s16552_s27 + $0x31b8] sm:$0xff] }
 0x6cc   : > { %12362 = vmatprep.subr.bf16.mxu1 %v15239_v37  ;;  %v15463_v10 = vcombine.high %v2124_v29, %v2128_v25  ;;  %v2052_v38 = vld [vmem:[%s16552_s27 + $0x2f58] sm:$0xff]  ;;  %v15462_v34 = vcombine.low %v2124_v29, %v2128_v25 }
 0x6cd   : > { %v2056_v32 = vld [vmem:[%s16552_s27 + $0x2f78] sm:$0xff] }
 0x6ce   : > { %12388 = vmatpush1.bf16.msra.mxu0 %v15302_v21  ;;  %v2116_v52 = vld [vmem:[%s16552_s27 + $0x3158] sm:$0xff]  ;;  %v15391_v57 = vcombine.high %v2052_v38, %v2056_v32  ;;  %v15390_v33 = vcombine.low %v2052_v38, %v2056_v32 }
 0x6cf   : > { %12363 = vmatpush2.bf16.msra.mxu1 %v15238_v63  ;;  %12389 = vmatprep.subr.bf16.mxu0 %v15295_v49  ;;  %v2120_v9 = vld [vmem:[%s16552_s27 + $0x3178] sm:$0xff] }
 0x6d0   : > { %12364 = vmatprep.subr.bf16.mxu1 %v15231_v62  ;;  %v15455_v53 = vcombine.high %v2116_v52, %v2120_v9  ;;  %v2044_v43 = vld [vmem:[%s16552_s27 + $0x2f18] sm:$0xff]  ;;  %v15454_v30 = vcombine.low %v2116_v52, %v2120_v9 }
 0x6d1   : > { %v2048_v55 = vld [vmem:[%s16552_s27 + $0x2f38] sm:$0xff] }
 0x6d2   : > { %12390 = vmatpush1.bf16.msra.mxu0 %v15294_v8  ;;  %v2112_v42 = vld [vmem:[%s16552_s27 + $0x3138] sm:$0xff]  ;;  %v15383_v4 = vcombine.high %v2044_v43, %v2048_v55  ;;  %v15382_v19 = vcombine.low %v2044_v43, %v2048_v55 }
 0x6d3   : > { %12365 = vmatpush2.bf16.msra.mxu1 %v15230_v15  ;;  %12391 = vmatprep.subr.bf16.mxu0 %v15287_v27  ;;  %v2036_v3 = vld [vmem:[%s16552_s27 + $0x2ed8] sm:$0xff] }
 0x6d4   : > { %12366 = vmatprep.subr.bf16.mxu1 %v15223_v6  ;;  %v2100_v37 = vld [vmem:[%s16552_s27 + $0x30d8] sm:$0xff] }
 0x6d5   : > { %v2104_v60 = vld [vmem:[%s16552_s27 + $0x30f8] sm:$0xff] }
 0x6d6   : > { %12392 = vmatpush1.bf16.msra.mxu0 %v15286_v7  ;;  %v15439_v21 = vcombine.high %v2100_v37, %v2104_v60  ;;  %v2028_v63 = vld [vmem:[%s16552_s27 + $0x2e98] sm:$0xff]  ;;  %v15438_v50 = vcombine.low %v2100_v37, %v2104_v60 }
 0x6d7   : > { %12367 = vmatpush2.bf16.msra.mxu1 %v15222_v39  ;;  %12393 = vmatprep.subr.bf16.mxu0 %v15407_v26  ;;  %v2032_v49 = vld [vmem:[%s16552_s27 + $0x2eb8] sm:$0xff] }
 0x6d8   : > { %12418 = vmatprep.subr.bf16.mxu1 %v15471_v58  ;;  %v2092_v62 = vld [vmem:[%s16552_s27 + $0x3098] sm:$0xff]  ;;  %v15367_v14 = vcombine.high %v2028_v63, %v2032_v49  ;;  %v15366_v59 = vcombine.low %v2028_v63, %v2032_v49 }
 0x6d9   : > { %v2096_v0 = vld [vmem:[%s16552_s27 + $0x30b8] sm:$0xff] }
 0x6da   : > { %v12124_v22 = vpop.f32.mrf.mxu1  ;;  %12369 = vmatmul.mubr.bf16.vlgmr.msra.gmra.mxu1 %v17139_v18  ;;  %12394 = vmatpush2.bf16.msra.mxu0 %v15406_v20  ;;  %v15431_v8 = vcombine.high %v2092_v62, %v2096_v0  ;;  %v2020_v15 = vld [vmem:[%s16552_s27 + $0x2e58] sm:$0xff]  ;;  %v15430_v2 = vcombine.low %v2092_v62, %v2096_v0 }
 0x6db   : > { %v18591_v1 = vadd.f32 %v12124_v22, %v18551_v51  ;;  %12419 = vmatpush1.bf16.msra.mxu1 %v15470_v24  ;;  %12395 = vmatprep.subr.bf16.mxu0 %v15399_v35  ;;  %v2108_v51 = vld [vmem:[%s16552_s27 + $0x3118] sm:$0xff] }
 0x6dc   : > { %v12126_v45 = vpop.f32.mrf.mxu1  ;;  %12420 = vmatprep.subr.bf16.mxu1 %v15463_v10  ;;  %12450 = vmatprep.mubr.bf16.mxu1 %v16325_v41  ;;  %v15447_v41 = vcombine.high %v2108_v51, %v2112_v42  ;;  %v15446_v36 = vcombine.low %v2108_v51, %v2112_v42  ;;  %v2024_v27 = vld [vmem:[%s16552_s27 + $0x2e78] sm:$0xff] }
 0x6dd   : > { %v18597_v18 = vadd.f32 %v12126_v45, %v18555_v28  ;;  %v2040_v28 = vld [vmem:[%s16552_s27 + $0x2ef8] sm:$0xff]  ;;  %v15359_v23 = vcombine.high %v2020_v15, %v2024_v27  ;;  %v15358_v54 = vcombine.low %v2020_v15, %v2024_v27 }
 0x6de   : > { %v12128_v48 = vpop.f32.mrf.mxu1  ;;  %12396 = vmatpush2.bf16.msra.mxu0 %v15398_v31  ;;  %v15375_v46 = vcombine.high %v2036_v3, %v2040_v28  ;;  %v15374_v40 = vcombine.low %v2036_v3, %v2040_v28  ;;  %v2084_v6 = vld [vmem:[%s16552_s27 + $0x3058] sm:$0xff] }
 0x6df   : > { %12421 = vmatpush1.bf16.msra.mxu1 %v15462_v34  ;;  %12397 = vmatprep.subr.bf16.mxu0 %v15391_v57  ;;  %v2088_v16 = vld [vmem:[%s16552_s27 + $0x3078] sm:$0xff] }
 0x6e0   : > { %v12129_v44 = vpop.f32.mrf.mxu1  ;;  %12422 = vmatprep.subr.bf16.mxu1 %v15455_v53  ;;  %v15423_v7 = vcombine.high %v2084_v6, %v2088_v16  ;;  %v2012_v39 = vld [vmem:[%s16552_s27 + $0x2e18] sm:$0xff]  ;;  %v15422_v29 = vcombine.low %v2084_v6, %v2088_v16 }
 0x6e1   : > { %v2016_v26 = vld [vmem:[%s16552_s27 + $0x2e38] sm:$0xff] }
 0x6e2   : > { %12398 = vmatpush2.bf16.msra.mxu0 %v15390_v33  ;;  %v2076_v58 = vld [vmem:[%s16552_s27 + $0x3018] sm:$0xff]  ;;  %v15351_v25 = vcombine.high %v2012_v39, %v2016_v26  ;;  %v15350_v24 = vcombine.low %v2012_v39, %v2016_v26  ;;  %v12492_v39 = vrot.slane %v12484_v12, %v17912_v17 }
 0x6e3   : > { %12423 = vmatpush1.bf16.msra.mxu1 %v15454_v30  ;;  %12399 = vmatprep.subr.bf16.mxu0 %v15383_v4  ;;  %v2080_v56 = vld [vmem:[%s16552_s27 + $0x3038] sm:$0xff] }
 0x6e4   : > { %12424 = vmatprep.subr.bf16.mxu1 %v15447_v41  ;;  %v15415_v20 = vcombine.high %v2076_v58, %v2080_v56  ;;  %v15414_v35 = vcombine.low %v2076_v58, %v2080_v56  ;;  %v532_v58 = vld [vmem:[#allocation2 + $0x8] sm:$0xff] }
 0x6e6   : > { %12400 = vmatpush2.bf16.msra.mxu0 %v15382_v19 }
 0x6e7   : > { %12425 = vmatpush1.bf16.msra.mxu1 %v15446_v36  ;;  %12401 = vmatprep.subr.bf16.mxu0 %v15375_v46 }
 0x6e8   : > { %12426 = vmatprep.subr.bf16.mxu1 %v15439_v21 }
 0x6ea   : > { %12402 = vmatpush2.bf16.msra.mxu0 %v15374_v40 }
 0x6eb   : > { %12427 = vmatpush1.bf16.msra.mxu1 %v15438_v50  ;;  %12403 = vmatprep.subr.bf16.mxu0 %v15367_v14 }
 0x6ec   : > { %12428 = vmatprep.subr.bf16.mxu1 %v15431_v8 }
 0x6ee   : > { %12404 = vmatpush2.bf16.msra.mxu0 %v15366_v59 }
 0x6ef   : > { %12429 = vmatpush1.bf16.msra.mxu1 %v15430_v2  ;;  %12405 = vmatprep.subr.bf16.mxu0 %v15359_v23 }
 0x6f0   : > { %12430 = vmatprep.subr.bf16.mxu1 %v15423_v7 }
 0x6f2   : > { %12406 = vmatpush2.bf16.msra.mxu0 %v15358_v54 }
 0x6f3   : > { %12431 = vmatpush1.bf16.msra.mxu1 %v15422_v29  ;;  %12407 = vmatprep.subr.bf16.mxu0 %v15351_v25 }
 0x6f4   : > { %12432 = vmatprep.subr.bf16.mxu1 %v15415_v20 }
 0x6f6   : > { %12408 = vmatpush2.bf16.msra.mxu0 %v15350_v24 }
 0x6f7   : > { %12433 = vmatpush1.bf16.msra.mxu1 %v15414_v35 }
 0x6f9   : > { %v12165_v10 = vpop.f32.mrf.mxu0  ;;  %12410 = vmatmul.mubr.bf16.vlgmr.msra.gmra.mxu0 %v17147_v5 }
 0x6fa   : > { %v12166_v38 = vadd.f32 %v12165_v10, %v18591_v1  ;;  %12451 = vmatmul.mubr.bf16.vlgmr.msra.gmra.mxu1 %v17191_v11 }
 0x6fb   : > { %v12167_v32 = vpop.f32.mrf.mxu0 }
 0x6fc   : > { %v12168_v52 = vadd.f32 %v12167_v32, %v18597_v18 }
 0x6fd   : > { %v12169_v9 = vpop.f32.mrf.mxu0 }
 0x6ff   : > { %v12170_v22 = vpop.f32.mrf.mxu0 }
 0x71a   : > { %v12206_v31 = vpop.f32.mrf.mxu1 }
 0x71b   : > { %v12207_v34 = vadd.f32 %v12206_v31, %v12166_v38 }
 0x71c   : > { %v12208_v57 = vpop.f32.mrf.mxu1 }
 0x71d   : > { %v12209_v45 = vadd.f32 %v12208_v57, %v12168_v52 }
 0x71e   : > { %v12210_v53 = vpop.f32.mrf.mxu1 }
 0x720   : > { %v12211_v43 = vpop.f32.mrf.mxu1 }
 0x739   : > { %v12247_v55 = vpop.f32.mrf.mxu0 }
 0x73a   : > { %v12248_v51 = vadd.f32 %v12247_v55, %v12207_v34 }
 0x73b   : > { %v12249_v42 = vpop.f32.mrf.mxu0 }
 0x73c   : > { %v12250_v48 = vadd.f32 %v12249_v42, %v12209_v45 }
 0x73d   : > { %v12251_v5 = vpop.f32.mrf.mxu0 }
 0x73f   : > { %v12252_v33 = vpop.f32.mrf.mxu0 }
 0x75a   : > { %v12288_v1 = vpop.f32.mrf.mxu1 }
 0x75b   : > { %v12289_v30 = vadd.f32 %v12288_v1, %v12248_v51 }
 0x75c   : > { %v12290_v11 = vpop.f32.mrf.mxu1 }
 0x75d   : > { %v12291_v4 = vadd.f32 %v12290_v11, %v12250_v48 }
 0x75e   : > { %v12292_v44 = vpop.f32.mrf.mxu1 }
 0x760   : > { %v12293_v18 = vpop.f32.mrf.mxu1 }
 0x779   : > { %v12329_v41 = vpop.f32.mrf.mxu0 }
 0x77a   : > { %v12330_v21 = vadd.f32 %v12329_v41, %v12289_v30 }
 0x77b   : > { %v12331_v3 = vpop.f32.mrf.mxu0 }
 0x77c   : > { %v12332_v63 = vadd.f32 %v12331_v3, %v12291_v4 }
 0x77d   : > { %v12333_v28 = vpop.f32.mrf.mxu0 }
 0x77f   : > { %v12334_v37 = vpop.f32.mrf.mxu0 }
 0x79a   : > { %v12370_v60 = vpop.f32.mrf.mxu1 }
 0x79b   : > { %v12371_v49 = vadd.f32 %v12370_v60, %v12330_v21 }
 0x79c   : > { %v12372_v19 = vpop.f32.mrf.mxu1 }
 0x79d   : > { %v12373_v0 = vadd.f32 %v12372_v19, %v12332_v63 }
 0x79e   : > { %v12374_v36 = vpop.f32.mrf.mxu1 }
 0x7a0   : > { %v12375_v46 = vpop.f32.mrf.mxu1 }
 0x7b9   : > { %v12411_v62 = vpop.f32.mrf.mxu0 }
 0x7ba   : > { %v12412_v40 = vadd.f32 %v12411_v62, %v12371_v49  ;;  %v12452_v50 = vpop.f32.mrf.mxu1 }
 0x7bb   : > { %v12413_v14 = vpop.f32.mrf.mxu0 }
 0x7bc   : > { %v12414_v8 = vadd.f32 %v12413_v14, %v12373_v0  ;;  %v12454_v15 = vpop.f32.mrf.mxu1  ;;  %v12453_v6 = vadd.f32 %v12452_v50, %v12412_v40 }
 0x7bd   : > { %v12415_v27 = vpop.f32.mrf.mxu0 }
 0x7be   : > { %v12455_v16 = vadd.f32 %v12454_v15, %v12414_v8  ;;  %v12456_v59 = vpop.f32.mrf.mxu1 }
 0x7bf   : > { %v12416_v2 = vpop.f32.mrf.mxu0 }
 0x7c0   : > { %v12485_v23 = vcombine.low %v12453_v6, %v12455_v16  ;;  %v12457_v7 = vpop.f32.mrf.mxu1 }
 0x7c2   : > { %v12499_v26 = vrot.slane %v12485_v23, %v17912_v17 }
 0x7c4   : > { %v12500_v56 = vcombine.low %v12492_v39, %v12499_v26  ;;  %12510 = sbr.rel (%p15472_p13) target bundleno = 2721 (0xaa1), region = 96 }
 0x7c6   : > { %v12504_v54 = vadd.f32 %v12500_v56, %v532_v58 }
 0x7c8   : > { %12506 = vst [vmem:[#allocation2 + $0x8] sm:$0xff] %v12504_v54 }
 0x7c9   : > { %v15829_v29 = vld [vmem:[#allocation8 + $0x74] ss:$8 sps:$4 sm:$0xff]   ;;  %v15833_v20 = vld [vmem:[#allocation8 + $0x70] ss:$8 sps:$4 sm:$0xff]   ;;  %v15835_v35 = vld [vmem:[#allocation8 + $0x64] ss:$8 sps:$4 sm:$0xff]  }
 0x7ca   : > { %v15831_v25 = vld [vmem:[#allocation8 + $0x174] ss:$8 sps:$4 sm:$0xff]   ;;  %13347 = vmatprep.subr.bf16.mxu0 %v15829_v29  ;;  %v15834_v24 = vld [vmem:[#allocation8 + $0x170] ss:$8 sps:$4 sm:$0xff]   ;;  %v15837_v47 = vld [vmem:[#allocation8 + $0x164] ss:$8 sps:$4 sm:$0xff]  }
 0x7cb   : > { %13388 = vmatprep.subr.bf16.mxu1 %v15831_v25  ;;  %13348 = vmatpush1.bf16.msra.mxu0 %v15833_v20  ;;  %v15839_v61 = vld [vmem:[#allocation8 + $0x60] ss:$8 sps:$4 sm:$0xff]   ;;  %v15841_v10 = vld [vmem:[#allocation8 + $0x54] ss:$8 sps:$4 sm:$0xff]   ;;  %v15845_v32 = vld [vmem:[#allocation8 + $0x50] ss:$8 sps:$4 sm:$0xff]  }
 0x7cc   : > { %13389 = vmatpush1.bf16.msra.mxu1 %v15834_v24  ;;  %13349 = vmatprep.subr.bf16.mxu0 %v15835_v35  ;;  %v15840_v12 = vld [vmem:[#allocation8 + $0x160] ss:$8 sps:$4 sm:$0xff]   ;;  %v15843_v38 = vld [vmem:[#allocation8 + $0x154] ss:$8 sps:$4 sm:$0xff]   ;;  %v15846_v52 = vld [vmem:[#allocation8 + $0x150] ss:$8 sps:$4 sm:$0xff]  }
 0x7cd   : > { %13390 = vmatprep.subr.bf16.mxu1 %v15837_v47  ;;  %v15847_v9 = vld [vmem:[#allocation8 + $0x44] ss:$8 sps:$4 sm:$0xff]   ;;  %v15851_v31 = vld [vmem:[#allocation8 + $0x40] ss:$8 sps:$4 sm:$0xff]   ;;  %v15853_v57 = vld [vmem:[#allocation8 + $0x34] ss:$8 sps:$4 sm:$0xff]  }
 0x7ce   : > { %v15849_v22 = vld [vmem:[#allocation8 + $0x144] ss:$8 sps:$4 sm:$0xff]   ;;  %v15852_v34 = vld [vmem:[#allocation8 + $0x140] ss:$8 sps:$4 sm:$0xff]   ;;  %v15855_v45 = vld [vmem:[#allocation8 + $0x134] ss:$8 sps:$4 sm:$0xff]  }
 0x7cf   : > { %13350 = vmatpush1.bf16.msra.mxu0 %v15839_v61  ;;  %v15857_v53 = vld [vmem:[#allocation8 + $0x30] ss:$8 sps:$4 sm:$0xff]   ;;  %v15859_v55 = vld [vmem:[#allocation8 + $0x24] ss:$8 sps:$4 sm:$0xff]   ;;  %v15863_v42 = vld [vmem:[#allocation8 + $0x20] ss:$8 sps:$4 sm:$0xff]  }
 0x7d0   : > { %13391 = vmatpush1.bf16.msra.mxu1 %v15840_v12  ;;  %13351 = vmatprep.subr.bf16.mxu0 %v15841_v10  ;;  %v15858_v43 = vld [vmem:[#allocation8 + $0x130] ss:$8 sps:$4 sm:$0xff]   ;;  %v15861_v51 = vld [vmem:[#allocation8 + $0x124] ss:$8 sps:$4 sm:$0xff]   ;;  %v15864_v48 = vld [vmem:[#allocation8 + $0x120] ss:$8 sps:$4 sm:$0xff]  }
 0x7d1   : > { %13392 = vmatprep.subr.bf16.mxu1 %v15843_v38  ;;  %v15865_v5 = vld [vmem:[#allocation8 + $0x14] ss:$8 sps:$4 sm:$0xff]   ;;  %v15869_v1 = vld [vmem:[#allocation8 + $0x10] ss:$8 sps:$4 sm:$0xff]   ;;  %v15871_v11 = vld [vmem:[#allocation8 + $0x4] ss:$8 sps:$4 sm:$0xff]  }
 0x7d2   : > { %v15867_v33 = vld [vmem:[#allocation8 + $0x114] ss:$8 sps:$4 sm:$0xff]   ;;  %v15870_v30 = vld [vmem:[#allocation8 + $0x110] ss:$8 sps:$4 sm:$0xff]   ;;  %v15873_v4 = vld [vmem:[#allocation8 + $0x104] ss:$8 sps:$4 sm:$0xff]  }
 0x7d3   : > { %13352 = vmatpush1.bf16.msra.mxu0 %v15845_v32  ;;  %v15875_v44 = vld [vmem:[#allocation8] ss:$8 sps:$4 sm:$0xff]   ;;  %v15877_v41 = vld [vmem:[#allocation8 + $0xf4] ss:$8 sps:$4 sm:$0xff]   ;;  %v15881_v28 = vld [vmem:[#allocation8 + $0xf0] ss:$8 sps:$4 sm:$0xff]  }
 0x7d4   : > { %13393 = vmatpush1.bf16.msra.mxu1 %v15846_v52  ;;  %13353 = vmatprep.subr.bf16.mxu0 %v15847_v9  ;;  %v15876_v18 = vld [vmem:[#allocation8 + $0x100] ss:$8 sps:$4 sm:$0xff]   ;;  %v15879_v3 = vld [vmem:[#allocation8 + $0x1f4] ss:$8 sps:$4 sm:$0xff]   ;;  %v15882_v37 = vld [vmem:[#allocation8 + $0x1f0] ss:$8 sps:$4 sm:$0xff]  }
 0x7d5   : > { %13394 = vmatprep.subr.bf16.mxu1 %v15849_v22  ;;  %v15883_v60 = vld [vmem:[#allocation8 + $0xe4] ss:$8 sps:$4 sm:$0xff]   ;;  %v15887_v36 = vld [vmem:[#allocation8 + $0xe0] ss:$8 sps:$4 sm:$0xff]   ;;  %v15889_v21 = vld [vmem:[#allocation8 + $0xd4] ss:$8 sps:$4 sm:$0xff]  }
 0x7d6   : > { %v15885_v19 = vld [vmem:[#allocation8 + $0x1e4] ss:$8 sps:$4 sm:$0xff]   ;;  %v15888_v46 = vld [vmem:[#allocation8 + $0x1e0] ss:$8 sps:$4 sm:$0xff]   ;;  %v15891_v63 = vld [vmem:[#allocation8 + $0x1d4] ss:$8 sps:$4 sm:$0xff]  }
 0x7d7   : > { %13354 = vmatpush1.bf16.msra.mxu0 %v15851_v31  ;;  %v15893_v49 = vld [vmem:[#allocation8 + $0xd0] ss:$8 sps:$4 sm:$0xff]   ;;  %v15895_v0 = vld [vmem:[#allocation8 + $0xc4] ss:$8 sps:$4 sm:$0xff]   ;;  %v15899_v14 = vld [vmem:[#allocation8 + $0xc0] ss:$8 sps:$4 sm:$0xff]  }
 0x7d8   : > { %13395 = vmatpush1.bf16.msra.mxu1 %v15852_v34  ;;  %13355 = vmatprep.subr.bf16.mxu0 %v15853_v57  ;;  %v15894_v62 = vld [vmem:[#allocation8 + $0x1d0] ss:$8 sps:$4 sm:$0xff]   ;;  %v15897_v40 = vld [vmem:[#allocation8 + $0x1c4] ss:$8 sps:$4 sm:$0xff]   ;;  %v15900_v15 = vld [vmem:[#allocation8 + $0x1c0] ss:$8 sps:$4 sm:$0xff]  }
 0x7d9   : > { %13396 = vmatprep.subr.bf16.mxu1 %v15855_v45  ;;  %v12511_v50 = vld [vmem:[#allocation2] sm:$0xff]  ;;  %v15901_v27 = vld [vmem:[#allocation8 + $0xb4] ss:$8 sps:$4 sm:$0xff]   ;;  %v15905_v2 = vld [vmem:[#allocation8 + $0xb0] ss:$8 sps:$4 sm:$0xff]   ;;  %vm16328_vm0 = vmmov 0  }
 0x7da   : > { %v12513_v8 = vmax.f32 %v12511_v50, 0.0  ;;  %v15903_v6 = vld [vmem:[#allocation8 + $0x1b4] ss:$8 sps:$4 sm:$0xff]   ;;  %v15906_v39 = vld [vmem:[#allocation8 + $0x1b0] ss:$8 sps:$4 sm:$0xff]  }
 0x7db   : > { %13356 = vmatpush1.bf16.msra.mxu0 %v15857_v53  ;;  %v15907_v26 = vld [vmem:[#allocation8 + $0xa4] ss:$8 sps:$4 sm:$0xff]   ;;  %v15911_v29 = vld [vmem:[#allocation8 + $0xa0] ss:$8 sps:$4 sm:$0xff]   ;;  %v15913_v24 = vld [vmem:[#allocation8 + $0x94] ss:$8 sps:$4 sm:$0xff]  }
 0x7dc   : > { %13397 = vmatpush1.bf16.msra.mxu1 %v15858_v43  ;;  %13357 = vmatprep.subr.bf16.mxu0 %v15859_v55  ;;  %v12524_v16 = vrot.slane %v12513_v8, %v17912_v17  ;;  %v12517_v59 = vcombine.high %v12513_v8, %v12513_v8  ;;  %v15909_v58 = vld [vmem:[#allocation8 + $0x1a4] ss:$8 sps:$4 sm:$0xff]   ;;  %v15912_v20 = vld [vmem:[#allocation8 + $0x1a0] ss:$8 sps:$4 sm:$0xff]   ;;  %v15915_v35 = vld [vmem:[#allocation8 + $0x194] ss:$8 sps:$4 sm:$0xff]  }
 0x7dd   : > { %13398 = vmatprep.subr.bf16.mxu1 %v15861_v51  ;;  %v15917_v47 = vld [vmem:[#allocation8 + $0x90] ss:$8 sps:$4 sm:$0xff]   ;;  %v15919_v12 = vld [vmem:[#allocation8 + $0x84] ss:$8 sps:$4 sm:$0xff]   ;;  %v15923_v38 = vld [vmem:[#allocation8 + $0x80] ss:$8 sps:$4 sm:$0xff]  }
 0x7de   : > { %v12532_v23 = vcombine.high %v12524_v16, %v12524_v16  ;;  %v12531_v7 = vrot.slane %v12517_v59, %v17912_v17  ;;  %v15918_v61 = vld [vmem:[#allocation8 + $0x190] ss:$8 sps:$4 sm:$0xff]   ;;  %v15921_v10 = vld [vmem:[#allocation8 + $0x184] ss:$8 sps:$4 sm:$0xff]   ;;  %v15924_v32 = vld [vmem:[#allocation8 + $0x180] ss:$8 sps:$4 sm:$0xff]   ;;  %v12559_v22 = vpack.c.bf16 %v12524_v16, %v12524_v16 }
 0x7df   : > { %13358 = vmatpush1.bf16.msra.mxu0 %v15863_v42  ;;  %v15927_v52 = vld [vmem:[#allocation8 + $0x274] ss:$8 sps:$4 sm:$0xff]   ;;  %v15925_v34 = vld [vmem:[#allocation8 + $0x270] ss:$8 sps:$4 sm:$0xff]   ;;  %v15933_v45 = vld [vmem:[#allocation8 + $0x264] ss:$8 sps:$4 sm:$0xff]  }
 0x7e0   : > { %13399 = vmatpush1.bf16.msra.mxu1 %v15864_v48  ;;  %13359 = vmatprep.subr.bf16.mxu0 %v15865_v5  ;;  %v12560_v56 = vpack.c.bf16 %v12532_v23, %v12532_v23  ;;  %v12533_v54 = vcombine.high %v12531_v7, %v12531_v7  ;;  %v15930_v9 = vld [vmem:[#allocation8 + $0x374] ss:$8 sps:$4 sm:$0xff]   ;;  %v12561_v31 = vpack.c.bf16 %v12531_v7, %v12531_v7  ;;  %v15928_v57 = vld [vmem:[#allocation8 + $0x370] ss:$8 sps:$4 sm:$0xff]   ;;  %v15936_v53 = vld [vmem:[#allocation8 + $0x364] ss:$8 sps:$4 sm:$0xff]  }
 0x7e1   : > { %13400 = vmatprep.subr.bf16.mxu1 %v15867_v33  ;;  %v15931_v43 = vld [vmem:[#allocation8 + $0x260] ss:$8 sps:$4 sm:$0xff]   ;;  %v15939_v51 = vld [vmem:[#allocation8 + $0x254] ss:$8 sps:$4 sm:$0xff]   ;;  %v15937_v48 = vld [vmem:[#allocation8 + $0x250] ss:$8 sps:$4 sm:$0xff]  }
 0x7e2   : > { %13379 = vmatprep.mubr.bf16.mxu0 %v12560_v56  ;;  %v12562_v25 = vpack.c.bf16 %v12533_v54, %v12533_v54  ;;  %v15934_v55 = vld [vmem:[#allocation8 + $0x360] ss:$8 sps:$4 sm:$0xff]   ;;  %v15942_v42 = vld [vmem:[#allocation8 + $0x354] ss:$8 sps:$4 sm:$0xff]   ;;  %v15940_v5 = vld [vmem:[#allocation8 + $0x350] ss:$8 sps:$4 sm:$0xff]  }
 0x7e3   : > { %13360 = vmatpush1.bf16.msra.mxu0 %v15869_v1  ;;  %v15945_v33 = vld [vmem:[#allocation8 + $0x244] ss:$8 sps:$4 sm:$0xff]   ;;  %v15975_v59 = vld [vmem:[#allocation8 + $0x2f4] ss:$8 sps:$4 sm:$0xff]   ;;  %v15973_v7 = vld [vmem:[#allocation8 + $0x2f0] ss:$8 sps:$4 sm:$0xff]  }
 0x7e4   : > { %13401 = vmatpush1.bf16.msra.mxu1 %v15870_v30  ;;  %13361 = vmatprep.subr.bf16.mxu0 %v15871_v11  ;;  %v15948_v1 = vld [vmem:[#allocation8 + $0x344] ss:$8 sps:$4 sm:$0xff]   ;;  %v15943_v30 = vld [vmem:[#allocation8 + $0x240] ss:$8 sps:$4 sm:$0xff]   ;;  %v15987_v54 = vld [vmem:[#allocation8 + $0x2d4] ss:$8 sps:$4 sm:$0xff]  }
 0x7e5   : > { %13402 = vmatprep.subr.bf16.mxu1 %v15873_v4  ;;  %13420 = vmatprep.mubr.bf16.mxu1 %v12562_v25  ;;  %v15946_v11 = vld [vmem:[#allocation8 + $0x340] ss:$8 sps:$4 sm:$0xff]   ;;  %v15951_v4 = vld [vmem:[#allocation8 + $0x234] ss:$8 sps:$4 sm:$0xff]   ;;  %v15972_v50 = vld [vmem:[#allocation8 + $0x304] ss:$8 sps:$4 sm:$0xff]  }
 0x7e6   : > { %v15982_v56 = vld [vmem:[#allocation8 + $0x3e0] ss:$8 sps:$4 sm:$0xff]   ;;  %v15985_v25 = vld [vmem:[#allocation8 + $0x2d0] ss:$8 sps:$4 sm:$0xff]  }
 0x7e7   : > { %13362 = vmatpush1.bf16.msra.mxu0 %v15875_v44  ;;  %v15954_v44 = vld [vmem:[#allocation8 + $0x334] ss:$8 sps:$4 sm:$0xff]  }
 0x7e8   : > { %13403 = vmatpush1.bf16.msra.mxu1 %v15876_v18  ;;  %13363 = vmatprep.subr.bf16.mxu0 %v15877_v41  ;;  %v15949_v18 = vld [vmem:[#allocation8 + $0x230] ss:$8 sps:$4 sm:$0xff]  }
 0x7e9   : > { %13404 = vmatprep.subr.bf16.mxu1 %v15879_v3  ;;  %v15952_v41 = vld [vmem:[#allocation8 + $0x330] ss:$8 sps:$4 sm:$0xff]   ;;  %v15957_v3 = vld [vmem:[#allocation8 + $0x224] ss:$8 sps:$4 sm:$0xff]  }
 0x7eb   : > { %13364 = vmatpush2.bf16.msra.mxu0 %v15881_v28  ;;  %v15960_v28 = vld [vmem:[#allocation8 + $0x324] ss:$8 sps:$4 sm:$0xff]  }
 0x7ec   : > { %13405 = vmatpush2.bf16.msra.mxu1 %v15882_v37  ;;  %13365 = vmatprep.subr.bf16.mxu0 %v15883_v60  ;;  %v15955_v37 = vld [vmem:[#allocation8 + $0x220] ss:$8 sps:$4 sm:$0xff]  }
 0x7ed   : > { %13406 = vmatprep.subr.bf16.mxu1 %v15885_v19  ;;  %v15958_v60 = vld [vmem:[#allocation8 + $0x320] ss:$8 sps:$4 sm:$0xff]   ;;  %v15963_v19 = vld [vmem:[#allocation8 + $0x214] ss:$8 sps:$4 sm:$0xff]  }
 0x7ef   : > { %13366 = vmatpush2.bf16.msra.mxu0 %v15887_v36  ;;  %v15966_v36 = vld [vmem:[#allocation8 + $0x314] ss:$8 sps:$4 sm:$0xff]  }
 0x7f0   : > { %13407 = vmatpush2.bf16.msra.mxu1 %v15888_v46  ;;  %13367 = vmatprep.subr.bf16.mxu0 %v15889_v21  ;;  %v12512_v46 = vld [vmem:[#allocation2 + $0x8] sm:$0xff] }
 0x7f1   : > { %13408 = vmatprep.subr.bf16.mxu1 %v15891_v63  ;;  %v12514_v21 = vmax.f32 %v12512_v46, 0.0  ;;  %v15961_v63 = vld [vmem:[#allocation8 + $0x210] ss:$8 sps:$4 sm:$0xff]   ;;  %v13537_v46 = vld [vmem:[#allocation11 + $0xc0] sm:$0xff] }
 0x7f3   : > { %13368 = vmatpush2.bf16.msra.mxu0 %v15893_v49  ;;  %v15964_v49 = vld [vmem:[#allocation8 + $0x310] ss:$8 sps:$4 sm:$0xff]  }
 0x7f4   : > { %13409 = vmatpush2.bf16.msra.mxu1 %v15894_v62  ;;  %13369 = vmatprep.subr.bf16.mxu0 %v15895_v0  ;;  %v18630_v62 = vrot.slane %v12514_v21, %v17912_v17  ;;  %v12534_v0 = vcombine.high %v12514_v21, %v12514_v21  ;;  %v13521_v21 = vld [vmem:[#allocation11 + $0x40] sm:$0xff] }
 0x7f5   : > { %13410 = vmatprep.subr.bf16.mxu1 %v15897_v40  ;;  %v15969_v40 = vld [vmem:[#allocation8 + $0x204] ss:$8 sps:$4 sm:$0xff]  }
 0x7f6   : > { %v18635_v8 = vrot.slane %v12534_v0, %v17912_v17  ;;  %v15981_v17 = vld [vmem:[#allocation8 + $0x2e4] ss:$8 sps:$4 sm:$0xff]   ;;  %v13519_v0 = vld [vmem:[#allocation11 + $0x30] sm:$0xff] }
 0x7f7   : > { %13370 = vmatpush2.bf16.msra.mxu0 %v15899_v14  ;;  %v12549_v14 = vcombine.high %v18630_v62, %v18630_v62 }
 0x7f8   : > { %13411 = vmatpush2.bf16.msra.mxu1 %v15900_v15  ;;  %13371 = vmatprep.subr.bf16.mxu0 %v15901_v27  ;;  %v15967_v15 = vld [vmem:[#allocation8 + $0x200] ss:$8 sps:$4 sm:$0xff]   ;;  %v12550_v16 = vcombine.high %v18635_v8, %v18635_v8 }
 0x7f9   : > { %13412 = vmatprep.subr.bf16.mxu1 %v15903_v6  ;;  %v15970_v27 = vld [vmem:[#allocation8 + $0x300] ss:$8 sps:$4 sm:$0xff]   ;;  %v12564_v6 = vpack.c.bf16 %v12549_v14, %v12549_v14 }
 0x7fa   : > { %v12566_v23 = vpack.c.bf16 %v12550_v16, %v12550_v16  ;;  %v13533_v14 = vld [vmem:[#allocation11 + $0xa0] sm:$0xff]  ;;  %v13515_v16 = vld [vmem:[#allocation11 + $0x10] sm:$0xff] }
 0x7fb   : > { %13372 = vmatpush2.bf16.msra.mxu0 %v15905_v2  ;;  %v15978_v2 = vld [vmem:[#allocation8 + $0x3f4] ss:$8 sps:$4 sm:$0xff]  }
 0x7fc   : > { %13413 = vmatpush2.bf16.msra.mxu1 %v15906_v39  ;;  %13373 = vmatprep.subr.bf16.mxu0 %v15907_v26  ;;  %v15976_v39 = vld [vmem:[#allocation8 + $0x3f0] ss:$8 sps:$4 sm:$0xff]   ;;  %v15984_v26 = vld [vmem:[#allocation8 + $0x3e4] ss:$8 sps:$4 sm:$0xff]  }
 0x7fd   : > { %13414 = vmatprep.subr.bf16.mxu1 %v15909_v58  ;;  %v15979_v58 = vld [vmem:[#allocation8 + $0x2e0] ss:$8 sps:$4 sm:$0xff]  }
 0x7ff   : > { %13374 = vmatpush2.bf16.msra.mxu0 %v15911_v29  ;;  %v15990_v29 = vld [vmem:[#allocation8 + $0x3d4] ss:$8 sps:$4 sm:$0xff]  }
 0x800   : > { %13415 = vmatpush2.bf16.msra.mxu1 %v15912_v20  ;;  %13375 = vmatprep.subr.bf16.mxu0 %v15913_v24  ;;  %v15988_v20 = vld [vmem:[#allocation8 + $0x3d0] ss:$8 sps:$4 sm:$0xff]   ;;  %v15993_v24 = vld [vmem:[#allocation8 + $0x2c4] ss:$8 sps:$4 sm:$0xff]  }
 0x801   : > { %13416 = vmatprep.subr.bf16.mxu1 %v15915_v35  ;;  %v15996_v35 = vld [vmem:[#allocation8 + $0x3c4] ss:$8 sps:$4 sm:$0xff]  }
 0x803   : > { %13376 = vmatpush2.bf16.msra.mxu0 %v15917_v47  ;;  %v15991_v47 = vld [vmem:[#allocation8 + $0x2c0] ss:$8 sps:$4 sm:$0xff]  }
 0x804   : > { %13417 = vmatpush2.bf16.msra.mxu1 %v15918_v61  ;;  %13377 = vmatprep.subr.bf16.mxu0 %v15919_v12  ;;  %v15994_v61 = vld [vmem:[#allocation8 + $0x3c0] ss:$8 sps:$4 sm:$0xff]   ;;  %v15999_v12 = vld [vmem:[#allocation8 + $0x2b4] ss:$8 sps:$4 sm:$0xff]  }
 0x805   : > { %13418 = vmatprep.subr.bf16.mxu1 %v15921_v10  ;;  %v16002_v10 = vld [vmem:[#allocation8 + $0x3b4] ss:$8 sps:$4 sm:$0xff]  }
 0x807   : > { %13378 = vmatpush2.bf16.msra.mxu0 %v15923_v38  ;;  %v15997_v38 = vld [vmem:[#allocation8 + $0x2b0] ss:$8 sps:$4 sm:$0xff]  }
 0x808   : > { %13419 = vmatpush2.bf16.msra.mxu1 %v15924_v32  ;;  %13429 = vmatprep.subr.bf16.mxu0 %v15927_v52  ;;  %v16000_v32 = vld [vmem:[#allocation8 + $0x3b0] ss:$8 sps:$4 sm:$0xff]   ;;  %v16005_v52 = vld [vmem:[#allocation8 + $0x2a4] ss:$8 sps:$4 sm:$0xff]  }
 0x809   : > { %13470 = vmatprep.subr.bf16.mxu1 %v15930_v9  ;;  %v16008_v9 = vld [vmem:[#allocation8 + $0x3a4] ss:$8 sps:$4 sm:$0xff]  }
 0x80a   : > { %13380 = vmatmul.mubr.bf16.vlgmr.msra.gmra.mxu0 %v12559_v22  ;;  %v16003_v22 = vld [vmem:[#allocation8 + $0x2a0] ss:$8 sps:$4 sm:$0xff]  }
 0x80b   : > { %13421 = vmatmul.mubr.bf16.vlgmr.msra.gmra.mxu1 %v12561_v31  ;;  %13430 = vmatpush1.bf16.msra.mxu0 %v15925_v34  ;;  %v16006_v31 = vld [vmem:[#allocation8 + $0x3a0] ss:$8 sps:$4 sm:$0xff]   ;;  %v16011_v34 = vld [vmem:[#allocation8 + $0x294] ss:$8 sps:$4 sm:$0xff]  }
 0x80c   : > { %13471 = vmatpush1.bf16.msra.mxu1 %v15928_v57  ;;  %13431 = vmatprep.subr.bf16.mxu0 %v15933_v45  ;;  %v16014_v57 = vld [vmem:[#allocation8 + $0x394] ss:$8 sps:$4 sm:$0xff]   ;;  %v16009_v45 = vld [vmem:[#allocation8 + $0x290] ss:$8 sps:$4 sm:$0xff]  }
 0x80d   : > { %13472 = vmatprep.subr.bf16.mxu1 %v15936_v53  ;;  %13461 = vmatprep.mubr.bf16.mxu0 %v12564_v6  ;;  %v16012_v53 = vld [vmem:[#allocation8 + $0x390] ss:$8 sps:$4 sm:$0xff]  }
 0x80e   : > { %13502 = vmatprep.mubr.bf16.mxu1 %v12566_v23  ;;  %v13531_v6 = vld [vmem:[#allocation11 + $0x90] sm:$0xff]  ;;  %v13529_v23 = vld [vmem:[#allocation11 + $0x80] sm:$0xff] }
 0x80f   : > { %13432 = vmatpush1.bf16.msra.mxu0 %v15931_v43  ;;  %v16017_v43 = vld [vmem:[#allocation8 + $0x284] ss:$8 sps:$4 sm:$0xff]  }
 0x810   : > { %13473 = vmatpush1.bf16.msra.mxu1 %v15934_v55  ;;  %13433 = vmatprep.subr.bf16.mxu0 %v15939_v51  ;;  %v16020_v55 = vld [vmem:[#allocation8 + $0x384] ss:$8 sps:$4 sm:$0xff]   ;;  %v16015_v51 = vld [vmem:[#allocation8 + $0x280] ss:$8 sps:$4 sm:$0xff]  }
 0x811   : > { %13474 = vmatprep.subr.bf16.mxu1 %v15942_v42  ;;  %v16018_v42 = vld [vmem:[#allocation8 + $0x380] ss:$8 sps:$4 sm:$0xff]  }
 0x813   : > { %13434 = vmatpush1.bf16.msra.mxu0 %v15937_v48  ;;  %v12563_v48 = vpack.c.bf16 %v18630_v62, %v18630_v62  ;;  %v13535_v62 = vld [vmem:[#allocation11 + $0xb0] sm:$0xff] }
 0x814   : > { %13475 = vmatpush1.bf16.msra.mxu1 %v15940_v5  ;;  %13435 = vmatprep.subr.bf16.mxu0 %v15945_v33  ;;  %v12565_v5 = vpack.c.bf16 %v18635_v8, %v18635_v8  ;;  %v13544_v33 = vld [vmem:[#allocation11 + $0xf8] sm:$0xff]  ;;  %v13517_v8 = vld [vmem:[#allocation11 + $0x20] sm:$0xff] }
 0x815   : > { %13476 = vmatprep.subr.bf16.mxu1 %v15948_v1  ;;  %v13528_v1 = vld [vmem:[#allocation11 + $0x78] sm:$0xff] }
 0x817   : > { %13436 = vmatpush1.bf16.msra.mxu0 %v15943_v30  ;;  %v13543_v30 = vld [vmem:[#allocation11 + $0xf0] sm:$0xff] }
 0x818   : > { %13477 = vmatpush1.bf16.msra.mxu1 %v15946_v11  ;;  %13437 = vmatprep.subr.bf16.mxu0 %v15951_v4  ;;  %v13527_v11 = vld [vmem:[#allocation11 + $0x70] sm:$0xff]  ;;  %v13542_v4 = vld [vmem:[#allocation11 + $0xe8] sm:$0xff] }
 0x819   : > { %13478 = vmatprep.subr.bf16.mxu1 %v15954_v44  ;;  %v13526_v44 = vld [vmem:[#allocation11 + $0x68] sm:$0xff] }
 0x81b   : > { %13438 = vmatpush1.bf16.msra.mxu0 %v15949_v18  ;;  %v13541_v18 = vld [vmem:[#allocation11 + $0xe0] sm:$0xff] }
 0x81c   : > { %13479 = vmatpush1.bf16.msra.mxu1 %v15952_v41  ;;  %13439 = vmatprep.subr.bf16.mxu0 %v15957_v3  ;;  %v13525_v41 = vld [vmem:[#allocation11 + $0x60] sm:$0xff]  ;;  %v13540_v3 = vld [vmem:[#allocation11 + $0xd8] sm:$0xff] }
 0x81d   : > { %13480 = vmatprep.subr.bf16.mxu1 %v15960_v28  ;;  %v13524_v28 = vld [vmem:[#allocation11 + $0x58] sm:$0xff] }
 0x81f   : > { %13440 = vmatpush1.bf16.msra.mxu0 %v15955_v37  ;;  %v13539_v37 = vld [vmem:[#allocation11 + $0xd0] sm:$0xff] }
 0x820   : > { %13481 = vmatpush1.bf16.msra.mxu1 %v15958_v60  ;;  %13441 = vmatprep.subr.bf16.mxu0 %v15963_v19  ;;  %v13523_v60 = vld [vmem:[#allocation11 + $0x50] sm:$0xff]  ;;  %v13538_v19 = vld [vmem:[#allocation11 + $0xc8] sm:$0xff] }
 0x821   : > { %13482 = vmatprep.subr.bf16.mxu1 %v15966_v36  ;;  %v13522_v36 = vld [vmem:[#allocation11 + $0x48] sm:$0xff] }
 0x823   : > { %13442 = vmatpush1.bf16.msra.mxu0 %v15961_v63  ;;  %v13536_v63 = vld [vmem:[#allocation11 + $0xb8] sm:$0xff] }
 0x824   : > { %13483 = vmatpush1.bf16.msra.mxu1 %v15964_v49  ;;  %13443 = vmatprep.subr.bf16.mxu0 %v15969_v40  ;;  %v13520_v49 = vld [vmem:[#allocation11 + $0x38] sm:$0xff]  ;;  %v13534_v40 = vld [vmem:[#allocation11 + $0xa8] sm:$0xff] }
 0x825   : > { %13484 = vmatprep.subr.bf16.mxu1 %v15972_v50  ;;  %v13518_v50 = vld [vmem:[#allocation11 + $0x28] sm:$0xff] }
 0x827   : > { %13444 = vmatpush1.bf16.msra.mxu0 %v15967_v15  ;;  %v13532_v15 = vld [vmem:[#allocation11 + $0x98] sm:$0xff] }
 0x828   : > { %13485 = vmatpush1.bf16.msra.mxu1 %v15970_v27  ;;  %13445 = vmatprep.subr.bf16.mxu0 %v15975_v59  ;;  %v13516_v27 = vld [vmem:[#allocation11 + $0x18] sm:$0xff]  ;;  %v13530_v59 = vld [vmem:[#allocation11 + $0x88] sm:$0xff] }
 0x829   : > { %13486 = vmatprep.subr.bf16.mxu1 %v15978_v2  ;;  %v13514_v2 = vld [vmem:[#allocation11 + $0x8] sm:$0xff] }
 0x82b   : > { %13446 = vmatpush2.bf16.msra.mxu0 %v15973_v7  ;;  %v13513_v7 = vld [vmem:[#allocation11] sm:$0xff] }
 0x82c   : > { %13487 = vmatpush2.bf16.msra.mxu1 %v15976_v39  ;;  %13447 = vmatprep.subr.bf16.mxu0 %v15981_v17  ;;  %v13638_v39 = vld [vmem:[#allocation14 + $0x78] sm:$0xff]  ;;  %v16327_v17 = vmov 0.0  }
 0x82d   : > { %13488 = vmatprep.subr.bf16.mxu1 %v15984_v26  ;;  %v13637_v26 = vld [vmem:[#allocation14 + $0x70] sm:$0xff] }
 0x82f   : > { %13448 = vmatpush2.bf16.msra.mxu0 %v15979_v58  ;;  %v13636_v58 = vld [vmem:[#allocation14 + $0x68] sm:$0xff] }
 0x830   : > { %13489 = vmatpush2.bf16.msra.mxu1 %v15982_v56  ;;  %13449 = vmatprep.subr.bf16.mxu0 %v15987_v54  ;;  %v13635_v56 = vld [vmem:[#allocation14 + $0x60] sm:$0xff]  ;;  %v13634_v54 = vld [vmem:[#allocation14 + $0x58] sm:$0xff] }
 0x831   : > { %13490 = vmatprep.subr.bf16.mxu1 %v15990_v29  ;;  %v13633_v29 = vld [vmem:[#allocation14 + $0x50] sm:$0xff] }
 0x833   : > { %13450 = vmatpush2.bf16.msra.mxu0 %v15985_v25  ;;  %v13632_v25 = vld [vmem:[#allocation14 + $0x48] sm:$0xff] }
 0x834   : > { %13491 = vmatpush2.bf16.msra.mxu1 %v15988_v20  ;;  %13451 = vmatprep.subr.bf16.mxu0 %v15993_v24  ;;  %v13631_v20 = vld [vmem:[#allocation14 + $0x40] sm:$0xff]  ;;  %v13630_v24 = vld [vmem:[#allocation14 + $0x38] sm:$0xff] }
 0x835   : > { %13492 = vmatprep.subr.bf16.mxu1 %v15996_v35  ;;  %v13629_v35 = vld [vmem:[#allocation14 + $0x30] sm:$0xff] }
 0x837   : > { %13452 = vmatpush2.bf16.msra.mxu0 %v15991_v47  ;;  %v13628_v47 = vld [vmem:[#allocation14 + $0x28] sm:$0xff] }
 0x838   : > { %13493 = vmatpush2.bf16.msra.mxu1 %v15994_v61  ;;  %13453 = vmatprep.subr.bf16.mxu0 %v15999_v12 }
 0x839   : > { %13494 = vmatprep.subr.bf16.mxu1 %v16002_v10 }
 0x83b   : > { %13454 = vmatpush2.bf16.msra.mxu0 %v15997_v38 }
 0x83c   : > { %13495 = vmatpush2.bf16.msra.mxu1 %v16000_v32  ;;  %13455 = vmatprep.subr.bf16.mxu0 %v16005_v52 }
 0x83d   : > { %13496 = vmatprep.subr.bf16.mxu1 %v16008_v9 }
 0x83f   : > { %13456 = vmatpush2.bf16.msra.mxu0 %v16003_v22 }
 0x840   : > { %13497 = vmatpush2.bf16.msra.mxu1 %v16006_v31  ;;  %13457 = vmatprep.subr.bf16.mxu0 %v16011_v34  ;;  %v12699_v31 = vsub.s32 0, %v16604_v13  ;;  %v12695_v34 = vld [vmem:[#allocation9] sm:$0x3] }
 0x841   : > { %13498 = vmatprep.subr.bf16.mxu1 %v16014_v57  ;;  %v12703_v57 = vsub.s32 1, %v16604_v13 }
 0x843   : > { %13458 = vmatpush2.bf16.msra.mxu0 %v16009_v45  ;;  %v12700_v45 = vrot.slane %v12695_v34, %v12699_v31 }
 0x844   : > { %13499 = vmatpush2.bf16.msra.mxu1 %v16012_v53  ;;  %13459 = vmatprep.subr.bf16.mxu0 %v16017_v43  ;;  %v12704_v53 = vrot.slane %v12695_v34, %v12703_v57 }
 0x845   : > { %13500 = vmatprep.subr.bf16.mxu1 %v16020_v55 }
 0x847   : > { %13460 = vmatpush2.bf16.msra.mxu0 %v16015_v51 }
 0x848   : > { %13501 = vmatpush2.bf16.msra.mxu1 %v16018_v42  ;;  %15610 = vmatprep.subr.mxu0 %v13544_v33 }
 0x849   : > { %15662 = vmatprep.subr.mxu1 %v16327_v17 }
 0x84a   : > { %13462 = vmatmul.mubr.bf16.vlgmr.msra.gmra.mxu0 %v12563_v48 }
 0x84b   : > { %13503 = vmatmul.mubr.bf16.vlgmr.msra.gmra.mxu1 %v12565_v5  ;;  %15611 = vmatpush3.msra.mxu0 %v13528_v1 }
 0x84c   : > { %15612 = vmatprep.subr.mxu0 %v13543_v30  ;;  %15663 = vmatpush3.msra.mxu1 %v13638_v39 }
 0x84d   : > { %15613 = vmatpush3.msra.mxu0 %v13527_v11  ;;  %15664 = vmatprep.subr.mxu1 %v16327_v17 }
 0x84e   : > { %15614 = vmatprep.subr.mxu0 %v13542_v4  ;;  %15665 = vmatpush3.msra.mxu1 %v13637_v26 }
 0x84f   : > { %15615 = vmatpush3.msra.mxu0 %v13526_v44  ;;  %15666 = vmatprep.subr.mxu1 %v16327_v17 }
 0x850   : > { %15616 = vmatprep.subr.mxu0 %v13541_v18  ;;  %15667 = vmatpush3.msra.mxu1 %v13636_v58 }
 0x851   : > { %15617 = vmatpush3.msra.mxu0 %v13525_v41  ;;  %15668 = vmatprep.subr.mxu1 %v16327_v17 }
 0x852   : > { %15618 = vmatprep.subr.mxu0 %v13540_v3  ;;  %15669 = vmatpush3.msra.mxu1 %v13635_v56 }
 0x853   : > { %15619 = vmatpush3.msra.mxu0 %v13524_v28  ;;  %15670 = vmatprep.subr.mxu1 %v16327_v17 }
 0x854   : > { %15620 = vmatprep.subr.mxu0 %v13539_v37  ;;  %15671 = vmatpush3.msra.mxu1 %v13634_v54 }
 0x855   : > { %15621 = vmatpush3.msra.mxu0 %v13523_v60  ;;  %15672 = vmatprep.subr.mxu1 %v16327_v17  ;;  %v13627_v60 = vld [vmem:[#allocation14 + $0x20] sm:$0xff] }
 0x856   : > { %15622 = vmatprep.subr.mxu0 %v13538_v19  ;;  %15673 = vmatpush3.msra.mxu1 %v13633_v29  ;;  %v13626_v19 = vld [vmem:[#allocation14 + $0x18] sm:$0xff] }
 0x857   : > { %15623 = vmatpush3.msra.mxu0 %v13522_v36  ;;  %15674 = vmatprep.subr.mxu1 %v16327_v17  ;;  %v13625_v36 = vld [vmem:[#allocation14 + $0x10] sm:$0xff] }
 0x858   : > { %15624 = vmatprep.subr.mxu0 %v13537_v46  ;;  %15675 = vmatpush3.msra.mxu1 %v13632_v25  ;;  %v13624_v46 = vld [vmem:[#allocation14 + $0x8] sm:$0xff] }
 0x859   : > { %15625 = vmatpush3.msra.mxu0 %v13521_v21  ;;  %15676 = vmatprep.subr.mxu1 %v16327_v17  ;;  %v13623_v21 = vld [vmem:[#allocation14] sm:$0xff] }
 0x85a   : > { %15626 = vmatprep.subr.mxu0 %v13536_v63  ;;  %15677 = vmatpush3.msra.mxu1 %v13631_v20 }
 0x85b   : > { %15627 = vmatpush3.msra.mxu0 %v13520_v49  ;;  %15678 = vmatprep.subr.mxu1 %v16327_v17  ;;  %v15601_v49 = vld [vmem:[#allocation12] ss:$0 sm:$0xff] }
 0x85c   : > { %15628 = vmatprep.subr.mxu0 %v13535_v62  ;;  %15679 = vmatpush3.msra.mxu1 %v13630_v24 }
 0x85d   : > { %15629 = vmatpush3.msra.mxu0 %v13519_v0  ;;  %15680 = vmatprep.subr.mxu1 %v16327_v17 }
 0x85e   : > { %15630 = vmatprep.subr.mxu0 %v13534_v40  ;;  %15681 = vmatpush3.msra.mxu1 %v13629_v35 }
 0x85f   : > { %15631 = vmatpush3.msra.mxu0 %v13518_v50  ;;  %15682 = vmatprep.subr.mxu1 %v16327_v17 }
 0x860   : > { %15632 = vmatprep.subr.mxu0 %v13533_v14  ;;  %15683 = vmatpush3.msra.mxu1 %v13628_v47  ;;  %v15602_v14 = vld [vmem:[#allocation15] ss:$0 sm:$0xff] }
 0x861   : > { %15633 = vmatpush3.msra.mxu0 %v13517_v8  ;;  %15684 = vmatprep.subr.mxu1 %v16327_v17 }
 0x862   : > { %15634 = vmatprep.subr.mxu0 %v13532_v15  ;;  %15685 = vmatpush3.msra.mxu1 %v13627_v60 }
 0x863   : > { %15635 = vmatpush3.msra.mxu0 %v13516_v27  ;;  %15686 = vmatprep.subr.mxu1 %v16327_v17 }
 0x864   : > { %15636 = vmatprep.subr.mxu0 %v13531_v6  ;;  %15687 = vmatpush3.msra.mxu1 %v13626_v19 }
 0x865   : > { %15637 = vmatpush3.msra.mxu0 %v13515_v16  ;;  %15688 = vmatprep.subr.mxu1 %v16327_v17 }
 0x866   : > { %15638 = vmatprep.subr.mxu0 %v13530_v59  ;;  %15689 = vmatpush3.msra.mxu1 %v13625_v36 }
 0x867   : > { %15639 = vmatpush3.msra.mxu0 %v13514_v2  ;;  %15690 = vmatprep.subr.mxu1 %v16327_v17 }
 0x868   : > { %15640 = vmatprep.subr.mxu0 %v13529_v23  ;;  %15691 = vmatpush3.msra.mxu1 %v13624_v46 }
 0x869   : > { %15641 = vmatpush3.msra.mxu0 %v13513_v7  ;;  %15692 = vmatprep.subr.mxu1 %v16327_v17 }
 0x86a   : > { %15693 = vmatpush3.msra.mxu1 %v13623_v21  ;;  %15694 = vmatprep.mubr.msk.f32.mxu1 %vm16328_vm0, %v16327_v17 }
 0x8ca   : > { %v13381_v61 = vpop.f32.mrf.mxu0 }
 0x8cb   : > { %v13422_v12 = vpop.f32.mrf.mxu1  ;;  %v13382_v43 = vadd.f32 %v13381_v61, %v12700_v45 }
 0x8cc   : > { %v13383_v10 = vpop.f32.mrf.mxu0 }
 0x8cd   : > { %v13424_v38 = vpop.f32.mrf.mxu1  ;;  %v13384_v55 = vadd.f32 %v13383_v10, %v12704_v53  ;;  %v13423_v51 = vadd.f32 %v13422_v12, %v13382_v43 }
 0x8ce   : > { %v13385_v32 = vpop.f32.mrf.mxu0 }
 0x8cf   : > { %v13426_v52 = vpop.f32.mrf.mxu1  ;;  %v13425_v5 = vadd.f32 %v13424_v38, %v13384_v55 }
 0x8d0   : > { %v13386_v9 = vpop.f32.mrf.mxu0 }
 0x8d1   : > { %v13427_v22 = vpop.f32.mrf.mxu1 }
 0x90a   : > { %v13463_v42 = vpop.f32.mrf.mxu0 }
 0x90b   : > { %v13504_v48 = vpop.f32.mrf.mxu1  ;;  %v13464_v33 = vadd.f32 %v13463_v42, %v13423_v51 }
 0x90c   : > { %v13465_v1 = vpop.f32.mrf.mxu0 }
 0x90d   : > { %v13506_v30 = vpop.f32.mrf.mxu1  ;;  %v13466_v11 = vadd.f32 %v13465_v1, %v13425_v5  ;;  %v13505_v4 = vadd.f32 %v13504_v48, %v13464_v33 }
 0x90e   : > { %v13467_v44 = vpop.f32.mrf.mxu0 }
 0x90f   : > { %v13508_v18 = vpop.f32.mrf.mxu1  ;;  %v13507_v41 = vadd.f32 %v13506_v30, %v13466_v11  ;;  %v13511_v13 = vmax.f32 %v13505_v4, 0.0 }
 0x910   : > { %v13468_v3 = vpop.f32.mrf.mxu0 }
 0x911   : > { %v13509_v28 = vpop.f32.mrf.mxu1  ;;  %v13512_v37 = vmax.f32 %v13507_v41, 0.0 }
 0x913   : > { %13616 = vmatprep.mubr.f32.mxu0 %v13512_v37 }
 0x914   : > { %13617 = vmatmul.mubr.f32.vlgmr.msra.gmra.mxu0 %v13511_v13 }
 0x9d4   : > { %v15642_v63 = vpop.f32.mrf.mxu0 }
 0x9d6   : > { %v15643_v62 = vpop.f32.mrf.mxu0 }
 0x9d7   : > { %v15644_v0 = vadd.f32 %v15643_v62, %v15642_v63 }
 0x9d9   : > { %v13619_v40 = vadd.f32 %v15644_v0, %v15601_v49 }
 0x9db   : > { %v13622_v50 = vmax.f32 %v13619_v40, 0.0 }
 0x9dd   : > { %15695 = vmatmul.mubr.f32.vlgmr.msra.gmra.mxu1 %v13622_v50 }
 0xa9d   : > { %v13712_v8 = vpop.f32.mrf.mxu1 }
 0xa9e   : > { %v13713_v15 = vadd.f32 %v15602_v14, %v13712_v8 }
 0xa9f   : > { %v15696_v27 = vpop.f32.mrf.mxu1 }
 0xaa0   : > { %13716 = vst [vmem:[#allocation17] sm:$0x3] %v13713_v15 }
 0xaa1 PF: > { %p15774_p2 = scmp.eq.s32.totalorder %s16401_s15, 1  ;;  %s16329_s13 = smov [#allocation17]  }
 0xaa2   : > { %s13724_s17 = sshll.u32 %s16329_s13, 4  ;;  %s13725_s17 = int_to_ptr.vmem [resolvable:$true] %s13724_s17 }
 0xaa3   : > { %s16231_s19 = scalar_lea.vmem %s13725_s17, 32  ;;  %p16238_p6 = scmp.lt.s32.totalorder %s13725_s17, %s13725_s17 }
 0xaa4   : > { %p16232_p0 = scmp.ne.s32.totalorder %s13725_s17, %s16231_s19  ;;  %p16239_p8 = scmp.lt.s32.totalorder %s16231_s19, %s16231_s19 }
 0xaa6   : > { %p16233_p5 = pnand %p16232_p0, %p15774_p2  ;;  %p16240_p7 = por %p16239_p8, %p16238_p6 }
 0xaa8   : > { %p16234_p3 = pneg %p16233_p5 }
 0xaaa   : > { %p16241_p9 = pnand %p16240_p7, %p16234_p3 }
 0xaac   : > { %16244 = shalt.err (!%p16241_p9)
}
 0xaad   : > { %15730 = dma.vmem_to_hbm [thread:$0]  (%p15774_p2), %s13725_s17, 32, %s18696_s9, [#allocation5]  }
 0xaae   : > { %16292 = dma.done.wait (%p15774_p2), [#allocation5], 32  }
 0xaaf   : > { %16294 = vsyncadd (%p15774_p2), [#allocation5], 4294967264 }
 0xab0 PF: > { %p24_p10 = scmp.ge.s32.totalorder %s16495_s24, 4   ;;  %s18717_s30 = smov %s16301_s10 }
 0xab1   : > { %s18718_s10 = smov %s16305_s11  ;;  %s18719_s11 = smov %s16506_s26 }
 0xab2   : > { %s18720_s12 = smov %s16495_s24  ;;  %26 = sbr.rel (!%p24_p10) target bundleno = 8 (0x8), region = 132 }
 0xab7   :  { %13737 = vsyncpa [#allocation4], 1 }
 0xab8   :  { %13739 = vsyncpa [#allocation4 + $0x1], 1 }
 0xab9   :  { %13740 = vsyncpa [#allocation7], 1 }
 0xaba   :  { %13741 = vsyncpa [#allocation10], 1 }
 0xabb   :  { %13742 = vsyncpa [#allocation13], 1 }
 0xabc   :  { %13743 = vsyncpa [#allocation16], 1 }
 0xabd   :  { %13744 = vsyncpa [#allocation5], 1 }
 0xabe   :  { %13746 = vsyncpa [#allocation5 + $0x1], 1 }

</bundles_post_ra>
